<compile_context>
chip_gen: v7x
topology: tpu7x:2x2x1
jax: 0.10.0
libtpu: 0.0.40
codegen_flags: <defaults>
</compile_context>

<pallas_src>
import functools
import math

import jax
import jax.numpy as jnp
from jax.experimental import pallas as pl
from jax.experimental.pallas import tpu as pltpu


def _round_up(n, m):
    return ((n + m - 1) // m) * m


# ----------------------------------------------------------------------------
# Fused nearest-2x upsample + 3x3 conv (padding=1) + bias, as 4 parity-phase
# 2x2 convs on the low-res input, channel reduction on the MXU.
# ----------------------------------------------------------------------------

def _fused_upsample_conv_kernel(x_ref, w_ref, b_ref, o_ref, *, th, w_lo, cin, cout):
    """One grid step = (sample n, cout tile, low-res row tile).

    x_ref : (1, H+2, W+2, cin)   padded low-res sample, NHWC, VMEM-resident
    w_ref : (16, cin, cout)      phase-summed 2x2 tap weights, VMEM-resident
    b_ref : (1, cout)            bias
    o_ref : (1, 4, th, w_lo, cout)   4 = output parity phase (2*py + px)
    """
    r0 = pl.program_id(2) * th            # first low-res row of this tile
    bias = b_ref[...]                      # (1, cout), broadcasts over rows

    for py in range(2):
        for px in range(2):
            acc = jnp.zeros((th * w_lo, cout), jnp.float32)
            for a in range(2):
                for bb in range(2):
                    # 2x2 tap window on the (1-ring padded) low-res input.
                    win = x_ref[0, pl.ds(r0 + py + a, th), pl.ds(px + bb, w_lo), :]
                    win = win.reshape(th * w_lo, cin).astype(jnp.float32)
                    tap = w_ref[4 * (2 * py + px) + 2 * a + bb]        # (cin, cout)
                    acc = acc + jnp.dot(win, tap,
                                        preferred_element_type=jnp.float32,
                                        precision=jax.lax.Precision.HIGHEST)
            acc = acc + bias
            # Channels-last store (lane-dense once cout is a multiple of 128).
            o_ref[0, 2 * py + px] = acc.reshape(th, w_lo, cout).astype(o_ref.dtype)


def upsample_conv2x(x, w, b):
    n, cin, h, wd = x.shape
    cout = w.shape[0]
    assert w.shape == (cout, cin, 3, 3)
    # TODO(synk): general (non multiple-of-8) spatial sizes need masked windows.
    assert h % 8 == 0 and wd % 8 == 0
    dtype = x.dtype

    cin_p = _round_up(max(cin, 8), 8)
    cout_p = _round_up(max(cout, 8), 8)
    if cout_p > 128:
        cout_p = _round_up(cout, 128)
    tco = min(cout_p, 128)                 # cout tile
    th = 8 if h % 8 == 0 else h            # low-res row tile (-> 2*th out rows)

    # Low-res NHWC input with the conv's 1-pixel ring folded to low resolution
    # (single wrapper pass; NHWC is required for the channels-last MXU tiles).
    xp = jnp.pad(x, ((0, 0), (0, cin_p - cin), (1, 1), (1, 1)))
    xp = jnp.transpose(xp, (0, 2, 3, 1))                    # (N, H+2, W+2, cin_p)

    # Phase-summed 2x2 weights.  S[py, a, di] selects which 3x3 rows collapse
    # onto low-res row offset a for output parity py (same matrix for columns).
    S = jnp.array([[[1., 0., 0.], [0., 1., 1.]],
                   [[1., 1., 0.], [0., 0., 1.]]], dtype=jnp.float32)
    w2 = jnp.einsum('pad,qbe,oide->pqabio', S, S, w.astype(jnp.float32))
    w2 = jnp.pad(w2, ((0, 0),) * 4 + ((0, cin_p - cin), (0, cout_p - cout)))
    w2 = w2.reshape(16, cin_p, cout_p)                      # (phase*tap, cin, cout)
    b_p = jnp.pad(b.astype(jnp.float32), (0, cout_p - cout)).reshape(1, cout_p)

    grid = (n, cout_p // tco, h // th)
    kernel = functools.partial(_fused_upsample_conv_kernel,
                               th=th, w_lo=wd, cin=cin_p, cout=tco)

    y = pl.pallas_call(
        kernel,
        out_shape=jax.ShapeDtypeStruct((n, 4, h, wd, cout_p), dtype),
        grid_spec=pltpu.PrefetchScalarGridSpec(
            num_scalar_prefetch=0,
            grid=grid,
            in_specs=[
                # Whole padded low-res sample: index ignores (co, h) tiles so it
                # stays resident in VMEM across them (no re-DMA).
                pl.BlockSpec((1, h + 2, wd + 2, cin_p), lambda i, j, k: (i, 0, 0, 0)),
                # Weights / bias: VMEM, per-cout-tile, resident across h tiles.
                pl.BlockSpec((16, cin_p, tco), lambda i, j, k: (0, 0, j)),
                pl.BlockSpec((1, tco), lambda i, j, k: (0, j)),
            ],
            out_specs=pl.BlockSpec((1, 4, th, wd, tco),
                                   lambda i, j, k: (i, 0, k, 0, j))),
        compiler_params=pltpu.CompilerParams(
            dimension_semantics=("parallel", "parallel", "parallel"),
            vmem_limit_bytes=32 * 1024 * 1024),
    )(xp, w2, b_p)

    # Untangle parity phases and return PyTorch's NCHW layout (single wrapper
    # transpose; layout plumbing, needed anyway for the NCHW API).
    y = y.reshape(n, 2, 2, h, wd, cout_p)
    y = jnp.transpose(y, (0, 5, 3, 1, 4, 2)).reshape(n, cout_p, 2 * h, 2 * wd)
    return y[:, :cout]


# ----------------------------------------------------------------------------
# Pure nearest-2x upsample (use_conv=False): memory-bound, native-dtype I/O.
# ----------------------------------------------------------------------------

def _upsample2x_kernel(x_ref, rrow_ref, rcol_ref, o_ref, *, tc, h, w):
    """x_ref (1, tc, h, w) -> o_ref (1, tc, 2h, 2w) via exact 0/1 matmuls."""
    rep_rows = rrow_ref[...]                                   # (2h, h)
    rep_cols = rcol_ref[...]                                   # (w, 2w)
    xb = x_ref[0].astype(jnp.float32)                          # (tc, h, w)
    # Column duplication batched across every channel of the block (one matmul).
    xw = jnp.dot(xb.reshape(tc * h, w), rep_cols,
                 preferred_element_type=jnp.float32,
                 precision=jax.lax.Precision.HIGHEST).reshape(tc, h, 2 * w)
    # Row duplication per channel (sublane axis).
    for c in range(tc):
        o_ref[0, c] = jnp.dot(rep_rows, xw[c],
                              preferred_element_type=jnp.float32,
                              precision=jax.lax.Precision.HIGHEST
                              ).astype(o_ref.dtype)


def upsample_nearest2x(x):
    n, c, h, w = x.shape
    assert h % 8 == 0 and w % 8 == 0
    tc = c if c <= 8 else 8
    assert c % tc == 0

    # 0/1 duplication matrices, built once in the wrapper and kept VMEM-resident
    # (constant index_map) instead of being re-derived from iotas every step.
    rows = (jnp.arange(2 * h)[:, None] // 2 == jnp.arange(h)[None, :]
            ).astype(jnp.float32)                              # (2h, h)
    cols = (jnp.arange(w)[:, None] == jnp.arange(2 * w)[None, :] // 2
            ).astype(jnp.float32)                              # (w, 2w)

    kernel = functools.partial(_upsample2x_kernel, tc=tc, h=h, w=w)
    return pl.pallas_call(
        kernel,
        out_shape=jax.ShapeDtypeStruct((n, c, 2 * h, 2 * w), x.dtype),
        grid_spec=pltpu.PrefetchScalarGridSpec(
            num_scalar_prefetch=0,
            grid=(n, c // tc),
            in_specs=[
                pl.BlockSpec((1, tc, h, w), lambda i, j: (i, j, 0, 0)),
                pl.BlockSpec((2 * h, h), lambda i, j: (0, 0)),
                pl.BlockSpec((w, 2 * w), lambda i, j: (0, 0)),
            ],
            out_specs=pl.BlockSpec((1, tc, 2 * h, 2 * w), lambda i, j: (i, j, 0, 0))),
        compiler_params=pltpu.CompilerParams(
            dimension_semantics=("parallel", "parallel"),
            vmem_limit_bytes=32 * 1024 * 1024),
    )(x, rows, cols)


# ----------------------------------------------------------------------------
# Module-level wrapper mirroring the PyTorch `Upsample` class
# ----------------------------------------------------------------------------

class Upsample:
    """Pallas-TPU port of guided_diffusion `Upsample` (nearest 2x, dims=2)."""

    def __init__(self, channels, use_conv, dims=2, out_channels=None, *, key=None):
        # TODO(synk): dims in (1, 3) nearest-upsample paths not implemented;
        # the UNet path exercised here is dims=2.
        assert dims == 2
        self.channels = channels
        self.out_channels = out_channels or channels
        self.use_conv = use_conv
        self.dims = dims
        if use_conv:
            assert key is not None
            kw, kb = jax.random.split(key)
            fan_in = channels * 3 * 3
            bound = 1.0 / math.sqrt(fan_in)      # PyTorch Conv2d default init
            self.conv_w = jax.random.uniform(
                kw, (self.out_channels, channels, 3, 3), jnp.float32, -bound, bound)
            self.conv_b = jax.random.uniform(
                kb, (self.out_channels,), jnp.float32, -bound, bound)

    def __call__(self, x):
        assert x.shape[1] == self.channels
        if self.use_conv:
            return upsample_conv2x(x, self.conv_w, self.conv_b)
        return upsample_nearest2x(x)


# ----------------------------------------------------------------------------
# Plain-JAX reference of the PyTorch forward (correctness checks only)
# ----------------------------------------------------------------------------

def _reference_upsample_conv(x, w, b):
    u = jnp.repeat(jnp.repeat(x, 2, axis=2), 2, axis=3)
    up = jnp.pad(u, ((0, 0), (0, 0), (1, 1), (1, 1)))
    n, cin, hh, ww = u.shape
    cout = w.shape[0]
    out = jnp.zeros((n, cout, hh, ww), jnp.float32) + b[None, :, None, None]
    for di in range(3):
        for dj in range(3):
            win = up[:, :, di:di + hh, dj:dj + ww]
            out = out + jnp.einsum('ncij,oc->noij', win, w[:, :, di, dj],
                                   precision=jax.lax.Precision.HIGHEST)
    return out


# ----------------------------------------------------------------------------
# Main
# ----------------------------------------------------------------------------

if __name__ == "__main__":
    key = jax.random.PRNGKey(0)
    kx, km = jax.random.split(key)

    N, C, H, W = 2, 4, 16, 16
    x = jax.random.normal(kx, (N, C, H, W), dtype=jnp.float32)

    # use_conv=True path (fused upsample + parity-phase conv + bias)
    up_conv = Upsample(channels=C, use_conv=True, dims=2, key=km)
    y = up_conv(x)
    jax.block_until_ready(y)
    assert y.shape == (N, C, 2 * H, 2 * W)

    # use_conv=False path (pure nearest-2x upsample)
    up_plain = Upsample(channels=C, use_conv=False, dims=2)
    y0 = up_plain(x)
    jax.block_until_ready(y0)
    assert y0.shape == (N, C, 2 * H, 2 * W)

    # Correctness vs the PyTorch-equivalent references.
    ref0 = jnp.repeat(jnp.repeat(x, 2, axis=2), 2, axis=3)
    assert bool(jnp.allclose(y0, ref0, rtol=1e-5, atol=1e-5))

    ref = _reference_upsample_conv(x, up_conv.conv_w, up_conv.conv_b)
    assert bool(jnp.allclose(y, ref, rtol=1e-4, atol=1e-4))
    assert bool(jnp.all(jnp.isfinite(y)))

    print("KERNEL_OK")
</pallas_src>

<mosaic_0001>
module attributes {stable_mosaic.version = 11 : i64} {
  func.func @_fused_upsample_conv_kernel(%arg0: i32, %arg1: i32, %arg2: i32, %arg3: memref<1x18x18x8xf32, #tpu.memory_space<vmem>>, %arg4: memref<16x8x8xf32, #tpu.memory_space<vmem>>, %arg5: memref<1x8xf32, #tpu.memory_space<vmem>>, %arg6: memref<1x4x8x16x8xf32, #tpu.memory_space<vmem>>) attributes {dimension_semantics = [#tpu.dimension_semantics<parallel>, #tpu.dimension_semantics<parallel>, #tpu.dimension_semantics<parallel>], iteration_bounds = array<i64: 2, 1, 2>, scalar_prefetch = 0 : i64, scratch_operands = 0 : i64, tpu.core_type = #tpu.core_type<tc>, window_params = [{transform_indices = @transform_0, window_bounds = array<i64: 1, 18, 18, 8>}, {transform_indices = @transform_1, window_bounds = array<i64: 16, 8, 8>}, {transform_indices = @transform_2, window_bounds = array<i64: 1, 8>}, {transform_indices = @transform_3, window_bounds = array<i64: 1, 4, 8, 16, 8>}]} {
    %c8_i32 = arith.constant 8 : i32
    %0 = arith.muli %arg2, %c8_i32 : i32
    %c0 = arith.constant 0 : index
    %c0_0 = arith.constant 0 : index
    %1 = vector.load %arg5[%c0, %c0_0] : memref<1x8xf32, #tpu.memory_space<vmem>>, vector<1x8xf32>
    %cst = arith.constant 0.000000e+00 : f32
    %2 = vector.broadcast %cst : f32 to vector<128x8xf32>
    %c0_i32 = arith.constant 0 : i32
    %3 = arith.addi %0, %c0_i32 : i32
    %c0_i32_1 = arith.constant 0 : i32
    %4 = arith.addi %3, %c0_i32_1 : i32
    %c0_2 = arith.constant 0 : index
    %5 = arith.index_cast %4 : i32 to index
    %c0_3 = arith.constant 0 : index
    %c0_4 = arith.constant 0 : index
    %6 = vector.load %arg3[%c0_2, %5, %c0_3, %c0_4] : memref<1x18x18x8xf32, #tpu.memory_space<vmem>>, vector<1x8x16x8xf32>
    %7 = vector.shape_cast %6 : vector<1x8x16x8xf32> to vector<8x16x8xf32>
    %8 = vector.shape_cast %7 : vector<8x16x8xf32> to vector<128x8xf32>
    %c0_5 = arith.constant 0 : index
    %c0_6 = arith.constant 0 : index
    %c0_7 = arith.constant 0 : index
    %9 = vector.load %arg4[%c0_5, %c0_6, %c0_7] : memref<16x8x8xf32, #tpu.memory_space<vmem>>, vector<1x8x8xf32>
    %10 = vector.shape_cast %9 : vector<1x8x8xf32> to vector<8x8xf32>
    %cst_8 = arith.constant dense<0.000000e+00> : vector<128x8xf32>
    %11 = tpu.matmul %8, %10, %cst_8 {dimension_numbers = #tpu.dot_dimension_numbers<[1], [0], [0], [1], [0, 0, 1, 1], [], []>, precision = #tpu.contract_precision<fp32>} : vector<128x8xf32>, vector<8x8xf32>, vector<128x8xf32> -> vector<128x8xf32>
    %12 = arith.addf %2, %11 : vector<128x8xf32>
    %c0_i32_9 = arith.constant 0 : i32
    %13 = arith.addi %0, %c0_i32_9 : i32
    %c0_i32_10 = arith.constant 0 : i32
    %14 = arith.addi %13, %c0_i32_10 : i32
    %c0_11 = arith.constant 0 : index
    %15 = arith.index_cast %14 : i32 to index
    %c1 = arith.constant 1 : index
    %c0_12 = arith.constant 0 : index
    %16 = vector.load %arg3[%c0_11, %15, %c1, %c0_12] : memref<1x18x18x8xf32, #tpu.memory_space<vmem>>, vector<1x8x16x8xf32>
    %17 = vector.shape_cast %16 : vector<1x8x16x8xf32> to vector<8x16x8xf32>
    %18 = vector.shape_cast %17 : vector<8x16x8xf32> to vector<128x8xf32>
    %c1_13 = arith.constant 1 : index
    %c0_14 = arith.constant 0 : index
    %c0_15 = arith.constant 0 : index
    %19 = vector.load %arg4[%c1_13, %c0_14, %c0_15] : memref<16x8x8xf32, #tpu.memory_space<vmem>>, vector<1x8x8xf32>
    %20 = vector.shape_cast %19 : vector<1x8x8xf32> to vector<8x8xf32>
    %cst_16 = arith.constant dense<0.000000e+00> : vector<128x8xf32>
    %21 = tpu.matmul %18, %20, %cst_16 {dimension_numbers = #tpu.dot_dimension_numbers<[1], [0], [0], [1], [0, 0, 1, 1], [], []>, precision = #tpu.contract_precision<fp32>} : vector<128x8xf32>, vector<8x8xf32>, vector<128x8xf32> -> vector<128x8xf32>
    %22 = arith.addf %12, %21 : vector<128x8xf32>
    %c0_i32_17 = arith.constant 0 : i32
    %23 = arith.addi %0, %c0_i32_17 : i32
    %c1_i32 = arith.constant 1 : i32
    %24 = arith.addi %23, %c1_i32 : i32
    %c0_18 = arith.constant 0 : index
    %25 = arith.index_cast %24 : i32 to index
    %c0_19 = arith.constant 0 : index
    %c0_20 = arith.constant 0 : index
    %26 = vector.load %arg3[%c0_18, %25, %c0_19, %c0_20] : memref<1x18x18x8xf32, #tpu.memory_space<vmem>>, vector<1x8x16x8xf32>
    %27 = vector.shape_cast %26 : vector<1x8x16x8xf32> to vector<8x16x8xf32>
    %28 = vector.shape_cast %27 : vector<8x16x8xf32> to vector<128x8xf32>
    %c2 = arith.constant 2 : index
    %c0_21 = arith.constant 0 : index
    %c0_22 = arith.constant 0 : index
    %29 = vector.load %arg4[%c2, %c0_21, %c0_22] : memref<16x8x8xf32, #tpu.memory_space<vmem>>, vector<1x8x8xf32>
    %30 = vector.shape_cast %29 : vector<1x8x8xf32> to vector<8x8xf32>
    %cst_23 = arith.constant dense<0.000000e+00> : vector<128x8xf32>
    %31 = tpu.matmul %28, %30, %cst_23 {dimension_numbers = #tpu.dot_dimension_numbers<[1], [0], [0], [1], [0, 0, 1, 1], [], []>, precision = #tpu.contract_precision<fp32>} : vector<128x8xf32>, vector<8x8xf32>, vector<128x8xf32> -> vector<128x8xf32>
    %32 = arith.addf %22, %31 : vector<128x8xf32>
    %c0_i32_24 = arith.constant 0 : i32
    %33 = arith.addi %0, %c0_i32_24 : i32
    %c1_i32_25 = arith.constant 1 : i32
    %34 = arith.addi %33, %c1_i32_25 : i32
    %c0_26 = arith.constant 0 : index
    %35 = arith.index_cast %34 : i32 to index
    %c1_27 = arith.constant 1 : index
    %c0_28 = arith.constant 0 : index
    %36 = vector.load %arg3[%c0_26, %35, %c1_27, %c0_28] : memref<1x18x18x8xf32, #tpu.memory_space<vmem>>, vector<1x8x16x8xf32>
    %37 = vector.shape_cast %36 : vector<1x8x16x8xf32> to vector<8x16x8xf32>
    %38 = vector.shape_cast %37 : vector<8x16x8xf32> to vector<128x8xf32>
    %c3 = arith.constant 3 : index
    %c0_29 = arith.constant 0 : index
    %c0_30 = arith.constant 0 : index
    %39 = vector.load %arg4[%c3, %c0_29, %c0_30] : memref<16x8x8xf32, #tpu.memory_space<vmem>>, vector<1x8x8xf32>
    %40 = vector.shape_cast %39 : vector<1x8x8xf32> to vector<8x8xf32>
    %cst_31 = arith.constant dense<0.000000e+00> : vector<128x8xf32>
    %41 = tpu.matmul %38, %40, %cst_31 {dimension_numbers = #tpu.dot_dimension_numbers<[1], [0], [0], [1], [0, 0, 1, 1], [], []>, precision = #tpu.contract_precision<fp32>} : vector<128x8xf32>, vector<8x8xf32>, vector<128x8xf32> -> vector<128x8xf32>
    %42 = arith.addf %32, %41 : vector<128x8xf32>
    %43 = vector.broadcast %1 : vector<1x8xf32> to vector<128x8xf32>
    %44 = arith.addf %42, %43 : vector<128x8xf32>
    %45 = vector.shape_cast %44 : vector<128x8xf32> to vector<8x16x8xf32>
    %c0_32 = arith.constant 0 : index
    %c0_33 = arith.constant 0 : index
    %c0_34 = arith.constant 0 : index
    %c0_35 = arith.constant 0 : index
    %c0_36 = arith.constant 0 : index
    %46 = vector.load %arg6[%c0_32, %c0_33, %c0_34, %c0_35, %c0_36] : memref<1x4x8x16x8xf32, #tpu.memory_space<vmem>>, vector<1x1x8x16x8xf32>
    %47 = vector.shape_cast %46 : vector<1x1x8x16x8xf32> to vector<8x16x8xf32>
    %48 = vector.shape_cast %45 : vector<8x16x8xf32> to vector<1x1x8x16x8xf32>
    tpu.vector_store %arg6[%c0_32, %c0_33, %c0_34, %c0_35, %c0_36], %48 {strides = array<i32>} : memref<1x4x8x16x8xf32, #tpu.memory_space<vmem>>, vector<1x1x8x16x8xf32>,
    %cst_37 = arith.constant 0.000000e+00 : f32
    %49 = vector.broadcast %cst_37 : f32 to vector<128x8xf32>
    %c0_i32_38 = arith.constant 0 : i32
    %50 = arith.addi %0, %c0_i32_38 : i32
    %c0_i32_39 = arith.constant 0 : i32
    %51 = arith.addi %50, %c0_i32_39 : i32
    %c0_40 = arith.constant 0 : index
    %52 = arith.index_cast %51 : i32 to index
    %c1_41 = arith.constant 1 : index
    %c0_42 = arith.constant 0 : index
    %53 = vector.load %arg3[%c0_40, %52, %c1_41, %c0_42] : memref<1x18x18x8xf32, #tpu.memory_space<vmem>>, vector<1x8x16x8xf32>
    %54 = vector.shape_cast %53 : vector<1x8x16x8xf32> to vector<8x16x8xf32>
    %55 = vector.shape_cast %54 : vector<8x16x8xf32> to vector<128x8xf32>
    %c4 = arith.constant 4 : index
    %c0_43 = arith.constant 0 : index
    %c0_44 = arith.constant 0 : index
    %56 = vector.load %arg4[%c4, %c0_43, %c0_44] : memref<16x8x8xf32, #tpu.memory_space<vmem>>, vector<1x8x8xf32>
    %57 = vector.shape_cast %56 : vector<1x8x8xf32> to vector<8x8xf32>
    %cst_45 = arith.constant dense<0.000000e+00> : vector<128x8xf32>
    %58 = tpu.matmul %55, %57, %cst_45 {dimension_numbers = #tpu.dot_dimension_numbers<[1], [0], [0], [1], [0, 0, 1, 1], [], []>, precision = #tpu.contract_precision<fp32>} : vector<128x8xf32>, vector<8x8xf32>, vector<128x8xf32> -> vector<128x8xf32>
    %59 = arith.addf %49, %58 : vector<128x8xf32>
    %c0_i32_46 = arith.constant 0 : i32
    %60 = arith.addi %0, %c0_i32_46 : i32
    %c0_i32_47 = arith.constant 0 : i32
    %61 = arith.addi %60, %c0_i32_47 : i32
    %c0_48 = arith.constant 0 : index
    %62 = arith.index_cast %61 : i32 to index
    %c2_49 = arith.constant 2 : index
    %c0_50 = arith.constant 0 : index
    %63 = vector.load %arg3[%c0_48, %62, %c2_49, %c0_50] : memref<1x18x18x8xf32, #tpu.memory_space<vmem>>, vector<1x8x16x8xf32>
    %64 = vector.shape_cast %63 : vector<1x8x16x8xf32> to vector<8x16x8xf32>
    %65 = vector.shape_cast %64 : vector<8x16x8xf32> to vector<128x8xf32>
    %c5 = arith.constant 5 : index
    %c0_51 = arith.constant 0 : index
    %c0_52 = arith.constant 0 : index
    %66 = vector.load %arg4[%c5, %c0_51, %c0_52] : memref<16x8x8xf32, #tpu.memory_space<vmem>>, vector<1x8x8xf32>
    %67 = vector.shape_cast %66 : vector<1x8x8xf32> to vector<8x8xf32>
    %cst_53 = arith.constant dense<0.000000e+00> : vector<128x8xf32>
    %68 = tpu.matmul %65, %67, %cst_53 {dimension_numbers = #tpu.dot_dimension_numbers<[1], [0], [0], [1], [0, 0, 1, 1], [], []>, precision = #tpu.contract_precision<fp32>} : vector<128x8xf32>, vector<8x8xf32>, vector<128x8xf32> -> vector<128x8xf32>
    %69 = arith.addf %59, %68 : vector<128x8xf32>
    %c0_i32_54 = arith.constant 0 : i32
    %70 = arith.addi %0, %c0_i32_54 : i32
    %c1_i32_55 = arith.constant 1 : i32
    %71 = arith.addi %70, %c1_i32_55 : i32
    %c0_56 = arith.constant 0 : index
    %72 = arith.index_cast %71 : i32 to index
    %c1_57 = arith.constant 1 : index
    %c0_58 = arith.constant 0 : index
    %73 = vector.load %arg3[%c0_56, %72, %c1_57, %c0_58] : memref<1x18x18x8xf32, #tpu.memory_space<vmem>>, vector<1x8x16x8xf32>
    %74 = vector.shape_cast %73 : vector<1x8x16x8xf32> to vector<8x16x8xf32>
    %75 = vector.shape_cast %74 : vector<8x16x8xf32> to vector<128x8xf32>
    %c6 = arith.constant 6 : index
    %c0_59 = arith.constant 0 : index
    %c0_60 = arith.constant 0 : index
    %76 = vector.load %arg4[%c6, %c0_59, %c0_60] : memref<16x8x8xf32, #tpu.memory_space<vmem>>, vector<1x8x8xf32>
    %77 = vector.shape_cast %76 : vector<1x8x8xf32> to vector<8x8xf32>
    %cst_61 = arith.constant dense<0.000000e+00> : vector<128x8xf32>
    %78 = tpu.matmul %75, %77, %cst_61 {dimension_numbers = #tpu.dot_dimension_numbers<[1], [0], [0], [1], [0, 0, 1, 1], [], []>, precision = #tpu.contract_precision<fp32>} : vector<128x8xf32>, vector<8x8xf32>, vector<128x8xf32> -> vector<128x8xf32>
    %79 = arith.addf %69, %78 : vector<128x8xf32>
    %c0_i32_62 = arith.constant 0 : i32
    %80 = arith.addi %0, %c0_i32_62 : i32
    %c1_i32_63 = arith.constant 1 : i32
    %81 = arith.addi %80, %c1_i32_63 : i32
    %c0_64 = arith.constant 0 : index
    %82 = arith.index_cast %81 : i32 to index
    %c2_65 = arith.constant 2 : index
    %c0_66 = arith.constant 0 : index
    %83 = vector.load %arg3[%c0_64, %82, %c2_65, %c0_66] : memref<1x18x18x8xf32, #tpu.memory_space<vmem>>, vector<1x8x16x8xf32>
    %84 = vector.shape_cast %83 : vector<1x8x16x8xf32> to vector<8x16x8xf32>
    %85 = vector.shape_cast %84 : vector<8x16x8xf32> to vector<128x8xf32>
    %c7 = arith.constant 7 : index
    %c0_67 = arith.constant 0 : index
    %c0_68 = arith.constant 0 : index
    %86 = vector.load %arg4[%c7, %c0_67, %c0_68] : memref<16x8x8xf32, #tpu.memory_space<vmem>>, vector<1x8x8xf32>
    %87 = vector.shape_cast %86 : vector<1x8x8xf32> to vector<8x8xf32>
    %cst_69 = arith.constant dense<0.000000e+00> : vector<128x8xf32>
    %88 = tpu.matmul %85, %87, %cst_69 {dimension_numbers = #tpu.dot_dimension_numbers<[1], [0], [0], [1], [0, 0, 1, 1], [], []>, precision = #tpu.contract_precision<fp32>} : vector<128x8xf32>, vector<8x8xf32>, vector<128x8xf32> -> vector<128x8xf32>
    %89 = arith.addf %79, %88 : vector<128x8xf32>
    %90 = vector.broadcast %1 : vector<1x8xf32> to vector<128x8xf32>
    %91 = arith.addf %89, %90 : vector<128x8xf32>
    %92 = vector.shape_cast %91 : vector<128x8xf32> to vector<8x16x8xf32>
    %c0_70 = arith.constant 0 : index
    %c1_71 = arith.constant 1 : index
    %c0_72 = arith.constant 0 : index
    %c0_73 = arith.constant 0 : index
    %c0_74 = arith.constant 0 : index
    %93 = vector.load %arg6[%c0_70, %c1_71, %c0_72, %c0_73, %c0_74] : memref<1x4x8x16x8xf32, #tpu.memory_space<vmem>>, vector<1x1x8x16x8xf32>
    %94 = vector.shape_cast %93 : vector<1x1x8x16x8xf32> to vector<8x16x8xf32>
    %95 = vector.shape_cast %92 : vector<8x16x8xf32> to vector<1x1x8x16x8xf32>
    tpu.vector_store %arg6[%c0_70, %c1_71, %c0_72, %c0_73, %c0_74], %95 {strides = array<i32>} : memref<1x4x8x16x8xf32, #tpu.memory_space<vmem>>, vector<1x1x8x16x8xf32>,
    %cst_75 = arith.constant 0.000000e+00 : f32
    %96 = vector.broadcast %cst_75 : f32 to vector<128x8xf32>
    %c1_i32_76 = arith.constant 1 : i32
    %97 = arith.addi %0, %c1_i32_76 : i32
    %c0_i32_77 = arith.constant 0 : i32
    %98 = arith.addi %97, %c0_i32_77 : i32
    %c0_78 = arith.constant 0 : index
    %99 = arith.index_cast %98 : i32 to index
    %c0_79 = arith.constant 0 : index
    %c0_80 = arith.constant 0 : index
    %100 = vector.load %arg3[%c0_78, %99, %c0_79, %c0_80] : memref<1x18x18x8xf32, #tpu.memory_space<vmem>>, vector<1x8x16x8xf32>
    %101 = vector.shape_cast %100 : vector<1x8x16x8xf32> to vector<8x16x8xf32>
    %102 = vector.shape_cast %101 : vector<8x16x8xf32> to vector<128x8xf32>
    %c8 = arith.constant 8 : index
    %c0_81 = arith.constant 0 : index
    %c0_82 = arith.constant 0 : index
    %103 = vector.load %arg4[%c8, %c0_81, %c0_82] : memref<16x8x8xf32, #tpu.memory_space<vmem>>, vector<1x8x8xf32>
    %104 = vector.shape_cast %103 : vector<1x8x8xf32> to vector<8x8xf32>
    %cst_83 = arith.constant dense<0.000000e+00> : vector<128x8xf32>
    %105 = tpu.matmul %102, %104, %cst_83 {dimension_numbers = #tpu.dot_dimension_numbers<[1], [0], [0], [1], [0, 0, 1, 1], [], []>, precision = #tpu.contract_precision<fp32>} : vector<128x8xf32>, vector<8x8xf32>, vector<128x8xf32> -> vector<128x8xf32>
    %106 = arith.addf %96, %105 : vector<128x8xf32>
    %c1_i32_84 = arith.constant 1 : i32
    %107 = arith.addi %0, %c1_i32_84 : i32
    %c0_i32_85 = arith.constant 0 : i32
    %108 = arith.addi %107, %c0_i32_85 : i32
    %c0_86 = arith.constant 0 : index
    %109 = arith.index_cast %108 : i32 to index
    %c1_87 = arith.constant 1 : index
    %c0_88 = arith.constant 0 : index
    %110 = vector.load %arg3[%c0_86, %109, %c1_87, %c0_88] : memref<1x18x18x8xf32, #tpu.memory_space<vmem>>, vector<1x8x16x8xf32>
    %111 = vector.shape_cast %110 : vector<1x8x16x8xf32> to vector<8x16x8xf32>
    %112 = vector.shape_cast %111 : vector<8x16x8xf32> to vector<128x8xf32>
    %c9 = arith.constant 9 : index
    %c0_89 = arith.constant 0 : index
    %c0_90 = arith.constant 0 : index
    %113 = vector.load %arg4[%c9, %c0_89, %c0_90] : memref<16x8x8xf32, #tpu.memory_space<vmem>>, vector<1x8x8xf32>
    %114 = vector.shape_cast %113 : vector<1x8x8xf32> to vector<8x8xf32>
    %cst_91 = arith.constant dense<0.000000e+00> : vector<128x8xf32>
    %115 = tpu.matmul %112, %114, %cst_91 {dimension_numbers = #tpu.dot_dimension_numbers<[1], [0], [0], [1], [0, 0, 1, 1], [], []>, precision = #tpu.contract_precision<fp32>} : vector<128x8xf32>, vector<8x8xf32>, vector<128x8xf32> -> vector<128x8xf32>
    %116 = arith.addf %106, %115 : vector<128x8xf32>
    %c1_i32_92 = arith.constant 1 : i32
    %117 = arith.addi %0, %c1_i32_92 : i32
    %c1_i32_93 = arith.constant 1 : i32
    %118 = arith.addi %117, %c1_i32_93 : i32
    %c0_94 = arith.constant 0 : index
    %119 = arith.index_cast %118 : i32 to index
    %c0_95 = arith.constant 0 : index
    %c0_96 = arith.constant 0 : index
    %120 = vector.load %arg3[%c0_94, %119, %c0_95, %c0_96] : memref<1x18x18x8xf32, #tpu.memory_space<vmem>>, vector<1x8x16x8xf32>
    %121 = vector.shape_cast %120 : vector<1x8x16x8xf32> to vector<8x16x8xf32>
    %122 = vector.shape_cast %121 : vector<8x16x8xf32> to vector<128x8xf32>
    %c10 = arith.constant 10 : index
    %c0_97 = arith.constant 0 : index
    %c0_98 = arith.constant 0 : index
    %123 = vector.load %arg4[%c10, %c0_97, %c0_98] : memref<16x8x8xf32, #tpu.memory_space<vmem>>, vector<1x8x8xf32>
    %124 = vector.shape_cast %123 : vector<1x8x8xf32> to vector<8x8xf32>
    %cst_99 = arith.constant dense<0.000000e+00> : vector<128x8xf32>
    %125 = tpu.matmul %122, %124, %cst_99 {dimension_numbers = #tpu.dot_dimension_numbers<[1], [0], [0], [1], [0, 0, 1, 1], [], []>, precision = #tpu.contract_precision<fp32>} : vector<128x8xf32>, vector<8x8xf32>, vector<128x8xf32> -> vector<128x8xf32>
    %126 = arith.addf %116, %125 : vector<128x8xf32>
    %c1_i32_100 = arith.constant 1 : i32
    %127 = arith.addi %0, %c1_i32_100 : i32
    %c1_i32_101 = arith.constant 1 : i32
    %128 = arith.addi %127, %c1_i32_101 : i32
    %c0_102 = arith.constant 0 : index
    %129 = arith.index_cast %128 : i32 to index
    %c1_103 = arith.constant 1 : index
    %c0_104 = arith.constant 0 : index
    %130 = vector.load %arg3[%c0_102, %129, %c1_103, %c0_104] : memref<1x18x18x8xf32, #tpu.memory_space<vmem>>, vector<1x8x16x8xf32>
    %131 = vector.shape_cast %130 : vector<1x8x16x8xf32> to vector<8x16x8xf32>
    %132 = vector.shape_cast %131 : vector<8x16x8xf32> to vector<128x8xf32>
    %c11 = arith.constant 11 : index
    %c0_105 = arith.constant 0 : index
    %c0_106 = arith.constant 0 : index
    %133 = vector.load %arg4[%c11, %c0_105, %c0_106] : memref<16x8x8xf32, #tpu.memory_space<vmem>>, vector<1x8x8xf32>
    %134 = vector.shape_cast %133 : vector<1x8x8xf32> to vector<8x8xf32>
    %cst_107 = arith.constant dense<0.000000e+00> : vector<128x8xf32>
    %135 = tpu.matmul %132, %134, %cst_107 {dimension_numbers = #tpu.dot_dimension_numbers<[1], [0], [0], [1], [0, 0, 1, 1], [], []>, precision = #tpu.contract_precision<fp32>} : vector<128x8xf32>, vector<8x8xf32>, vector<128x8xf32> -> vector<128x8xf32>
    %136 = arith.addf %126, %135 : vector<128x8xf32>
    %137 = vector.broadcast %1 : vector<1x8xf32> to vector<128x8xf32>
    %138 = arith.addf %136, %137 : vector<128x8xf32>
    %139 = vector.shape_cast %138 : vector<128x8xf32> to vector<8x16x8xf32>
    %c0_108 = arith.constant 0 : index
    %c2_109 = arith.constant 2 : index
    %c0_110 = arith.constant 0 : index
    %c0_111 = arith.constant 0 : index
    %c0_112 = arith.constant 0 : index
    %140 = vector.load %arg6[%c0_108, %c2_109, %c0_110, %c0_111, %c0_112] : memref<1x4x8x16x8xf32, #tpu.memory_space<vmem>>, vector<1x1x8x16x8xf32>
    %141 = vector.shape_cast %140 : vector<1x1x8x16x8xf32> to vector<8x16x8xf32>
    %142 = vector.shape_cast %139 : vector<8x16x8xf32> to vector<1x1x8x16x8xf32>
    tpu.vector_store %arg6[%c0_108, %c2_109, %c0_110, %c0_111, %c0_112], %142 {strides = array<i32>} : memref<1x4x8x16x8xf32, #tpu.memory_space<vmem>>, vector<1x1x8x16x8xf32>,
    %cst_113 = arith.constant 0.000000e+00 : f32
    %143 = vector.broadcast %cst_113 : f32 to vector<128x8xf32>
    %c1_i32_114 = arith.constant 1 : i32
    %144 = arith.addi %0, %c1_i32_114 : i32
    %c0_i32_115 = arith.constant 0 : i32
    %145 = arith.addi %144, %c0_i32_115 : i32
    %c0_116 = arith.constant 0 : index
    %146 = arith.index_cast %145 : i32 to index
    %c1_117 = arith.constant 1 : index
    %c0_118 = arith.constant 0 : index
    %147 = vector.load %arg3[%c0_116, %146, %c1_117, %c0_118] : memref<1x18x18x8xf32, #tpu.memory_space<vmem>>, vector<1x8x16x8xf32>
    %148 = vector.shape_cast %147 : vector<1x8x16x8xf32> to vector<8x16x8xf32>
    %149 = vector.shape_cast %148 : vector<8x16x8xf32> to vector<128x8xf32>
    %c12 = arith.constant 12 : index
    %c0_119 = arith.constant 0 : index
    %c0_120 = arith.constant 0 : index
    %150 = vector.load %arg4[%c12, %c0_119, %c0_120] : memref<16x8x8xf32, #tpu.memory_space<vmem>>, vector<1x8x8xf32>
    %151 = vector.shape_cast %150 : vector<1x8x8xf32> to vector<8x8xf32>
    %cst_121 = arith.constant dense<0.000000e+00> : vector<128x8xf32>
    %152 = tpu.matmul %149, %151, %cst_121 {dimension_numbers = #tpu.dot_dimension_numbers<[1], [0], [0], [1], [0, 0, 1, 1], [], []>, precision = #tpu.contract_precision<fp32>} : vector<128x8xf32>, vector<8x8xf32>, vector<128x8xf32> -> vector<128x8xf32>
    %153 = arith.addf %143, %152 : vector<128x8xf32>
    %c1_i32_122 = arith.constant 1 : i32
    %154 = arith.addi %0, %c1_i32_122 : i32
    %c0_i32_123 = arith.constant 0 : i32
    %155 = arith.addi %154, %c0_i32_123 : i32
    %c0_124 = arith.constant 0 : index
    %156 = arith.index_cast %155 : i32 to index
    %c2_125 = arith.constant 2 : index
    %c0_126 = arith.constant 0 : index
    %157 = vector.load %arg3[%c0_124, %156, %c2_125, %c0_126] : memref<1x18x18x8xf32, #tpu.memory_space<vmem>>, vector<1x8x16x8xf32>
    %158 = vector.shape_cast %157 : vector<1x8x16x8xf32> to vector<8x16x8xf32>
    %159 = vector.shape_cast %158 : vector<8x16x8xf32> to vector<128x8xf32>
    %c13 = arith.constant 13 : index
    %c0_127 = arith.constant 0 : index
    %c0_128 = arith.constant 0 : index
    %160 = vector.load %arg4[%c13, %c0_127, %c0_128] : memref<16x8x8xf32, #tpu.memory_space<vmem>>, vector<1x8x8xf32>
    %161 = vector.shape_cast %160 : vector<1x8x8xf32> to vector<8x8xf32>
    %cst_129 = arith.constant dense<0.000000e+00> : vector<128x8xf32>
    %162 = tpu.matmul %159, %161, %cst_129 {dimension_numbers = #tpu.dot_dimension_numbers<[1], [0], [0], [1], [0, 0, 1, 1], [], []>, precision = #tpu.contract_precision<fp32>} : vector<128x8xf32>, vector<8x8xf32>, vector<128x8xf32> -> vector<128x8xf32>
    %163 = arith.addf %153, %162 : vector<128x8xf32>
    %c1_i32_130 = arith.constant 1 : i32
    %164 = arith.addi %0, %c1_i32_130 : i32
    %c1_i32_131 = arith.constant 1 : i32
    %165 = arith.addi %164, %c1_i32_131 : i32
    %c0_132 = arith.constant 0 : index
    %166 = arith.index_cast %165 : i32 to index
    %c1_133 = arith.constant 1 : index
    %c0_134 = arith.constant 0 : index
    %167 = vector.load %arg3[%c0_132, %166, %c1_133, %c0_134] : memref<1x18x18x8xf32, #tpu.memory_space<vmem>>, vector<1x8x16x8xf32>
    %168 = vector.shape_cast %167 : vector<1x8x16x8xf32> to vector<8x16x8xf32>
    %169 = vector.shape_cast %168 : vector<8x16x8xf32> to vector<128x8xf32>
    %c14 = arith.constant 14 : index
    %c0_135 = arith.constant 0 : index
    %c0_136 = arith.constant 0 : index
    %170 = vector.load %arg4[%c14, %c0_135, %c0_136] : memref<16x8x8xf32, #tpu.memory_space<vmem>>, vector<1x8x8xf32>
    %171 = vector.shape_cast %170 : vector<1x8x8xf32> to vector<8x8xf32>
    %cst_137 = arith.constant dense<0.000000e+00> : vector<128x8xf32>
    %172 = tpu.matmul %169, %171, %cst_137 {dimension_numbers = #tpu.dot_dimension_numbers<[1], [0], [0], [1], [0, 0, 1, 1], [], []>, precision = #tpu.contract_precision<fp32>} : vector<128x8xf32>, vector<8x8xf32>, vector<128x8xf32> -> vector<128x8xf32>
    %173 = arith.addf %163, %172 : vector<128x8xf32>
    %c1_i32_138 = arith.constant 1 : i32
    %174 = arith.addi %0, %c1_i32_138 : i32
    %c1_i32_139 = arith.constant 1 : i32
    %175 = arith.addi %174, %c1_i32_139 : i32
    %c0_140 = arith.constant 0 : index
    %176 = arith.index_cast %175 : i32 to index
    %c2_141 = arith.constant 2 : index
    %c0_142 = arith.constant 0 : index
    %177 = vector.load %arg3[%c0_140, %176, %c2_141, %c0_142] : memref<1x18x18x8xf32, #tpu.memory_space<vmem>>, vector<1x8x16x8xf32>
    %178 = vector.shape_cast %177 : vector<1x8x16x8xf32> to vector<8x16x8xf32>
    %179 = vector.shape_cast %178 : vector<8x16x8xf32> to vector<128x8xf32>
    %c15 = arith.constant 15 : index
    %c0_143 = arith.constant 0 : index
    %c0_144 = arith.constant 0 : index
    %180 = vector.load %arg4[%c15, %c0_143, %c0_144] : memref<16x8x8xf32, #tpu.memory_space<vmem>>, vector<1x8x8xf32>
    %181 = vector.shape_cast %180 : vector<1x8x8xf32> to vector<8x8xf32>
    %cst_145 = arith.constant dense<0.000000e+00> : vector<128x8xf32>
    %182 = tpu.matmul %179, %181, %cst_145 {dimension_numbers = #tpu.dot_dimension_numbers<[1], [0], [0], [1], [0, 0, 1, 1], [], []>, precision = #tpu.contract_precision<fp32>} : vector<128x8xf32>, vector<8x8xf32>, vector<128x8xf32> -> vector<128x8xf32>
    %183 = arith.addf %173, %182 : vector<128x8xf32>
    %184 = vector.broadcast %1 : vector<1x8xf32> to vector<128x8xf32>
    %185 = arith.addf %183, %184 : vector<128x8xf32>
    %186 = vector.shape_cast %185 : vector<128x8xf32> to vector<8x16x8xf32>
    %c0_146 = arith.constant 0 : index
    %c3_147 = arith.constant 3 : index
    %c0_148 = arith.constant 0 : index
    %c0_149 = arith.constant 0 : index
    %c0_150 = arith.constant 0 : index
    %187 = vector.load %arg6[%c0_146, %c3_147, %c0_148, %c0_149, %c0_150] : memref<1x4x8x16x8xf32, #tpu.memory_space<vmem>>, vector<1x1x8x16x8xf32>
    %188 = vector.shape_cast %187 : vector<1x1x8x16x8xf32> to vector<8x16x8xf32>
    %189 = vector.shape_cast %186 : vector<8x16x8xf32> to vector<1x1x8x16x8xf32>
    tpu.vector_store %arg6[%c0_146, %c3_147, %c0_148, %c0_149, %c0_150], %189 {strides = array<i32>} : memref<1x4x8x16x8xf32, #tpu.memory_space<vmem>>, vector<1x1x8x16x8xf32>,
    return
  }
  func.func @transform_0(%arg0: i32, %arg1: i32, %arg2: i32) -> (i32, i32, i32, i32) {
    %c0_i32 = arith.constant 0 : i32
    %c0_i32_0 = arith.constant 0 : i32
    %c0_i32_1 = arith.constant 0 : i32
    %c0_i32_2 = arith.constant 0 : i32
    return %arg0, %c0_i32, %c0_i32_0, %c0_i32_1 : i32, i32, i32, i32
  }
  func.func @transform_1(%arg0: i32, %arg1: i32, %arg2: i32) -> (i32, i32, i32) {
    %c0_i32 = arith.constant 0 : i32
    %c0_i32_0 = arith.constant 0 : i32
    %c0_i32_1 = arith.constant 0 : i32
    return %c0_i32, %c0_i32_0, %arg1 : i32, i32, i32
  }
  func.func @transform_2(%arg0: i32, %arg1: i32, %arg2: i32) -> (i32, i32) {
    %c0_i32 = arith.constant 0 : i32
    %c0_i32_0 = arith.constant 0 : i32
    return %c0_i32, %arg1 : i32, i32
  }
  func.func @transform_3(%arg0: i32, %arg1: i32, %arg2: i32) -> (i32, i32, i32, i32, i32) {
    %c0_i32 = arith.constant 0 : i32
    %c0_i32_0 = arith.constant 0 : i32
    %c0_i32_1 = arith.constant 0 : i32
    return %arg0, %c0_i32, %arg2, %c0_i32_0, %arg1 : i32, i32, i32, i32, i32
  }
}

</mosaic_0001>

<bundles_post_ra>
// kernel: tpu_custom_call.1
= control target key start
LH: loop header
LB: loop body
LE: loop exit
PB: predicated region body
PF: predicated region fallthrough
CT: control target
= control target key end

     0   :  { %s25424_s12 = smov 0   ;;  %s25426_s13 = smov 0   ;;  %s29972_s0 = inlined_call_operand.vmem [shape: f32[2,18,18,8], index: 0, kind: input, shape index: {}]   ;;  %s29973_s1 = inlined_call_operand.vmem [shape: f32[16,8,8], index: 1, kind: input, shape index: {}]   ;;  %s29974_s2 = inlined_call_operand.vmem [shape: f32[1,8], index: 2, kind: input, shape index: {}]   ;;  %s29975_s3 = inlined_call_operand.vmem [shape: f32[2,4,16,16,8], index: 3, kind: output, shape index: {}]  }
   0x1   :  { %s25428_s14 = smov 0   ;;  %s25430_s15 = smov 0  }
   0x2   :  { %s25432_s16 = smov 0   ;;  %s25434_s17 = smov 0  }
   0x3   :  { %s25436_s18 = smov 0  }
   0x4 LB: > { %s25_s19 = sadd.s32 1, %s25394_s16  ;;  %s32_s20 = sadd.s32 1, %s25398_s17  ;;  %s25402_s18 = sphi %s25436_s18, %s13_s18   ;;  %s25398_s17 = sphi %s25434_s17, %s31422_s17   ;;  %s25394_s16 = sphi %s25432_s16, %s31421_s16   ;;  %s25390_s15 = sphi %s25430_s15, %s31420_s15   ;;  %s25386_s14 = sphi %s25428_s14, %s31419_s14   ;;  %s25382_s13 = sphi %s25426_s13, %s31418_s13   ;;  %s25378_s12 = sphi %s25424_s12, %s31417_s12  }
   0x5   : > { %p26_p0 = scmp.ge.s32.totalorder %s25_s19, 2  ;;  %s19411_s21 = sadd.s32 4294967295, %s25402_s18  }
   0x6   : > { %p131_p1 = scmp.ne.s32.totalorder %s25382_s13, %s25378_s12  ;;  %p132_p2 = scmp.eq.s32.totalorder %s19411_s21, 3 }
   0x7   : > { %s31424_s19 = smov (%p26_p0, %s25_s19), 0  ;;  %s31426_s20 = smov (!%p26_p0, %s32_s20), %s25398_s17 }
   0x8   : > { %s115_s22 = ssub.s32 %s25394_s16, %s31424_s19  ;;  %p34_p3 = scmp.ge.s32.totalorder %s31426_s20, 2 }
   0x9   : > { %p19417_p4 = scmp.ge.s32.totalorder %s25402_s18, 1  ;;  %p25470_p5 = por %p132_p2, %p131_p1 }
   0xa   : > { %p177_p6 = scmp.lt.s32.totalorder %s25402_s18, 5  ;;  %s31428_s20 = smov (%p34_p3, %s31426_s20), 0 }
   0xb   : > { %s114_s24 = ssub.s32 %s25398_s17, %s31428_s20  ;;  %s121_s26 = sadd.s32 1, %s25382_s13 }
   0xc   : > { %p178_p7 = pnand %p19417_p4, %p177_p6  ;;  %s116_s25 = sor.u32 %s115_s22, %s114_s24 }
   0xd   : > { %p119_p8 = scmp.eq.s32.totalorder %s116_s25, 0 }
   0xe   : > { %181 = sbr.rel (%p178_p7) target bundleno = 1826 (0x722), region = 32 }
   0xf   : > { %s25481_s27 = scalar_select %p119_p8, %s25382_s13, %s121_s26  }
  0x15   : > { %v19422_v0 = vld [vmem:[%s29973_s1 + $0x8] sm:$0xff]  ;;  %p207_p9 = scmp.lt.s32.totalorder %s25390_s15, 1  ;;  %s19421_s6 = smul.u32 192, %s25386_s14  ;;  %vm259_vm0 = vcmask 64512  }
  0x16   : > { %v19461_v1 = vld [vmem:[%s29973_s1 + $0x28] sm:$0xff]  ;;  %v25490_v2 = vand.u32 4294901760, %v19422_v0  ;;  %s204_s28 = sand.u32 1, %s25378_s12   ;;  %s19689_s25 = sshll.u32 (%p25470_p5), %s25386_s14, 4 }
  0x17   : > { %v25492_v3 = vand.u32 4294901760, %v19461_v1  ;;  %s208_s5 = scalar_select %p207_p9, %s25390_s15, 1 }
  0x18   : > { %21322 = vmatprep.subr.mxu0 %v25490_v2  ;;  %v25499_v4 = vsub.f32 %v19422_v0, %v25490_v2  ;;  %s28180_s12 = sshll.u32 %s204_s28, 9  ;;  %s19685_s26 = sshll.u32 (%p25470_p5), %s25390_s15, 7 }
  0x19   : > { %21946 = vmatprep.subr.mxu1 %v25492_v3  ;;  %v25502_v5 = vsub.f32 %v19461_v1, %v25492_v3  ;;  %21323 = vmatpush3.msra.mxu0 %v25490_v2  ;;  %s25290_s7 = smul.u32 432, %s208_s5  ;;  %s28249_s4 = scalar_lea.vmem [#allocation2], %s28180_s12 }
  0x1a   : > { %21947 = vmatpush3.msra.mxu1 %v25492_v3  ;;  %v25507_v6 = vand.u32 4294901760, %v25499_v4  ;;  %s19018_s23 = sadd.s32 (%p25470_p5), %s19689_s25, %s19685_s26 }
  0x1b   : > { %v25510_v7 = vand.u32 4294901760, %v25502_v5  ;;  %s211_s10 = scalar_lea.vmem %s29972_s0, %s25290_s7  ;;  %s19686_s28 = sshll.u32 (%p25470_p5), %s19018_s23, 3 }
  0x1c   : > { %s25515_s11 = scalar_lea.vmem %s211_s10, %s19421_s6  ;;  %v538_v8 = vsub.f32 %v25499_v4, %v25507_v6  ;;  %s29830_s30 = scalar_lea.vmem (%p25470_p5), %s29975_s3, %s19686_s28 }
  0x1d   : > { %v5239_v9 = vsub.f32 %v25502_v5, %v25510_v7  ;;  %v241_v10 = vld [vmem:[%s25515_s11 + $0x1] sm:$0xff]  ;;  %v242_v12 = vld [vmem:[%s25515_s11 + $0x9] sm:$0xff]  ;;  %v243_v18 = vld [vmem:[%s25515_s11 + $0x19] sm:$0xff] }
  0x1e   : > { %v4943_v11 = vld [vmem:[%s25515_s11 + $0x2] sm:$0xff]  ;;  %v261_v13 = vsel %vm259_vm0, %v241_v10, 0  ;;  %v25525_v14 = vand.u32 4294901760, %v538_v8  ;;  %v4944_v17 = vld [vmem:[%s25515_s11 + $0xa] sm:$0xff]  ;;  %v264_v21 = vsel %vm259_vm0, %v242_v12, 0  ;;  %v4945_v23 = vld [vmem:[%s25515_s11 + $0x1a] sm:$0xff] }
  0x1f   : > { %v4962_v15 = vsel %vm259_vm0, %v4943_v11, 0  ;;  %v25528_v16 = vand.u32 4294901760, %v5239_v9  ;;  %v25532_v19 = vand.u32 4294901760, %v261_v13  ;;  %v4965_v22 = vsel %vm259_vm0, %v4944_v17, 0  ;;  %v244_v24 = vld [vmem:[%s25515_s11 + $0x21] sm:$0xff]  ;;  %v245_v54 = vld [vmem:[%s25515_s11 + $0x31] sm:$0xff] }
  0x20   : > { %v25534_v20 = vand.u32 4294901760, %v4962_v15  ;;  %21348 = vmatprep.subr.mxu0 %v25525_v14  ;;  %v25542_v25 = vand.u32 4294901760, %v264_v21  ;;  %v25544_v26 = vand.u32 4294901760, %v4965_v22  ;;  %v267_v27 = vsel %vm259_vm0, %v243_v18, 0  ;;  %v4946_v29 = vld [vmem:[%s25515_s11 + $0x22] sm:$0xff]  ;;  %v4947_v55 = vld [vmem:[%s25515_s11 + $0x32] sm:$0xff] }
  0x21   : > { %21972 = vmatprep.subr.mxu1 %v25528_v16  ;;  %v4968_v28 = vsel %vm259_vm0, %v4945_v23, 0  ;;  %v25550_v30 = vsub.f32 %v261_v13, %v25532_v19  ;;  %v25555_v32 = vand.u32 4294901760, %v267_v27  ;;  %v270_v36 = vsel %vm259_vm0, %v244_v24, 0  ;;  %v246_v60 = vld [vmem:[%s25515_s11 + $0x39] sm:$0xff]  ;;  %v247_v8 = vld [vmem:[%s25515_s11 + $0x49] sm:$0xff] }
  0x22   : > { %v25553_v31 = vsub.f32 %v4962_v15, %v25534_v20  ;;  %v25557_v33 = vand.u32 4294901760, %v4968_v28  ;;  %v25560_v34 = vsub.f32 %v264_v21, %v25542_v25  ;;  %v25563_v35 = vsub.f32 %v4965_v22, %v25544_v26  ;;  %v4948_v61 = vld [vmem:[%s25515_s11 + $0x3a] sm:$0xff]  ;;  %v4949_v9 = vld [vmem:[%s25515_s11 + $0x4a] sm:$0xff] }
  0x23   : > { %30524 = vst [vmem:[#allocation3_spill] sm:$0xff] %v25550_v30  ;;  %v4971_v37 = vsel %vm259_vm0, %v4946_v29, 0  ;;  %v25568_v38 = vand.u32 4294901760, %v25550_v30  ;;  %v25572_v40 = vsub.f32 %v267_v27, %v25555_v32  ;;  %v25581_v44 = vand.u32 4294901760, %v270_v36  ;;  %v4950_v29 = vld [vmem:[%s25515_s11 + $0x52] sm:$0xff] }
  0x24   : > { %30525 = vst [vmem:[#allocation4_spill] sm:$0xff] %v25560_v34  ;;  %v29980_v39 = vand.u32 4294901760, %v25553_v31  ;;  %v25575_v41 = vsub.f32 %v4968_v28, %v25557_v33  ;;  %v25578_v42 = vand.u32 4294901760, %v25560_v34  ;;  %v29979_v43 = vand.u32 4294901760, %v25563_v35  ;;  %v248_v28 = vld [vmem:[%s25515_s11 + $0x51] sm:$0xff] }
  0x25   : > { %30526 = vst [vmem:[#allocation5_spill] sm:$0xff] %v25568_v38  ;;  %30527 = vst [vmem:[#allocation6_spill] sm:$0xff] %v25572_v40  ;;  %v25583_v45 = vand.u32 4294901760, %v4971_v37  ;;  %v377_v46 = vsub.f32 %v25550_v30, %v25568_v38  ;;  %v25591_v48 = vand.u32 4294901760, %v25572_v40  ;;  %v25600_v52 = vsub.f32 %v270_v36, %v25581_v44  ;;  %v4955_v38 = vld [vmem:[%s25515_s11 + $0x92] sm:$0xff] }
  0x26   : > { %30528 = vst [vmem:[#allocation7_spill] sm:$0xff] %v25578_v42  ;;  %v5078_v47 = vsub.f32 %v25553_v31, %v29980_v39  ;;  %v29978_v49 = vand.u32 4294901760, %v25575_v41  ;;  %v387_v50 = vsub.f32 %v25560_v34, %v25578_v42  ;;  %v5088_v51 = vsub.f32 %v25563_v35, %v29979_v43 }
  0x27   : > { %30529 = vst [vmem:[#allocation8_spill] sm:$0xff] %v25591_v48  ;;  %30530 = vst [vmem:[#allocation9_spill] sm:$0xff] %v25600_v52  ;;  %v25603_v53 = vsub.f32 %v4971_v37, %v25583_v45  ;;  %v25607_v56 = vand.u32 4294901760, %v377_v46  ;;  %v397_v58 = vsub.f32 %v25572_v40, %v25591_v48  ;;  %v25619_v0 = vand.u32 4294901760, %v25600_v52 }
  0x28   : > { %v5079_v57 = vand.u32 4294901760, %v5078_v47  ;;  %v5098_v59 = vsub.f32 %v25575_v41, %v29978_v49  ;;  %v25616_v62 = vand.u32 4294901760, %v387_v50  ;;  %v5089_v63 = vand.u32 4294901760, %v5088_v51  ;;  %v250_v49 = vld [vmem:[%s25515_s11 + $0x69] sm:$0xff] }
  0x29   : > { %30531 = vst [vmem:[#allocation10_spill] sm:$0xff] %v25603_v53  ;;  %30532 = vst [vmem:[#allocation11_spill] sm:$0xff] %v25607_v56  ;;  %v29977_v1 = vand.u32 4294901760, %v25603_v53  ;;  %21324 = vmatprep.mubr.f32.mxu0 %v25607_v56  ;;  %v25625_v10 = vand.u32 4294901760, %v397_v58  ;;  %v273_v12 = vsel %vm259_vm0, %v245_v54, 0  ;;  %v4974_v13 = vsel %vm259_vm0, %v4947_v55, 0 }
  0x2a   : > { %30533 = vst [vmem:[#allocation12_spill] sm:$0xff] %v25616_v62  ;;  %30534 = vst [vmem:[#allocation13_spill] sm:$0xff] %v25619_v0  ;;  %21948 = vmatprep.mubr.f32.mxu1 %v5079_v57  ;;  %v5099_v11 = vand.u32 4294901760, %v5098_v59  ;;  %21325 = vmatmul.mubr.f32.vlgmr.msra.gmra.mrb[0].mxu0 %v25616_v62  ;;  %v407_v15 = vsub.f32 %v25600_v52, %v25619_v0  ;;  %v25635_v18 = vand.u32 4294901760, %v273_v12  ;;  %v25637_v21 = vand.u32 4294901760, %v4974_v13 }
  0x2b   : > { %30535 = vst [vmem:[#allocation14_spill] sm:$0xff] %v25625_v10  ;;  %21949 = vmatmul.mubr.f32.vlgmr.msra.gmra.mrb[0].mxu1 %v5089_v63  ;;  %v5108_v17 = vsub.f32 %v25603_v53, %v29977_v1  ;;  %21349 = vmatpush3.msra.mxu0 %v25525_v14  ;;  %v276_v22 = vsel %vm259_vm0, %v246_v60, 0  ;;  %v4977_v23 = vsel %vm259_vm0, %v4948_v61, 0  ;;  %v279_v24 = vsel %vm259_vm0, %v247_v8, 0 }
  0x2c   : > { %21973 = vmatpush3.msra.mxu1 %v25528_v16  ;;  %v4980_v27 = vsel %vm259_vm0, %v4949_v9, 0  ;;  %21327 = vmatprep.mubr.f32.mxu0 %v25625_v10  ;;  %v25648_v36 = vand.u32 4294901760, %v407_v15  ;;  %v25651_v14 = vsub.f32 %v273_v12, %v25635_v18  ;;  %v25654_v16 = vsub.f32 %v4974_v13, %v25637_v21  ;;  %v4953_v10 = vld [vmem:[%s25515_s11 + $0x7a] sm:$0xff] }
  0x2d   : > { %21951 = vmatprep.mubr.f32.mxu1 %v5099_v11  ;;  %v5109_v37 = vand.u32 4294901760, %v5108_v17  ;;  %v25656_v46 = vand.u32 4294901760, %v276_v22  ;;  %v25658_v47 = vand.u32 4294901760, %v4977_v23  ;;  %v25660_v50 = vand.u32 4294901760, %v279_v24  ;;  %21374 = vmatprep.subr.mxu0 %v25499_v4 }
  0x2e   : > { %30536 = vst [vmem:[#allocation15_spill] sm:$0xff] %v25648_v36  ;;  %30537 = vst [vmem:[#allocation16_spill] sm:$0xff] %v25651_v14  ;;  %v25662_v51 = vand.u32 4294901760, %v4980_v27  ;;  %21998 = vmatprep.subr.mxu1 %v25502_v5  ;;  %21328 = vmatmul.mubr.f32.gmra.mrb[2].mxu0 %v25648_v36  ;;  %v25668_v54 = vand.u32 4294901760, %v25651_v14  ;;  %v29976_v55 = vand.u32 4294901760, %v25654_v16  ;;  %v282_v57 = vsel %vm259_vm0, %v248_v28, 0 }
  0x2f   : > { %30538 = vst [vmem:[#allocation17_spill] sm:$0xff] %v25654_v16  ;;  %21952 = vmatmul.mubr.f32.gmra.mrb[2].mxu1 %v5109_v37  ;;  %v4983_v58 = vsel %vm259_vm0, %v4950_v29, 0  ;;  %v25674_v59 = vsub.f32 %v276_v22, %v25656_v46  ;;  %v25677_v60 = vsub.f32 %v4977_v23, %v25658_v47  ;;  %v25680_v61 = vsub.f32 %v279_v24, %v25660_v50  ;;  %v249_v23 = vld [vmem:[%s25515_s11 + $0x61] sm:$0xff]  ;;  %v251_v36 = vld [vmem:[%s25515_s11 + $0x79] sm:$0xff] }
  0x30   : > { %30539 = vst [vmem:[#allocation18_spill] sm:$0xff] %v25668_v54  ;;  %v25683_v63 = vsub.f32 %v4980_v27, %v25662_v51  ;;  %v417_v8 = vsub.f32 %v25651_v14, %v25668_v54  ;;  %v5118_v9 = vsub.f32 %v25654_v16, %v29976_v55  ;;  %v25690_v11 = vand.u32 4294901760, %v282_v57  ;;  %v4951_v24 = vld [vmem:[%s25515_s11 + $0x62] sm:$0xff] }
  0x31   : > { %30540 = vst [vmem:[#allocation19_spill] sm:$0xff] %v25674_v59  ;;  %30541 = vst [vmem:[#allocation20_spill] sm:$0xff] %v25677_v60  ;;  %v25692_v12 = vand.u32 4294901760, %v4983_v58  ;;  %v25695_v13 = vand.u32 4294901760, %v25674_v59  ;;  %v29981_v15 = vand.u32 4294901760, %v25677_v60  ;;  %v25699_v17 = vand.u32 4294901760, %v25680_v61 }
  0x32   : > { %30542 = vst [vmem:[#allocation21_spill] sm:$0xff] %v25680_v61  ;;  %30543 = vst [vmem:[#allocation22_spill] sm:$0xff] %v25683_v63  ;;  %v29985_v22 = vand.u32 4294901760, %v25683_v63  ;;  %v25704_v27 = vand.u32 4294901760, %v417_v8  ;;  %v5119_v28 = vand.u32 4294901760, %v5118_v9  ;;  %v25707_v29 = vsub.f32 %v282_v57, %v25690_v11  ;;  %v4952_v57 = vld [vmem:[%s25515_s11 + $0x6a] sm:$0xff] }
  0x33   : > { %30544 = vst [vmem:[#allocation23_spill] sm:$0xff] %v25695_v13  ;;  %30545 = vst [vmem:[#allocation24_spill] sm:$0xff] %v25699_v17  ;;  %v25710_v37 = vsub.f32 %v4983_v58, %v25692_v12  ;;  %v427_v55 = vsub.f32 %v25674_v59, %v25695_v13  ;;  %v5128_v1 = vsub.f32 %v25677_v60, %v29981_v15  ;;  %v285_v39 = vsel %vm259_vm0, %v249_v23, 0  ;;  %v4954_v13 = vld [vmem:[%s25515_s11 + $0x82] sm:$0xff]  ;;  %v256_v60 = vld [vmem:[%s25515_s11 + $0xb1] sm:$0xff] }
  0x34   : > { %30546 = vst [vmem:[#allocation25_spill] sm:$0xff] %v25704_v27  ;;  %30547 = vst [vmem:[#allocation26_spill] sm:$0xff] %v25707_v29  ;;  %v437_v8 = vsub.f32 %v25680_v61, %v25699_v17  ;;  %v5138_v9 = vsub.f32 %v25683_v63, %v29985_v22  ;;  %21330 = vmatprep.mubr.f32.mxu0 %v25704_v27  ;;  %21954 = vmatprep.mubr.f32.mxu1 %v5119_v28  ;;  %v25726_v58 = vand.u32 4294901760, %v25707_v29 }
  0x35   : > { %30548 = vst [vmem:[#allocation27_spill] sm:$0xff] %v25710_v37  ;;  %v29994_v43 = vand.u32 4294901760, %v25710_v37  ;;  %v4986_v15 = vsel %vm259_vm0, %v4951_v24, 0  ;;  %v25733_v62 = vand.u32 4294901760, %v427_v55  ;;  %v5129_v22 = vand.u32 4294901760, %v5128_v1 }
  0x36   : > { %30549 = vst [vmem:[#allocation28_spill] sm:$0xff] %v25726_v58  ;;  %v25735_v56 = vand.u32 4294901760, %v437_v8  ;;  %v5139_v27 = vand.u32 4294901760, %v5138_v9  ;;  %v447_v28 = vsub.f32 %v25707_v29, %v25726_v58  ;;  %v25742_v23 = vand.u32 4294901760, %v285_v39  ;;  %v252_v58 = vld [vmem:[%s25515_s11 + $0x81] sm:$0xff] }
  0x37   : > { %30550 = vst [vmem:[#allocation29_spill] sm:$0xff] %v25733_v62  ;;  %v5148_v17 = vsub.f32 %v25710_v37, %v29994_v43  ;;  %v25744_v24 = vand.u32 4294901760, %v4986_v15  ;;  %21331 = vmatmul.mubr.f32.gmra.mrb[4].mxu0 %v25733_v62  ;;  %21955 = vmatmul.mubr.f32.gmra.mrb[4].mxu1 %v5129_v22  ;;  %v288_v55 = vsel %vm259_vm0, %v250_v49, 0  ;;  %v4989_v1 = vsel %vm259_vm0, %v4952_v57, 0 }
  0x38   : > { %30551 = vst [vmem:[#allocation30_spill] sm:$0xff] %v25735_v56  ;;  %v291_v8 = vsel %vm259_vm0, %v251_v36, 0  ;;  %v4992_v9 = vsel %vm259_vm0, %v4953_v10, 0  ;;  %21333 = vmatprep.mubr.f32.mxu0 %v25735_v56  ;;  %21957 = vmatprep.mubr.f32.mxu1 %v5139_v27  ;;  %v25754_v43 = vand.u32 4294901760, %v447_v28  ;;  %v25757_v0 = vsub.f32 %v285_v39, %v25742_v23 }
  0x39   : > { %v5149_v54 = vand.u32 4294901760, %v5148_v17  ;;  %v25760_v22 = vsub.f32 %v4986_v15, %v25744_v24  ;;  %v25762_v49 = vand.u32 4294901760, %v288_v55  ;;  %v25764_v57 = vand.u32 4294901760, %v4989_v1 }
  0x3a   : > { %30552 = vst [vmem:[#allocation31_spill] sm:$0xff] %v25754_v43  ;;  %30553 = vst [vmem:[#allocation32_spill] sm:$0xff] %v25757_v0  ;;  %v25766_v36 = vand.u32 4294901760, %v291_v8  ;;  %v25768_v10 = vand.u32 4294901760, %v4992_v9  ;;  %v25771_v56 = vand.u32 4294901760, %v25757_v0  ;;  %v294_v17 = vsel %vm259_vm0, %v252_v58, 0 }
  0x3b   : > { %30554 = vst [vmem:[#allocation33_spill] sm:$0xff] %v25760_v22  ;;  %v30010_v27 = vand.u32 4294901760, %v25760_v22  ;;  %v4995_v39 = vsel %vm259_vm0, %v4954_v13, 0  ;;  %21334 = vmatmul.mubr.f32.gmra.mrb[6].mxu0 %v25754_v43  ;;  %21958 = vmatmul.mubr.f32.gmra.mrb[6].mxu1 %v5149_v54  ;;  %v25778_v15 = vsub.f32 %v288_v55, %v25762_v49  ;;  %v25781_v28 = vsub.f32 %v4989_v1, %v25764_v57 }
  0x3c   : > { %30555 = vst [vmem:[#allocation34_spill] sm:$0xff] %v25771_v56  ;;  %v25784_v62 = vsub.f32 %v291_v8, %v25766_v36  ;;  %v25786_v48 = vand.u32 4294901760, %v294_v17  ;;  %v457_v58 = vsub.f32 %v25757_v0, %v25771_v56  ;;  %v25794_v54 = vsub.f32 %v4992_v9, %v25768_v10  ;;  %v253_v56 = vld [vmem:[%s25515_s11 + $0x91] sm:$0xff] }
  0x3d   : > { %30556 = vst [vmem:[#allocation35_spill] sm:$0xff] %v25778_v15  ;;  %30557 = vst [vmem:[#allocation36_spill] sm:$0xff] %v25781_v28  ;;  %v5158_v13 = vsub.f32 %v25760_v22, %v30010_v27  ;;  %v25796_v55 = vand.u32 4294901760, %v4995_v39  ;;  %v25799_v1 = vand.u32 4294901760, %v25778_v15  ;;  %v30565_v37 = vand.u32 4294901760, %v25781_v28 }
  0x3e   : > { %30558 = vst [vmem:[#allocation37_spill] sm:$0xff] %v25784_v62  ;;  %30559 = vst [vmem:[#allocation38_spill] sm:$0xff] %v25794_v54  ;;  %v25803_v43 = vand.u32 4294901760, %v25784_v62  ;;  %v25806_v42 = vsub.f32 %v294_v17, %v25786_v48  ;;  %v25810_v27 = vand.u32 4294901760, %v457_v58  ;;  %v30034_v22 = vand.u32 4294901760, %v25794_v54 }
  0x3f   : > { %30560 = vst [vmem:[#allocation39_spill] sm:$0xff] %v25799_v1  ;;  %v5159_v9 = vand.u32 4294901760, %v5158_v13  ;;  %v25814_v0 = vsub.f32 %v4995_v39, %v25796_v55  ;;  %v467_v8 = vsub.f32 %v25778_v15, %v25799_v1  ;;  %v5168_v17 = vsub.f32 %v25781_v28, %v30565_v37  ;;  %v254_v28 = vld [vmem:[%s25515_s11 + $0x99] sm:$0xff] }
  0x40   : > { %30561 = vst [vmem:[#allocation40_spill] sm:$0xff] %v25803_v43  ;;  %30562 = vst [vmem:[#allocation41_spill] sm:$0xff] %v25806_v42  ;;  %v477_v29 = vsub.f32 %v25784_v62, %v25803_v43  ;;  %v25824_v58 = vand.u32 4294901760, %v25806_v42  ;;  %21336 = vmatprep.mubr.f32.mxu0 %v25810_v27  ;;  %v5178_v39 = vsub.f32 %v25794_v54, %v30034_v22  ;;  %v297_v1 = vsel %vm259_vm0, %v253_v56, 0  ;;  %v4956_v43 = vld [vmem:[%s25515_s11 + $0x9a] sm:$0xff]  ;;  %v255_v62 = vld [vmem:[%s25515_s11 + $0xa9] sm:$0xff] }
  0x41   : > { %30563 = vst [vmem:[#allocation42_spill] sm:$0xff] %v25810_v27  ;;  %30564 = vst [vmem:[#allocation43_spill] sm:$0xff] %v25814_v0  ;;  %21960 = vmatprep.mubr.f32.mxu1 %v5159_v9  ;;  %v30039_v13 = vand.u32 4294901760, %v25814_v0  ;;  %v4998_v37 = vsel %vm259_vm0, %v4955_v38, 0  ;;  %v25836_v15 = vand.u32 4294901760, %v467_v8  ;;  %v5169_v63 = vand.u32 4294901760, %v5168_v17 }
  0x42   : > { %30566 = vst [vmem:[#allocation44_spill] sm:$0xff] %v25824_v58  ;;  %v25838_v27 = vand.u32 4294901760, %v477_v29  ;;  %v487_v9 = vsub.f32 %v25806_v42, %v25824_v58  ;;  %v5179_v61 = vand.u32 4294901760, %v5178_v39  ;;  %v25845_v54 = vand.u32 4294901760, %v297_v1  ;;  %v4957_v56 = vld [vmem:[%s25515_s11 + $0xaa] sm:$0xff] }
  0x43   : > { %30567 = vst [vmem:[#allocation45_spill] sm:$0xff] %v25836_v15  ;;  %v5188_v22 = vsub.f32 %v25814_v0, %v30039_v13  ;;  %v25847_v38 = vand.u32 4294901760, %v4998_v37  ;;  %21337 = vmatmul.mubr.f32.gmra.mrb[8].mxu0 %v25836_v15  ;;  %21961 = vmatmul.mubr.f32.gmra.mrb[8].mxu1 %v5169_v63  ;;  %v300_v8 = vsel %vm259_vm0, %v254_v28, 0  ;;  %v5001_v17 = vsel %vm259_vm0, %v4956_v43, 0  ;;  %v4958_v63 = vld [vmem:[%s25515_s11 + $0xb2] sm:$0xff] }
  0x44   : > { %30568 = vst [vmem:[#allocation46_spill] sm:$0xff] %v25838_v27  ;;  %v25852_v29 = vand.u32 4294901760, %v487_v9  ;;  %v303_v39 = vsel %vm259_vm0, %v255_v62, 0  ;;  %21339 = vmatprep.mubr.f32.mxu0 %v25838_v27  ;;  %21963 = vmatprep.mubr.f32.mxu1 %v5179_v61  ;;  %v25859_v58 = vsub.f32 %v297_v1, %v25845_v54  ;;  %v25864_v15 = vand.u32 4294901760, %v300_v8 }
  0x45   : > { %v5189_v13 = vand.u32 4294901760, %v5188_v22  ;;  %v25862_v0 = vsub.f32 %v4998_v37, %v25847_v38  ;;  %v25867_v9 = vand.u32 4294901760, %v5001_v17  ;;  %v25869_v28 = vand.u32 4294901760, %v303_v39 }
  0x46   : > { %30569 = vst [vmem:[#allocation47_spill] sm:$0xff] %v25852_v29  ;;  %30570 = vst [vmem:[#allocation48_spill] sm:$0xff] %v25859_v58  ;;  %v5004_v43 = vsel %vm259_vm0, %v4957_v56, 0  ;;  %v306_v62 = vsel %vm259_vm0, %v256_v60, 0  ;;  %v25874_v61 = vand.u32 4294901760, %v25859_v58  ;;  %v25878_v1 = vsub.f32 %v300_v8, %v25864_v15 }
  0x47   : > { %30571 = vst [vmem:[#allocation49_spill] sm:$0xff] %v25862_v0  ;;  %v25880_v37 = vand.u32 4294901760, %v5004_v43  ;;  %21340 = vmatmul.mubr.f32.gmra.mrb[10].mxu0 %v25852_v29  ;;  %21964 = vmatmul.mubr.f32.gmra.mrb[10].mxu1 %v5189_v13  ;;  %v25884_v27 = vsub.f32 %v5001_v17, %v25867_v9  ;;  %v25887_v56 = vsub.f32 %v303_v39, %v25869_v28  ;;  %v25889_v60 = vand.u32 4294901760, %v306_v62 }
  0x48   : > { %30572 = vst [vmem:[#allocation50_spill] sm:$0xff] %v25874_v61  ;;  %30573 = vst [vmem:[#allocation51_spill] sm:$0xff] %v25878_v1  ;;  %v5007_v42 = vsel %vm259_vm0, %v4958_v63, 0  ;;  %v497_v22 = vsub.f32 %v25859_v58, %v25874_v61  ;;  %v30575_v8 = vand.u32 4294901760, %v25862_v0  ;;  %v25898_v29 = vand.u32 4294901760, %v25878_v1 }
  0x49   : > { %30574 = vst [vmem:[#allocation52_spill] sm:$0xff] %v25887_v56  ;;  %v25901_v13 = vsub.f32 %v5004_v43, %v25880_v37  ;;  %v30065_v17 = vand.u32 4294901760, %v25884_v27  ;;  %v25905_v39 = vand.u32 4294901760, %v25887_v56  ;;  %v25908_v63 = vsub.f32 %v306_v62, %v25889_v60 }
  0x4a   : > { %v5198_v59 = vsub.f32 %v25862_v0, %v30575_v8  ;;  %30576 = vst [vmem:[#allocation53_spill] sm:$0xff] %v25898_v29  ;;  %v25910_v16 = vand.u32 4294901760, %v5007_v42  ;;  %v25912_v61 = vand.u32 4294901760, %v497_v22  ;;  %v507_v8 = vsub.f32 %v25878_v1, %v25898_v29 }
  0x4b   : > { %30577 = vst [vmem:[#allocation54_spill] sm:$0xff] %v25905_v39  ;;  %30578 = vst [vmem:[#allocation55_spill] sm:$0xff] %v25908_v63  ;;  %v30071_v0 = vand.u32 4294901760, %v25901_v13  ;;  %v5208_v43 = vsub.f32 %v25884_v27, %v30065_v17  ;;  %v517_v14 = vsub.f32 %v25887_v56, %v25905_v39  ;;  %v25923_v62 = vand.u32 4294901760, %v25908_v63 }
  0x4c   : > { %v5199_v58 = vand.u32 4294901760, %v5198_v59  ;;  %v25926_v53 = vsub.f32 %v5007_v42, %v25910_v16  ;;  %21342 = vmatprep.mubr.f32.mxu0 %v25912_v61  ;;  %v25929_v59 = vand.u32 4294901760, %v507_v8 }
  0x4d   : > { %30579 = vst [vmem:[#allocation56_spill] sm:$0xff] %v25923_v62  ;;  %v5218_v22 = vsub.f32 %v25901_v13, %v30071_v0  ;;  %v5209_v29 = vand.u32 4294901760, %v5208_v43  ;;  %v25934_v17 = vand.u32 4294901760, %v517_v14  ;;  %v527_v39 = vsub.f32 %v25908_v63, %v25923_v62  ;;  %v30584_v43 = vld [vmem:[#allocation20_spill] sm:$0xff]  ;;  %v30590_v0 = vld [vmem:[#allocation33_spill] sm:$0xff] }
  0x4e   : > { %21966 = vmatprep.mubr.f32.mxu1 %v5199_v58  ;;  %v30070_v56 = vand.u32 4294901760, %v25926_v53  ;;  %21343 = vmatmul.mubr.f32.gmra.mrb[12].mxu0 %v25929_v59 }
  0x4f   : > { %v5219_v42 = vand.u32 4294901760, %v5218_v22  ;;  %21967 = vmatmul.mubr.f32.gmra.mrb[12].mxu1 %v5209_v29  ;;  %21345 = vmatprep.mubr.f32.mxu0 %v25934_v17  ;;  %v25941_v58 = vand.u32 4294901760, %v527_v39  ;;  %v30582_v29 = vld [vmem:[#allocation17_spill] sm:$0xff]  ;;  %v30583_v39 = vld [vmem:[#allocation19_spill] sm:$0xff] }
  0x50   : > { %v5228_v8 = vsub.f32 %v25926_v53, %v30070_v56  ;;  %v30585_v22 = vld [vmem:[#allocation21_spill] sm:$0xff]  ;;  %v30589_v56 = vld [vmem:[#allocation32_spill] sm:$0xff] }
  0x51   : > { %21969 = vmatprep.mubr.f32.mxu1 %v5219_v42  ;;  %v30586_v42 = vld [vmem:[#allocation22_spill] sm:$0xff] }
  0x52   : > { %v5229_v14 = vand.u32 4294901760, %v5228_v8  ;;  %21346 = vmatmul.mubr.f32.gmra.mrb[14].mxu0 %v25941_v58  ;;  %v30587_v8 = vld [vmem:[#allocation26_spill] sm:$0xff] }
  0x53   : > { %21350 = vmatprep.mubr.f32.mxu0 %v25532_v19 }
  0x54   : > { %21970 = vmatmul.mubr.f32.gmra.mrb[14].mxu1 %v5229_v14  ;;  %v30588_v14 = vld [vmem:[#allocation27_spill] sm:$0xff] }
  0x55   : > { %21974 = vmatprep.mubr.f32.mxu1 %v25534_v20 }
  0x56   : > { %21351 = vmatmul.mubr.f32.vlgmr.msra.gmra.mrb[0].mxu0 %v25542_v25 }
  0x57   : > { %21375 = vmatpush3.msra.mxu0 %v25499_v4  ;;  %21353 = vmatprep.mubr.f32.mxu0 %v25555_v32  ;;  %v30580_v4 = vld [vmem:[#allocation10_spill] sm:$0xff] }
  0x58   : > { %21975 = vmatmul.mubr.f32.vlgmr.msra.gmra.mrb[0].mxu1 %v25544_v26  ;;  %21400 = vmatprep.subr.mxu0 %v25490_v2 }
  0x59   : > { %21999 = vmatpush3.msra.mxu1 %v25502_v5  ;;  %21977 = vmatprep.mubr.f32.mxu1 %v25557_v33  ;;  %v30581_v5 = vld [vmem:[#allocation16_spill] sm:$0xff] }
  0x5a   : > { %21354 = vmatmul.mubr.f32.gmra.mrb[2].mxu0 %v25581_v44  ;;  %22024 = vmatprep.subr.mxu1 %v25492_v3 }
  0x5b   : > { %21356 = vmatprep.mubr.f32.mxu0 %v25635_v18 }
  0x5c   : > { %21978 = vmatmul.mubr.f32.gmra.mrb[2].mxu1 %v25583_v45 }
  0x5d   : > { %21980 = vmatprep.mubr.f32.mxu1 %v25637_v21 }
  0x5e   : > { %21357 = vmatmul.mubr.f32.gmra.mrb[4].mxu0 %v25656_v46 }
  0x5f   : > { %21359 = vmatprep.mubr.f32.mxu0 %v25660_v50 }
  0x60   : > { %21981 = vmatmul.mubr.f32.gmra.mrb[4].mxu1 %v25658_v47 }
  0x61   : > { %21983 = vmatprep.mubr.f32.mxu1 %v25662_v51 }
  0x62   : > { %21360 = vmatmul.mubr.f32.gmra.mrb[6].mxu0 %v25690_v11 }
  0x63   : > { %21362 = vmatprep.mubr.f32.mxu0 %v25742_v23 }
  0x64   : > { %21984 = vmatmul.mubr.f32.gmra.mrb[6].mxu1 %v25692_v12 }
  0x65   : > { %21986 = vmatprep.mubr.f32.mxu1 %v25744_v24 }
  0x66   : > { %21363 = vmatmul.mubr.f32.gmra.mrb[8].mxu0 %v25762_v49 }
  0x67   : > { %21365 = vmatprep.mubr.f32.mxu0 %v25766_v36 }
  0x68   : > { %21987 = vmatmul.mubr.f32.gmra.mrb[8].mxu1 %v25764_v57 }
  0x69   : > { %21989 = vmatprep.mubr.f32.mxu1 %v25768_v10 }
  0x6a   : > { %21366 = vmatmul.mubr.f32.gmra.mrb[10].mxu0 %v25786_v48 }
  0x6b   : > { %21368 = vmatprep.mubr.f32.mxu0 %v25845_v54 }
  0x6c   : > { %21990 = vmatmul.mubr.f32.gmra.mrb[10].mxu1 %v25796_v55 }
  0x6d   : > { %21992 = vmatprep.mubr.f32.mxu1 %v25847_v38 }
  0x6e   : > { %21369 = vmatmul.mubr.f32.gmra.mrb[12].mxu0 %v25864_v15 }
  0x6f   : > { %21371 = vmatprep.mubr.f32.mxu0 %v25869_v28 }
  0x70   : > { %21993 = vmatmul.mubr.f32.gmra.mrb[12].mxu1 %v25867_v9 }
  0x71   : > { %21995 = vmatprep.mubr.f32.mxu1 %v25880_v37 }
  0x72   : > { %21372 = vmatmul.mubr.f32.gmra.mrb[14].mxu0 %v25889_v60 }
  0x73   : > { %21376 = vmatprep.mubr.f32.mxu0 %v25550_v30  ;;  %v30597_v30 = vld [vmem:[#allocation48_spill] sm:$0xff] }
  0x74   : > { %21996 = vmatmul.mubr.f32.gmra.mrb[14].mxu1 %v25910_v16 }
  0x75   : > { %22000 = vmatprep.mubr.f32.mxu1 %v25553_v31 }
  0x76   : > { %21377 = vmatmul.mubr.f32.vlgmr.msra.gmra.mrb[0].mxu0 %v25560_v34  ;;  %v30595_v34 = vld [vmem:[#allocation41_spill] sm:$0xff] }
  0x77   : > { %21401 = vmatpush3.msra.mxu0 %v25490_v2  ;;  %21379 = vmatprep.mubr.f32.mxu0 %v25572_v40  ;;  %v30593_v40 = vld [vmem:[#allocation37_spill] sm:$0xff] }
  0x78   : > { %22001 = vmatmul.mubr.f32.vlgmr.msra.gmra.mrb[0].mxu1 %v25563_v35  ;;  %21426 = vmatprep.subr.mxu0 %v25507_v6 }
  0x79   : > { %22025 = vmatpush3.msra.mxu1 %v25492_v3  ;;  %22003 = vmatprep.mubr.f32.mxu1 %v25575_v41 }
  0x7a   : > { %21380 = vmatmul.mubr.f32.gmra.mrb[2].mxu0 %v25600_v52  ;;  %22050 = vmatprep.subr.mxu1 %v25510_v7  ;;  %v30591_v52 = vld [vmem:[#allocation35_spill] sm:$0xff] }
  0x7b   : > { %21382 = vmatprep.mubr.f32.mxu0 %v30581_v5  ;;  %v30592_v5 = vld [vmem:[#allocation36_spill] sm:$0xff] }
  0x7c   : > { %22004 = vmatmul.mubr.f32.gmra.mrb[2].mxu1 %v30580_v4 }
  0x7d   : > { %22006 = vmatprep.mubr.f32.mxu1 %v30582_v29 }
  0x7e   : > { %21383 = vmatmul.mubr.f32.gmra.mrb[4].mxu0 %v30583_v39  ;;  %v30594_v39 = vld [vmem:[#allocation38_spill] sm:$0xff] }
  0x7f   : > { %21385 = vmatprep.mubr.f32.mxu0 %v30585_v22  ;;  %v30596_v22 = vld [vmem:[#allocation43_spill] sm:$0xff] }
  0x80   : > { %22007 = vmatmul.mubr.f32.gmra.mrb[4].mxu1 %v30584_v43 }
  0x81   : > { %22009 = vmatprep.mubr.f32.mxu1 %v30586_v42 }
  0x82   : > { %21386 = vmatmul.mubr.f32.gmra.mrb[6].mxu0 %v30587_v8  ;;  %v30598_v8 = vld [vmem:[#allocation49_spill] sm:$0xff] }
  0x83   : > { %21388 = vmatprep.mubr.f32.mxu0 %v30589_v56  ;;  %v30599_v56 = vld [vmem:[#allocation52_spill] sm:$0xff] }
  0x84   : > { %22010 = vmatmul.mubr.f32.gmra.mrb[6].mxu1 %v30588_v14 }
  0x85   : > { %22012 = vmatprep.mubr.f32.mxu1 %v30590_v0 }
  0x86   : > { %21389 = vmatmul.mubr.f32.gmra.mrb[8].mxu0 %v30591_v52 }
  0x87   : > { %21391 = vmatprep.mubr.f32.mxu0 %v30593_v40  ;;  %v30600_v40 = vld [vmem:[#allocation5_spill] sm:$0xff] }
  0x88   : > { %22013 = vmatmul.mubr.f32.gmra.mrb[8].mxu1 %v30592_v5 }
  0x89   : > { %22015 = vmatprep.mubr.f32.mxu1 %v30594_v39 }
  0x8a   : > { %21392 = vmatmul.mubr.f32.gmra.mrb[10].mxu0 %v30595_v34  ;;  %v30601_v34 = vand.u32 4294901760, %v25553_v31  ;;  %v30607_v31 = vand.u32 4294901760, %v30580_v4  ;;  %v30615_v4 = vand.u32 4294901760, %v30588_v14  ;;  %v30623_v14 = vand.u32 4294901760, %v30596_v22 }
  0x8b   : > { %21394 = vmatprep.mubr.f32.mxu0 %v30597_v30  ;;  %v30602_v30 = vld [vmem:[#allocation7_spill] sm:$0xff] }
  0x8c   : > { %22016 = vmatmul.mubr.f32.gmra.mrb[10].mxu1 %v30596_v22  ;;  %v240_v22 = vld [vmem:[%s29973_s1] sm:$0xff] }
  0x8d   : > { %22018 = vmatprep.mubr.f32.mxu1 %v30598_v8 }
  0x8e   : > { %21395 = vmatmul.mubr.f32.gmra.mrb[12].mxu0 %v25878_v1  ;;  %v30603_v1 = vand.u32 4294901760, %v25563_v35  ;;  %v30611_v35 = vand.u32 4294901760, %v30584_v43  ;;  %v30619_v43 = vand.u32 4294901760, %v30592_v5  ;;  %v30627_v5 = vand.u32 4294901760, %v25884_v27 }
  0x8f   : > { %21397 = vmatprep.mubr.f32.mxu0 %v30599_v56  ;;  %v30604_v56 = vld [vmem:[#allocation8_spill] sm:$0xff] }
  0x90   : > { %22019 = vmatmul.mubr.f32.gmra.mrb[12].mxu1 %v25884_v27  ;;  %v19460_v27 = vld [vmem:[%s29973_s1 + $0x20] sm:$0xff] }
  0x91   : > { %22021 = vmatprep.mubr.f32.mxu1 %v25901_v13 }
  0x92   : > { %21398 = vmatmul.mubr.f32.gmra.mrb[14].mxu0 %v25908_v63  ;;  %v30605_v63 = vand.u32 4294901760, %v25575_v41  ;;  %v30612_v41 = vld [vmem:[#allocation24_spill] sm:$0xff] }
  0x93   : > { %21402 = vmatprep.mubr.f32.mxu0 %v30600_v40  ;;  %v30606_v40 = vld [vmem:[#allocation13_spill] sm:$0xff] }
  0x94   : > { %22022 = vmatmul.mubr.f32.gmra.mrb[14].mxu1 %v25926_v53 }
  0x95   : > { %22026 = vmatprep.mubr.f32.mxu1 %v30601_v34  ;;  %v30609_v34 = vand.u32 4294901760, %v30582_v29  ;;  %v30617_v29 = vand.u32 4294901760, %v30590_v0  ;;  %v30625_v0 = vand.u32 4294901760, %v30598_v8  ;;  %v26079_v8 = vand.u32 4294901760, %v240_v22 }
  0x96   : > { %21403 = vmatmul.mubr.f32.vlgmr.msra.gmra.mrb[0].mxu0 %v30602_v30  ;;  %v236_v30 = vld [vmem:[%s25515_s11 + $0x90] sm:$0xff] }
  0x97   : > { %21427 = vmatpush3.msra.mxu0 %v25507_v6  ;;  %21405 = vmatprep.mubr.f32.mxu0 %v30604_v56  ;;  %v30608_v6 = vld [vmem:[#allocation18_spill] sm:$0xff] }
  0x98   : > { %22027 = vmatmul.mubr.f32.vlgmr.msra.gmra.mrb[0].mxu1 %v30603_v1  ;;  %21452 = vmatprep.subr.mxu0 %v25490_v2  ;;  %v30613_v1 = vand.u32 4294901760, %v30586_v42  ;;  %v30621_v42 = vand.u32 4294901760, %v30594_v39  ;;  %v30629_v39 = vand.u32 4294901760, %v25901_v13  ;;  %v26082_v13 = vand.u32 4294901760, %v19460_v27 }
  0x99   : > { %22051 = vmatpush3.msra.mxu1 %v25510_v7  ;;  %22029 = vmatprep.mubr.f32.mxu1 %v30605_v63  ;;  %v30610_v7 = vld [vmem:[#allocation23_spill] sm:$0xff]  ;;  %v30614_v63 = vld [vmem:[#allocation28_spill] sm:$0xff] }
  0x9a   : > { %21406 = vmatmul.mubr.f32.gmra.mrb[2].mxu0 %v30606_v40  ;;  %22076 = vmatprep.subr.mxu1 %v25492_v3  ;;  %v235_v40 = vld [vmem:[%s25515_s11 + $0x80] sm:$0xff] }
  0x9b   : > { %21408 = vmatprep.mubr.f32.mxu0 %v30608_v6 }
  0x9c   : > { %22030 = vmatmul.mubr.f32.gmra.mrb[2].mxu1 %v30607_v31  ;;  %v30616_v31 = vld [vmem:[#allocation34_spill] sm:$0xff] }
  0x9d   : > { %22032 = vmatprep.mubr.f32.mxu1 %v30609_v34  ;;  %v30618_v34 = vld [vmem:[#allocation39_spill] sm:$0xff] }
  0x9e   : > { %21409 = vmatmul.mubr.f32.gmra.mrb[4].mxu0 %v30610_v7 }
  0x9f   : > { %21411 = vmatprep.mubr.f32.mxu0 %v30612_v41 }
  0xa0   : > { %22033 = vmatmul.mubr.f32.gmra.mrb[4].mxu1 %v30611_v35  ;;  %v30620_v35 = vld [vmem:[#allocation40_spill] sm:$0xff] }
  0xa1   : > { %22035 = vmatprep.mubr.f32.mxu1 %v30613_v1  ;;  %v30622_v1 = vld [vmem:[#allocation44_spill] sm:$0xff] }
  0xa2   : > { %21412 = vmatmul.mubr.f32.gmra.mrb[6].mxu0 %v30614_v63 }
  0xa3   : > { %21414 = vmatprep.mubr.f32.mxu0 %v30616_v31 }
  0xa4   : > { %22036 = vmatmul.mubr.f32.gmra.mrb[6].mxu1 %v30615_v4  ;;  %v30624_v4 = vld [vmem:[#allocation50_spill] sm:$0xff] }
  0xa5   : > { %22038 = vmatprep.mubr.f32.mxu1 %v30617_v29  ;;  %v30626_v29 = vld [vmem:[#allocation53_spill] sm:$0xff] }
  0xa6   : > { %21415 = vmatmul.mubr.f32.gmra.mrb[8].mxu0 %v30618_v34 }
  0xa7   : > { %21417 = vmatprep.mubr.f32.mxu0 %v30620_v35 }
  0xa8   : > { %22039 = vmatmul.mubr.f32.gmra.mrb[8].mxu1 %v30619_v43  ;;  %v30628_v43 = vld [vmem:[#allocation54_spill] sm:$0xff] }
  0xa9   : > { %22041 = vmatprep.mubr.f32.mxu1 %v30621_v42  ;;  %v30630_v42 = vand.u32 4294901760, %v25926_v53 }
  0xaa   : > { %21418 = vmatmul.mubr.f32.gmra.mrb[10].mxu0 %v30622_v1  ;;  %v232_v1 = vld [vmem:[%s25515_s11 + $0x60] sm:$0xff] }
  0xab   : > { %21420 = vmatprep.mubr.f32.mxu0 %v30624_v4  ;;  %v1424_v31 = vsel %vm259_vm0, %v232_v1, 0 }
  0xac   : > { %22042 = vmatmul.mubr.f32.gmra.mrb[10].mxu1 %v30623_v14  ;;  %v26239_v41 = vand.u32 4294901760, %v1424_v31 }
  0xad   : > { %22044 = vmatprep.mubr.f32.mxu1 %v30625_v0 }
  0xae   : > { %21421 = vmatmul.mubr.f32.gmra.mrb[12].mxu0 %v30626_v29 }
  0xaf   : > { %21423 = vmatprep.mubr.f32.mxu0 %v30628_v43 }
  0xb0   : > { %22045 = vmatmul.mubr.f32.gmra.mrb[12].mxu1 %v30627_v5 }
  0xb1   : > { %22047 = vmatprep.mubr.f32.mxu1 %v30629_v39 }
  0xb2   : > { %21424 = vmatmul.mubr.f32.gmra.mrb[14].mxu0 %v25923_v62  ;;  %v229_v62 = vld [vmem:[%s25515_s11 + $0x38] sm:$0xff] }
  0xb3   : > { %21428 = vmatprep.mubr.f32.mxu0 %v25532_v19 }
  0xb4   : > { %22048 = vmatmul.mubr.f32.gmra.mrb[14].mxu1 %v30630_v42  ;;  %v224_v42 = vld [vmem:[%s25515_s11] sm:$0xff] }
  0xb5   : > { %22052 = vmatprep.mubr.f32.mxu1 %v25534_v20 }
  0xb6   : > { %21429 = vmatmul.mubr.f32.vlgmr.msra.gmra.mrb[0].mxu0 %v25542_v25 }
  0xb7   : > { %21453 = vmatpush3.msra.mxu0 %v25490_v2  ;;  %21431 = vmatprep.mubr.f32.mxu0 %v25555_v32  ;;  %v26108_v2 = vsub.f32 %v240_v22, %v26079_v8 }
  0xb8   : > { %22053 = vmatmul.mubr.f32.vlgmr.msra.gmra.mrb[0].mxu1 %v25544_v26  ;;  %21478 = vmatprep.subr.mxu0 %v26079_v8 }
  0xb9   : > { %22077 = vmatpush3.msra.mxu1 %v25492_v3  ;;  %22055 = vmatprep.mubr.f32.mxu1 %v25557_v33  ;;  %v26112_v3 = vsub.f32 %v19460_v27, %v26082_v13  ;;  %v26118_v53 = vand.u32 4294901760, %v26108_v2 }
  0xba   : > { %21432 = vmatmul.mubr.f32.gmra.mrb[2].mxu0 %v25581_v44  ;;  %22102 = vmatprep.subr.mxu1 %v26082_v13 }
  0xbb   : > { %21434 = vmatprep.mubr.f32.mxu0 %v25635_v18  ;;  %30631 = vst [vmem:[#allocation10_spill] sm:$0xff] %v26118_v53  ;;  %v26122_v14 = vand.u32 4294901760, %v26112_v3  ;;  %v1677_v0 = vsub.f32 %v26108_v2, %v26118_v53 }
  0xbc   : > { %22056 = vmatmul.mubr.f32.gmra.mrb[2].mxu1 %v25583_v45 }
  0xbd   : > { %22058 = vmatprep.mubr.f32.mxu1 %v25637_v21  ;;  %30632 = vst [vmem:[#allocation17_spill] sm:$0xff] %v26122_v14  ;;  %v6378_v5 = vsub.f32 %v26112_v3, %v26122_v14  ;;  %v26135_v39 = vand.u32 4294901760, %v1677_v0  ;;  %v227_v0 = vld [vmem:[%s25515_s11 + $0x20] sm:$0xff]  ;;  %v1433_v14 = vsel %vm259_vm0, %v235_v40, 0 }
  0xbe   : > { %21435 = vmatmul.mubr.f32.gmra.mrb[4].mxu0 %v25656_v46 }
  0xbf   : > { %21437 = vmatprep.mubr.f32.mxu0 %v25660_v50  ;;  %v26138_v22 = vand.u32 4294901760, %v6378_v5  ;;  %v228_v5 = vld [vmem:[%s25515_s11 + $0x30] sm:$0xff] }
  0xc0   : > { %22059 = vmatmul.mubr.f32.gmra.mrb[4].mxu1 %v25658_v47  ;;  %v1412_v43 = vsel %vm259_vm0, %v228_v5, 0  ;;  %v231_v5 = vld [vmem:[%s25515_s11 + $0x50] sm:$0xff] }
  0xc1   : > { %22061 = vmatprep.mubr.f32.mxu1 %v25662_v51  ;;  %v26191_v4 = vand.u32 4294901760, %v1412_v43 }
  0xc2   : > { %21438 = vmatmul.mubr.f32.gmra.mrb[6].mxu0 %v25690_v11 }
  0xc3   : > { %21440 = vmatprep.mubr.f32.mxu0 %v25742_v23  ;;  %v26215_v34 = vsub.f32 %v1412_v43, %v26191_v4 }
  0xc4   : > { %22062 = vmatmul.mubr.f32.gmra.mrb[6].mxu1 %v25692_v12 }
  0xc5   : > { %22064 = vmatprep.mubr.f32.mxu1 %v25744_v24  ;;  %30636 = vst [vmem:[#allocation27_spill] sm:$0xff] %v26215_v34 }
  0xc6   : > { %21441 = vmatmul.mubr.f32.gmra.mrb[8].mxu0 %v25762_v49 }
  0xc7   : > { %21443 = vmatprep.mubr.f32.mxu0 %v25766_v36 }
  0xc8   : > { %22065 = vmatmul.mubr.f32.gmra.mrb[8].mxu1 %v25764_v57 }
  0xc9   : > { %22067 = vmatprep.mubr.f32.mxu1 %v25768_v10 }
  0xca   : > { %21444 = vmatmul.mubr.f32.gmra.mrb[10].mxu0 %v25786_v48 }
  0xcb   : > { %21446 = vmatprep.mubr.f32.mxu0 %v25845_v54 }
  0xcc   : > { %22068 = vmatmul.mubr.f32.gmra.mrb[10].mxu1 %v25796_v55 }
  0xcd   : > { %22070 = vmatprep.mubr.f32.mxu1 %v25847_v38 }
  0xce   : > { %21447 = vmatmul.mubr.f32.gmra.mrb[12].mxu0 %v25864_v15 }
  0xcf   : > { %21449 = vmatprep.mubr.f32.mxu0 %v25869_v28 }
  0xd0   : > { %22071 = vmatmul.mubr.f32.gmra.mrb[12].mxu1 %v25867_v9 }
  0xd1   : > { %22073 = vmatprep.mubr.f32.mxu1 %v25880_v37 }
  0xd2   : > { %21450 = vmatmul.mubr.f32.gmra.mrb[14].mxu0 %v25889_v60 }
  0xd3   : > { %21454 = vmatprep.mubr.f32.mxu0 %v25532_v19 }
  0xd4   : > { %22074 = vmatmul.mubr.f32.gmra.mrb[14].mxu1 %v25910_v16 }
  0xd5   : > { %22078 = vmatprep.mubr.f32.mxu1 %v25534_v20  ;;  %v1400_v20 = vsel %vm259_vm0, %v224_v42, 0 }
  0xd6   : > { %21455 = vmatmul.mubr.f32.vlgmr.msra.gmra.mrb[0].mxu0 %v25542_v25  ;;  %v26158_v27 = vand.u32 4294901760, %v1400_v20 }
  0xd7   : > { %21479 = vmatpush3.msra.mxu0 %v26079_v8  ;;  %21457 = vmatprep.mubr.f32.mxu0 %v25555_v32 }
  0xd8   : > { %22079 = vmatmul.mubr.f32.vlgmr.msra.gmra.mrb[0].mxu1 %v25544_v26  ;;  %21504 = vmatprep.subr.mxu0 %v26135_v39  ;;  %v225_v26 = vld [vmem:[%s25515_s11 + $0x8] sm:$0xff] }
  0xd9   : > { %22103 = vmatpush3.msra.mxu1 %v26082_v13  ;;  %22081 = vmatprep.mubr.f32.mxu1 %v25557_v33  ;;  %v226_v33 = vld [vmem:[%s25515_s11 + $0x18] sm:$0xff] }
  0xda   : > { %21458 = vmatmul.mubr.f32.gmra.mrb[2].mxu0 %v25581_v44  ;;  %22128 = vmatprep.subr.mxu1 %v26138_v22 }
  0xdb   : > { %21460 = vmatprep.mubr.f32.mxu0 %v25635_v18 }
  0xdc   : > { %22082 = vmatmul.mubr.f32.gmra.mrb[2].mxu1 %v25583_v45  ;;  %v1403_v45 = vsel %vm259_vm0, %v225_v26, 0  ;;  %v1409_v26 = vsel %vm259_vm0, %v227_v0, 0 }
  0xdd   : > { %22084 = vmatprep.mubr.f32.mxu1 %v25637_v21  ;;  %v1406_v21 = vsel %vm259_vm0, %v226_v33, 0  ;;  %v26166_v42 = vand.u32 4294901760, %v1403_v45  ;;  %v26184_v29 = vand.u32 4294901760, %v1409_v26 }
  0xde   : > { %21461 = vmatmul.mubr.f32.gmra.mrb[4].mxu0 %v25656_v46  ;;  %v26177_v33 = vand.u32 4294901760, %v1406_v21 }
  0xdf   : > { %21463 = vmatprep.mubr.f32.mxu0 %v25660_v50 }
  0xe0   : > { %22085 = vmatmul.mubr.f32.gmra.mrb[4].mxu1 %v25658_v47  ;;  %v26171_v47 = vsub.f32 %v1400_v20, %v26158_v27  ;;  %v1415_v20 = vsel %vm259_vm0, %v229_v62, 0 }
  0xe1   : > { %22087 = vmatprep.mubr.f32.mxu1 %v25662_v51  ;;  %v230_v51 = vld [vmem:[%s25515_s11 + $0x48] sm:$0xff]  ;;  %v26199_v35 = vand.u32 4294901760, %v1415_v20 }
  0xe2   : > { %21464 = vmatmul.mubr.f32.gmra.mrb[6].mxu0 %v25690_v11  ;;  %v1418_v0 = vsel %vm259_vm0, %v230_v51, 0  ;;  %v26206_v51 = vsub.f32 %v1409_v26, %v26184_v29 }
  0xe3   : > { %21466 = vmatprep.mubr.f32.mxu0 %v25742_v23  ;;  %v26201_v62 = vand.u32 4294901760, %v1418_v0 }
  0xe4   : > { %22088 = vmatmul.mubr.f32.gmra.mrb[6].mxu1 %v25692_v12  ;;  %v26182_v12 = vsub.f32 %v1403_v45, %v26166_v42  ;;  %v26196_v45 = vsub.f32 %v1406_v21, %v26177_v33  ;;  %30634 = vst [vmem:[#allocation22_spill] sm:$0xff] %v26206_v51  ;;  %v26237_v43 = vand.u32 4294901760, %v26206_v51 }
  0xe5   : > { %22090 = vmatprep.mubr.f32.mxu1 %v25744_v24  ;;  %v1421_v24 = vsel %vm259_vm0, %v231_v5, 0  ;;  %v26224_v5 = vsub.f32 %v1415_v20, %v26199_v35 }
  0xe6   : > { %21467 = vmatmul.mubr.f32.gmra.mrb[8].mxu0 %v25762_v49  ;;  %30633 = vst [vmem:[#allocation20_spill] sm:$0xff] %v26196_v45  ;;  %v26220_v26 = vand.u32 4294901760, %v26196_v45  ;;  %v26229_v63 = vand.u32 4294901760, %v1421_v24  ;;  %v30640_v1 = vand.u32 4294901760, %v26182_v12  ;;  %30641 = vst [vmem:[#allocation43_spill] sm:$0xff] %v26237_v43 }
  0xe7   : > { %21469 = vmatprep.mubr.f32.mxu0 %v25766_v36  ;;  %30638 = vst [vmem:[#allocation36_spill] sm:$0xff] %v26224_v5  ;;  %v26253_v56 = vand.u32 4294901760, %v26224_v5 }
  0xe8   : > { %22091 = vmatmul.mubr.f32.gmra.mrb[8].mxu1 %v25764_v57  ;;  %30637 = vst [vmem:[#allocation33_spill] sm:$0xff] %v26220_v26  ;;  %v233_v57 = vld [vmem:[%s25515_s11 + $0x68] sm:$0xff] }
  0xe9   : > { %22093 = vmatprep.mubr.f32.mxu1 %v25768_v10  ;;  %v30635_v10 = vand.u32 4294901760, %v26171_v47  ;;  %v1427_v7 = vsel %vm259_vm0, %v233_v57, 0  ;;  %30643 = vst [vmem:[#allocation57_spill] sm:$0xff] %v26253_v56  ;;  %v1546_v57 = vsub.f32 %v26206_v51, %v26237_v43  ;;  %v1436_v43 = vsel %vm259_vm0, %v236_v30, 0 }
  0xea   : > { %21470 = vmatmul.mubr.f32.gmra.mrb[10].mxu0 %v25786_v48  ;;  %v1566_v51 = vsub.f32 %v26224_v5, %v26253_v56  ;;  %v30653_v56 = vld [vmem:[#allocation12_spill] sm:$0xff]  ;;  %v239_v5 = vld [vmem:[%s25515_s11 + $0xb0] sm:$0xff] }
  0xeb   : > { %21472 = vmatprep.mubr.f32.mxu0 %v25845_v54  ;;  %v1516_v21 = vsub.f32 %v26171_v47, %v30635_v10  ;;  %v234_v10 = vld [vmem:[%s25515_s11 + $0x78] sm:$0xff]  ;;  %v26289_v40 = vand.u32 4294901760, %v1546_v57 }
  0xec   : > { %22094 = vmatmul.mubr.f32.gmra.mrb[10].mxu1 %v25796_v55  ;;  %v26227_v55 = vsub.f32 %v1418_v0, %v26201_v62  ;;  %v26244_v0 = vand.u32 4294901760, %v26215_v34  ;;  %v1430_v6 = vsel %vm259_vm0, %v234_v10, 0  ;;  %v26266_v10 = vsub.f32 %v1424_v31, %v26239_v41  ;;  %v237_v31 = vld [vmem:[%s25515_s11 + $0x98] sm:$0xff] }
  0xed   : > { %22096 = vmatprep.mubr.f32.mxu1 %v25847_v38  ;;  %v1526_v38 = vsub.f32 %v26182_v12, %v30640_v1  ;;  %v1517_v20 = vand.u32 4294901760, %v1516_v21  ;;  %v1536_v1 = vsub.f32 %v26196_v45, %v26220_v26  ;;  %v26259_v21 = vsub.f32 %v1421_v24, %v26229_v63  ;;  %30650 = vst [vmem:[#allocation62_spill] sm:$0xff] %v26289_v40 }
  0xee   : > { %30639 = vst [vmem:[#allocation38_spill] sm:$0xff] %v26227_v55  ;;  %21473 = vmatmul.mubr.f32.gmra.mrb[12].mxu0 %v25864_v15  ;;  %30642 = vst [vmem:[#allocation49_spill] sm:$0xff] %v26244_v0  ;;  %v26268_v26 = vand.u32 4294901760, %v1427_v7  ;;  %v1556_v24 = vsub.f32 %v26215_v34, %v26244_v0  ;;  %v26273_v52 = vand.u32 4294901760, %v1430_v6  ;;  %v238_v0 = vld [vmem:[%s25515_s11 + $0xa8] sm:$0xff]  ;;  %v1439_v57 = vsel %vm259_vm0, %v237_v31, 0 }
  0xef   : > { %21475 = vmatprep.mubr.f32.mxu0 %v25869_v28  ;;  %30645 = vst [vmem:[#allocation59_spill] sm:$0xff] %v26259_v21  ;;  %30646 = vst [vmem:[#allocation60_spill] sm:$0xff] %v26266_v10  ;;  %v26277_v53 = vand.u32 4294901760, %v1536_v1  ;;  %v26292_v1 = vand.u32 4294901760, %v26266_v10  ;;  %v30656_v34 = vld [vmem:[#allocation14_spill] sm:$0xff] }
  0xf0   : > { %22097 = vmatmul.mubr.f32.gmra.mrb[12].mxu1 %v25867_v9  ;;  %v26256_v9 = vand.u32 4294901760, %v26227_v55  ;;  %v26295_v30 = vsub.f32 %v1427_v7, %v26268_v26  ;;  %v1442_v7 = vsel %vm259_vm0, %v238_v0, 0 }
  0xf1   : > { %22099 = vmatprep.mubr.f32.mxu1 %v25880_v37  ;;  %v1527_v37 = vand.u32 4294901760, %v1526_v38  ;;  %v30647_v38 = vld [vmem:[#allocation11_spill] sm:$0xff]  ;;  %30651 = vst [vmem:[#allocation63_spill] sm:$0xff] %v26292_v1 }
  0xf2   : > { %30644 = vst [vmem:[#allocation58_spill] sm:$0xff] %v26256_v9  ;;  %21476 = vmatmul.mubr.f32.gmra.mrb[14].mxu0 %v25889_v60  ;;  %30648 = vst [vmem:[#allocation11_spill] sm:$0xff] %v26277_v53 }
  0xf3   : > { %21480 = vmatprep.mubr.f32.mxu0 %v1517_v20  ;;  %v26286_v20 = vand.u32 4294901760, %v26259_v21  ;;  %30652 = vst [vmem:[#allocation64_spill] sm:$0xff] %v26295_v30 }
  0xf4   : > { %22100 = vmatmul.mubr.f32.gmra.mrb[14].mxu1 %v25910_v16  ;;  %v1576_v16 = vsub.f32 %v26227_v55, %v26256_v9  ;;  %v26301_v9 = vand.u32 4294901760, %v1556_v24  ;;  %v26304_v55 = vsub.f32 %v1430_v6, %v26273_v52  ;;  %v26325_v24 = vand.u32 4294901760, %v26295_v30 }
  0xf5   : > { %22104 = vmatprep.mubr.f32.mxu1 %v30647_v38  ;;  %30649 = vst [vmem:[#allocation61_spill] sm:$0xff] %v26286_v20  ;;  %v26297_v38 = vand.u32 4294901760, %v1433_v14  ;;  %v1586_v6 = vsub.f32 %v26259_v21, %v26286_v20 }
  0xf6   : > { %21481 = vmatmul.mubr.f32.vlgmr.msra.gmra.mrb[0].mxu0 %v1527_v37  ;;  %30654 = vst [vmem:[#allocation12_spill] sm:$0xff] %v26301_v9  ;;  %30655 = vst [vmem:[#allocation65_spill] sm:$0xff] %v26304_v55  ;;  %v26306_v37 = vand.u32 4294901760, %v1436_v43  ;;  %v26336_v31 = vand.u32 4294901760, %v26304_v55 }
  0xf7   : > { %21505 = vmatpush3.msra.mxu0 %v26135_v39  ;;  %21483 = vmatprep.mubr.f32.mxu0 %v26277_v53  ;;  %v26314_v39 = vand.u32 4294901760, %v1566_v51  ;;  %30659 = vst [vmem:[#allocation67_spill] sm:$0xff] %v26325_v24  ;;  %v26328_v0 = vsub.f32 %v1433_v14, %v26297_v38  ;;  %v30661_v51 = vld [vmem:[#allocation15_spill] sm:$0xff]  ;;  %v1445_v53 = vsel %vm259_vm0, %v239_v5, 0  ;;  %v30664_v14 = vld [vmem:[#allocation25_spill] sm:$0xff] }
  0xf8   : > { %22105 = vmatmul.mubr.f32.vlgmr.msra.gmra.mrb[0].mxu1 %v30653_v56  ;;  %v26316_v56 = vand.u32 4294901760, %v1576_v16  ;;  %21530 = vmatprep.subr.mxu0 %v26108_v2  ;;  %30662 = vst [vmem:[#allocation15_spill] sm:$0xff] %v26336_v31  ;;  %v26339_v16 = vsub.f32 %v1436_v43, %v26306_v37  ;;  %v26356_v43 = vand.u32 4294901760, %v1445_v53 }
  0xf9   : > { %22129 = vmatpush3.msra.mxu1 %v26138_v22  ;;  %22107 = vmatprep.mubr.f32.mxu1 %v30656_v34  ;;  %30657 = vst [vmem:[#allocation14_spill] sm:$0xff] %v26314_v39  ;;  %v1596_v22 = vsub.f32 %v26266_v10, %v26292_v1  ;;  %30660 = vst [vmem:[#allocation68_spill] sm:$0xff] %v26328_v0  ;;  %v26330_v34 = vand.u32 4294901760, %v1439_v57  ;;  %v26345_v1 = vand.u32 4294901760, %v1586_v6  ;;  %v30668_v10 = vld [vmem:[#allocation29_spill] sm:$0xff] }
  0xfa   : > { %30658 = vst [vmem:[#allocation66_spill] sm:$0xff] %v26316_v56  ;;  %21484 = vmatmul.mubr.f32.gmra.mrb[2].mxu0 %v26289_v40  ;;  %22154 = vmatprep.subr.mxu1 %v26112_v3  ;;  %30663 = vst [vmem:[#allocation69_spill] sm:$0xff] %v26339_v16  ;;  %v26341_v40 = vand.u32 4294901760, %v1442_v7  ;;  %v1616_v6 = vsub.f32 %v26304_v55, %v26336_v31  ;;  %v30676_v31 = vld [vmem:[#allocation31_spill] sm:$0xff] }
  0xfb   : > { %21486 = vmatprep.mubr.f32.mxu0 %v26301_v9  ;;  %30665 = vst [vmem:[#allocation25_spill] sm:$0xff] %v26345_v1  ;;  %v26351_v9 = vand.u32 4294901760, %v26328_v0  ;;  %v26354_v20 = vsub.f32 %v1439_v57, %v26330_v34  ;;  %v26360_v5 = vand.u32 4294901760, %v1596_v22 }
  0xfc   : > { %22108 = vmatmul.mubr.f32.gmra.mrb[2].mxu1 %v30661_v51  ;;  %v1606_v51 = vsub.f32 %v26295_v30, %v26325_v24  ;;  %v30672_v24 = vld [vmem:[#allocation30_spill] sm:$0xff] }
  0xfd   : > { %22110 = vmatprep.mubr.f32.mxu1 %v30664_v14  ;;  %30666 = vst [vmem:[#allocation70_spill] sm:$0xff] %v26351_v9  ;;  %30667 = vst [vmem:[#allocation71_spill] sm:$0xff] %v26354_v20  ;;  %v26365_v14 = vand.u32 4294901760, %v26339_v16  ;;  %v26377_v22 = vand.u32 4294901760, %v26354_v20 }
  0xfe   : > { %21487 = vmatmul.mubr.f32.gmra.mrb[4].mxu0 %v26314_v39  ;;  %30669 = vst [vmem:[#allocation29_spill] sm:$0xff] %v26360_v5  ;;  %v26368_v39 = vsub.f32 %v1442_v7, %v26341_v40  ;;  %v26372_v57 = vand.u32 4294901760, %v1606_v51  ;;  %v26384_v7 = vand.u32 4294901760, %v1616_v6  ;;  %v30680_v6 = vld [vmem:[#allocation45_spill] sm:$0xff] }
  0xff   : > { %21489 = vmatprep.mubr.f32.mxu0 %v26316_v56  ;;  %30670 = vst [vmem:[#allocation72_spill] sm:$0xff] %v26365_v14  ;;  %30674 = vst [vmem:[#allocation74_spill] sm:$0xff] %v26377_v22  ;;  %v26380_v56 = vsub.f32 %v1445_v53, %v26356_v43  ;;  %v1646_v53 = vsub.f32 %v26354_v20, %v26377_v22  ;;  %v30682_v22 = vld [vmem:[#allocation47_spill] sm:$0xff] }
 0x100   : > { %22111 = vmatmul.mubr.f32.gmra.mrb[4].mxu1 %v30668_v10  ;;  %30671 = vst [vmem:[#allocation73_spill] sm:$0xff] %v26368_v39  ;;  %30673 = vst [vmem:[#allocation30_spill] sm:$0xff] %v26372_v57  ;;  %v1626_v10 = vsub.f32 %v26328_v0, %v26351_v9  ;;  %v26389_v51 = vand.u32 4294901760, %v26368_v39 }
 0x101   : > { %22113 = vmatprep.mubr.f32.mxu1 %v30672_v24  ;;  %30675 = vst [vmem:[#allocation75_spill] sm:$0xff] %v26380_v56  ;;  %v1636_v24 = vsub.f32 %v26339_v16, %v26365_v14 }
 0x102   : > { %21490 = vmatmul.mubr.f32.gmra.mrb[6].mxu0 %v26345_v1  ;;  %30677 = vst [vmem:[#allocation31_spill] sm:$0xff] %v26389_v51  ;;  %v30678_v1 = vld [vmem:[#allocation42_spill] sm:$0xff]  ;;  %v26393_v9 = vand.u32 4294901760, %v1626_v10  ;;  %v1656_v14 = vsub.f32 %v26368_v39, %v26389_v51  ;;  %v26408_v10 = vand.u32 4294901760, %v1646_v53  ;;  %v30692_v53 = vld [vmem:[#allocation36_spill] sm:$0xff] }
 0x103   : > { %21492 = vmatprep.mubr.f32.mxu0 %v26360_v5  ;;  %v26402_v5 = vand.u32 4294901760, %v1636_v24 }
 0x104   : > { %22114 = vmatmul.mubr.f32.gmra.mrb[6].mxu1 %v30676_v31  ;;  %v26398_v31 = vand.u32 4294901760, %v26380_v56 }
 0x105   : > { %22116 = vmatprep.mubr.f32.mxu1 %v30678_v1  ;;  %v30681_v1 = vld [vmem:[#allocation46_spill] sm:$0xff] }
 0x106   : > { %21493 = vmatmul.mubr.f32.gmra.mrb[8].mxu0 %v26372_v57  ;;  %30679 = vst [vmem:[#allocation42_spill] sm:$0xff] %v26398_v31  ;;  %v1666_v57 = vsub.f32 %v26380_v56, %v26398_v31 }
 0x107   : > { %21495 = vmatprep.mubr.f32.mxu0 %v26384_v7 }
 0x108   : > { %22117 = vmatmul.mubr.f32.gmra.mrb[8].mxu1 %v30680_v6  ;;  %v26414_v6 = vand.u32 4294901760, %v1656_v14  ;;  %v26418_v24 = vand.u32 4294901760, %v1666_v57  ;;  %v30689_v14 = vld [vmem:[#allocation9_spill] sm:$0xff]  ;;  %v30690_v57 = vld [vmem:[#allocation27_spill] sm:$0xff] }
 0x109   : > { %22119 = vmatprep.mubr.f32.mxu1 %v30681_v1  ;;  %v30693_v1 = vld [vmem:[#allocation19_spill] sm:$0xff] }
 0x10a   : > { %21496 = vmatmul.mubr.f32.gmra.mrb[10].mxu0 %v26393_v9 }
 0x10b   : > { %21498 = vmatprep.mubr.f32.mxu0 %v26402_v5 }
 0x10c   : > { %22120 = vmatmul.mubr.f32.gmra.mrb[10].mxu1 %v30682_v22  ;;  %v30691_v22 = vld [vmem:[#allocation16_spill] sm:$0xff] }
 0x10d   : > { %22122 = vmatprep.mubr.f32.mxu1 %v25912_v61  ;;  %v30683_v61 = vld [vmem:[#allocation3_spill] sm:$0xff] }
 0x10e   : > { %21499 = vmatmul.mubr.f32.gmra.mrb[12].mxu0 %v26408_v10 }
 0x10f   : > { %21501 = vmatprep.mubr.f32.mxu0 %v26414_v6 }
 0x110   : > { %22123 = vmatmul.mubr.f32.gmra.mrb[12].mxu1 %v25929_v59  ;;  %v30685_v59 = vld [vmem:[#allocation6_spill] sm:$0xff] }
 0x111   : > { %22125 = vmatprep.mubr.f32.mxu1 %v25934_v17  ;;  %v30684_v17 = vld [vmem:[#allocation4_spill] sm:$0xff] }
 0x112   : > { %21502 = vmatmul.mubr.f32.gmra.mrb[14].mxu0 %v26418_v24 }
 0x113   : > { %21506 = vmatprep.mubr.f32.mxu0 %v26158_v27 }
 0x114   : > { %22126 = vmatmul.mubr.f32.gmra.mrb[14].mxu1 %v25941_v58  ;;  %v30686_v58 = vld [vmem:[#allocation10_spill] sm:$0xff] }
 0x115   : > { %22130 = vmatprep.mubr.f32.mxu1 %v25532_v19 }
 0x116   : > { %21507 = vmatmul.mubr.f32.vlgmr.msra.gmra.mrb[0].mxu0 %v26166_v42 }
 0x117   : > { %21531 = vmatpush3.msra.mxu0 %v26108_v2  ;;  %21509 = vmatprep.mubr.f32.mxu0 %v26177_v33  ;;  %v30687_v2 = vld [vmem:[#allocation22_spill] sm:$0xff] }
 0x118   : > { %22131 = vmatmul.mubr.f32.vlgmr.msra.gmra.mrb[0].mxu1 %v25542_v25  ;;  %21556 = vmatprep.subr.mxu0 %v26079_v8 }
 0x119   : > { %22155 = vmatpush3.msra.mxu1 %v26112_v3  ;;  %22133 = vmatprep.mubr.f32.mxu1 %v25555_v32  ;;  %v30688_v3 = vld [vmem:[#allocation17_spill] sm:$0xff] }
 0x11a   : > { %21510 = vmatmul.mubr.f32.gmra.mrb[2].mxu0 %v26184_v29  ;;  %22180 = vmatprep.subr.mxu1 %v26082_v13 }
 0x11b   : > { %21512 = vmatprep.mubr.f32.mxu0 %v26191_v4 }
 0x11c   : > { %22134 = vmatmul.mubr.f32.gmra.mrb[2].mxu1 %v25581_v44 }
 0x11d   : > { %22136 = vmatprep.mubr.f32.mxu1 %v25635_v18 }
 0x11e   : > { %21513 = vmatmul.mubr.f32.gmra.mrb[4].mxu0 %v26199_v35 }
 0x11f   : > { %21515 = vmatprep.mubr.f32.mxu0 %v26201_v62 }
 0x120   : > { %22137 = vmatmul.mubr.f32.gmra.mrb[4].mxu1 %v25656_v46 }
 0x121   : > { %22139 = vmatprep.mubr.f32.mxu1 %v25660_v50 }
 0x122   : > { %21516 = vmatmul.mubr.f32.gmra.mrb[6].mxu0 %v26229_v63 }
 0x123   : > { %21518 = vmatprep.mubr.f32.mxu0 %v26239_v41 }
 0x124   : > { %22140 = vmatmul.mubr.f32.gmra.mrb[6].mxu1 %v25690_v11 }
 0x125   : > { %22142 = vmatprep.mubr.f32.mxu1 %v25742_v23 }
 0x126   : > { %21519 = vmatmul.mubr.f32.gmra.mrb[8].mxu0 %v26268_v26 }
 0x127   : > { %21521 = vmatprep.mubr.f32.mxu0 %v26273_v52 }
 0x128   : > { %22143 = vmatmul.mubr.f32.gmra.mrb[8].mxu1 %v25762_v49 }
 0x129   : > { %22145 = vmatprep.mubr.f32.mxu1 %v25766_v36 }
 0x12a   : > { %21522 = vmatmul.mubr.f32.gmra.mrb[10].mxu0 %v26297_v38 }
 0x12b   : > { %21524 = vmatprep.mubr.f32.mxu0 %v26306_v37 }
 0x12c   : > { %22146 = vmatmul.mubr.f32.gmra.mrb[10].mxu1 %v25786_v48 }
 0x12d   : > { %22148 = vmatprep.mubr.f32.mxu1 %v25845_v54 }
 0x12e   : > { %21525 = vmatmul.mubr.f32.gmra.mrb[12].mxu0 %v26330_v34 }
 0x12f   : > { %21527 = vmatprep.mubr.f32.mxu0 %v26341_v40 }
 0x130   : > { %22149 = vmatmul.mubr.f32.gmra.mrb[12].mxu1 %v25864_v15 }
 0x131   : > { %22151 = vmatprep.mubr.f32.mxu1 %v25869_v28 }
 0x132   : > { %21528 = vmatmul.mubr.f32.gmra.mrb[14].mxu0 %v26356_v43 }
 0x133   : > { %21532 = vmatprep.mubr.f32.mxu0 %v26171_v47 }
 0x134   : > { %22152 = vmatmul.mubr.f32.gmra.mrb[14].mxu1 %v25889_v60 }
 0x135   : > { %22156 = vmatprep.mubr.f32.mxu1 %v30683_v61  ;;  %v30694_v61 = vld [vmem:[#allocation38_spill] sm:$0xff] }
 0x136   : > { %21533 = vmatmul.mubr.f32.vlgmr.msra.gmra.mrb[0].mxu0 %v26182_v12 }
 0x137   : > { %21557 = vmatpush3.msra.mxu0 %v26079_v8  ;;  %21535 = vmatprep.mubr.f32.mxu0 %v26196_v45  ;;  %v30698_v45 = vld [vmem:[#allocation32_spill] sm:$0xff] }
 0x138   : > { %22157 = vmatmul.mubr.f32.vlgmr.msra.gmra.mrb[0].mxu1 %v30684_v17  ;;  %21582 = vmatprep.subr.mxu0 %v30686_v58  ;;  %v30695_v17 = vld [vmem:[#allocation21_spill] sm:$0xff] }
 0x139   : > { %22181 = vmatpush3.msra.mxu1 %v26082_v13  ;;  %22159 = vmatprep.mubr.f32.mxu1 %v30685_v59  ;;  %v30696_v59 = vld [vmem:[#allocation26_spill] sm:$0xff] }
 0x13a   : > { %21536 = vmatmul.mubr.f32.gmra.mrb[2].mxu0 %v30687_v2  ;;  %22206 = vmatprep.subr.mxu1 %v30688_v3  ;;  %v30697_v2 = vld [vmem:[#allocation60_spill] sm:$0xff] }
 0x13b   : > { %21538 = vmatprep.mubr.f32.mxu0 %v30690_v57  ;;  %v19439_v57 = vld [vmem:[%s25515_s11 + $0xc0] sm:$0xff] }
 0x13c   : > { %22160 = vmatmul.mubr.f32.gmra.mrb[2].mxu1 %v30689_v14  ;;  %v30699_v14 = vld [vmem:[#allocation35_spill] sm:$0xff] }
 0x13d   : > { %22162 = vmatprep.mubr.f32.mxu1 %v30691_v22  ;;  %v30700_v22 = vld [vmem:[#allocation37_spill] sm:$0xff] }
 0x13e   : > { %21539 = vmatmul.mubr.f32.gmra.mrb[4].mxu0 %v30692_v53 }
 0x13f   : > { %21541 = vmatprep.mubr.f32.mxu0 %v30694_v61 }
 0x140   : > { %22163 = vmatmul.mubr.f32.gmra.mrb[4].mxu1 %v30693_v1  ;;  %v30701_v1 = vld [vmem:[#allocation41_spill] sm:$0xff] }
 0x141   : > { %22165 = vmatprep.mubr.f32.mxu1 %v30695_v17  ;;  %v30702_v17 = vld [vmem:[#allocation48_spill] sm:$0xff] }
 0x142   : > { %21542 = vmatmul.mubr.f32.gmra.mrb[6].mxu0 %v26259_v21  ;;  %v19473_v21 = vld [vmem:[%s25515_s11 + $0x99] sm:$0xff] }
 0x143   : > { %21544 = vmatprep.mubr.f32.mxu0 %v30697_v2 }
 0x144   : > { %22166 = vmatmul.mubr.f32.gmra.mrb[6].mxu1 %v30696_v59  ;;  %v30703_v59 = vld [vmem:[#allocation51_spill] sm:$0xff] }
 0x145   : > { %22168 = vmatprep.mubr.f32.mxu1 %v30698_v45  ;;  %v30704_v45 = vld [vmem:[#allocation52_spill] sm:$0xff] }
 0x146   : > { %21545 = vmatmul.mubr.f32.gmra.mrb[8].mxu0 %v26295_v30 }
 0x147   : > { %21547 = vmatprep.mubr.f32.mxu0 %v26304_v55 }
 0x148   : > { %22169 = vmatmul.mubr.f32.gmra.mrb[8].mxu1 %v30699_v14  ;;  %v30705_v14 = vld [vmem:[#allocation55_spill] sm:$0xff] }
 0x149   : > { %22171 = vmatprep.mubr.f32.mxu1 %v30700_v22  ;;  %v30706_v22 = vand.u32 4294901760, %v26171_v47  ;;  %v30713_v47 = vld [vmem:[#allocation13_spill] sm:$0xff] }
 0x14a   : > { %21548 = vmatmul.mubr.f32.gmra.mrb[10].mxu0 %v26328_v0  ;;  %v19471_v0 = vld [vmem:[%s25515_s11 + $0x81] sm:$0xff] }
 0x14b   : > { %21550 = vmatprep.mubr.f32.mxu0 %v26339_v16  ;;  %v30708_v16 = vand.u32 4294901760, %v26182_v12  ;;  %v30714_v12 = vld [vmem:[#allocation49_spill] sm:$0xff] }
 0x14c   : > { %22172 = vmatmul.mubr.f32.gmra.mrb[10].mxu1 %v30701_v1  ;;  %v30707_v1 = vld [vmem:[#allocation5_spill] sm:$0xff] }
 0x14d   : > { %22174 = vmatprep.mubr.f32.mxu1 %v30702_v17  ;;  %v30709_v17 = vld [vmem:[#allocation7_spill] sm:$0xff] }
 0x14e   : > { %21551 = vmatmul.mubr.f32.gmra.mrb[12].mxu0 %v26354_v20 }
 0x14f   : > { %21553 = vmatprep.mubr.f32.mxu0 %v26368_v39 }
 0x150   : > { %22175 = vmatmul.mubr.f32.gmra.mrb[12].mxu1 %v30703_v59  ;;  %v30710_v59 = vld [vmem:[#allocation33_spill] sm:$0xff] }
 0x151   : > { %22177 = vmatprep.mubr.f32.mxu1 %v30704_v45  ;;  %v30711_v45 = vld [vmem:[#allocation8_spill] sm:$0xff] }
 0x152   : > { %21554 = vmatmul.mubr.f32.gmra.mrb[14].mxu0 %v26380_v56 }
 0x153   : > { %21558 = vmatprep.mubr.f32.mxu0 %v30706_v22  ;;  %v30717_v22 = vld [vmem:[#allocation23_spill] sm:$0xff] }
 0x154   : > { %22178 = vmatmul.mubr.f32.gmra.mrb[14].mxu1 %v30705_v14  ;;  %v30712_v14 = vld [vmem:[#allocation43_spill] sm:$0xff] }
 0x155   : > { %22182 = vmatprep.mubr.f32.mxu1 %v30707_v1  ;;  %v30719_v1 = vld [vmem:[#allocation24_spill] sm:$0xff] }
 0x156   : > { %21559 = vmatmul.mubr.f32.vlgmr.msra.gmra.mrb[0].mxu0 %v30708_v16  ;;  %v30715_v16 = vld [vmem:[#allocation18_spill] sm:$0xff] }
 0x157   : > { %21583 = vmatpush3.msra.mxu0 %v30686_v58  ;;  %21561 = vmatprep.mubr.f32.mxu0 %v30710_v59  ;;  %v30716_v58 = vld [vmem:[#allocation57_spill] sm:$0xff]  ;;  %v30723_v59 = vld [vmem:[#allocation34_spill] sm:$0xff] }
 0x158   : > { %22183 = vmatmul.mubr.f32.vlgmr.msra.gmra.mrb[0].mxu1 %v30709_v17  ;;  %21608 = vmatprep.subr.mxu0 %v26079_v8  ;;  %v30720_v17 = vld [vmem:[#allocation61_spill] sm:$0xff] }
 0x159   : > { %22207 = vmatpush3.msra.mxu1 %v30688_v3  ;;  %22185 = vmatprep.mubr.f32.mxu1 %v30711_v45  ;;  %v30718_v3 = vld [vmem:[#allocation58_spill] sm:$0xff]  ;;  %v30721_v45 = vld [vmem:[#allocation28_spill] sm:$0xff] }
 0x15a   : > { %21562 = vmatmul.mubr.f32.gmra.mrb[2].mxu0 %v30712_v14  ;;  %22232 = vmatprep.subr.mxu1 %v26082_v13  ;;  %v30722_v14 = vld [vmem:[#allocation63_spill] sm:$0xff] }
 0x15b   : > { %21564 = vmatprep.mubr.f32.mxu0 %v30714_v12  ;;  %v30725_v12 = vld [vmem:[#allocation39_spill] sm:$0xff] }
 0x15c   : > { %22186 = vmatmul.mubr.f32.gmra.mrb[2].mxu1 %v30713_v47  ;;  %v30724_v47 = vld [vmem:[#allocation67_spill] sm:$0xff] }
 0x15d   : > { %22188 = vmatprep.mubr.f32.mxu1 %v30715_v16  ;;  %v30726_v16 = vld [vmem:[#allocation15_spill] sm:$0xff] }
 0x15e   : > { %21565 = vmatmul.mubr.f32.gmra.mrb[4].mxu0 %v30716_v58  ;;  %v30727_v58 = vld [vmem:[#allocation40_spill] sm:$0xff] }
 0x15f   : > { %21567 = vmatprep.mubr.f32.mxu0 %v30718_v3  ;;  %v30729_v3 = vld [vmem:[#allocation44_spill] sm:$0xff] }
 0x160   : > { %22189 = vmatmul.mubr.f32.gmra.mrb[4].mxu1 %v30717_v22  ;;  %v30728_v22 = vld [vmem:[#allocation70_spill] sm:$0xff] }
 0x161   : > { %22191 = vmatprep.mubr.f32.mxu1 %v30719_v1  ;;  %v30730_v1 = vld [vmem:[#allocation72_spill] sm:$0xff] }
 0x162   : > { %21568 = vmatmul.mubr.f32.gmra.mrb[6].mxu0 %v30720_v17  ;;  %v30731_v17 = vld [vmem:[#allocation50_spill] sm:$0xff] }
 0x163   : > { %21570 = vmatprep.mubr.f32.mxu0 %v30722_v14  ;;  %v30733_v14 = vld [vmem:[#allocation53_spill] sm:$0xff] }
 0x164   : > { %22192 = vmatmul.mubr.f32.gmra.mrb[6].mxu1 %v30721_v45  ;;  %v30732_v45 = vld [vmem:[#allocation74_spill] sm:$0xff] }
 0x165   : > { %22194 = vmatprep.mubr.f32.mxu1 %v30723_v59  ;;  %v30734_v59 = vld [vmem:[#allocation54_spill] sm:$0xff] }
 0x166   : > { %21571 = vmatmul.mubr.f32.gmra.mrb[8].mxu0 %v30724_v47 }
 0x167   : > { %21573 = vmatprep.mubr.f32.mxu0 %v30726_v16  ;;  %v19470_v16 = vld [vmem:[%s25515_s11 + $0x79] sm:$0xff] }
 0x168   : > { %22195 = vmatmul.mubr.f32.gmra.mrb[8].mxu1 %v30725_v12  ;;  %v19441_v12 = vld [vmem:[%s29973_s1 + $0x10] sm:$0xff]  ;;  %v7282_v39 = vsel %vm259_vm0, %v19470_v16, 0 }
 0x169   : > { %22197 = vmatprep.mubr.f32.mxu1 %v30727_v58  ;;  %v30735_v58 = vld [vmem:[#allocation56_spill] sm:$0xff]  ;;  %v26699_v16 = vand.u32 4294901760, %v7282_v39 }
 0x16a   : > { %21574 = vmatmul.mubr.f32.gmra.mrb[10].mxu0 %v30728_v22 }
 0x16b   : > { %21576 = vmatprep.mubr.f32.mxu0 %v30730_v1  ;;  %v19468_v1 = vld [vmem:[%s25515_s11 + $0x61] sm:$0xff] }
 0x16c   : > { %22198 = vmatmul.mubr.f32.gmra.mrb[10].mxu1 %v30729_v3  ;;  %v19478_v3 = vld [vmem:[%s29973_s1 + $0x30] sm:$0xff] }
 0x16d   : > { %22200 = vmatprep.mubr.f32.mxu1 %v30731_v17  ;;  %v26546_v17 = vand.u32 4294901760, %v19478_v3 }
 0x16e   : > { %21577 = vmatmul.mubr.f32.gmra.mrb[12].mxu0 %v30732_v45 }
 0x16f   : > { %21579 = vmatprep.mubr.f32.mxu0 %v26389_v51 }
 0x170   : > { %22201 = vmatmul.mubr.f32.gmra.mrb[12].mxu1 %v30733_v14  ;;  %v26543_v14 = vand.u32 4294901760, %v19441_v12 }
 0x171   : > { %22203 = vmatprep.mubr.f32.mxu1 %v30734_v59 }
 0x172   : > { %21580 = vmatmul.mubr.f32.gmra.mrb[14].mxu0 %v26398_v31 }
 0x173   : > { %21584 = vmatprep.mubr.f32.mxu0 %v26158_v27 }
 0x174   : > { %22204 = vmatmul.mubr.f32.gmra.mrb[14].mxu1 %v30735_v58 }
 0x175   : > { %22208 = vmatprep.mubr.f32.mxu1 %v25532_v19 }
 0x176   : > { %21585 = vmatmul.mubr.f32.vlgmr.msra.gmra.mrb[0].mxu0 %v26166_v42 }
 0x177   : > { %21609 = vmatpush3.msra.mxu0 %v26079_v8  ;;  %21587 = vmatprep.mubr.f32.mxu0 %v26177_v33  ;;  %v26572_v8 = vsub.f32 %v19441_v12, %v26543_v14 }
 0x178   : > { %22209 = vmatmul.mubr.f32.vlgmr.msra.gmra.mrb[0].mxu1 %v25542_v25  ;;  %21634 = vmatprep.subr.mxu0 %v26543_v14 }
 0x179   : > { %22233 = vmatpush3.msra.mxu1 %v26082_v13  ;;  %22211 = vmatprep.mubr.f32.mxu1 %v25555_v32  ;;  %v26576_v13 = vsub.f32 %v19478_v3, %v26546_v17  ;;  %v26582_v59 = vand.u32 4294901760, %v26572_v8 }
 0x17a   : > { %21588 = vmatmul.mubr.f32.gmra.mrb[2].mxu0 %v26184_v29  ;;  %22258 = vmatprep.subr.mxu1 %v26546_v17 }
 0x17b   : > { %21590 = vmatprep.mubr.f32.mxu0 %v26191_v4  ;;  %30736 = vst [vmem:[#allocation45_spill] sm:$0xff] %v26582_v59  ;;  %v26586_v58 = vand.u32 4294901760, %v26576_v13  ;;  %v2837_v12 = vsub.f32 %v26572_v8, %v26582_v59  ;;  %v7291_v59 = vsel %vm259_vm0, %v19473_v21, 0 }
 0x17c   : > { %22212 = vmatmul.mubr.f32.gmra.mrb[2].mxu1 %v25581_v44 }
 0x17d   : > { %22214 = vmatprep.mubr.f32.mxu1 %v25635_v18  ;;  %30737 = vst [vmem:[#allocation46_spill] sm:$0xff] %v26586_v58  ;;  %v7535_v3 = vsub.f32 %v26576_v13, %v26586_v58  ;;  %v26599_v31 = vand.u32 4294901760, %v2837_v12  ;;  %v19465_v12 = vld [vmem:[%s25515_s11 + $0x39] sm:$0xff] }
 0x17e   : > { %21591 = vmatmul.mubr.f32.gmra.mrb[4].mxu0 %v26199_v35 }
 0x17f   : > { %21593 = vmatprep.mubr.f32.mxu0 %v26201_v62  ;;  %v26602_v51 = vand.u32 4294901760, %v7535_v3 }
 0x180   : > { %22215 = vmatmul.mubr.f32.gmra.mrb[4].mxu1 %v25656_v46 }
 0x181   : > { %22217 = vmatprep.mubr.f32.mxu1 %v25660_v50 }
 0x182   : > { %21594 = vmatmul.mubr.f32.gmra.mrb[6].mxu0 %v26229_v63 }
 0x183   : > { %21596 = vmatprep.mubr.f32.mxu0 %v26239_v41 }
 0x184   : > { %22218 = vmatmul.mubr.f32.gmra.mrb[6].mxu1 %v25690_v11 }
 0x185   : > { %22220 = vmatprep.mubr.f32.mxu1 %v25742_v23 }
 0x186   : > { %21597 = vmatmul.mubr.f32.gmra.mrb[8].mxu0 %v26268_v26 }
 0x187   : > { %21599 = vmatprep.mubr.f32.mxu0 %v26273_v52 }
 0x188   : > { %22221 = vmatmul.mubr.f32.gmra.mrb[8].mxu1 %v25762_v49 }
 0x189   : > { %22223 = vmatprep.mubr.f32.mxu1 %v25766_v36 }
 0x18a   : > { %21600 = vmatmul.mubr.f32.gmra.mrb[10].mxu0 %v26297_v38 }
 0x18b   : > { %21602 = vmatprep.mubr.f32.mxu0 %v26306_v37 }
 0x18c   : > { %22224 = vmatmul.mubr.f32.gmra.mrb[10].mxu1 %v25786_v48 }
 0x18d   : > { %22226 = vmatprep.mubr.f32.mxu1 %v25845_v54 }
 0x18e   : > { %21603 = vmatmul.mubr.f32.gmra.mrb[12].mxu0 %v26330_v34 }
 0x18f   : > { %21605 = vmatprep.mubr.f32.mxu0 %v26341_v40 }
 0x190   : > { %22227 = vmatmul.mubr.f32.gmra.mrb[12].mxu1 %v25864_v15 }
 0x191   : > { %22229 = vmatprep.mubr.f32.mxu1 %v25869_v28 }
 0x192   : > { %21606 = vmatmul.mubr.f32.gmra.mrb[14].mxu0 %v26356_v43 }
 0x193   : > { %21610 = vmatprep.mubr.f32.mxu0 %v26158_v27 }
 0x194   : > { %22230 = vmatmul.mubr.f32.gmra.mrb[14].mxu1 %v25889_v60 }
 0x195   : > { %22234 = vmatprep.mubr.f32.mxu1 %v25532_v19  ;;  %v19462_v19 = vld [vmem:[%s25515_s11 + $0x19] sm:$0xff] }
 0x196   : > { %21611 = vmatmul.mubr.f32.vlgmr.msra.gmra.mrb[0].mxu0 %v26166_v42  ;;  %v7258_v27 = vsel %vm259_vm0, %v19462_v19, 0  ;;  %v19464_v42 = vld [vmem:[%s25515_s11 + $0x31] sm:$0xff] }
 0x197   : > { %21635 = vmatpush3.msra.mxu0 %v26543_v14  ;;  %21613 = vmatprep.mubr.f32.mxu0 %v26177_v33  ;;  %v7264_v19 = vsel %vm259_vm0, %v19464_v42, 0 }
 0x198   : > { %22235 = vmatmul.mubr.f32.vlgmr.msra.gmra.mrb[0].mxu1 %v25542_v25  ;;  %21660 = vmatprep.subr.mxu0 %v26599_v31  ;;  %v19463_v25 = vld [vmem:[%s25515_s11 + $0x21] sm:$0xff]  ;;  %v26642_v22 = vand.u32 4294901760, %v7264_v19 }
 0x199   : > { %22259 = vmatpush3.msra.mxu1 %v26546_v17  ;;  %22237 = vmatprep.mubr.f32.mxu1 %v25555_v32  ;;  %v7261_v32 = vsel %vm259_vm0, %v19463_v25, 0  ;;  %v7267_v25 = vsel %vm259_vm0, %v19465_v12, 0  ;;  %v7276_v12 = vsel %vm259_vm0, %v19468_v1, 0 }
 0x19a   : > { %21614 = vmatmul.mubr.f32.gmra.mrb[2].mxu0 %v26184_v29  ;;  %22284 = vmatprep.subr.mxu1 %v26602_v51  ;;  %v26629_v3 = vand.u32 4294901760, %v7261_v32  ;;  %v26671_v56 = vand.u32 4294901760, %v7276_v12 }
 0x19b   : > { %21616 = vmatprep.mubr.f32.mxu0 %v26191_v4 }
 0x19c   : > { %22238 = vmatmul.mubr.f32.gmra.mrb[2].mxu1 %v25581_v44  ;;  %v26624_v44 = vand.u32 4294901760, %v7258_v27 }
 0x19d   : > { %22240 = vmatprep.mubr.f32.mxu1 %v25635_v18  ;;  %v19466_v18 = vld [vmem:[%s25515_s11 + $0x49] sm:$0xff] }
 0x19e   : > { %21617 = vmatmul.mubr.f32.gmra.mrb[4].mxu0 %v26199_v35  ;;  %v7270_v45 = vsel %vm259_vm0, %v19466_v18, 0 }
 0x19f   : > { %21619 = vmatprep.mubr.f32.mxu0 %v26201_v62 }
 0x1a0   : > { %22241 = vmatmul.mubr.f32.gmra.mrb[4].mxu1 %v25656_v46  ;;  %v19467_v46 = vld [vmem:[%s25515_s11 + $0x51] sm:$0xff] }
 0x1a1   : > { %22243 = vmatprep.mubr.f32.mxu1 %v25660_v50  ;;  %v26637_v50 = vsub.f32 %v7258_v27, %v26624_v44  ;;  %v7273_v42 = vsel %vm259_vm0, %v19467_v46, 0  ;;  %v26653_v27 = vand.u32 4294901760, %v7270_v45  ;;  %v26663_v46 = vsub.f32 %v7264_v19, %v26642_v22 }
 0x1a2   : > { %21620 = vmatmul.mubr.f32.gmra.mrb[6].mxu0 %v26229_v63 }
 0x1a3   : > { %21622 = vmatprep.mubr.f32.mxu0 %v26239_v41  ;;  %30738 = vst [vmem:[#allocation47_spill] sm:$0xff] %v26637_v50  ;;  %v26658_v18 = vand.u32 4294901760, %v26637_v50  ;;  %30741 = vst [vmem:[#allocation6_spill] sm:$0xff] %v26663_v46  ;;  %v26679_v1 = vsub.f32 %v7270_v45, %v26653_v27  ;;  %v26695_v45 = vsub.f32 %v7276_v12, %v26671_v56  ;;  %v7285_v12 = vsel %vm259_vm0, %v19471_v0, 0 }
 0x1a4   : > { %22244 = vmatmul.mubr.f32.gmra.mrb[6].mxu1 %v25690_v11  ;;  %v26646_v11 = vsub.f32 %v7261_v32, %v26629_v3  ;;  %v19469_v32 = vld [vmem:[%s25515_s11 + $0x69] sm:$0xff] }
 0x1a5   : > { %22246 = vmatprep.mubr.f32.mxu1 %v25742_v23  ;;  %v26651_v23 = vand.u32 4294901760, %v7267_v25  ;;  %30740 = vst [vmem:[#allocation4_spill] sm:$0xff] %v26658_v18  ;;  %30744 = vst [vmem:[#allocation9_spill] sm:$0xff] %v26679_v1  ;;  %v7279_v19 = vsel %vm259_vm0, %v19469_v32, 0  ;;  %v7374_v20 = vsub.f32 %v26637_v50, %v26658_v18  ;;  %v26710_v18 = vand.u32 4294901760, %v26679_v1 }
 0x1a6   : > { %21623 = vmatmul.mubr.f32.gmra.mrb[8].mxu0 %v26268_v26  ;;  %30739 = vst [vmem:[#allocation3_spill] sm:$0xff] %v26646_v11  ;;  %v26669_v47 = vand.u32 4294901760, %v26646_v11  ;;  %30747 = vst [vmem:[#allocation21_spill] sm:$0xff] %v26695_v45  ;;  %v26725_v61 = vand.u32 4294901760, %v26695_v45 }
 0x1a7   : > { %21625 = vmatprep.mubr.f32.mxu0 %v26273_v52  ;;  %30749 = vst [vmem:[#allocation32_spill] sm:$0xff] %v26710_v18  ;;  %v26714_v30 = vand.u32 4294901760, %v7374_v20  ;;  %v26733_v20 = vand.u32 4294901760, %v7285_v12 }
 0x1a8   : > { %22247 = vmatmul.mubr.f32.gmra.mrb[8].mxu1 %v25762_v49  ;;  %v26665_v49 = vand.u32 4294901760, %v7273_v42  ;;  %30742 = vst [vmem:[#allocation10_spill] sm:$0xff] %v26669_v47  ;;  %30752 = vst [vmem:[#allocation41_spill] sm:$0xff] %v26725_v61 }
 0x1a9   : > { %22249 = vmatprep.mubr.f32.mxu1 %v25766_v36  ;;  %v26676_v36 = vsub.f32 %v7267_v25, %v26651_v23  ;;  %v26697_v25 = vand.u32 4294901760, %v7279_v19  ;;  %30750 = vst [vmem:[#allocation35_spill] sm:$0xff] %v26714_v30 }
 0x1aa   : > { %21626 = vmatmul.mubr.f32.gmra.mrb[10].mxu0 %v26297_v38  ;;  %v26691_v55 = vsub.f32 %v7273_v42, %v26665_v49  ;;  %v7384_v42 = vsub.f32 %v26646_v11, %v26669_v47  ;;  %v30758_v11 = vld [vmem:[#allocation62_spill] sm:$0xff] }
 0x1ab   : > { %21628 = vmatprep.mubr.f32.mxu0 %v26306_v37  ;;  %30743 = vst [vmem:[#allocation17_spill] sm:$0xff] %v26676_v36  ;;  %v26707_v32 = vand.u32 4294901760, %v26676_v36  ;;  %v26728_v0 = vsub.f32 %v7279_v19, %v26697_v25  ;;  %v7414_v19 = vsub.f32 %v26679_v1, %v26710_v18  ;;  %v7434_v18 = vsub.f32 %v26695_v45, %v26725_v61  ;;  %v19477_v1 = vld [vmem:[%s25515_s11 + $0xc9] sm:$0xff] }
 0x1ac   : > { %22250 = vmatmul.mubr.f32.gmra.mrb[10].mxu1 %v25786_v48  ;;  %v26688_v48 = vand.u32 4294901760, %v26663_v46  ;;  %30746 = vst [vmem:[#allocation19_spill] sm:$0xff] %v26691_v55  ;;  %v26719_v2 = vand.u32 4294901760, %v26691_v55  ;;  %v26738_v58 = vand.u32 4294901760, %v7384_v42  ;;  %v26774_v61 = vand.u32 4294901760, %v7291_v59 }
 0x1ad   : > { %22252 = vmatprep.mubr.f32.mxu1 %v25845_v54  ;;  %v19472_v54 = vld [vmem:[%s25515_s11 + $0x91] sm:$0xff]  ;;  %30748 = vst [vmem:[#allocation26_spill] sm:$0xff] %v26707_v32  ;;  %30753 = vst [vmem:[#allocation48_spill] sm:$0xff] %v26728_v0  ;;  %v7404_v53 = vsub.f32 %v26676_v36, %v26707_v32  ;;  %v30764_v32 = vld [vmem:[#allocation12_spill] sm:$0xff] }
 0x1ae   : > { %30745 = vst [vmem:[#allocation16_spill] sm:$0xff] %v26688_v48  ;;  %21629 = vmatmul.mubr.f32.gmra.mrb[12].mxu0 %v26330_v34  ;;  %30751 = vst [vmem:[#allocation37_spill] sm:$0xff] %v26719_v2  ;;  %v7288_v47 = vsel %vm259_vm0, %v19472_v54, 0  ;;  %v30755_v54 = vld [vmem:[#allocation11_spill] sm:$0xff] }
 0x1af   : > { %21631 = vmatprep.mubr.f32.mxu0 %v26341_v40  ;;  %30756 = vst [vmem:[#allocation52_spill] sm:$0xff] %v26738_v58 }
 0x1b0   : > { %22253 = vmatmul.mubr.f32.gmra.mrb[12].mxu1 %v25864_v15  ;;  %v7394_v15 = vsub.f32 %v26663_v46, %v26688_v48  ;;  %v19474_v48 = vld [vmem:[%s25515_s11 + $0xa9] sm:$0xff] }
 0x1b1   : > { %22255 = vmatprep.mubr.f32.mxu1 %v25869_v28  ;;  %v26731_v28 = vsub.f32 %v7282_v39, %v26699_v16  ;;  %v26745_v39 = vand.u32 4294901760, %v7288_v47  ;;  %v7294_v42 = vsel %vm259_vm0, %v19474_v48, 0  ;;  %v26772_v48 = vand.u32 4294901760, %v7414_v19 }
 0x1b2   : > { %21632 = vmatmul.mubr.f32.gmra.mrb[14].mxu0 %v26356_v43  ;;  %v26748_v46 = vand.u32 4294901760, %v7394_v15  ;;  %v26765_v15 = vsub.f32 %v7285_v12, %v26733_v20  ;;  %v26781_v12 = vand.u32 4294901760, %v7294_v42 }
 0x1b3   : > { %30754 = vst [vmem:[#allocation51_spill] sm:$0xff] %v26731_v28  ;;  %21636 = vmatprep.mubr.f32.mxu0 %v30755_v54  ;;  %v19475_v54 = vld [vmem:[%s25515_s11 + $0xb1] sm:$0xff]  ;;  %v26762_v21 = vand.u32 4294901760, %v26731_v28  ;;  %30763 = vst [vmem:[#allocation18_spill] sm:$0xff] %v26772_v48  ;;  %v26779_v45 = vsub.f32 %v7288_v47, %v26745_v39  ;;  %v26793_v47 = vand.u32 4294901760, %v7434_v18 }
 0x1b4   : > { %22256 = vmatmul.mubr.f32.gmra.mrb[14].mxu1 %v25889_v60  ;;  %30757 = vst [vmem:[#allocation55_spill] sm:$0xff] %v26748_v46  ;;  %v7424_v60 = vsub.f32 %v26691_v55, %v26719_v2  ;;  %30761 = vst [vmem:[#allocation8_spill] sm:$0xff] %v26765_v15  ;;  %v19476_v2 = vld [vmem:[%s25515_s11 + $0xc1] sm:$0xff]  ;;  %v7297_v55 = vsel %vm259_vm0, %v19475_v54, 0  ;;  %v26800_v54 = vand.u32 4294901760, %v26765_v15 }
 0x1b5   : > { %22260 = vmatprep.mubr.f32.mxu1 %v26714_v30  ;;  %v26759_v30 = vand.u32 4294901760, %v26728_v0  ;;  %30760 = vst [vmem:[#allocation7_spill] sm:$0xff] %v26762_v21  ;;  %30765 = vst [vmem:[#allocation23_spill] sm:$0xff] %v26779_v45  ;;  %v7300_v19 = vsel %vm259_vm0, %v19476_v2, 0  ;;  %v30770_v2 = vld [vmem:[#allocation66_spill] sm:$0xff]  ;;  %v26808_v18 = vand.u32 4294901760, %v7297_v55 }
 0x1b6   : > { %21637 = vmatmul.mubr.f32.vlgmr.msra.gmra.mrb[0].mxu0 %v30758_v11  ;;  %v26770_v11 = vand.u32 4294901760, %v7404_v53  ;;  %v26787_v53 = vand.u32 4294901760, %v7424_v60  ;;  %30768 = vst [vmem:[#allocation28_spill] sm:$0xff] %v26793_v47  ;;  %30769 = vst [vmem:[#allocation34_spill] sm:$0xff] %v26800_v54  ;;  %v26806_v60 = vsub.f32 %v7291_v59, %v26774_v61  ;;  %v30774_v59 = vld [vmem:[#allocation25_spill] sm:$0xff] }
 0x1b7   : > { %30759 = vst [vmem:[#allocation5_spill] sm:$0xff] %v26759_v30  ;;  %21661 = vmatpush3.msra.mxu0 %v26599_v31  ;;  %21639 = vmatprep.mubr.f32.mxu0 %v30764_v32  ;;  %v2602_v31 = vsel %vm259_vm0, %v19439_v57, 0  ;;  %v7444_v32 = vsub.f32 %v26728_v0, %v26759_v30  ;;  %v7454_v57 = vsub.f32 %v26731_v28, %v26762_v21  ;;  %v26815_v21 = vand.u32 4294901760, %v26779_v45 }
 0x1b8   : > { %22261 = vmatmul.mubr.f32.vlgmr.msra.gmra.mrb[0].mxu1 %v26738_v58  ;;  %30762 = vst [vmem:[#allocation13_spill] sm:$0xff] %v26770_v11  ;;  %v19440_v58 = vld [vmem:[%s25515_s11 + $0xc8] sm:$0xff]  ;;  %30766 = vst [vmem:[#allocation24_spill] sm:$0xff] %v26787_v53  ;;  %21686 = vmatprep.subr.mxu0 %v26572_v8  ;;  %v26818_v30 = vsub.f32 %v7294_v42, %v26781_v12  ;;  %v7464_v0 = vsub.f32 %v26765_v15, %v26800_v54  ;;  %v26833_v42 = vand.u32 4294901760, %v26806_v60 }
 0x1b9   : > { %22285 = vmatpush3.msra.mxu1 %v26602_v51  ;;  %22263 = vmatprep.mubr.f32.mxu1 %v26748_v46  ;;  %v30767_v51 = vld [vmem:[#allocation14_spill] sm:$0xff]  ;;  %30771 = vst [vmem:[#allocation39_spill] sm:$0xff] %v26806_v60  ;;  %v2605_v46 = vsel %vm259_vm0, %v19440_v58, 0  ;;  %30772 = vst [vmem:[#allocation40_spill] sm:$0xff] %v26815_v21  ;;  %v26824_v28 = vand.u32 4294901760, %v7444_v32  ;;  %v26836_v36 = vsub.f32 %v7297_v55, %v26808_v18 }
 0x1ba   : > { %21640 = vmatmul.mubr.f32.gmra.mrb[2].mxu0 %v30767_v51  ;;  %22310 = vmatprep.subr.mxu1 %v26576_v13  ;;  %v26810_v51 = vand.u32 4294901760, %v2602_v31  ;;  %30773 = vst [vmem:[#allocation44_spill] sm:$0xff] %v26818_v30  ;;  %v26828_v58 = vand.u32 4294901760, %v2605_v46  ;;  %30777 = vst [vmem:[#allocation53_spill] sm:$0xff] %v26833_v42  ;;  %v30782_v55 = vld [vmem:[#allocation30_spill] sm:$0xff]  ;;  %v26855_v15 = vand.u32 4294901760, %v7464_v0 }
 0x1bb   : > { %21642 = vmatprep.mubr.f32.mxu0 %v30770_v2  ;;  %v7303_v2 = vsel %vm259_vm0, %v19477_v1, 0  ;;  %30775 = vst [vmem:[#allocation50_spill] sm:$0xff] %v26824_v28  ;;  %30778 = vst [vmem:[#allocation54_spill] sm:$0xff] %v26836_v36 }
 0x1bc   : > { %22264 = vmatmul.mubr.f32.gmra.mrb[2].mxu1 %v26770_v11  ;;  %v26820_v11 = vand.u32 4294901760, %v7300_v19  ;;  %v26839_v1 = vsub.f32 %v2602_v31, %v26810_v51  ;;  %v26841_v32 = vand.u32 4294901760, %v7303_v2  ;;  %30783 = vst [vmem:[#allocation12_spill] sm:$0xff] %v26855_v15  ;;  %v26858_v31 = vsub.f32 %v2605_v46, %v26828_v58 }
 0x1bd   : > { %22266 = vmatprep.mubr.f32.mxu1 %v26772_v48  ;;  %v30776_v48 = vld [vmem:[#allocation29_spill] sm:$0xff] }
 0x1be   : > { %21643 = vmatmul.mubr.f32.gmra.mrb[4].mxu0 %v30774_v59  ;;  %v26844_v59 = vand.u32 4294901760, %v7454_v57  ;;  %v26852_v54 = vsub.f32 %v7300_v19, %v26820_v11  ;;  %v7484_v57 = vsub.f32 %v26806_v60, %v26833_v42  ;;  %v30189_v19 = vand.u32 4294901760, %v26839_v1 }
 0x1bf   : > { %21645 = vmatprep.mubr.f32.mxu0 %v30776_v48  ;;  %v26849_v48 = vand.u32 4294901760, %v26818_v30 }
 0x1c0   : > { %22267 = vmatmul.mubr.f32.gmra.mrb[4].mxu1 %v26787_v53  ;;  %30779 = vst [vmem:[#allocation56_spill] sm:$0xff] %v26844_v59  ;;  %v7474_v53 = vsub.f32 %v26779_v45, %v26815_v21  ;;  %30781 = vst [vmem:[#allocation62_spill] sm:$0xff] %v26852_v54  ;;  %v26869_v21 = vsub.f32 %v7303_v2, %v26841_v32  ;;  %v26883_v2 = vand.u32 4294901760, %v7484_v57 }
 0x1c1   : > { %22269 = vmatprep.mubr.f32.mxu1 %v26793_v47  ;;  %30780 = vst [vmem:[#allocation11_spill] sm:$0xff] %v26849_v48  ;;  %v26865_v47 = vand.u32 4294901760, %v26836_v36  ;;  %v7494_v46 = vsub.f32 %v26818_v30, %v26849_v48 }
 0x1c2   : > { %21646 = vmatmul.mubr.f32.gmra.mrb[6].mxu0 %v30782_v55  ;;  %30785 = vst [vmem:[#allocation66_spill] sm:$0xff] %v26869_v21  ;;  %v26872_v0 = vand.u32 4294901760, %v7474_v53 }
 0x1c3   : > { %21648 = vmatprep.mubr.f32.mxu0 %v26384_v7  ;;  %30784 = vst [vmem:[#allocation14_spill] sm:$0xff] %v26865_v47  ;;  %v26877_v7 = vand.u32 4294901760, %v26852_v54  ;;  %v7504_v53 = vsub.f32 %v26836_v36, %v26865_v47 }
 0x1c4   : > { %22270 = vmatmul.mubr.f32.gmra.mrb[6].mxu1 %v26824_v28  ;;  %30786 = vst [vmem:[#allocation25_spill] sm:$0xff] %v26872_v0  ;;  %v26891_v28 = vand.u32 4294901760, %v26869_v21 }
 0x1c5   : > { %22272 = vmatprep.mubr.f32.mxu1 %v26844_v59  ;;  %30787 = vst [vmem:[#allocation29_spill] sm:$0xff] %v26877_v7  ;;  %v2816_v59 = vsub.f32 %v26839_v1, %v30189_v19  ;;  %v7514_v55 = vsub.f32 %v26852_v54, %v26877_v7  ;;  %v26904_v19 = vand.u32 4294901760, %v7504_v53  ;;  %v30798_v53 = vld [vmem:[#allocation46_spill] sm:$0xff] }
 0x1c6   : > { %21649 = vmatmul.mubr.f32.gmra.mrb[8].mxu0 %v26393_v9  ;;  %30788 = vst [vmem:[#allocation30_spill] sm:$0xff] %v26891_v28  ;;  %v26894_v9 = vand.u32 4294901760, %v7494_v46  ;;  %v7524_v46 = vsub.f32 %v26869_v21, %v26891_v28 }
 0x1c7   : > { %21651 = vmatprep.mubr.f32.mxu0 %v26402_v5  ;;  %v30789_v5 = vand.u32 4294901760, %v26858_v31 }
 0x1c8   : > { %22273 = vmatmul.mubr.f32.gmra.mrb[8].mxu1 %v26855_v15  ;;  %v2817_v15 = vand.u32 4294901760, %v2816_v59  ;;  %v30796_v59 = vld [vmem:[#allocation45_spill] sm:$0xff] }
 0x1c9   : > { %22275 = vmatprep.mubr.f32.mxu1 %v26872_v0  ;;  %v2826_v57 = vsub.f32 %v26858_v31, %v30789_v5  ;;  %v26909_v0 = vand.u32 4294901760, %v7514_v55  ;;  %v26913_v5 = vand.u32 4294901760, %v7524_v46  ;;  %v30797_v55 = vld [vmem:[#allocation36_spill] sm:$0xff]  ;;  %v30800_v46 = vld [vmem:[#allocation38_spill] sm:$0xff] }
 0x1ca   : > { %21652 = vmatmul.mubr.f32.gmra.mrb[10].mxu0 %v26408_v10 }
 0x1cb   : > { %21654 = vmatprep.mubr.f32.mxu0 %v26414_v6  ;;  %v2827_v10 = vand.u32 4294901760, %v2826_v57  ;;  %30790 = vst [vmem:[#allocation76_spill] sm:$0xff] %v26913_v5  ;;  %v30791_v6 = vld [vmem:[#allocation20_spill] sm:$0xff]  ;;  %v30799_v57 = vld [vmem:[#allocation17_spill] sm:$0xff] }
 0x1cc   : > { %22276 = vmatmul.mubr.f32.gmra.mrb[10].mxu1 %v26883_v2 }
 0x1cd   : > { %22278 = vmatprep.mubr.f32.mxu1 %v26894_v9 }
 0x1ce   : > { %21655 = vmatmul.mubr.f32.gmra.mrb[12].mxu0 %v26418_v24  ;;  %v30792_v24 = vld [vmem:[#allocation22_spill] sm:$0xff] }
 0x1cf   : > { %21657 = vmatprep.mubr.f32.mxu0 %v2817_v15  ;;  %v30795_v15 = vld [vmem:[#allocation6_spill] sm:$0xff] }
 0x1d0   : > { %22279 = vmatmul.mubr.f32.gmra.mrb[12].mxu1 %v26904_v19 }
 0x1d1   : > { %22281 = vmatprep.mubr.f32.mxu1 %v26909_v0 }
 0x1d2   : > { %21658 = vmatmul.mubr.f32.gmra.mrb[14].mxu0 %v2827_v10  ;;  %v30801_v10 = vld [vmem:[#allocation9_spill] sm:$0xff] }
 0x1d3   : > { %21662 = vmatprep.mubr.f32.mxu0 %v26177_v33 }
 0x1d4   : > { %22282 = vmatmul.mubr.f32.gmra.mrb[14].mxu1 %v26913_v5  ;;  %v30809_v5 = vld [vmem:[#allocation51_spill] sm:$0xff] }
 0x1d5   : > { %22286 = vmatprep.mubr.f32.mxu1 %v26624_v44 }
 0x1d6   : > { %21663 = vmatmul.mubr.f32.vlgmr.msra.gmra.mrb[0].mxu0 %v26184_v29 }
 0x1d7   : > { %21687 = vmatpush3.msra.mxu0 %v26572_v8  ;;  %21665 = vmatprep.mubr.f32.mxu0 %v26191_v4  ;;  %v30793_v8 = vld [vmem:[#allocation3_spill] sm:$0xff] }
 0x1d8   : > { %22287 = vmatmul.mubr.f32.vlgmr.msra.gmra.mrb[0].mxu1 %v26629_v3  ;;  %21712 = vmatprep.subr.mxu0 %v26543_v14 }
 0x1d9   : > { %22311 = vmatpush3.msra.mxu1 %v26576_v13  ;;  %22289 = vmatprep.mubr.f32.mxu1 %v26642_v22  ;;  %v30794_v13 = vld [vmem:[#allocation27_spill] sm:$0xff] }
 0x1da   : > { %21666 = vmatmul.mubr.f32.gmra.mrb[2].mxu0 %v26199_v35  ;;  %22336 = vmatprep.subr.mxu1 %v26546_v17 }
 0x1db   : > { %21668 = vmatprep.mubr.f32.mxu0 %v26201_v62 }
 0x1dc   : > { %22290 = vmatmul.mubr.f32.gmra.mrb[2].mxu1 %v26651_v23 }
 0x1dd   : > { %22292 = vmatprep.mubr.f32.mxu1 %v26653_v27 }
 0x1de   : > { %21669 = vmatmul.mubr.f32.gmra.mrb[4].mxu0 %v26229_v63 }
 0x1df   : > { %21671 = vmatprep.mubr.f32.mxu0 %v26239_v41 }
 0x1e0   : > { %22293 = vmatmul.mubr.f32.gmra.mrb[4].mxu1 %v26665_v49 }
 0x1e1   : > { %22295 = vmatprep.mubr.f32.mxu1 %v26671_v56 }
 0x1e2   : > { %21672 = vmatmul.mubr.f32.gmra.mrb[6].mxu0 %v26268_v26 }
 0x1e3   : > { %21674 = vmatprep.mubr.f32.mxu0 %v26273_v52 }
 0x1e4   : > { %22296 = vmatmul.mubr.f32.gmra.mrb[6].mxu1 %v26697_v25 }
 0x1e5   : > { %22298 = vmatprep.mubr.f32.mxu1 %v26699_v16 }
 0x1e6   : > { %21675 = vmatmul.mubr.f32.gmra.mrb[8].mxu0 %v26297_v38 }
 0x1e7   : > { %21677 = vmatprep.mubr.f32.mxu0 %v26306_v37 }
 0x1e8   : > { %22299 = vmatmul.mubr.f32.gmra.mrb[8].mxu1 %v26733_v20 }
 0x1e9   : > { %22301 = vmatprep.mubr.f32.mxu1 %v26745_v39 }
 0x1ea   : > { %21678 = vmatmul.mubr.f32.gmra.mrb[10].mxu0 %v26330_v34 }
 0x1eb   : > { %21680 = vmatprep.mubr.f32.mxu0 %v26341_v40 }
 0x1ec   : > { %22302 = vmatmul.mubr.f32.gmra.mrb[10].mxu1 %v26774_v61 }
 0x1ed   : > { %22304 = vmatprep.mubr.f32.mxu1 %v26781_v12 }
 0x1ee   : > { %21681 = vmatmul.mubr.f32.gmra.mrb[12].mxu0 %v26356_v43 }
 0x1ef   : > { %21683 = vmatprep.mubr.f32.mxu0 %v26810_v51 }
 0x1f0   : > { %22305 = vmatmul.mubr.f32.gmra.mrb[12].mxu1 %v26808_v18 }
 0x1f1   : > { %22307 = vmatprep.mubr.f32.mxu1 %v26820_v11 }
 0x1f2   : > { %21684 = vmatmul.mubr.f32.gmra.mrb[14].mxu0 %v26828_v58 }
 0x1f3   : > { %21688 = vmatprep.mubr.f32.mxu0 %v30791_v6  ;;  %v30802_v6 = vld [vmem:[#allocation59_spill] sm:$0xff] }
 0x1f4   : > { %22308 = vmatmul.mubr.f32.gmra.mrb[14].mxu1 %v26841_v32 }
 0x1f5   : > { %22312 = vmatprep.mubr.f32.mxu1 %v26637_v50  ;;  %v30807_v50 = vld [vmem:[#allocation48_spill] sm:$0xff] }
 0x1f6   : > { %21689 = vmatmul.mubr.f32.vlgmr.msra.gmra.mrb[0].mxu0 %v30792_v24  ;;  %v30803_v24 = vld [vmem:[#allocation19_spill] sm:$0xff] }
 0x1f7   : > { %21713 = vmatpush3.msra.mxu0 %v26543_v14  ;;  %21691 = vmatprep.mubr.f32.mxu0 %v30794_v13  ;;  %v30805_v13 = vld [vmem:[#allocation21_spill] sm:$0xff] }
 0x1f8   : > { %22313 = vmatmul.mubr.f32.vlgmr.msra.gmra.mrb[0].mxu1 %v30793_v8  ;;  %21738 = vmatprep.subr.mxu0 %v30796_v59  ;;  %v30804_v8 = vld [vmem:[#allocation60_spill] sm:$0xff] }
 0x1f9   : > { %22337 = vmatpush3.msra.mxu1 %v26546_v17  ;;  %22315 = vmatprep.mubr.f32.mxu1 %v30795_v15  ;;  %v30806_v15 = vld [vmem:[#allocation64_spill] sm:$0xff] }
 0x1fa   : > { %21692 = vmatmul.mubr.f32.gmra.mrb[2].mxu0 %v30797_v55  ;;  %22362 = vmatprep.subr.mxu1 %v30798_v53  ;;  %v30808_v55 = vld [vmem:[#allocation65_spill] sm:$0xff] }
 0x1fb   : > { %21694 = vmatprep.mubr.f32.mxu0 %v30800_v46  ;;  %v30811_v46 = vld [vmem:[#allocation8_spill] sm:$0xff] }
 0x1fc   : > { %22316 = vmatmul.mubr.f32.gmra.mrb[2].mxu1 %v30799_v57  ;;  %v30810_v57 = vld [vmem:[#allocation68_spill] sm:$0xff] }
 0x1fd   : > { %22318 = vmatprep.mubr.f32.mxu1 %v30801_v10  ;;  %v30812_v10 = vld [vmem:[#allocation69_spill] sm:$0xff] }
 0x1fe   : > { %21695 = vmatmul.mubr.f32.gmra.mrb[4].mxu0 %v30802_v6  ;;  %v30813_v6 = vld [vmem:[#allocation71_spill] sm:$0xff] }
 0x1ff   : > { %21697 = vmatprep.mubr.f32.mxu0 %v30804_v8  ;;  %v30814_v8 = vld [vmem:[#allocation73_spill] sm:$0xff] }
 0x200   : > { %22319 = vmatmul.mubr.f32.gmra.mrb[4].mxu1 %v30803_v24 }
 0x201   : > { %22321 = vmatprep.mubr.f32.mxu1 %v30805_v13 }
 0x202   : > { %21698 = vmatmul.mubr.f32.gmra.mrb[6].mxu0 %v30806_v15  ;;  %v30815_v15 = vld [vmem:[#allocation75_spill] sm:$0xff] }
 0x203   : > { %21700 = vmatprep.mubr.f32.mxu0 %v30808_v55  ;;  %v30818_v55 = vld [vmem:[#allocation43_spill] sm:$0xff] }
 0x204   : > { %22322 = vmatmul.mubr.f32.gmra.mrb[6].mxu1 %v30807_v50  ;;  %v19491_v50 = vld [vmem:[%s25515_s11 + $0xaa] sm:$0xff] }
 0x205   : > { %22324 = vmatprep.mubr.f32.mxu1 %v30809_v5 }
 0x206   : > { %21701 = vmatmul.mubr.f32.gmra.mrb[8].mxu0 %v30810_v57  ;;  %v30816_v57 = vld [vmem:[#allocation33_spill] sm:$0xff] }
 0x207   : > { %21703 = vmatprep.mubr.f32.mxu0 %v30812_v10  ;;  %v30817_v10 = vld [vmem:[#allocation4_spill] sm:$0xff] }
 0x208   : > { %22325 = vmatmul.mubr.f32.gmra.mrb[8].mxu1 %v30811_v46 }
 0x209   : > { %22327 = vmatprep.mubr.f32.mxu1 %v26779_v45 }
 0x20a   : > { %21704 = vmatmul.mubr.f32.gmra.mrb[10].mxu0 %v30813_v6  ;;  %v30819_v6 = vld [vmem:[#allocation10_spill] sm:$0xff] }
 0x20b   : > { %21706 = vmatprep.mubr.f32.mxu0 %v30814_v8  ;;  %v30820_v8 = vld [vmem:[#allocation49_spill] sm:$0xff] }
 0x20c   : > { %22328 = vmatmul.mubr.f32.gmra.mrb[10].mxu1 %v26806_v60 }
 0x20d   : > { %22330 = vmatprep.mubr.f32.mxu1 %v26818_v30 }
 0x20e   : > { %21707 = vmatmul.mubr.f32.gmra.mrb[12].mxu0 %v30815_v15  ;;  %v30821_v15 = vld [vmem:[#allocation16_spill] sm:$0xff] }
 0x20f   : > { %21709 = vmatprep.mubr.f32.mxu0 %v26839_v1 }
 0x210   : > { %22331 = vmatmul.mubr.f32.gmra.mrb[12].mxu1 %v26836_v36  ;;  %v30833_v36 = vld [vmem:[#allocation7_spill] sm:$0xff] }
 0x211   : > { %22333 = vmatprep.mubr.f32.mxu1 %v26852_v54  ;;  %v30822_v54 = vld [vmem:[#allocation57_spill] sm:$0xff] }
 0x212   : > { %21710 = vmatmul.mubr.f32.gmra.mrb[14].mxu0 %v26858_v31 }
 0x213   : > { %21714 = vmatprep.mubr.f32.mxu0 %v30816_v57  ;;  %v30823_v57 = vld [vmem:[#allocation26_spill] sm:$0xff] }
 0x214   : > { %22334 = vmatmul.mubr.f32.gmra.mrb[14].mxu1 %v26869_v21  ;;  %v30831_v21 = vld [vmem:[#allocation5_spill] sm:$0xff] }
 0x215   : > { %22338 = vmatprep.mubr.f32.mxu1 %v30817_v10  ;;  %v30824_v10 = vld [vmem:[#allocation58_spill] sm:$0xff] }
 0x216   : > { %21715 = vmatmul.mubr.f32.vlgmr.msra.gmra.mrb[0].mxu0 %v30818_v55  ;;  %v30825_v55 = vld [vmem:[#allocation32_spill] sm:$0xff] }
 0x217   : > { %21739 = vmatpush3.msra.mxu0 %v30796_v59  ;;  %21717 = vmatprep.mubr.f32.mxu0 %v30820_v8  ;;  %v30826_v59 = vld [vmem:[#allocation61_spill] sm:$0xff] }
 0x218   : > { %22339 = vmatmul.mubr.f32.vlgmr.msra.gmra.mrb[0].mxu1 %v30819_v6  ;;  %21764 = vmatprep.subr.mxu0 %v26543_v14  ;;  %v30827_v6 = vld [vmem:[#allocation37_spill] sm:$0xff] }
 0x219   : > { %22363 = vmatpush3.msra.mxu1 %v30798_v53  ;;  %22341 = vmatprep.mubr.f32.mxu1 %v30821_v15  ;;  %v30828_v53 = vld [vmem:[#allocation63_spill] sm:$0xff]  ;;  %v30829_v8 = vld [vmem:[#allocation41_spill] sm:$0xff] }
 0x21a   : > { %21718 = vmatmul.mubr.f32.gmra.mrb[2].mxu0 %v30822_v54  ;;  %22388 = vmatprep.subr.mxu1 %v26546_v17  ;;  %v30830_v15 = vld [vmem:[#allocation67_spill] sm:$0xff] }
 0x21b   : > { %21720 = vmatprep.mubr.f32.mxu0 %v30824_v10  ;;  %v30832_v54 = vld [vmem:[#allocation15_spill] sm:$0xff]  ;;  %v30835_v10 = vld [vmem:[#allocation34_spill] sm:$0xff] }
 0x21c   : > { %22342 = vmatmul.mubr.f32.gmra.mrb[2].mxu1 %v30823_v57  ;;  %v30834_v57 = vld [vmem:[#allocation70_spill] sm:$0xff] }
 0x21d   : > { %22344 = vmatprep.mubr.f32.mxu1 %v30825_v55  ;;  %v30836_v55 = vld [vmem:[#allocation72_spill] sm:$0xff] }
 0x21e   : > { %21721 = vmatmul.mubr.f32.gmra.mrb[4].mxu0 %v30826_v59  ;;  %v30837_v59 = vld [vmem:[#allocation40_spill] sm:$0xff] }
 0x21f   : > { %21723 = vmatprep.mubr.f32.mxu0 %v30828_v53  ;;  %v30839_v53 = vld [vmem:[#allocation31_spill] sm:$0xff] }
 0x220   : > { %22345 = vmatmul.mubr.f32.gmra.mrb[4].mxu1 %v30827_v6  ;;  %v30838_v6 = vld [vmem:[#allocation74_spill] sm:$0xff] }
 0x221   : > { %22347 = vmatprep.mubr.f32.mxu1 %v30829_v8  ;;  %v19488_v8 = vld [vmem:[%s25515_s11 + $0x82] sm:$0xff] }
 0x222   : > { %21724 = vmatmul.mubr.f32.gmra.mrb[6].mxu0 %v30830_v15  ;;  %v30840_v15 = vld [vmem:[#allocation42_spill] sm:$0xff]  ;;  %v8458_v60 = vsel %vm259_vm0, %v19488_v8, 0  ;;  %v30861_v8 = vld [vmem:[#allocation35_spill] sm:$0xff] }
 0x223   : > { %21726 = vmatprep.mubr.f32.mxu0 %v30832_v54  ;;  %v19495_v54 = vld [vmem:[%s29973_s1 + $0x38] sm:$0xff]  ;;  %v27232_v13 = vand.u32 4294901760, %v8458_v60 }
 0x224   : > { %22348 = vmatmul.mubr.f32.gmra.mrb[6].mxu1 %v30831_v21 }
 0x225   : > { %22350 = vmatprep.mubr.f32.mxu1 %v30833_v36 }
 0x226   : > { %21727 = vmatmul.mubr.f32.gmra.mrb[8].mxu0 %v30834_v57  ;;  %v30841_v57 = vand.u32 4294901760, %v26839_v1 }
 0x227   : > { %21729 = vmatprep.mubr.f32.mxu0 %v30836_v55  ;;  %v30842_v55 = vand.u32 4294901760, %v26858_v31  ;;  %v27038_v31 = vand.u32 4294901760, %v19495_v54 }
 0x228   : > { %22351 = vmatmul.mubr.f32.gmra.mrb[8].mxu1 %v30835_v10 }
 0x229   : > { %22353 = vmatprep.mubr.f32.mxu1 %v30837_v59 }
 0x22a   : > { %21730 = vmatmul.mubr.f32.gmra.mrb[10].mxu0 %v30838_v6  ;;  %v19458_v6 = vld [vmem:[%s29973_s1 + $0x18] sm:$0xff] }
 0x22b   : > { %21732 = vmatprep.mubr.f32.mxu0 %v30839_v53  ;;  %v27035_v1 = vand.u32 4294901760, %v19458_v6 }
 0x22c   : > { %22354 = vmatmul.mubr.f32.gmra.mrb[10].mxu1 %v26833_v42 }
 0x22d   : > { %22356 = vmatprep.mubr.f32.mxu1 %v26849_v48 }
 0x22e   : > { %21733 = vmatmul.mubr.f32.gmra.mrb[12].mxu0 %v30840_v15 }
 0x22f   : > { %21735 = vmatprep.mubr.f32.mxu0 %v30841_v57 }
 0x230   : > { %22357 = vmatmul.mubr.f32.gmra.mrb[12].mxu1 %v26865_v47 }
 0x231   : > { %22359 = vmatprep.mubr.f32.mxu1 %v26877_v7  ;;  %v19484_v7 = vld [vmem:[%s25515_s11 + $0x52] sm:$0xff] }
 0x232   : > { %21736 = vmatmul.mubr.f32.gmra.mrb[14].mxu0 %v30842_v55 }
 0x233   : > { %21740 = vmatprep.mubr.f32.mxu0 %v26177_v33 }
 0x234   : > { %22360 = vmatmul.mubr.f32.gmra.mrb[14].mxu1 %v26891_v28  ;;  %v19483_v28 = vld [vmem:[%s25515_s11 + $0x4a] sm:$0xff] }
 0x235   : > { %22364 = vmatprep.mubr.f32.mxu1 %v26624_v44 }
 0x236   : > { %21741 = vmatmul.mubr.f32.vlgmr.msra.gmra.mrb[0].mxu0 %v26184_v29 }
 0x237   : > { %21765 = vmatpush3.msra.mxu0 %v26543_v14  ;;  %21743 = vmatprep.mubr.f32.mxu0 %v26191_v4  ;;  %v27064_v14 = vsub.f32 %v19458_v6, %v27035_v1 }
 0x238   : > { %22365 = vmatmul.mubr.f32.vlgmr.msra.gmra.mrb[0].mxu1 %v26629_v3  ;;  %21790 = vmatprep.subr.mxu0 %v27035_v1 }
 0x239   : > { %22389 = vmatpush3.msra.mxu1 %v26546_v17  ;;  %22367 = vmatprep.mubr.f32.mxu1 %v26642_v22  ;;  %v27068_v17 = vsub.f32 %v19495_v54, %v27038_v31  ;;  %v27074_v53 = vand.u32 4294901760, %v27064_v14 }
 0x23a   : > { %21744 = vmatmul.mubr.f32.gmra.mrb[2].mxu0 %v26199_v35  ;;  %22414 = vmatprep.subr.mxu1 %v27038_v31 }
 0x23b   : > { %21746 = vmatprep.mubr.f32.mxu0 %v26201_v62  ;;  %30843 = vst [vmem:[#allocation20_spill] sm:$0xff] %v27074_v53  ;;  %v27078_v15 = vand.u32 4294901760, %v27068_v17  ;;  %v4010_v57 = vsub.f32 %v27064_v14, %v27074_v53  ;;  %v19492_v53 = vld [vmem:[%s25515_s11 + $0xb2] sm:$0xff] }
 0x23c   : > { %22368 = vmatmul.mubr.f32.gmra.mrb[2].mxu1 %v26651_v23 }
 0x23d   : > { %22370 = vmatprep.mubr.f32.mxu1 %v26653_v27  ;;  %30844 = vst [vmem:[#allocation22_spill] sm:$0xff] %v27078_v15  ;;  %v8708_v55 = vsub.f32 %v27068_v17, %v27078_v15  ;;  %v27091_v6 = vand.u32 4294901760, %v4010_v57 }
 0x23e   : > { %21747 = vmatmul.mubr.f32.gmra.mrb[4].mxu0 %v26229_v63 }
 0x23f   : > { %21749 = vmatprep.mubr.f32.mxu0 %v26239_v41  ;;  %v27094_v54 = vand.u32 4294901760, %v8708_v55  ;;  %v19482_v55 = vld [vmem:[%s25515_s11 + $0x3a] sm:$0xff] }
 0x240   : > { %22371 = vmatmul.mubr.f32.gmra.mrb[4].mxu1 %v26665_v49 }
 0x241   : > { %22373 = vmatprep.mubr.f32.mxu1 %v26671_v56 }
 0x242   : > { %21750 = vmatmul.mubr.f32.gmra.mrb[6].mxu0 %v26268_v26 }
 0x243   : > { %21752 = vmatprep.mubr.f32.mxu0 %v26273_v52 }
 0x244   : > { %22374 = vmatmul.mubr.f32.gmra.mrb[6].mxu1 %v26697_v25 }
 0x245   : > { %22376 = vmatprep.mubr.f32.mxu1 %v26699_v16 }
 0x246   : > { %21753 = vmatmul.mubr.f32.gmra.mrb[8].mxu0 %v26297_v38 }
 0x247   : > { %21755 = vmatprep.mubr.f32.mxu0 %v26306_v37 }
 0x248   : > { %22377 = vmatmul.mubr.f32.gmra.mrb[8].mxu1 %v26733_v20 }
 0x249   : > { %22379 = vmatprep.mubr.f32.mxu1 %v26745_v39 }
 0x24a   : > { %21756 = vmatmul.mubr.f32.gmra.mrb[10].mxu0 %v26330_v34 }
 0x24b   : > { %21758 = vmatprep.mubr.f32.mxu0 %v26341_v40 }
 0x24c   : > { %22380 = vmatmul.mubr.f32.gmra.mrb[10].mxu1 %v26774_v61 }
 0x24d   : > { %22382 = vmatprep.mubr.f32.mxu1 %v26781_v12 }
 0x24e   : > { %21759 = vmatmul.mubr.f32.gmra.mrb[12].mxu0 %v26356_v43 }
 0x24f   : > { %21761 = vmatprep.mubr.f32.mxu0 %v26810_v51 }
 0x250   : > { %22383 = vmatmul.mubr.f32.gmra.mrb[12].mxu1 %v26808_v18 }
 0x251   : > { %22385 = vmatprep.mubr.f32.mxu1 %v26820_v11 }
 0x252   : > { %21762 = vmatmul.mubr.f32.gmra.mrb[14].mxu0 %v26828_v58 }
 0x253   : > { %21766 = vmatprep.mubr.f32.mxu0 %v26177_v33  ;;  %v19479_v33 = vld [vmem:[%s25515_s11 + $0x1a] sm:$0xff] }
 0x254   : > { %22386 = vmatmul.mubr.f32.gmra.mrb[14].mxu1 %v26841_v32 }
 0x255   : > { %22390 = vmatprep.mubr.f32.mxu1 %v26624_v44 }
 0x256   : > { %21767 = vmatmul.mubr.f32.vlgmr.msra.gmra.mrb[0].mxu0 %v26184_v29  ;;  %v8431_v29 = vsel %vm259_vm0, %v19479_v33, 0 }
 0x257   : > { %21791 = vmatpush3.msra.mxu0 %v27035_v1  ;;  %21769 = vmatprep.mubr.f32.mxu0 %v26191_v4  ;;  %v19480_v4 = vld [vmem:[%s25515_s11 + $0x22] sm:$0xff]  ;;  %v27115_v57 = vand.u32 4294901760, %v8431_v29 }
 0x258   : > { %22391 = vmatmul.mubr.f32.vlgmr.msra.gmra.mrb[0].mxu1 %v26629_v3  ;;  %21816 = vmatprep.subr.mxu0 %v27091_v6 }
 0x259   : > { %22415 = vmatpush3.msra.mxu1 %v27038_v31  ;;  %22393 = vmatprep.mubr.f32.mxu1 %v26642_v22 }
 0x25a   : > { %21770 = vmatmul.mubr.f32.gmra.mrb[2].mxu0 %v26199_v35  ;;  %22440 = vmatprep.subr.mxu1 %v27094_v54  ;;  %v19481_v35 = vld [vmem:[%s25515_s11 + $0x32] sm:$0xff] }
 0x25b   : > { %21772 = vmatprep.mubr.f32.mxu0 %v26201_v62  ;;  %v8434_v62 = vsel %vm259_vm0, %v19480_v4, 0  ;;  %v8437_v33 = vsel %vm259_vm0, %v19481_v35, 0  ;;  %v8440_v4 = vsel %vm259_vm0, %v19482_v55, 0  ;;  %v8443_v35 = vsel %vm259_vm0, %v19483_v28, 0 }
 0x25c   : > { %22394 = vmatmul.mubr.f32.gmra.mrb[2].mxu1 %v26651_v23  ;;  %v27133_v47 = vand.u32 4294901760, %v8437_v33  ;;  %v8446_v55 = vsel %vm259_vm0, %v19484_v7, 0  ;;  %v27150_v28 = vand.u32 4294901760, %v8443_v35 }
 0x25d   : > { %22396 = vmatprep.mubr.f32.mxu1 %v26653_v27  ;;  %v27158_v59 = vand.u32 4294901760, %v8446_v55 }
 0x25e   : > { %21773 = vmatmul.mubr.f32.gmra.mrb[4].mxu0 %v26229_v63  ;;  %v27124_v63 = vand.u32 4294901760, %v8434_v62  ;;  %v27175_v36 = vsub.f32 %v8443_v35, %v27150_v28 }
 0x25f   : > { %21775 = vmatprep.mubr.f32.mxu0 %v26239_v41  ;;  %v27128_v41 = vsub.f32 %v8431_v29, %v27115_v57  ;;  %v27142_v29 = vand.u32 4294901760, %v8440_v4 }
 0x260   : > { %22397 = vmatmul.mubr.f32.gmra.mrb[4].mxu1 %v26665_v49  ;;  %30851 = vst [vmem:[#allocation60_spill] sm:$0xff] %v27175_v36 }
 0x261   : > { %22399 = vmatprep.mubr.f32.mxu1 %v26671_v56  ;;  %30845 = vst [vmem:[#allocation27_spill] sm:$0xff] %v27128_v41  ;;  %v27148_v42 = vand.u32 4294901760, %v27128_v41  ;;  %v27168_v10 = vsub.f32 %v8440_v4, %v27142_v29  ;;  %v27184_v4 = vsub.f32 %v8446_v55, %v27158_v59  ;;  %v27205_v55 = vand.u32 4294901760, %v27175_v36 }
 0x262   : > { %21776 = vmatmul.mubr.f32.gmra.mrb[6].mxu0 %v26268_v26  ;;  %v19485_v26 = vld [vmem:[%s25515_s11 + $0x62] sm:$0xff] }
 0x263   : > { %21778 = vmatprep.mubr.f32.mxu0 %v26273_v52  ;;  %v27140_v52 = vsub.f32 %v8434_v62, %v27124_v63  ;;  %v8449_v48 = vsel %vm259_vm0, %v19485_v26, 0  ;;  %30847 = vst [vmem:[#allocation36_spill] sm:$0xff] %v27148_v42  ;;  %v19487_v62 = vld [vmem:[%s25515_s11 + $0x7a] sm:$0xff]  ;;  %30850 = vst [vmem:[#allocation59_spill] sm:$0xff] %v27168_v10  ;;  %v27214_v46 = vand.u32 4294901760, %v27184_v4 }
 0x264   : > { %22400 = vmatmul.mubr.f32.gmra.mrb[6].mxu1 %v26697_v25  ;;  %v27160_v7 = vand.u32 4294901760, %v8449_v48  ;;  %v8455_v21 = vsel %vm259_vm0, %v19487_v62, 0  ;;  %30853 = vst [vmem:[#allocation65_spill] sm:$0xff] %v27184_v4  ;;  %30857 = vst [vmem:[#allocation73_spill] sm:$0xff] %v27205_v55 }
 0x265   : > { %22402 = vmatprep.mubr.f32.mxu1 %v26699_v16  ;;  %30846 = vst [vmem:[#allocation45_spill] sm:$0xff] %v27140_v52  ;;  %v27165_v26 = vand.u32 4294901760, %v27140_v52  ;;  %v27199_v62 = vand.u32 4294901760, %v8455_v21  ;;  %30858 = vst [vmem:[#allocation75_spill] sm:$0xff] %v27214_v46 }
 0x266   : > { %21779 = vmatmul.mubr.f32.gmra.mrb[8].mxu0 %v26297_v38  ;;  %v19486_v38 = vld [vmem:[%s25515_s11 + $0x6a] sm:$0xff] }
 0x267   : > { %21781 = vmatprep.mubr.f32.mxu0 %v26306_v37  ;;  %v27154_v37 = vsub.f32 %v8437_v33, %v27133_v47  ;;  %30849 = vst [vmem:[#allocation38_spill] sm:$0xff] %v27165_v26  ;;  %v8452_v33 = vsel %vm259_vm0, %v19486_v38, 0  ;;  %v27187_v38 = vsub.f32 %v8449_v48, %v27160_v7  ;;  %v8557_v35 = vsub.f32 %v27140_v52, %v27165_v26  ;;  %v19490_v26 = vld [vmem:[%s25515_s11 + $0x9a] sm:$0xff] }
 0x268   : > { %22403 = vmatmul.mubr.f32.gmra.mrb[8].mxu1 %v26733_v20  ;;  %v27189_v30 = vand.u32 4294901760, %v8452_v33 }
 0x269   : > { %22405 = vmatprep.mubr.f32.mxu1 %v26745_v39  ;;  %30848 = vst [vmem:[#allocation46_spill] sm:$0xff] %v27154_v37  ;;  %30854 = vst [vmem:[#allocation68_spill] sm:$0xff] %v27187_v38 }
 0x26a   : > { %21782 = vmatmul.mubr.f32.gmra.mrb[10].mxu0 %v26330_v34  ;;  %v8547_v34 = vsub.f32 %v27128_v41, %v27148_v42  ;;  %v19489_v42 = vld [vmem:[%s25515_s11 + $0x92] sm:$0xff]  ;;  %v27220_v5 = vsub.f32 %v8452_v33, %v27189_v30  ;;  %v8587_v33 = vsub.f32 %v27175_v36, %v27205_v55  ;;  %v19493_v55 = vld [vmem:[%s25515_s11 + $0xc2] sm:$0xff] }
 0x26b   : > { %21784 = vmatprep.mubr.f32.mxu0 %v26341_v40  ;;  %v27179_v40 = vand.u32 4294901760, %v27154_v37  ;;  %v8461_v45 = vsel %vm259_vm0, %v19489_v42, 0  ;;  %v27225_v42 = vand.u32 4294901760, %v8557_v35  ;;  %v8467_v35 = vsel %vm259_vm0, %v19491_v50, 0 }
 0x26c   : > { %22406 = vmatmul.mubr.f32.gmra.mrb[10].mxu1 %v26774_v61  ;;  %v27202_v48 = vand.u32 4294901760, %v8547_v34  ;;  %v27217_v34 = vand.u32 4294901760, %v27187_v38  ;;  %30860 = vst [vmem:[#allocation43_spill] sm:$0xff] %v27220_v5  ;;  %v27237_v24 = vand.u32 4294901760, %v8461_v45 }
 0x26d   : > { %22408 = vmatprep.mubr.f32.mxu1 %v26781_v12  ;;  %30852 = vst [vmem:[#allocation64_spill] sm:$0xff] %v27179_v40  ;;  %30862 = vst [vmem:[#allocation49_spill] sm:$0xff] %v27225_v42 }
 0x26e   : > { %21785 = vmatmul.mubr.f32.gmra.mrb[12].mxu0 %v26356_v43  ;;  %v27197_v43 = vand.u32 4294901760, %v27168_v10  ;;  %30856 = vst [vmem:[#allocation71_spill] sm:$0xff] %v27202_v48  ;;  %30859 = vst [vmem:[#allocation33_spill] sm:$0xff] %v27217_v34 }
 0x26f   : > { %21787 = vmatprep.mubr.f32.mxu0 %v26810_v51  ;;  %v8567_v51 = vsub.f32 %v27154_v37, %v27179_v40  ;;  %v27230_v40 = vsub.f32 %v8455_v21, %v27199_v62  ;;  %v8597_v21 = vsub.f32 %v27184_v4, %v27214_v46  ;;  %v27267_v46 = vand.u32 4294901760, %v8587_v33  ;;  %v30873_v4 = vld [vmem:[#allocation13_spill] sm:$0xff] }
 0x270   : > { %22409 = vmatmul.mubr.f32.gmra.mrb[12].mxu1 %v26808_v18  ;;  %30855 = vst [vmem:[#allocation69_spill] sm:$0xff] %v27197_v43 }
 0x271   : > { %22411 = vmatprep.mubr.f32.mxu1 %v26820_v11  ;;  %30863 = vst [vmem:[#allocation57_spill] sm:$0xff] %v27230_v40  ;;  %v27240_v15 = vand.u32 4294901760, %v8567_v51  ;;  %v27258_v50 = vand.u32 4294901760, %v27230_v40  ;;  %30871 = vst [vmem:[#allocation70_spill] sm:$0xff] %v27267_v46 }
 0x272   : > { %21788 = vmatmul.mubr.f32.gmra.mrb[14].mxu0 %v26828_v58  ;;  %v8577_v58 = vsub.f32 %v27168_v10, %v27197_v43  ;;  %v30865_v43 = vld [vmem:[#allocation52_spill] sm:$0xff]  ;;  %v27250_v10 = vand.u32 4294901760, %v27220_v5 }
 0x273   : > { %21792 = vmatprep.mubr.f32.mxu0 %v30861_v8  ;;  %v8464_v8 = vsel %vm259_vm0, %v19490_v26, 0  ;;  %30864 = vst [vmem:[#allocation58_spill] sm:$0xff] %v27240_v15  ;;  %30868 = vst [vmem:[#allocation67_spill] sm:$0xff] %v27258_v50 }
 0x274   : > { %22412 = vmatmul.mubr.f32.gmra.mrb[14].mxu1 %v26841_v32  ;;  %30866 = vst [vmem:[#allocation61_spill] sm:$0xff] %v27250_v10  ;;  %v27255_v26 = vand.u32 4294901760, %v8577_v58  ;;  %v27263_v51 = vand.u32 4294901760, %v8464_v8  ;;  %v8470_v58 = vsel %vm259_vm0, %v19492_v53, 0  ;;  %v30876_v53 = vld [vmem:[#allocation18_spill] sm:$0xff] }
 0x275   : > { %22416 = vmatprep.mubr.f32.mxu1 %v27202_v48  ;;  %v8607_v48 = vsub.f32 %v27187_v38, %v27217_v34  ;;  %v30870_v34 = vld [vmem:[#allocation55_spill] sm:$0xff]  ;;  %v19494_v38 = vld [vmem:[%s25515_s11 + $0xca] sm:$0xff] }
 0x276   : > { %21793 = vmatmul.mubr.f32.vlgmr.msra.gmra.mrb[0].mxu0 %v30865_v43  ;;  %30867 = vst [vmem:[#allocation63_spill] sm:$0xff] %v27255_v26  ;;  %v27261_v43 = vsub.f32 %v8458_v60, %v27232_v13  ;;  %v8473_v60 = vsel %vm259_vm0, %v19493_v55, 0  ;;  %v8627_v55 = vsub.f32 %v27230_v40, %v27258_v50  ;;  %v30881_v50 = vld [vmem:[#allocation24_spill] sm:$0xff] }
 0x277   : > { %21817 = vmatpush3.msra.mxu0 %v27091_v6  ;;  %21795 = vmatprep.mubr.f32.mxu0 %v30870_v34  ;;  %v27270_v6 = vsub.f32 %v8461_v45, %v27237_v24  ;;  %v27282_v34 = vand.u32 4294901760, %v8607_v48  ;;  %v8617_v45 = vsub.f32 %v27220_v5, %v27250_v10  ;;  %v27297_v48 = vand.u32 4294901760, %v8470_v58 }
 0x278   : > { %22417 = vmatmul.mubr.f32.vlgmr.msra.gmra.mrb[0].mxu1 %v27225_v42  ;;  %30869 = vst [vmem:[#allocation15_spill] sm:$0xff] %v27261_v43  ;;  %v27272_v42 = vand.u32 4294901760, %v8467_v35  ;;  %21842 = vmatprep.subr.mxu0 %v27064_v14  ;;  %v27292_v33 = vand.u32 4294901760, %v27261_v43 }
 0x279   : > { %22441 = vmatpush3.msra.mxu1 %v27094_v54  ;;  %30872 = vst [vmem:[#allocation72_spill] sm:$0xff] %v27270_v6  ;;  %22419 = vmatprep.mubr.f32.mxu1 %v27240_v15  ;;  %v27280_v54 = vand.u32 4294901760, %v8597_v21  ;;  %30875 = vst [vmem:[#allocation31_spill] sm:$0xff] %v27282_v34  ;;  %v27301_v21 = vand.u32 4294901760, %v27270_v6  ;;  %v8476_v15 = vsel %vm259_vm0, %v19494_v38, 0  ;;  %v27310_v10 = vand.u32 4294901760, %v8617_v45 }
 0x27a   : > { %21796 = vmatmul.mubr.f32.gmra.mrb[2].mxu0 %v30873_v4  ;;  %22466 = vmatprep.subr.mxu1 %v27068_v17  ;;  %30877 = vst [vmem:[#allocation42_spill] sm:$0xff] %v27292_v33  ;;  %v27295_v4 = vsub.f32 %v8464_v8, %v27263_v51  ;;  %v30883_v8 = vld [vmem:[#allocation28_spill] sm:$0xff]  ;;  %v27322_v5 = vand.u32 4294901760, %v8476_v15  ;;  %v27325_v38 = vand.u32 4294901760, %v8627_v55 }
 0x27b   : > { %30874 = vst [vmem:[#allocation74_spill] sm:$0xff] %v27280_v54  ;;  %21798 = vmatprep.mubr.f32.mxu0 %v30876_v53  ;;  %30879 = vst [vmem:[#allocation52_spill] sm:$0xff] %v27301_v21  ;;  %v27306_v53 = vand.u32 4294901760, %v8473_v60 }
 0x27c   : > { %22420 = vmatmul.mubr.f32.gmra.mrb[2].mxu1 %v27255_v26  ;;  %30878 = vst [vmem:[#allocation35_spill] sm:$0xff] %v27295_v4  ;;  %v27304_v26 = vsub.f32 %v8467_v35, %v27272_v42  ;;  %30882 = vst [vmem:[#allocation13_spill] sm:$0xff] %v27310_v10  ;;  %v27317_v40 = vand.u32 4294901760, %v27295_v4  ;;  %v27320_v35 = vsub.f32 %v8470_v58, %v27297_v48  ;;  %v30890_v58 = vld [vmem:[#allocation56_spill] sm:$0xff] }
 0x27d   : > { %22422 = vmatprep.mubr.f32.mxu1 %v27267_v46  ;;  %v8637_v46 = vsub.f32 %v27261_v43, %v27292_v33  ;;  %30886 = vst [vmem:[#allocation28_spill] sm:$0xff] %v27325_v38 }
 0x27e   : > { %30880 = vst [vmem:[#allocation55_spill] sm:$0xff] %v27304_v26  ;;  %21799 = vmatmul.mubr.f32.gmra.mrb[4].mxu0 %v30881_v50  ;;  %30884 = vst [vmem:[#allocation18_spill] sm:$0xff] %v27317_v40  ;;  %v8647_v50 = vsub.f32 %v27270_v6, %v27301_v21  ;;  %v27330_v45 = vand.u32 4294901760, %v27304_v26  ;;  %v8657_v55 = vsub.f32 %v27295_v4, %v27317_v40 }
 0x27f   : > { %21801 = vmatprep.mubr.f32.mxu0 %v30883_v8  ;;  %30885 = vst [vmem:[#allocation24_spill] sm:$0xff] %v27320_v35  ;;  %v27333_v8 = vsub.f32 %v8473_v60, %v27306_v53  ;;  %v27338_v33 = vand.u32 4294901760, %v8637_v46  ;;  %v27346_v21 = vsub.f32 %v8476_v15, %v27322_v5  ;;  %v30894_v46 = vld [vmem:[#allocation12_spill] sm:$0xff] }
 0x280   : > { %22423 = vmatmul.mubr.f32.gmra.mrb[4].mxu1 %v27280_v54  ;;  %30887 = vst [vmem:[#allocation77_spill] sm:$0xff] %v27330_v45  ;;  %v30889_v54 = vld [vmem:[#allocation50_spill] sm:$0xff]  ;;  %v27349_v60 = vand.u32 4294901760, %v8647_v50  ;;  %v27359_v40 = vand.u32 4294901760, %v8657_v55 }
 0x281   : > { %22425 = vmatprep.mubr.f32.mxu1 %v27282_v34  ;;  %30888 = vst [vmem:[#allocation78_spill] sm:$0xff] %v27333_v8  ;;  %v27343_v34 = vand.u32 4294901760, %v27320_v35  ;;  %30892 = vst [vmem:[#allocation56_spill] sm:$0xff] %v27346_v21  ;;  %v27364_v50 = vand.u32 4294901760, %v27346_v21 }
 0x282   : > { %21802 = vmatmul.mubr.f32.gmra.mrb[6].mxu0 %v30889_v54  ;;  %v8667_v54 = vsub.f32 %v27304_v26, %v27330_v45 }
 0x283   : > { %21804 = vmatprep.mubr.f32.mxu0 %v30890_v58  ;;  %30891 = vst [vmem:[#allocation50_spill] sm:$0xff] %v27343_v34  ;;  %v27354_v58 = vand.u32 4294901760, %v27333_v8  ;;  %v8677_v15 = vsub.f32 %v27320_v35, %v27343_v34  ;;  %30896 = vst [vmem:[#allocation12_spill] sm:$0xff] %v27364_v50  ;;  %v8697_v55 = vsub.f32 %v27346_v21, %v27364_v50 }
 0x284   : > { %22426 = vmatmul.mubr.f32.gmra.mrb[6].mxu1 %v27310_v10  ;;  %v30895_v10 = vld [vmem:[#allocation25_spill] sm:$0xff] }
 0x285   : > { %22428 = vmatprep.mubr.f32.mxu1 %v27325_v38  ;;  %30893 = vst [vmem:[#allocation79_spill] sm:$0xff] %v27354_v58  ;;  %v27367_v38 = vand.u32 4294901760, %v8667_v54  ;;  %v8687_v45 = vsub.f32 %v27333_v8, %v27354_v58  ;;  %v30903_v54 = vld [vmem:[#allocation22_spill] sm:$0xff] }
 0x286   : > { %21805 = vmatmul.mubr.f32.gmra.mrb[8].mxu0 %v30894_v46 }
 0x287   : > { %21807 = vmatprep.mubr.f32.mxu0 %v30895_v10  ;;  %v27374_v10 = vand.u32 4294901760, %v8677_v15  ;;  %v27379_v46 = vand.u32 4294901760, %v8687_v45  ;;  %v30902_v45 = vld [vmem:[#allocation17_spill] sm:$0xff]  ;;  %v30904_v15 = vld [vmem:[#allocation59_spill] sm:$0xff] }
 0x288   : > { %22429 = vmatmul.mubr.f32.gmra.mrb[8].mxu1 %v27338_v33 }
 0x289   : > { %22431 = vmatprep.mubr.f32.mxu1 %v27349_v60 }
 0x28a   : > { %21808 = vmatmul.mubr.f32.gmra.mrb[10].mxu0 %v26883_v2  ;;  %v27384_v2 = vand.u32 4294901760, %v8697_v55  ;;  %v30905_v55 = vld [vmem:[#allocation9_spill] sm:$0xff] }
 0x28b   : > { %21810 = vmatprep.mubr.f32.mxu0 %v26894_v9  ;;  %v30897_v9 = vld [vmem:[#allocation76_spill] sm:$0xff] }
 0x28c   : > { %22432 = vmatmul.mubr.f32.gmra.mrb[10].mxu1 %v27359_v40 }
 0x28d   : > { %22434 = vmatprep.mubr.f32.mxu1 %v27367_v38 }
 0x28e   : > { %21811 = vmatmul.mubr.f32.gmra.mrb[12].mxu0 %v26904_v19  ;;  %v30898_v19 = vld [vmem:[#allocation47_spill] sm:$0xff] }
 0x28f   : > { %21813 = vmatprep.mubr.f32.mxu0 %v26909_v0  ;;  %v30899_v0 = vld [vmem:[#allocation3_spill] sm:$0xff] }
 0x290   : > { %22435 = vmatmul.mubr.f32.gmra.mrb[12].mxu1 %v27374_v10 }
 0x291   : > { %22437 = vmatprep.mubr.f32.mxu1 %v27379_v46 }
 0x292   : > { %21814 = vmatmul.mubr.f32.gmra.mrb[14].mxu0 %v30897_v9  ;;  %v30906_v9 = vld [vmem:[#allocation19_spill] sm:$0xff] }
 0x293   : > { %21818 = vmatprep.mubr.f32.mxu0 %v26624_v44 }
 0x294   : > { %22438 = vmatmul.mubr.f32.gmra.mrb[14].mxu1 %v27384_v2 }
 0x295   : > { %22442 = vmatprep.mubr.f32.mxu1 %v27115_v57 }
 0x296   : > { %21819 = vmatmul.mubr.f32.vlgmr.msra.gmra.mrb[0].mxu0 %v26629_v3 }
 0x297   : > { %21843 = vmatpush3.msra.mxu0 %v27064_v14  ;;  %21821 = vmatprep.mubr.f32.mxu0 %v26642_v22  ;;  %v30900_v14 = vld [vmem:[#allocation6_spill] sm:$0xff] }
 0x298   : > { %22443 = vmatmul.mubr.f32.vlgmr.msra.gmra.mrb[0].mxu1 %v27124_v63  ;;  %21868 = vmatprep.subr.mxu0 %v27035_v1 }
 0x299   : > { %22467 = vmatpush3.msra.mxu1 %v27068_v17  ;;  %22445 = vmatprep.mubr.f32.mxu1 %v27133_v47  ;;  %v30901_v17 = vld [vmem:[#allocation20_spill] sm:$0xff] }
 0x29a   : > { %21822 = vmatmul.mubr.f32.gmra.mrb[2].mxu0 %v26651_v23  ;;  %22492 = vmatprep.subr.mxu1 %v27038_v31 }
 0x29b   : > { %21824 = vmatprep.mubr.f32.mxu0 %v26653_v27 }
 0x29c   : > { %22446 = vmatmul.mubr.f32.gmra.mrb[2].mxu1 %v27142_v29 }
 0x29d   : > { %22448 = vmatprep.mubr.f32.mxu1 %v27150_v28 }
 0x29e   : > { %21825 = vmatmul.mubr.f32.gmra.mrb[4].mxu0 %v26665_v49 }
 0x29f   : > { %21827 = vmatprep.mubr.f32.mxu0 %v26671_v56 }
 0x2a0   : > { %22449 = vmatmul.mubr.f32.gmra.mrb[4].mxu1 %v27158_v59 }
 0x2a1   : > { %22451 = vmatprep.mubr.f32.mxu1 %v27160_v7 }
 0x2a2   : > { %21828 = vmatmul.mubr.f32.gmra.mrb[6].mxu0 %v26697_v25 }
 0x2a3   : > { %21830 = vmatprep.mubr.f32.mxu0 %v26699_v16 }
 0x2a4   : > { %22452 = vmatmul.mubr.f32.gmra.mrb[6].mxu1 %v27189_v30 }
 0x2a5   : > { %22454 = vmatprep.mubr.f32.mxu1 %v27199_v62 }
 0x2a6   : > { %21831 = vmatmul.mubr.f32.gmra.mrb[8].mxu0 %v26733_v20 }
 0x2a7   : > { %21833 = vmatprep.mubr.f32.mxu0 %v26745_v39 }
 0x2a8   : > { %22455 = vmatmul.mubr.f32.gmra.mrb[8].mxu1 %v27232_v13 }
 0x2a9   : > { %22457 = vmatprep.mubr.f32.mxu1 %v27237_v24 }
 0x2aa   : > { %21834 = vmatmul.mubr.f32.gmra.mrb[10].mxu0 %v26774_v61 }
 0x2ab   : > { %21836 = vmatprep.mubr.f32.mxu0 %v26781_v12 }
 0x2ac   : > { %22458 = vmatmul.mubr.f32.gmra.mrb[10].mxu1 %v27263_v51 }
 0x2ad   : > { %22460 = vmatprep.mubr.f32.mxu1 %v27272_v42 }
 0x2ae   : > { %21837 = vmatmul.mubr.f32.gmra.mrb[12].mxu0 %v26808_v18 }
 0x2af   : > { %21839 = vmatprep.mubr.f32.mxu0 %v26820_v11 }
 0x2b0   : > { %22461 = vmatmul.mubr.f32.gmra.mrb[12].mxu1 %v27297_v48 }
 0x2b1   : > { %22463 = vmatprep.mubr.f32.mxu1 %v27306_v53 }
 0x2b2   : > { %21840 = vmatmul.mubr.f32.gmra.mrb[14].mxu0 %v26841_v32 }
 0x2b3   : > { %21844 = vmatprep.mubr.f32.mxu0 %v30898_v19  ;;  %v30907_v19 = vld [vmem:[#allocation65_spill] sm:$0xff] }
 0x2b4   : > { %22464 = vmatmul.mubr.f32.gmra.mrb[14].mxu1 %v27322_v5 }
 0x2b5   : > { %22468 = vmatprep.mubr.f32.mxu1 %v27128_v41  ;;  %v30913_v41 = vld [vmem:[#allocation57_spill] sm:$0xff] }
 0x2b6   : > { %21845 = vmatmul.mubr.f32.vlgmr.msra.gmra.mrb[0].mxu0 %v30899_v0  ;;  %v30908_v0 = vld [vmem:[#allocation21_spill] sm:$0xff] }
 0x2b7   : > { %21869 = vmatpush3.msra.mxu0 %v27035_v1  ;;  %21847 = vmatprep.mubr.f32.mxu0 %v30900_v14  ;;  %v30909_v14 = vld [vmem:[#allocation68_spill] sm:$0xff] }
 0x2b8   : > { %22469 = vmatmul.mubr.f32.vlgmr.msra.gmra.mrb[0].mxu1 %v27140_v52  ;;  %21894 = vmatprep.subr.mxu0 %v30901_v17  ;;  %v30911_v52 = vld [vmem:[#allocation43_spill] sm:$0xff] }
 0x2b9   : > { %22493 = vmatpush3.msra.mxu1 %v27038_v31  ;;  %22471 = vmatprep.mubr.f32.mxu1 %v27154_v37  ;;  %v30910_v37 = vld [vmem:[#allocation48_spill] sm:$0xff] }
 0x2ba   : > { %21848 = vmatmul.mubr.f32.gmra.mrb[2].mxu0 %v30902_v45  ;;  %22518 = vmatprep.subr.mxu1 %v30903_v54  ;;  %v30912_v45 = vld [vmem:[#allocation51_spill] sm:$0xff] }
 0x2bb   : > { %21850 = vmatprep.mubr.f32.mxu0 %v30905_v55  ;;  %v30915_v55 = vld [vmem:[#allocation23_spill] sm:$0xff] }
 0x2bc   : > { %22472 = vmatmul.mubr.f32.gmra.mrb[2].mxu1 %v30904_v15  ;;  %v30914_v15 = vld [vmem:[#allocation8_spill] sm:$0xff] }
 0x2bd   : > { %22474 = vmatprep.mubr.f32.mxu1 %v27175_v36 }
 0x2be   : > { %21851 = vmatmul.mubr.f32.gmra.mrb[4].mxu0 %v30906_v9  ;;  %v30916_v9 = vld [vmem:[#allocation39_spill] sm:$0xff] }
 0x2bf   : > { %21853 = vmatprep.mubr.f32.mxu0 %v30908_v0  ;;  %v30917_v0 = vld [vmem:[#allocation44_spill] sm:$0xff] }
 0x2c0   : > { %22475 = vmatmul.mubr.f32.gmra.mrb[4].mxu1 %v30907_v19  ;;  %v30967_v19 = vld [vmem:[#allocation71_spill] sm:$0xff] }
 0x2c1   : > { %22477 = vmatprep.mubr.f32.mxu1 %v30909_v14  ;;  %v19540_v14 = vld [vmem:[%s25515_s11 + $0x99] sm:$0xff] }
 0x2c2   : > { %21854 = vmatmul.mubr.f32.gmra.mrb[6].mxu0 %v30910_v37  ;;  %v30918_v37 = vld [vmem:[#allocation54_spill] sm:$0xff] }
 0x2c3   : > { %21856 = vmatprep.mubr.f32.mxu0 %v30912_v45  ;;  %v30919_v45 = vld [vmem:[#allocation62_spill] sm:$0xff] }
 0x2c4   : > { %22478 = vmatmul.mubr.f32.gmra.mrb[6].mxu1 %v30911_v52 }
 0x2c5   : > { %22480 = vmatprep.mubr.f32.mxu1 %v30913_v41 }
 0x2c6   : > { %21857 = vmatmul.mubr.f32.gmra.mrb[8].mxu0 %v30914_v15  ;;  %v30920_v15 = vld [vmem:[#allocation66_spill] sm:$0xff] }
 0x2c7   : > { %21859 = vmatprep.mubr.f32.mxu0 %v30915_v55  ;;  %v30921_v55 = vld [vmem:[#allocation4_spill] sm:$0xff] }
 0x2c8   : > { %22481 = vmatmul.mubr.f32.gmra.mrb[8].mxu1 %v27261_v43 }
 0x2c9   : > { %22483 = vmatprep.mubr.f32.mxu1 %v27270_v6 }
 0x2ca   : > { %21860 = vmatmul.mubr.f32.gmra.mrb[10].mxu0 %v30916_v9  ;;  %v30922_v9 = vld [vmem:[#allocation36_spill] sm:$0xff] }
 0x2cb   : > { %21862 = vmatprep.mubr.f32.mxu0 %v30917_v0  ;;  %v30924_v0 = vld [vmem:[#allocation38_spill] sm:$0xff] }
 0x2cc   : > { %22484 = vmatmul.mubr.f32.gmra.mrb[10].mxu1 %v27295_v4  ;;  %v30923_v4 = vld [vmem:[#allocation10_spill] sm:$0xff] }
 0x2cd   : > { %22486 = vmatprep.mubr.f32.mxu1 %v27304_v26 }
 0x2ce   : > { %21863 = vmatmul.mubr.f32.gmra.mrb[12].mxu0 %v30918_v37  ;;  %v30925_v37 = vld [vmem:[#allocation16_spill] sm:$0xff] }
 0x2cf   : > { %21865 = vmatprep.mubr.f32.mxu0 %v30919_v45  ;;  %v30926_v45 = vld [vmem:[#allocation64_spill] sm:$0xff] }
 0x2d0   : > { %22487 = vmatmul.mubr.f32.gmra.mrb[12].mxu1 %v27320_v35 }
 0x2d1   : > { %22489 = vmatprep.mubr.f32.mxu1 %v27333_v8  ;;  %v30938_v8 = vld [vmem:[#allocation67_spill] sm:$0xff] }
 0x2d2   : > { %21866 = vmatmul.mubr.f32.gmra.mrb[14].mxu0 %v30920_v15  ;;  %v30927_v15 = vld [vmem:[#allocation26_spill] sm:$0xff] }
 0x2d3   : > { %21870 = vmatprep.mubr.f32.mxu0 %v30921_v55  ;;  %v30928_v55 = vld [vmem:[#allocation69_spill] sm:$0xff] }
 0x2d4   : > { %22490 = vmatmul.mubr.f32.gmra.mrb[14].mxu1 %v27346_v21  ;;  %v30936_v21 = vld [vmem:[#allocation61_spill] sm:$0xff] }
 0x2d5   : > { %22494 = vmatprep.mubr.f32.mxu1 %v30922_v9  ;;  %v30929_v9 = vld [vmem:[#allocation32_spill] sm:$0xff] }
 0x2d6   : > { %21871 = vmatmul.mubr.f32.vlgmr.msra.gmra.mrb[0].mxu0 %v30923_v4  ;;  %v30930_v4 = vld [vmem:[#allocation73_spill] sm:$0xff] }
 0x2d7   : > { %21895 = vmatpush3.msra.mxu0 %v30901_v17  ;;  %21873 = vmatprep.mubr.f32.mxu0 %v30925_v37  ;;  %v30931_v17 = vld [vmem:[#allocation37_spill] sm:$0xff] }
 0x2d8   : > { %22495 = vmatmul.mubr.f32.vlgmr.msra.gmra.mrb[0].mxu1 %v30924_v0  ;;  %21920 = vmatprep.subr.mxu0 %v27035_v1  ;;  %v30932_v0 = vld [vmem:[#allocation75_spill] sm:$0xff]  ;;  %v30934_v37 = vld [vmem:[#allocation33_spill] sm:$0xff] }
 0x2d9   : > { %22519 = vmatpush3.msra.mxu1 %v30903_v54  ;;  %22497 = vmatprep.mubr.f32.mxu1 %v30926_v45  ;;  %v30933_v54 = vld [vmem:[#allocation41_spill] sm:$0xff] }
 0x2da   : > { %21874 = vmatmul.mubr.f32.gmra.mrb[2].mxu0 %v30927_v15  ;;  %22544 = vmatprep.subr.mxu1 %v27038_v31  ;;  %v30935_v45 = vld [vmem:[#allocation5_spill] sm:$0xff]  ;;  %v30937_v15 = vld [vmem:[#allocation7_spill] sm:$0xff] }
 0x2db   : > { %21876 = vmatprep.mubr.f32.mxu0 %v30929_v9  ;;  %v30940_v9 = vld [vmem:[#allocation42_spill] sm:$0xff] }
 0x2dc   : > { %22498 = vmatmul.mubr.f32.gmra.mrb[2].mxu1 %v30928_v55  ;;  %v30939_v55 = vld [vmem:[#allocation34_spill] sm:$0xff] }
 0x2dd   : > { %22500 = vmatprep.mubr.f32.mxu1 %v30930_v4  ;;  %v30941_v4 = vld [vmem:[#allocation40_spill] sm:$0xff] }
 0x2de   : > { %21877 = vmatmul.mubr.f32.gmra.mrb[4].mxu0 %v30931_v17  ;;  %v30942_v17 = vld [vmem:[#allocation52_spill] sm:$0xff] }
 0x2df   : > { %21879 = vmatprep.mubr.f32.mxu0 %v30933_v54  ;;  %v30944_v54 = vld [vmem:[#allocation18_spill] sm:$0xff] }
 0x2e0   : > { %22501 = vmatmul.mubr.f32.gmra.mrb[4].mxu1 %v30932_v0  ;;  %v30943_v0 = vld [vmem:[#allocation53_spill] sm:$0xff] }
 0x2e1   : > { %22503 = vmatprep.mubr.f32.mxu1 %v30934_v37  ;;  %v30945_v37 = vld [vmem:[#allocation11_spill] sm:$0xff] }
 0x2e2   : > { %21880 = vmatmul.mubr.f32.gmra.mrb[6].mxu0 %v30935_v45  ;;  %v30946_v45 = vld [vmem:[#allocation77_spill] sm:$0xff] }
 0x2e3   : > { %21882 = vmatprep.mubr.f32.mxu0 %v30937_v15  ;;  %v30948_v15 = vld [vmem:[#allocation29_spill] sm:$0xff] }
 0x2e4   : > { %22504 = vmatmul.mubr.f32.gmra.mrb[6].mxu1 %v30936_v21  ;;  %v30947_v21 = vld [vmem:[#allocation14_spill] sm:$0xff] }
 0x2e5   : > { %22506 = vmatprep.mubr.f32.mxu1 %v30938_v8 }
 0x2e6   : > { %21883 = vmatmul.mubr.f32.gmra.mrb[8].mxu0 %v30939_v55  ;;  %v30949_v55 = vld [vmem:[#allocation30_spill] sm:$0xff] }
 0x2e7   : > { %21885 = vmatprep.mubr.f32.mxu0 %v30941_v4 }
 0x2e8   : > { %22507 = vmatmul.mubr.f32.gmra.mrb[8].mxu1 %v30940_v9 }
 0x2e9   : > { %22509 = vmatprep.mubr.f32.mxu1 %v30942_v17 }
 0x2ea   : > { %21886 = vmatmul.mubr.f32.gmra.mrb[10].mxu0 %v30943_v0  ;;  %v19545_v0 = vld [vmem:[%s29973_s1 + $0x48] sm:$0xff] }
 0x2eb   : > { %21888 = vmatprep.mubr.f32.mxu0 %v30945_v37  ;;  %v27505_v4 = vand.u32 4294901760, %v19545_v0 }
 0x2ec   : > { %22510 = vmatmul.mubr.f32.gmra.mrb[10].mxu1 %v30944_v54  ;;  %v19535_v54 = vld [vmem:[%s25515_s11 + $0x61] sm:$0xff] }
 0x2ed   : > { %22512 = vmatprep.mubr.f32.mxu1 %v30946_v45  ;;  %v19534_v45 = vld [vmem:[%s25515_s11 + $0x51] sm:$0xff] }
 0x2ee   : > { %21889 = vmatmul.mubr.f32.gmra.mrb[12].mxu0 %v30947_v21  ;;  %v19631_v21 = vld [vmem:[%s29973_s1 + $0x68] sm:$0xff] }
 0x2ef   : > { %21891 = vmatprep.mubr.f32.mxu0 %v30948_v15  ;;  %v27508_v37 = vand.u32 4294901760, %v19631_v21 }
 0x2f0   : > { %22513 = vmatmul.mubr.f32.gmra.mrb[12].mxu1 %v27343_v34 }
 0x2f1   : > { %22515 = vmatprep.mubr.f32.mxu1 %v27354_v58 }
 0x2f2   : > { %21892 = vmatmul.mubr.f32.gmra.mrb[14].mxu0 %v30949_v55 }
 0x2f3   : > { %21896 = vmatprep.mubr.f32.mxu0 %v26624_v44 }
 0x2f4   : > { %22516 = vmatmul.mubr.f32.gmra.mrb[14].mxu1 %v27364_v50 }
 0x2f5   : > { %22520 = vmatprep.mubr.f32.mxu1 %v27115_v57 }
 0x2f6   : > { %21897 = vmatmul.mubr.f32.vlgmr.msra.gmra.mrb[0].mxu0 %v26629_v3 }
 0x2f7   : > { %21921 = vmatpush3.msra.mxu0 %v27035_v1  ;;  %21899 = vmatprep.mubr.f32.mxu0 %v26642_v22  ;;  %v27534_v1 = vsub.f32 %v19545_v0, %v27505_v4 }
 0x2f8   : > { %22521 = vmatmul.mubr.f32.vlgmr.msra.gmra.mrb[0].mxu1 %v27124_v63  ;;  %22570 = vmatprep.subr.mxu0 %v27505_v4 }
 0x2f9   : > { %22545 = vmatpush3.msra.mxu1 %v27038_v31  ;;  %22523 = vmatprep.mubr.f32.mxu1 %v27133_v47  ;;  %v27538_v31 = vsub.f32 %v19631_v21, %v27508_v37  ;;  %v27544_v15 = vand.u32 4294901760, %v27534_v1 }
 0x2fa   : > { %21900 = vmatmul.mubr.f32.gmra.mrb[2].mxu0 %v26651_v23  ;;  %23194 = vmatprep.subr.mxu1 %v27508_v37 }
 0x2fb   : > { %21902 = vmatprep.mubr.f32.mxu0 %v26653_v27  ;;  %30950 = vst [vmem:[#allocation25_spill] sm:$0xff] %v27544_v15  ;;  %v27548_v55 = vand.u32 4294901760, %v27538_v31  ;;  %v9932_v0 = vsub.f32 %v27534_v1, %v27544_v15 }
 0x2fc   : > { %22524 = vmatmul.mubr.f32.gmra.mrb[2].mxu1 %v27142_v29 }
 0x2fd   : > { %22526 = vmatprep.mubr.f32.mxu1 %v27150_v28  ;;  %30951 = vst [vmem:[#allocation76_spill] sm:$0xff] %v27548_v55  ;;  %v14628_v21 = vsub.f32 %v27538_v31, %v27548_v55  ;;  %v27561_v50 = vand.u32 4294901760, %v9932_v0  ;;  %v19531_v0 = vld [vmem:[%s25515_s11 + $0x31] sm:$0xff] }
 0x2fe   : > { %21903 = vmatmul.mubr.f32.gmra.mrb[4].mxu0 %v26665_v49  ;;  %v9661_v34 = vsel %vm259_vm0, %v19531_v0, 0 }
 0x2ff   : > { %21905 = vmatprep.mubr.f32.mxu0 %v26671_v56  ;;  %v27564_v58 = vand.u32 4294901760, %v14628_v21  ;;  %v27603_v0 = vand.u32 4294901760, %v9661_v34 }
 0x300   : > { %22527 = vmatmul.mubr.f32.gmra.mrb[4].mxu1 %v27158_v59 }
 0x301   : > { %22529 = vmatprep.mubr.f32.mxu1 %v27160_v7 }
 0x302   : > { %21906 = vmatmul.mubr.f32.gmra.mrb[6].mxu0 %v26697_v25 }
 0x303   : > { %21908 = vmatprep.mubr.f32.mxu0 %v26699_v16 }
 0x304   : > { %22530 = vmatmul.mubr.f32.gmra.mrb[6].mxu1 %v27189_v30 }
 0x305   : > { %22532 = vmatprep.mubr.f32.mxu1 %v27199_v62 }
 0x306   : > { %21909 = vmatmul.mubr.f32.gmra.mrb[8].mxu0 %v26733_v20 }
 0x307   : > { %21911 = vmatprep.mubr.f32.mxu0 %v26745_v39 }
 0x308   : > { %22533 = vmatmul.mubr.f32.gmra.mrb[8].mxu1 %v27232_v13 }
 0x309   : > { %22535 = vmatprep.mubr.f32.mxu1 %v27237_v24 }
 0x30a   : > { %21912 = vmatmul.mubr.f32.gmra.mrb[10].mxu0 %v26774_v61 }
 0x30b   : > { %21914 = vmatprep.mubr.f32.mxu0 %v26781_v12 }
 0x30c   : > { %22536 = vmatmul.mubr.f32.gmra.mrb[10].mxu1 %v27263_v51 }
 0x30d   : > { %22538 = vmatprep.mubr.f32.mxu1 %v27272_v42 }
 0x30e   : > { %21915 = vmatmul.mubr.f32.gmra.mrb[12].mxu0 %v26808_v18 }
 0x30f   : > { %21917 = vmatprep.mubr.f32.mxu0 %v26820_v11 }
 0x310   : > { %22539 = vmatmul.mubr.f32.gmra.mrb[12].mxu1 %v27297_v48 }
 0x311   : > { %22541 = vmatprep.mubr.f32.mxu1 %v27306_v53 }
 0x312   : > { %21918 = vmatmul.mubr.f32.gmra.mrb[14].mxu0 %v26841_v32 }
 0x313   : > { %21922 = vmatprep.mubr.f32.mxu0 %v26624_v44  ;;  %v19529_v44 = vld [vmem:[%s25515_s11 + $0x19] sm:$0xff] }
 0x314   : > { %22542 = vmatmul.mubr.f32.gmra.mrb[14].mxu1 %v27322_v5 }
 0x315   : > { %22546 = vmatprep.mubr.f32.mxu1 %v27115_v57 }
 0x316   : > { %21923 = vmatmul.mubr.f32.vlgmr.msra.gmra.mrb[0].mxu0 %v26629_v3  ;;  %v9655_v3 = vsel %vm259_vm0, %v19529_v44, 0  ;;  %v19533_v44 = vld [vmem:[%s25515_s11 + $0x49] sm:$0xff] }
 0x317   : > { %22571 = vmatpush3.msra.mxu0 %v27505_v4  ;;  %21925 = vmatprep.mubr.f32.mxu0 %v26642_v22  ;;  %v19530_v22 = vld [vmem:[%s25515_s11 + $0x21] sm:$0xff] }
 0x318   : > { %22547 = vmatmul.mubr.f32.vlgmr.msra.gmra.mrb[0].mxu1 %v27124_v63  ;;  %22596 = vmatprep.subr.mxu0 %v27561_v50  ;;  %v9658_v21 = vsel %vm259_vm0, %v19530_v22, 0 }
 0x319   : > { %23195 = vmatpush3.msra.mxu1 %v27508_v37  ;;  %22549 = vmatprep.mubr.f32.mxu1 %v27133_v47 }
 0x31a   : > { %21926 = vmatmul.mubr.f32.gmra.mrb[2].mxu0 %v26651_v23  ;;  %23220 = vmatprep.subr.mxu1 %v27564_v58  ;;  %v27584_v23 = vand.u32 4294901760, %v9655_v3 }
 0x31b   : > { %21928 = vmatprep.mubr.f32.mxu0 %v26653_v27  ;;  %v19532_v27 = vld [vmem:[%s25515_s11 + $0x39] sm:$0xff] }
 0x31c   : > { %22550 = vmatmul.mubr.f32.gmra.mrb[2].mxu1 %v27142_v29  ;;  %v9664_v22 = vsel %vm259_vm0, %v19532_v27, 0  ;;  %v9673_v27 = vsel %vm259_vm0, %v19535_v54, 0 }
 0x31d   : > { %22552 = vmatprep.mubr.f32.mxu1 %v27150_v28  ;;  %v27629_v54 = vand.u32 4294901760, %v9673_v27 }
 0x31e   : > { %21929 = vmatmul.mubr.f32.gmra.mrb[4].mxu0 %v26665_v49  ;;  %v27592_v49 = vand.u32 4294901760, %v9658_v21 }
 0x31f   : > { %21931 = vmatprep.mubr.f32.mxu0 %v26671_v56  ;;  %v27597_v56 = vsub.f32 %v9655_v3, %v27584_v23  ;;  %v9670_v3 = vsel %vm259_vm0, %v19534_v45, 0 }
 0x320   : > { %22553 = vmatmul.mubr.f32.gmra.mrb[4].mxu1 %v27158_v59  ;;  %v27608_v17 = vsub.f32 %v9658_v21, %v27592_v49  ;;  %v19537_v21 = vld [vmem:[%s25515_s11 + $0x79] sm:$0xff]  ;;  %v27627_v45 = vand.u32 4294901760, %v9670_v3 }
 0x321   : > { %22555 = vmatprep.mubr.f32.mxu1 %v27160_v7  ;;  %30952 = vst [vmem:[#allocation47_spill] sm:$0xff] %v27597_v56  ;;  %v27617_v9 = vand.u32 4294901760, %v27597_v56  ;;  %v9679_v43 = vsel %vm259_vm0, %v19537_v21, 0 }
 0x322   : > { %21932 = vmatmul.mubr.f32.gmra.mrb[6].mxu0 %v26697_v25  ;;  %v9667_v25 = vsel %vm259_vm0, %v19533_v44, 0  ;;  %30953 = vst [vmem:[#allocation3_spill] sm:$0xff] %v27608_v17  ;;  %v19536_v44 = vld [vmem:[%s25515_s11 + $0x69] sm:$0xff]  ;;  %v27662_v41 = vand.u32 4294901760, %v9679_v43 }
 0x323   : > { %21934 = vmatprep.mubr.f32.mxu0 %v26699_v16  ;;  %v27610_v16 = vand.u32 4294901760, %v9664_v22  ;;  %30954 = vst [vmem:[#allocation6_spill] sm:$0xff] %v27617_v9  ;;  %v27619_v8 = vand.u32 4294901760, %v9667_v25  ;;  %v9676_v26 = vsel %vm259_vm0, %v19536_v44, 0  ;;  %v27652_v44 = vsub.f32 %v9673_v27, %v27629_v54 }
 0x324   : > { %22556 = vmatmul.mubr.f32.gmra.mrb[6].mxu1 %v27189_v30 }
 0x325   : > { %22558 = vmatprep.mubr.f32.mxu1 %v27199_v62  ;;  %v27634_v35 = vsub.f32 %v9664_v22, %v27610_v16  ;;  %v27642_v6 = vsub.f32 %v9667_v25, %v27619_v8  ;;  %v19538_v22 = vld [vmem:[%s25515_s11 + $0x81] sm:$0xff]  ;;  %30959 = vst [vmem:[#allocation19_spill] sm:$0xff] %v27652_v44  ;;  %v30960_v25 = vand.u32 4294901760, %v27608_v17 }
 0x326   : > { %21935 = vmatmul.mubr.f32.gmra.mrb[8].mxu0 %v26733_v20  ;;  %v27624_v20 = vsub.f32 %v9661_v34, %v27603_v0  ;;  %v9771_v34 = vsub.f32 %v27597_v56, %v27617_v9  ;;  %v19539_v9 = vld [vmem:[%s25515_s11 + $0x91] sm:$0xff]  ;;  %v9682_v52 = vsel %vm259_vm0, %v19538_v22, 0 }
 0x327   : > { %21937 = vmatprep.mubr.f32.mxu0 %v26745_v39  ;;  %30956 = vst [vmem:[#allocation17_spill] sm:$0xff] %v27634_v35  ;;  %30957 = vst [vmem:[#allocation22_spill] sm:$0xff] %v27642_v6  ;;  %v27649_v39 = vsub.f32 %v9670_v3, %v27627_v45  ;;  %v9781_v21 = vsub.f32 %v27608_v17, %v30960_v25  ;;  %v30964_v27 = vand.u32 4294901760, %v27634_v35  ;;  %v27689_v55 = vand.u32 4294901760, %v9682_v52 }
 0x328   : > { %22559 = vmatmul.mubr.f32.gmra.mrb[8].mxu1 %v27232_v13  ;;  %30955 = vst [vmem:[#allocation20_spill] sm:$0xff] %v27624_v20  ;;  %v27666_v3 = vand.u32 4294901760, %v9771_v34  ;;  %v19541_v34 = vld [vmem:[%s25515_s11 + $0xa9] sm:$0xff] }
 0x329   : > { %22561 = vmatprep.mubr.f32.mxu1 %v27237_v24  ;;  %30958 = vst [vmem:[#allocation9_spill] sm:$0xff] %v27649_v39  ;;  %v9782_v22 = vand.u32 4294901760, %v9781_v21  ;;  %v9688_v21 = vsel %vm259_vm0, %v19540_v14, 0  ;;  %v30968_v15 = vand.u32 4294901760, %v27649_v39 }
 0x32a   : > { %21938 = vmatmul.mubr.f32.gmra.mrb[10].mxu0 %v26774_v61  ;;  %30961 = vst [vmem:[#allocation21_spill] sm:$0xff] %v27666_v3  ;;  %v9685_v61 = vsel %vm259_vm0, %v19539_v9, 0  ;;  %v27687_v9 = vsub.f32 %v9679_v43, %v27662_v41  ;;  %v9691_v43 = vsel %vm259_vm0, %v19541_v34, 0  ;;  %v27714_v34 = vand.u32 4294901760, %v9688_v21 }
 0x32b   : > { %21940 = vmatprep.mubr.f32.mxu0 %v26781_v12  ;;  %v27654_v12 = vand.u32 4294901760, %v9676_v26 }
 0x32c   : > { %22562 = vmatmul.mubr.f32.gmra.mrb[10].mxu1 %v27263_v51  ;;  %30965 = vst [vmem:[#allocation51_spill] sm:$0xff] %v27687_v9 }
 0x32d   : > { %22564 = vmatprep.mubr.f32.mxu1 %v27272_v42 }
 0x32e   : > { %21941 = vmatmul.mubr.f32.gmra.mrb[12].mxu0 %v26808_v18  ;;  %v30962_v18 = vand.u32 4294901760, %v27624_v20 }
 0x32f   : > { %21943 = vmatprep.mubr.f32.mxu0 %v26820_v11  ;;  %v27679_v11 = vsub.f32 %v9676_v26, %v27654_v12  ;;  %v30966_v26 = vand.u32 4294901760, %v27642_v6 }
 0x330   : > { %22565 = vmatmul.mubr.f32.gmra.mrb[12].mxu1 %v27297_v48  ;;  %v9791_v25 = vsub.f32 %v27624_v20, %v30962_v18  ;;  %v9801_v18 = vsub.f32 %v27634_v35, %v30964_v27  ;;  %v19542_v35 = vld [vmem:[%s25515_s11 + $0xb1] sm:$0xff]  ;;  %v9821_v20 = vsub.f32 %v27649_v39, %v30968_v15 }
 0x331   : > { %22567 = vmatprep.mubr.f32.mxu1 %v27306_v53  ;;  %30963 = vst [vmem:[#allocation48_spill] sm:$0xff] %v27679_v11  ;;  %v9811_v36 = vsub.f32 %v27642_v6, %v30966_v26  ;;  %v19543_v6 = vld [vmem:[%s25515_s11 + $0xc1] sm:$0xff]  ;;  %v30971_v15 = vld [vmem:[#allocation49_spill] sm:$0xff]  ;;  %v27721_v26 = vand.u32 4294901760, %v9691_v43 }
 0x332   : > { %21944 = vmatmul.mubr.f32.gmra.mrb[14].mxu0 %v26841_v32  ;;  %v27696_v32 = vand.u32 4294901760, %v9685_v61  ;;  %v9792_v27 = vand.u32 4294901760, %v9791_v25  ;;  %v9802_v14 = vand.u32 4294901760, %v9801_v18  ;;  %v27712_v25 = vsub.f32 %v9682_v52, %v27689_v55  ;;  %v19544_v18 = vld [vmem:[%s25515_s11 + $0xc9] sm:$0xff] }
 0x333   : > { %22572 = vmatprep.mubr.f32.mxu0 %v27666_v3  ;;  %v30969_v3 = vand.u32 4294901760, %v27652_v44  ;;  %v9812_v39 = vand.u32 4294901760, %v9811_v36  ;;  %v9697_v52 = vsel %vm259_vm0, %v19543_v6, 0  ;;  %v27737_v6 = vsub.f32 %v9688_v21, %v27714_v34 }
 0x334   : > { %22568 = vmatmul.mubr.f32.gmra.mrb[14].mxu1 %v27322_v5  ;;  %30970 = vst [vmem:[#allocation8_spill] sm:$0xff] %v27712_v25 }
 0x335   : > { %23196 = vmatprep.mubr.f32.mxu1 %v30967_v19  ;;  %v9831_v17 = vsub.f32 %v27652_v44, %v30969_v3  ;;  %v27719_v3 = vsub.f32 %v9685_v61, %v27696_v32  ;;  %v30972_v19 = vld [vmem:[#allocation58_spill] sm:$0xff]  ;;  %v9822_v44 = vand.u32 4294901760, %v9821_v20  ;;  %v30974_v61 = vand.u32 4294901760, %v27687_v9 }
 0x336   : > { %22573 = vmatmul.mubr.f32.vlgmr.msra.gmra.mrb[16].mxu0 %v9782_v22  ;;  %v9694_v22 = vsel %vm259_vm0, %v19542_v35, 0 }
 0x337   : > { %22597 = vmatpush3.msra.mxu0 %v27561_v50  ;;  %22575 = vmatprep.mubr.f32.mxu0 %v9792_v27  ;;  %v9832_v50 = vand.u32 4294901760, %v9831_v17  ;;  %v9851_v35 = vsub.f32 %v27687_v9, %v30974_v61  ;;  %v27739_v27 = vand.u32 4294901760, %v9694_v22  ;;  %v30975_v17 = vld [vmem:[#allocation63_spill] sm:$0xff]  ;;  %v30976_v61 = vld [vmem:[#allocation70_spill] sm:$0xff] }
 0x338   : > { %23197 = vmatmul.mubr.f32.vlgmr.msra.gmra.mrb[16].mxu1 %v30971_v15  ;;  %v30973_v15 = vand.u32 4294901760, %v27679_v11  ;;  %22622 = vmatprep.subr.mxu0 %v27534_v1 }
 0x339   : > { %23221 = vmatpush3.msra.mxu1 %v27564_v58  ;;  %23199 = vmatprep.mubr.f32.mxu1 %v30972_v19  ;;  %v30291_v58 = vand.u32 4294901760, %v27712_v25  ;;  %v27747_v19 = vand.u32 4294901760, %v9697_v52 }
 0x33a   : > { %v9841_v36 = vsub.f32 %v27679_v11, %v30973_v15  ;;  %22576 = vmatmul.mubr.f32.gmra.mrb[18].mxu0 %v9802_v14  ;;  %23246 = vmatprep.subr.mxu1 %v27538_v31  ;;  %v27745_v14 = vsub.f32 %v9691_v43, %v27721_v26  ;;  %v9700_v15 = vsel %vm259_vm0, %v19544_v18, 0  ;;  %v30977_v43 = vld [vmem:[#allocation74_spill] sm:$0xff]  ;;  %v9852_v11 = vand.u32 4294901760, %v9851_v35 }
 0x33b   : > { %22578 = vmatprep.mubr.f32.mxu0 %v9812_v39  ;;  %v9861_v9 = vsub.f32 %v27712_v25, %v30291_v58  ;;  %v27756_v39 = vsub.f32 %v9694_v22, %v27739_v27  ;;  %v27758_v20 = vand.u32 4294901760, %v9700_v15  ;;  %v30978_v18 = vand.u32 4294901760, %v27719_v3  ;;  %v30979_v58 = vld [vmem:[#allocation31_spill] sm:$0xff] }
 0x33c   : > { %23200 = vmatmul.mubr.f32.gmra.mrb[18].mxu1 %v30975_v17  ;;  %v9842_v21 = vand.u32 4294901760, %v9841_v36  ;;  %v30294_v17 = vand.u32 4294901760, %v27737_v6 }
 0x33d   : > { %23202 = vmatprep.mubr.f32.mxu1 %v30976_v61  ;;  %v9871_v36 = vsub.f32 %v27719_v3, %v30978_v18  ;;  %v27766_v61 = vsub.f32 %v9697_v52, %v27747_v19  ;;  %v9862_v22 = vand.u32 4294901760, %v9861_v9  ;;  %v27774_v35 = vsub.f32 %v9700_v15, %v27758_v20  ;;  %v30981_v9 = vld [vmem:[#allocation28_spill] sm:$0xff] }
 0x33e   : > { %22579 = vmatmul.mubr.f32.gmra.mrb[20].mxu0 %v9822_v44  ;;  %v9890_v44 = vand.u32 4294901760, %v27745_v14  ;;  %v9881_v25 = vsub.f32 %v27737_v6, %v30294_v17 }
 0x33f   : > { %22581 = vmatprep.mubr.f32.mxu0 %v9832_v50  ;;  %v9900_v50 = vand.u32 4294901760, %v27756_v39  ;;  %v9872_v18 = vand.u32 4294901760, %v9871_v36  ;;  %v9920_v15 = vand.u32 4294901760, %v27774_v35 }
 0x340   : > { %23203 = vmatmul.mubr.f32.gmra.mrb[20].mxu1 %v30977_v43  ;;  %v30980_v43 = vld [vmem:[#allocation13_spill] sm:$0xff]  ;;  %v9891_v52 = vsub.f32 %v27745_v14, %v9890_v44 }
 0x341   : > { %23205 = vmatprep.mubr.f32.mxu1 %v30979_v58  ;;  %v9910_v58 = vand.u32 4294901760, %v27766_v61  ;;  %v9901_v17 = vsub.f32 %v27756_v39, %v9900_v50 }
 0x342   : > { %22582 = vmatmul.mubr.f32.gmra.mrb[22].mxu0 %v9842_v21  ;;  %v9882_v21 = vand.u32 4294901760, %v9881_v25  ;;  %v9921_v25 = vsub.f32 %v27774_v35, %v9920_v15 }
 0x343   : > { %22584 = vmatprep.mubr.f32.mxu0 %v9852_v11  ;;  %v9892_v11 = vand.u32 4294901760, %v9891_v52  ;;  %v9911_v36 = vsub.f32 %v27766_v61, %v9910_v58  ;;  %v30992_v52 = vld [vmem:[#allocation60_spill] sm:$0xff] }
 0x344   : > { %23206 = vmatmul.mubr.f32.gmra.mrb[22].mxu1 %v30980_v43  ;;  %v9902_v43 = vand.u32 4294901760, %v9901_v17  ;;  %v30990_v17 = vld [vmem:[#allocation59_spill] sm:$0xff] }
 0x345   : > { %23208 = vmatprep.mubr.f32.mxu1 %v30981_v9  ;;  %v30993_v9 = vld [vmem:[#allocation9_spill] sm:$0xff] }
 0x346   : > { %22585 = vmatmul.mubr.f32.gmra.mrb[24].mxu0 %v9862_v22  ;;  %v9912_v22 = vand.u32 4294901760, %v9911_v36  ;;  %v30996_v36 = vld [vmem:[#allocation68_spill] sm:$0xff] }
 0x347   : > { %22587 = vmatprep.mubr.f32.mxu0 %v9872_v18  ;;  %v30991_v18 = vld [vmem:[#allocation22_spill] sm:$0xff] }
 0x348   : > { %23209 = vmatmul.mubr.f32.gmra.mrb[24].mxu1 %v27338_v33  ;;  %v9922_v33 = vand.u32 4294901760, %v9921_v25  ;;  %v30998_v25 = vld [vmem:[#allocation43_spill] sm:$0xff] }
 0x349   : > { %23211 = vmatprep.mubr.f32.mxu1 %v27349_v60  ;;  %v30984_v60 = vld [vmem:[#allocation45_spill] sm:$0xff] }
 0x34a   : > { %22588 = vmatmul.mubr.f32.gmra.mrb[26].mxu0 %v9882_v21  ;;  %v30994_v21 = vld [vmem:[#allocation65_spill] sm:$0xff] }
 0x34b   : > { %22590 = vmatprep.mubr.f32.mxu0 %v9892_v11  ;;  %v30995_v11 = vld [vmem:[#allocation19_spill] sm:$0xff] }
 0x34c   : > { %23212 = vmatmul.mubr.f32.gmra.mrb[26].mxu1 %v27359_v40  ;;  %v30982_v40 = vld [vmem:[#allocation27_spill] sm:$0xff] }
 0x34d   : > { %23214 = vmatprep.mubr.f32.mxu1 %v27367_v38  ;;  %v30983_v38 = vld [vmem:[#allocation3_spill] sm:$0xff] }
 0x34e   : > { %22591 = vmatmul.mubr.f32.gmra.mrb[28].mxu0 %v9902_v43  ;;  %v30997_v43 = vld [vmem:[#allocation48_spill] sm:$0xff] }
 0x34f   : > { %22593 = vmatprep.mubr.f32.mxu0 %v9912_v22  ;;  %v30999_v22 = vld [vmem:[#allocation51_spill] sm:$0xff] }
 0x350   : > { %23215 = vmatmul.mubr.f32.gmra.mrb[28].mxu1 %v27374_v10  ;;  %v30985_v10 = vld [vmem:[#allocation20_spill] sm:$0xff] }
 0x351   : > { %23217 = vmatprep.mubr.f32.mxu1 %v27379_v46  ;;  %v30986_v46 = vld [vmem:[#allocation46_spill] sm:$0xff] }
 0x352   : > { %22594 = vmatmul.mubr.f32.gmra.mrb[30].mxu0 %v9922_v33  ;;  %v31000_v33 = vld [vmem:[#allocation57_spill] sm:$0xff] }
 0x353   : > { %22598 = vmatprep.mubr.f32.mxu0 %v27584_v23 }
 0x354   : > { %23218 = vmatmul.mubr.f32.gmra.mrb[30].mxu1 %v27384_v2  ;;  %v30987_v2 = vld [vmem:[#allocation25_spill] sm:$0xff] }
 0x355   : > { %23222 = vmatprep.mubr.f32.mxu1 %v27115_v57 }
 0x356   : > { %22599 = vmatmul.mubr.f32.vlgmr.msra.gmra.mrb[16].mxu0 %v27592_v49 }
 0x357   : > { %22623 = vmatpush3.msra.mxu0 %v27534_v1  ;;  %22601 = vmatprep.mubr.f32.mxu0 %v27603_v0  ;;  %v30988_v1 = vld [vmem:[#allocation17_spill] sm:$0xff] }
 0x358   : > { %23223 = vmatmul.mubr.f32.vlgmr.msra.gmra.mrb[16].mxu1 %v27124_v63  ;;  %22648 = vmatprep.subr.mxu0 %v27505_v4 }
 0x359   : > { %23247 = vmatpush3.msra.mxu1 %v27538_v31  ;;  %23225 = vmatprep.mubr.f32.mxu1 %v27133_v47  ;;  %v30989_v31 = vld [vmem:[#allocation76_spill] sm:$0xff] }
 0x35a   : > { %22602 = vmatmul.mubr.f32.gmra.mrb[18].mxu0 %v27610_v16  ;;  %23272 = vmatprep.subr.mxu1 %v27508_v37 }
 0x35b   : > { %22604 = vmatprep.mubr.f32.mxu0 %v27619_v8 }
 0x35c   : > { %23226 = vmatmul.mubr.f32.gmra.mrb[18].mxu1 %v27142_v29 }
 0x35d   : > { %23228 = vmatprep.mubr.f32.mxu1 %v27150_v28 }
 0x35e   : > { %22605 = vmatmul.mubr.f32.gmra.mrb[20].mxu0 %v27627_v45 }
 0x35f   : > { %22607 = vmatprep.mubr.f32.mxu0 %v27629_v54 }
 0x360   : > { %23229 = vmatmul.mubr.f32.gmra.mrb[20].mxu1 %v27158_v59 }
 0x361   : > { %23231 = vmatprep.mubr.f32.mxu1 %v27160_v7 }
 0x362   : > { %22608 = vmatmul.mubr.f32.gmra.mrb[22].mxu0 %v27654_v12 }
 0x363   : > { %22610 = vmatprep.mubr.f32.mxu0 %v27662_v41 }
 0x364   : > { %23232 = vmatmul.mubr.f32.gmra.mrb[22].mxu1 %v27189_v30 }
 0x365   : > { %23234 = vmatprep.mubr.f32.mxu1 %v27199_v62 }
 0x366   : > { %22611 = vmatmul.mubr.f32.gmra.mrb[24].mxu0 %v27689_v55 }
 0x367   : > { %22613 = vmatprep.mubr.f32.mxu0 %v27696_v32 }
 0x368   : > { %23235 = vmatmul.mubr.f32.gmra.mrb[24].mxu1 %v27232_v13 }
 0x369   : > { %23237 = vmatprep.mubr.f32.mxu1 %v27237_v24 }
 0x36a   : > { %22614 = vmatmul.mubr.f32.gmra.mrb[26].mxu0 %v27714_v34 }
 0x36b   : > { %22616 = vmatprep.mubr.f32.mxu0 %v27721_v26 }
 0x36c   : > { %23238 = vmatmul.mubr.f32.gmra.mrb[26].mxu1 %v27263_v51 }
 0x36d   : > { %23240 = vmatprep.mubr.f32.mxu1 %v27272_v42 }
 0x36e   : > { %22617 = vmatmul.mubr.f32.gmra.mrb[28].mxu0 %v27739_v27 }
 0x36f   : > { %22619 = vmatprep.mubr.f32.mxu0 %v27747_v19 }
 0x370   : > { %23241 = vmatmul.mubr.f32.gmra.mrb[28].mxu1 %v27297_v48 }
 0x371   : > { %23243 = vmatprep.mubr.f32.mxu1 %v27306_v53 }
 0x372   : > { %22620 = vmatmul.mubr.f32.gmra.mrb[30].mxu0 %v27758_v20 }
 0x373   : > { %22624 = vmatprep.mubr.f32.mxu0 %v27597_v56 }
 0x374   : > { %23244 = vmatmul.mubr.f32.gmra.mrb[30].mxu1 %v27322_v5 }
 0x375   : > { %23248 = vmatprep.mubr.f32.mxu1 %v30982_v40  ;;  %v31001_v40 = vld [vmem:[#allocation8_spill] sm:$0xff] }
 0x376   : > { %22625 = vmatmul.mubr.f32.vlgmr.msra.gmra.mrb[16].mxu0 %v30983_v38 }
 0x377   : > { %22649 = vmatpush3.msra.mxu0 %v27505_v4  ;;  %22627 = vmatprep.mubr.f32.mxu0 %v30985_v10 }
 0x378   : > { %23249 = vmatmul.mubr.f32.vlgmr.msra.gmra.mrb[16].mxu1 %v30984_v60  ;;  %22674 = vmatprep.subr.mxu0 %v30987_v2  ;;  %v31002_v60 = vld [vmem:[#allocation15_spill] sm:$0xff] }
 0x379   : > { %23273 = vmatpush3.msra.mxu1 %v27508_v37  ;;  %23251 = vmatprep.mubr.f32.mxu1 %v30986_v46  ;;  %v31003_v46 = vld [vmem:[#allocation72_spill] sm:$0xff] }
 0x37a   : > { %22628 = vmatmul.mubr.f32.gmra.mrb[18].mxu0 %v30988_v1  ;;  %23298 = vmatprep.subr.mxu1 %v30989_v31 }
 0x37b   : > { %22630 = vmatprep.mubr.f32.mxu0 %v30991_v18 }
 0x37c   : > { %23252 = vmatmul.mubr.f32.gmra.mrb[18].mxu1 %v30990_v17  ;;  %v31004_v17 = vld [vmem:[#allocation35_spill] sm:$0xff] }
 0x37d   : > { %23254 = vmatprep.mubr.f32.mxu1 %v30992_v52  ;;  %v31005_v52 = vld [vmem:[#allocation55_spill] sm:$0xff] }
 0x37e   : > { %22631 = vmatmul.mubr.f32.gmra.mrb[20].mxu0 %v30993_v9 }
 0x37f   : > { %22633 = vmatprep.mubr.f32.mxu0 %v30995_v11 }
 0x380   : > { %23255 = vmatmul.mubr.f32.gmra.mrb[20].mxu1 %v30994_v21  ;;  %v31006_v21 = vld [vmem:[#allocation24_spill] sm:$0xff] }
 0x381   : > { %23257 = vmatprep.mubr.f32.mxu1 %v30996_v36  ;;  %v31007_v36 = vld [vmem:[#allocation78_spill] sm:$0xff] }
 0x382   : > { %22634 = vmatmul.mubr.f32.gmra.mrb[22].mxu0 %v30997_v43 }
 0x383   : > { %22636 = vmatprep.mubr.f32.mxu0 %v30999_v22 }
 0x384   : > { %23258 = vmatmul.mubr.f32.gmra.mrb[22].mxu1 %v30998_v25  ;;  %v31008_v25 = vld [vmem:[#allocation56_spill] sm:$0xff] }
 0x385   : > { %23260 = vmatprep.mubr.f32.mxu1 %v31000_v33  ;;  %v31009_v33 = vld [vmem:[#allocation6_spill] sm:$0xff] }
 0x386   : > { %22637 = vmatmul.mubr.f32.gmra.mrb[24].mxu0 %v31001_v40 }
 0x387   : > { %22639 = vmatprep.mubr.f32.mxu0 %v27719_v3 }
 0x388   : > { %23261 = vmatmul.mubr.f32.gmra.mrb[24].mxu1 %v31002_v60  ;;  %v31010_v60 = vld [vmem:[#allocation36_spill] sm:$0xff] }
 0x389   : > { %23263 = vmatprep.mubr.f32.mxu1 %v31003_v46  ;;  %v31011_v46 = vand.u32 4294901760, %v30983_v38  ;;  %v31016_v38 = vld [vmem:[#allocation69_spill] sm:$0xff] }
 0x38a   : > { %22640 = vmatmul.mubr.f32.gmra.mrb[26].mxu0 %v27737_v6 }
 0x38b   : > { %22642 = vmatprep.mubr.f32.mxu0 %v27745_v14  ;;  %v31036_v14 = vld [vmem:[#allocation12_spill] sm:$0xff] }
 0x38c   : > { %23264 = vmatmul.mubr.f32.gmra.mrb[26].mxu1 %v31004_v17  ;;  %v31012_v17 = vld [vmem:[#allocation38_spill] sm:$0xff] }
 0x38d   : > { %23266 = vmatprep.mubr.f32.mxu1 %v31005_v52  ;;  %v31013_v52 = vand.u32 4294901760, %v30985_v10  ;;  %v31020_v10 = vld [vmem:[#allocation75_spill] sm:$0xff] }
 0x38e   : > { %22643 = vmatmul.mubr.f32.gmra.mrb[28].mxu0 %v27756_v39  ;;  %v19614_v39 = vld [vmem:[%s29973_s1 + $0x60] sm:$0xff] }
 0x38f   : > { %22645 = vmatprep.mubr.f32.mxu0 %v27766_v61  ;;  %v27933_v61 = vand.u32 4294901760, %v19614_v39 }
 0x390   : > { %23267 = vmatmul.mubr.f32.gmra.mrb[28].mxu1 %v31006_v21  ;;  %v31014_v21 = vld [vmem:[#allocation64_spill] sm:$0xff] }
 0x391   : > { %23269 = vmatprep.mubr.f32.mxu1 %v31007_v36  ;;  %v31015_v36 = vand.u32 4294901760, %v30988_v1  ;;  %v31023_v1 = vand.u32 4294901760, %v30997_v43  ;;  %v31031_v43 = vand.u32 4294901760, %v27737_v6  ;;  %v19528_v6 = vld [vmem:[%s29973_s1 + $0x40] sm:$0xff] }
 0x392   : > { %22646 = vmatmul.mubr.f32.gmra.mrb[30].mxu0 %v27774_v35  ;;  %v19599_v35 = vld [vmem:[%s25515_s11 + $0x21] sm:$0xff] }
 0x393   : > { %22650 = vmatprep.mubr.f32.mxu0 %v31009_v33 }
 0x394   : > { %23270 = vmatmul.mubr.f32.gmra.mrb[30].mxu1 %v31008_v25  ;;  %v31018_v25 = vld [vmem:[#allocation73_spill] sm:$0xff] }
 0x395   : > { %23274 = vmatprep.mubr.f32.mxu1 %v31010_v60  ;;  %v31021_v60 = vand.u32 4294901760, %v30995_v11  ;;  %v31029_v11 = vand.u32 4294901760, %v27719_v3  ;;  %v31035_v3 = vld [vmem:[#allocation79_spill] sm:$0xff] }
 0x396   : > { %22651 = vmatmul.mubr.f32.vlgmr.msra.gmra.mrb[16].mxu0 %v31011_v46  ;;  %v31022_v46 = vld [vmem:[#allocation33_spill] sm:$0xff] }
 0x397   : > { %22675 = vmatpush3.msra.mxu0 %v30987_v2  ;;  %22653 = vmatprep.mubr.f32.mxu0 %v31013_v52  ;;  %v31017_v2 = vand.u32 4294901760, %v30991_v18  ;;  %v31025_v18 = vand.u32 4294901760, %v30999_v22  ;;  %v31026_v52 = vld [vmem:[#allocation67_spill] sm:$0xff]  ;;  %v31033_v22 = vld [vmem:[#allocation77_spill] sm:$0xff] }
 0x398   : > { %23275 = vmatmul.mubr.f32.vlgmr.msra.gmra.mrb[16].mxu1 %v31012_v17  ;;  %22700 = vmatprep.subr.mxu0 %v27505_v4  ;;  %v31024_v17 = vld [vmem:[#allocation61_spill] sm:$0xff] }
 0x399   : > { %23299 = vmatpush3.msra.mxu1 %v30989_v31  ;;  %23277 = vmatprep.mubr.f32.mxu1 %v31014_v21  ;;  %v31019_v31 = vand.u32 4294901760, %v30993_v9  ;;  %v31027_v9 = vand.u32 4294901760, %v31001_v40  ;;  %v31028_v21 = vld [vmem:[#allocation42_spill] sm:$0xff] }
 0x39a   : > { %22654 = vmatmul.mubr.f32.gmra.mrb[18].mxu0 %v31015_v36  ;;  %23324 = vmatprep.subr.mxu1 %v27508_v37  ;;  %v31030_v36 = vld [vmem:[#allocation52_spill] sm:$0xff]  ;;  %v31034_v40 = vld [vmem:[#allocation50_spill] sm:$0xff] }
 0x39b   : > { %22656 = vmatprep.mubr.f32.mxu0 %v31017_v2 }
 0x39c   : > { %23278 = vmatmul.mubr.f32.gmra.mrb[18].mxu1 %v31016_v38  ;;  %v31032_v38 = vld [vmem:[#allocation18_spill] sm:$0xff] }
 0x39d   : > { %23280 = vmatprep.mubr.f32.mxu1 %v31018_v25  ;;  %v15493_v25 = vsel %vm259_vm0, %v19599_v35, 0 }
 0x39e   : > { %22657 = vmatmul.mubr.f32.gmra.mrb[20].mxu0 %v31019_v31 }
 0x39f   : > { %22659 = vmatprep.mubr.f32.mxu0 %v31021_v60 }
 0x3a0   : > { %23281 = vmatmul.mubr.f32.gmra.mrb[20].mxu1 %v31020_v10 }
 0x3a1   : > { %23283 = vmatprep.mubr.f32.mxu1 %v31022_v46 }
 0x3a2   : > { %22660 = vmatmul.mubr.f32.gmra.mrb[22].mxu0 %v31023_v1  ;;  %v27987_v1 = vand.u32 4294901760, %v15493_v25 }
 0x3a3   : > { %22662 = vmatprep.mubr.f32.mxu0 %v31025_v18  ;;  %v19600_v18 = vld [vmem:[%s25515_s11 + $0x31] sm:$0xff] }
 0x3a4   : > { %23284 = vmatmul.mubr.f32.gmra.mrb[22].mxu1 %v31024_v17  ;;  %v19514_v17 = vld [vmem:[%s25515_s11 + $0x30] sm:$0xff] }
 0x3a5   : > { %23286 = vmatprep.mubr.f32.mxu1 %v31026_v52 }
 0x3a6   : > { %22663 = vmatmul.mubr.f32.gmra.mrb[24].mxu0 %v31027_v9 }
 0x3a7   : > { %22665 = vmatprep.mubr.f32.mxu0 %v31029_v11  ;;  %v19601_v11 = vld [vmem:[%s25515_s11 + $0x39] sm:$0xff] }
 0x3a8   : > { %23287 = vmatmul.mubr.f32.gmra.mrb[24].mxu1 %v31028_v21  ;;  %v19515_v21 = vld [vmem:[%s25515_s11 + $0x38] sm:$0xff] }
 0x3a9   : > { %23289 = vmatprep.mubr.f32.mxu1 %v31030_v36 }
 0x3aa   : > { %22666 = vmatmul.mubr.f32.gmra.mrb[26].mxu0 %v31031_v43 }
 0x3ab   : > { %22668 = vmatprep.mubr.f32.mxu0 %v9890_v44  ;;  %v27930_v44 = vand.u32 4294901760, %v19528_v6 }
 0x3ac   : > { %23290 = vmatmul.mubr.f32.gmra.mrb[26].mxu1 %v31032_v38  ;;  %v10800_v38 = vsel %vm259_vm0, %v19514_v17, 0 }
 0x3ad   : > { %23292 = vmatprep.mubr.f32.mxu1 %v31033_v22  ;;  %v19516_v22 = vld [vmem:[%s25515_s11 + $0x48] sm:$0xff]  ;;  %v28020_v35 = vand.u32 4294901760, %v10800_v38 }
 0x3ae   : > { %22669 = vmatmul.mubr.f32.gmra.mrb[28].mxu0 %v9900_v50  ;;  %v27961_v50 = vsub.f32 %v19528_v6, %v27930_v44  ;;  %v19602_v6 = vld [vmem:[%s25515_s11 + $0x49] sm:$0xff] }
 0x3af   : > { %22671 = vmatprep.mubr.f32.mxu0 %v9910_v58  ;;  %v15502_v17 = vsel %vm259_vm0, %v19602_v6, 0 }
 0x3b0   : > { %23293 = vmatmul.mubr.f32.gmra.mrb[28].mxu1 %v31034_v40  ;;  %v27977_v10 = vand.u32 4294901760, %v27961_v50  ;;  %v28010_v40 = vsub.f32 %v15493_v25, %v27987_v1  ;;  %v28049_v6 = vand.u32 4294901760, %v15502_v17 }
 0x3b1   : > { %23295 = vmatprep.mubr.f32.mxu1 %v31035_v3  ;;  %v15496_v3 = vsel %vm259_vm0, %v19600_v18, 0  ;;  %v19517_v18 = vld [vmem:[%s25515_s11 + $0x50] sm:$0xff] }
 0x3b2   : > { %22672 = vmatmul.mubr.f32.gmra.mrb[30].mxu0 %v9920_v15  ;;  %v27967_v15 = vsub.f32 %v19614_v39, %v27933_v61  ;;  %31037 = vst [vmem:[#allocation23_spill] sm:$0xff] %v27977_v10  ;;  %v11071_v9 = vsub.f32 %v27961_v50, %v27977_v10  ;;  %31041 = vst [vmem:[#allocation62_spill] sm:$0xff] %v28010_v40  ;;  %v15499_v39 = vsel %vm259_vm0, %v19601_v11, 0  ;;  %v28027_v25 = vand.u32 4294901760, %v15496_v3  ;;  %v19605_v10 = vld [vmem:[%s25515_s11 + $0x69] sm:$0xff] }
 0x3b3   : > { %22676 = vmatprep.mubr.f32.mxu0 %v27584_v23  ;;  %v28036_v11 = vand.u32 4294901760, %v15499_v39  ;;  %31045 = vst [vmem:[#allocation16_spill] sm:$0xff] %v28049_v6  ;;  %v15511_v56 = vsel %vm259_vm0, %v19605_v10, 0 }
 0x3b4   : > { %23296 = vmatmul.mubr.f32.gmra.mrb[30].mxu1 %v31036_v14  ;;  %v27981_v60 = vand.u32 4294901760, %v27967_v15  ;;  %v10803_v14 = vsel %vm259_vm0, %v19515_v21, 0 }
 0x3b5   : > { %23300 = vmatprep.mubr.f32.mxu1 %v27115_v57  ;;  %v28034_v21 = vand.u32 4294901760, %v10803_v14  ;;  %31042 = vst [vmem:[#allocation66_spill] sm:$0xff] %v28036_v11 }
 0x3b6   : > { %22677 = vmatmul.mubr.f32.vlgmr.msra.gmra.mrb[16].mxu0 %v27592_v49  ;;  %31038 = vst [vmem:[#allocation39_spill] sm:$0xff] %v27981_v60  ;;  %v15767_v36 = vsub.f32 %v27967_v15, %v27981_v60 }
 0x3b7   : > { %22701 = vmatpush3.msra.mxu0 %v27505_v4  ;;  %22679 = vmatprep.mubr.f32.mxu0 %v27603_v0  ;;  %v19512_v4 = vld [vmem:[%s25515_s11 + $0x18] sm:$0xff]  ;;  %v28077_v60 = vsub.f32 %v10803_v14, %v28034_v21  ;;  %v28094_v14 = vsub.f32 %v15502_v17, %v28049_v6 }
 0x3b8   : > { %23301 = vmatmul.mubr.f32.vlgmr.msra.gmra.mrb[16].mxu1 %v27124_v63  ;;  %22726 = vmatprep.subr.mxu0 %v27930_v44  ;;  %v10794_v58 = vsel %vm259_vm0, %v19512_v4, 0  ;;  %v19520_v17 = vld [vmem:[%s25515_s11 + $0x78] sm:$0xff] }
 0x3b9   : > { %23325 = vmatpush3.msra.mxu1 %v27508_v37  ;;  %23303 = vmatprep.mubr.f32.mxu1 %v27133_v47  ;;  %v19513_v37 = vld [vmem:[%s25515_s11 + $0x20] sm:$0xff]  ;;  %v27974_v31 = vand.u32 4294901760, %v10794_v58  ;;  %31048 = vst [vmem:[#allocation32_spill] sm:$0xff] %v28077_v60  ;;  %31053 = vst [vmem:[#allocation34_spill] sm:$0xff] %v28094_v14 }
 0x3ba   : > { %22680 = vmatmul.mubr.f32.gmra.mrb[18].mxu0 %v27610_v16  ;;  %23350 = vmatprep.subr.mxu1 %v27933_v61  ;;  %v10797_v2 = vsel %vm259_vm0, %v19513_v37, 0  ;;  %v28018_v37 = vand.u32 4294901760, %v11071_v9  ;;  %v10809_v9 = vsel %vm259_vm0, %v19517_v18, 0 }
 0x3bb   : > { %22682 = vmatprep.mubr.f32.mxu0 %v27619_v8  ;;  %v27983_v46 = vand.u32 4294901760, %v10797_v2  ;;  %v27993_v52 = vsub.f32 %v10794_v58, %v27974_v31  ;;  %v10806_v58 = vsel %vm259_vm0, %v19516_v22, 0  ;;  %v19518_v22 = vld [vmem:[%s25515_s11 + $0x60] sm:$0xff] }
 0x3bc   : > { %23304 = vmatmul.mubr.f32.gmra.mrb[18].mxu1 %v27142_v29 }
 0x3bd   : > { %23306 = vmatprep.mubr.f32.mxu1 %v27150_v28  ;;  %31039 = vst [vmem:[#allocation44_spill] sm:$0xff] %v27993_v52  ;;  %v28003_v43 = vsub.f32 %v10797_v2, %v27983_v46  ;;  %v30295_v4 = vand.u32 4294901760, %v27993_v52  ;;  %v28024_v2 = vand.u32 4294901760, %v15767_v36  ;;  %v28041_v36 = vand.u32 4294901760, %v10806_v58 }
 0x3be   : > { %22683 = vmatmul.mubr.f32.gmra.mrb[20].mxu0 %v27627_v45 }
 0x3bf   : > { %22685 = vmatprep.mubr.f32.mxu0 %v27629_v54  ;;  %31040 = vst [vmem:[#allocation54_spill] sm:$0xff] %v28003_v43  ;;  %31043 = vst [vmem:[#allocation4_spill] sm:$0xff] %v28041_v36 }
 0x3c0   : > { %23307 = vmatmul.mubr.f32.gmra.mrb[20].mxu1 %v27158_v59 }
 0x3c1   : > { %23309 = vmatprep.mubr.f32.mxu1 %v27160_v7 }
 0x3c2   : > { %22686 = vmatmul.mubr.f32.gmra.mrb[22].mxu0 %v27654_v12 }
 0x3c3   : > { %22688 = vmatprep.mubr.f32.mxu0 %v27662_v41 }
 0x3c4   : > { %23310 = vmatmul.mubr.f32.gmra.mrb[22].mxu1 %v27189_v30 }
 0x3c5   : > { %23312 = vmatprep.mubr.f32.mxu1 %v27199_v62 }
 0x3c6   : > { %22689 = vmatmul.mubr.f32.gmra.mrb[24].mxu0 %v27689_v55 }
 0x3c7   : > { %22691 = vmatprep.mubr.f32.mxu0 %v27696_v32 }
 0x3c8   : > { %23313 = vmatmul.mubr.f32.gmra.mrb[24].mxu1 %v27232_v13 }
 0x3c9   : > { %23315 = vmatprep.mubr.f32.mxu1 %v27237_v24 }
 0x3ca   : > { %22692 = vmatmul.mubr.f32.gmra.mrb[26].mxu0 %v27714_v34 }
 0x3cb   : > { %22694 = vmatprep.mubr.f32.mxu0 %v27721_v26 }
 0x3cc   : > { %23316 = vmatmul.mubr.f32.gmra.mrb[26].mxu1 %v27263_v51 }
 0x3cd   : > { %23318 = vmatprep.mubr.f32.mxu1 %v27272_v42 }
 0x3ce   : > { %22695 = vmatmul.mubr.f32.gmra.mrb[28].mxu0 %v27739_v27 }
 0x3cf   : > { %22697 = vmatprep.mubr.f32.mxu0 %v27747_v19 }
 0x3d0   : > { %23319 = vmatmul.mubr.f32.gmra.mrb[28].mxu1 %v27297_v48 }
 0x3d1   : > { %23321 = vmatprep.mubr.f32.mxu1 %v27306_v53 }
 0x3d2   : > { %22698 = vmatmul.mubr.f32.gmra.mrb[30].mxu0 %v27758_v20 }
 0x3d3   : > { %22702 = vmatprep.mubr.f32.mxu0 %v27584_v23 }
 0x3d4   : > { %23322 = vmatmul.mubr.f32.gmra.mrb[30].mxu1 %v27322_v5 }
 0x3d5   : > { %23326 = vmatprep.mubr.f32.mxu1 %v27115_v57  ;;  %v30298_v57 = vand.u32 4294901760, %v28003_v43 }
 0x3d6   : > { %22703 = vmatmul.mubr.f32.vlgmr.msra.gmra.mrb[16].mxu0 %v27592_v49  ;;  %v19603_v49 = vld [vmem:[%s25515_s11 + $0x51] sm:$0xff] }
 0x3d7   : > { %22727 = vmatpush3.msra.mxu0 %v27930_v44  ;;  %22705 = vmatprep.mubr.f32.mxu0 %v27603_v0  ;;  %v28056_v0 = vsub.f32 %v27993_v52, %v30295_v4  ;;  %v15505_v18 = vsel %vm259_vm0, %v19603_v49, 0  ;;  %v31047_v4 = vand.u32 4294901760, %v28010_v40  ;;  %v19519_v49 = vld [vmem:[%s25515_s11 + $0x68] sm:$0xff]  ;;  %v19521_v52 = vld [vmem:[%s25515_s11 + $0x80] sm:$0xff] }
 0x3d8   : > { %23327 = vmatmul.mubr.f32.vlgmr.msra.gmra.mrb[16].mxu1 %v27124_v63  ;;  %22752 = vmatprep.subr.mxu0 %v28018_v37  ;;  %v28047_v63 = vsub.f32 %v10800_v38, %v28020_v35  ;;  %v28065_v38 = vsub.f32 %v15496_v3, %v28027_v25  ;;  %v10812_v3 = vsel %vm259_vm0, %v19518_v22, 0 }
 0x3d9   : > { %23351 = vmatpush3.msra.mxu1 %v27933_v61  ;;  %23329 = vmatprep.mubr.f32.mxu1 %v27133_v47  ;;  %v28062_v47 = vsub.f32 %v28003_v43, %v30298_v57  ;;  %v28074_v33 = vsub.f32 %v28010_v40, %v31047_v4  ;;  %v28080_v57 = vsub.f32 %v15499_v39, %v28036_v11  ;;  %v28096_v39 = vand.u32 4294901760, %v15505_v18 }
 0x3da   : > { %31044 = vst [vmem:[#allocation10_spill] sm:$0xff] %v28047_v63  ;;  %22706 = vmatmul.mubr.f32.gmra.mrb[18].mxu0 %v27610_v16  ;;  %23376 = vmatprep.subr.mxu1 %v28024_v2  ;;  %31046 = vst [vmem:[#allocation26_spill] sm:$0xff] %v28065_v38  ;;  %v19604_v16 = vld [vmem:[%s25515_s11 + $0x61] sm:$0xff]  ;;  %v28091_v4 = vand.u32 4294901760, %v28047_v63  ;;  %v28104_v40 = vand.u32 4294901760, %v28065_v38  ;;  %v28106_v43 = vand.u32 4294901760, %v10812_v3 }
 0x3db   : > { %22708 = vmatprep.mubr.f32.mxu0 %v27619_v8  ;;  %31049 = vst [vmem:[#allocation37_spill] sm:$0xff] %v28080_v57  ;;  %v28087_v8 = vand.u32 4294901760, %v10809_v9  ;;  %v15508_v22 = vsel %vm259_vm0, %v19604_v16, 0  ;;  %v28113_v16 = vand.u32 4294901760, %v28077_v60  ;;  %v10818_v11 = vsel %vm259_vm0, %v19520_v17, 0 }
 0x3dc   : > { %23330 = vmatmul.mubr.f32.gmra.mrb[18].mxu1 %v27142_v29  ;;  %v28085_v29 = vsub.f32 %v10806_v58, %v28041_v36  ;;  %31052 = vst [vmem:[#allocation7_spill] sm:$0xff] %v28091_v4  ;;  %31054 = vst [vmem:[#allocation40_spill] sm:$0xff] %v28104_v40  ;;  %v10815_v58 = vsel %vm259_vm0, %v19519_v49, 0  ;;  %v10930_v36 = vsub.f32 %v28047_v63, %v28091_v4  ;;  %v28134_v49 = vand.u32 4294901760, %v28094_v14  ;;  %v19607_v63 = vld [vmem:[%s25515_s11 + $0x81] sm:$0xff] }
 0x3dd   : > { %23332 = vmatprep.mubr.f32.mxu1 %v27150_v28  ;;  %31051 = vst [vmem:[#allocation5_spill] sm:$0xff] %v28087_v8  ;;  %31055 = vst [vmem:[#allocation53_spill] sm:$0xff] %v28113_v16  ;;  %v19606_v28 = vld [vmem:[%s25515_s11 + $0x79] sm:$0xff]  ;;  %v10821_v4 = vsel %vm259_vm0, %v19521_v52, 0  ;;  %v28157_v17 = vand.u32 4294901760, %v15511_v56 }
 0x3de   : > { %31050 = vst [vmem:[#allocation41_spill] sm:$0xff] %v28085_v29  ;;  %22709 = vmatmul.mubr.f32.gmra.mrb[20].mxu0 %v27627_v45  ;;  %v28116_v45 = vand.u32 4294901760, %v28080_v57  ;;  %v28123_v6 = vand.u32 4294901760, %v28085_v29  ;;  %31059 = vst [vmem:[#allocation30_spill] sm:$0xff] %v28134_v49  ;;  %v15514_v10 = vsel %vm259_vm0, %v19606_v28, 0  ;;  %v28169_v28 = vand.u32 4294901760, %v10818_v11 }
 0x3df   : > { %22711 = vmatprep.mubr.f32.mxu0 %v27629_v54  ;;  %v28128_v54 = vand.u32 4294901760, %v15508_v22 }
 0x3e0   : > { %23333 = vmatmul.mubr.f32.gmra.mrb[20].mxu1 %v27158_v59  ;;  %31056 = vst [vmem:[#allocation11_spill] sm:$0xff] %v28116_v45  ;;  %31057 = vst [vmem:[#allocation14_spill] sm:$0xff] %v28123_v6  ;;  %v28126_v59 = vsub.f32 %v10809_v9, %v28087_v8  ;;  %v28142_v9 = vsub.f32 %v10812_v3, %v28106_v43  ;;  %v28144_v8 = vand.u32 4294901760, %v10815_v58 }
 0x3e1   : > { %23335 = vmatprep.mubr.f32.mxu1 %v27160_v7  ;;  %v28137_v7 = vsub.f32 %v15505_v18, %v28096_v39  ;;  %v15626_v18 = vsub.f32 %v28065_v38, %v28104_v40  ;;  %v15636_v3 = vsub.f32 %v28080_v57, %v28116_v45  ;;  %v28167_v52 = vsub.f32 %v15508_v22, %v28128_v54 }
 0x3e2   : > { %31058 = vst [vmem:[#allocation29_spill] sm:$0xff] %v28126_v59  ;;  %22712 = vmatmul.mubr.f32.gmra.mrb[22].mxu0 %v27654_v12  ;;  %31061 = vst [vmem:[#allocation49_spill] sm:$0xff] %v28142_v9  ;;  %v10940_v12 = vsub.f32 %v28077_v60, %v28113_v16  ;;  %v28171_v16 = vand.u32 4294901760, %v10930_v36  ;;  %v15646_v45 = vsub.f32 %v28094_v14, %v28134_v49  ;;  %v28175_v40 = vand.u32 4294901760, %v15514_v10 }
 0x3e3   : > { %31060 = vst [vmem:[#allocation71_spill] sm:$0xff] %v28137_v7  ;;  %22714 = vmatprep.mubr.f32.mxu0 %v27662_v41  ;;  %v28164_v41 = vand.u32 4294901760, %v28126_v59  ;;  %31063 = vst [vmem:[#allocation63_spill] sm:$0xff] %v28167_v52  ;;  %v28177_v57 = vand.u32 4294901760, %v10821_v4  ;;  %v28186_v22 = vand.u32 4294901760, %v28142_v9  ;;  %v28189_v36 = vsub.f32 %v10815_v58, %v28144_v8 }
 0x3e4   : > { %23336 = vmatmul.mubr.f32.gmra.mrb[22].mxu1 %v27189_v30  ;;  %v10950_v30 = vsub.f32 %v28085_v29, %v28123_v6  ;;  %31064 = vst [vmem:[#allocation70_spill] sm:$0xff] %v28169_v28  ;;  %31065 = vst [vmem:[#allocation74_spill] sm:$0xff] %v28171_v16  ;;  %v15517_v49 = vsel %vm259_vm0, %v19607_v63, 0  ;;  %v28199_v6 = vand.u32 4294901760, %v15626_v18  ;;  %v28201_v14 = vand.u32 4294901760, %v10940_v12  ;;  %v19522_v18 = vld [vmem:[%s25515_s11 + $0x90] sm:$0xff] }
 0x3e5   : > { %23338 = vmatprep.mubr.f32.mxu1 %v27199_v62  ;;  %31062 = vst [vmem:[#allocation58_spill] sm:$0xff] %v28164_v41  ;;  %31066 = vst [vmem:[#allocation31_spill] sm:$0xff] %v28175_v40  ;;  %v28183_v62 = vand.u32 4294901760, %v28137_v7  ;;  %v28203_v29 = vand.u32 4294901760, %v15636_v3  ;;  %v28206_v58 = vsub.f32 %v15511_v56, %v28157_v17  ;;  %v28214_v60 = vand.u32 4294901760, %v28167_v52 }
 0x3e6   : > { %31067 = vst [vmem:[#allocation13_spill] sm:$0xff] %v28177_v57  ;;  %22715 = vmatmul.mubr.f32.gmra.mrb[24].mxu0 %v27689_v55  ;;  %31069 = vst [vmem:[#allocation27_spill] sm:$0xff] %v28186_v22  ;;  %v28196_v55 = vld [vmem:[%s29974_s2] ss:$0 sm:$0xff]  ;;  %v28209_v63 = vand.u32 4294901760, %v10950_v30  ;;  %v28220_v3 = vand.u32 4294901760, %v15646_v45  ;;  %v28223_v56 = vsub.f32 %v15514_v10, %v28175_v40  ;;  %v10970_v45 = vsub.f32 %v28142_v9, %v28186_v22 }
 0x3e7   : > { %31068 = vst [vmem:[#allocation28_spill] sm:$0xff] %v28183_v62  ;;  %31070 = vst [vmem:[#allocation3_spill] sm:$0xff] %v28189_v36  ;;  %22717 = vmatprep.mubr.f32.mxu0 %v27696_v32  ;;  %v28217_v32 = vsub.f32 %v10818_v11, %v28169_v28  ;;  %v28228_v30 = vand.u32 4294901760, %v15517_v49  ;;  %v15656_v11 = vsub.f32 %v28137_v7, %v28183_v62  ;;  %v28237_v10 = vand.u32 4294901760, %v28189_v36 }
 0x3e8   : > { %23339 = vmatmul.mubr.f32.gmra.mrb[24].mxu1 %v27232_v13  ;;  %31071 = vst [vmem:[#allocation45_spill] sm:$0xff] %v28199_v6  ;;  %31072 = vst [vmem:[#allocation20_spill] sm:$0xff] %v28201_v14  ;;  %v10960_v13 = vsub.f32 %v28126_v59, %v28164_v41 }
 0x3e9   : > { %31073 = vst [vmem:[#allocation46_spill] sm:$0xff] %v28203_v29  ;;  %31074 = vst [vmem:[#allocation25_spill] sm:$0xff] %v28206_v58  ;;  %23341 = vmatprep.mubr.f32.mxu1 %v27237_v24  ;;  %v21924_v12 = vpop.f32.mrb[0].mxu0  ;;  %v28226_v24 = vsub.f32 %v10821_v4, %v28177_v57  ;;  %v19608_v4 = vld [vmem:[%s25515_s11 + $0x91] sm:$0xff]  ;;  %v28280_v22 = vand.u32 4294901760, %v15656_v11  ;;  %v10980_v62 = vsub.f32 %v28189_v36, %v28237_v10  ;;  %v19524_v36 = vld [vmem:[%s25515_s11 + $0xa8] sm:$0xff] }
 0x3ea   : > { %31075 = vst [vmem:[#allocation17_spill] sm:$0xff] %v28209_v63  ;;  %31076 = vst [vmem:[#allocation76_spill] sm:$0xff] %v28214_v60  ;;  %v4894_v41 = vadd.f32 %v21924_v12, %v28196_v55  ;;  %v4777_v38 = vpop.f32.mrb[1].mxu0  ;;  %22718 = vmatmul.mubr.f32.gmra.mrb[26].mxu0 %v27714_v34  ;;  %v28245_v34 = vand.u32 4294901760, %v28206_v58  ;;  %v10824_v12 = vsel %vm259_vm0, %v19522_v18, 0 }
 0x3eb   : > { %31077 = vst [vmem:[#allocation59_spill] sm:$0xff] %v28217_v32  ;;  %31078 = vst [vmem:[#allocation22_spill] sm:$0xff] %v28220_v3  ;;  %v22548_v59 = vpop.f32.mrb[0].mxu1  ;;  %v4893_v40 = vadd.f32 %v28196_v55, %v4777_v38  ;;  %22720 = vmatprep.mubr.f32.mxu0 %v27721_v26  ;;  %v15666_v26 = vsub.f32 %v28167_v52, %v28214_v60  ;;  %v19523_v52 = vld [vmem:[%s25515_s11 + $0x98] sm:$0xff] }
 0x3ec   : > { %31079 = vst [vmem:[#allocation60_spill] sm:$0xff] %v28223_v56  ;;  %31080 = vst [vmem:[#allocation9_spill] sm:$0xff] %v28226_v24  ;;  %v9586_v57 = vadd.f32 %v22548_v59, %v28196_v55  ;;  %v9475_v28 = vpop.f32.mrb[1].mxu1  ;;  %23342 = vmatmul.mubr.f32.gmra.mrb[26].mxu1 %v27263_v51  ;;  %v28255_v51 = vand.u32 4294901760, %v10960_v13  ;;  %v28260_v59 = vand.u32 4294901760, %v28217_v32  ;;  %v15520_v13 = vsel %vm259_vm0, %v19608_v4, 0 }
 0x3ed   : > { %31081 = vst [vmem:[#allocation65_spill] sm:$0xff] %v28237_v10  ;;  %31082 = vst [vmem:[#allocation19_spill] sm:$0xff] %v28245_v34  ;;  %v9585_v38 = vadd.f32 %v28196_v55, %v9475_v28  ;;  %23344 = vmatprep.mubr.f32.mxu1 %v27272_v42  ;;  %v21927_v18 = vpop.f32.mrb[2].mxu0  ;;  %v28270_v28 = vand.u32 4294901760, %v28226_v24  ;;  %v28273_v42 = vsub.f32 %v15517_v49, %v28228_v30  ;;  %v28284_v49 = vand.u32 4294901760, %v10824_v12  ;;  %v19609_v10 = vld [vmem:[%s25515_s11 + $0x99] sm:$0xff] }
 0x3ee   : > { %4910 = vst.msk [vmem:[%s28249_s4 + $0x8] sm:$0xff] %vm259_vm0, %v4894_v41  ;;  %31083 = vst [vmem:[#allocation68_spill] sm:$0xff] %v28255_v51  ;;  %v28267_v41 = vand.u32 4294901760, %v28223_v56  ;;  %v4896_v60 = vadd.f32 %v21927_v18, %v28196_v55  ;;  %22721 = vmatmul.mubr.f32.gmra.mrb[28].mxu0 %v27739_v27  ;;  %v28291_v27 = vand.u32 4294901760, %v10970_v45  ;;  %v15676_v11 = vsub.f32 %v28206_v58, %v28245_v34 }
 0x3ef   : > { %31084 = vst [vmem:[#allocation48_spill] sm:$0xff] %v28260_v59  ;;  %19497 = vst.msk [vmem:[%s28249_s4 + $0x88] sm:$0xff] %vm259_vm0, %v9586_v57  ;;  %v22551_v57 = vpop.f32.mrb[2].mxu1  ;;  %22723 = vmatprep.mubr.f32.mxu0 %v27747_v19  ;;  %v28305_v19 = vand.u32 4294901760, %v15520_v13  ;;  %v31100_v58 = vand.u32 4294901760, %v28062_v47  ;;  %v31103_v47 = vand.u32 4294901760, %v28074_v33 }
 0x3f0   : > { %4909 = vst.msk [vmem:[%s28249_s4] sm:$0xff] %vm259_vm0, %v4893_v40  ;;  %31085 = vst [vmem:[#allocation43_spill] sm:$0xff] %v28267_v41  ;;  %v4789_v40 = vpop.f32.mrb[3].mxu0  ;;  %v9588_v4 = vadd.f32 %v22551_v57, %v28196_v55  ;;  %v9487_v18 = vpop.f32.mrb[3].mxu1  ;;  %23345 = vmatmul.mubr.f32.gmra.mrb[28].mxu1 %v27297_v48  ;;  %v10990_v48 = vsub.f32 %v28217_v32, %v28260_v59 }
 0x3f1   : > { %31086 = vst [vmem:[#allocation51_spill] sm:$0xff] %v28270_v28  ;;  %31087 = vst [vmem:[#allocation57_spill] sm:$0xff] %v28273_v42  ;;  %v9587_v57 = vadd.f32 %v28196_v55, %v9487_v18  ;;  %23347 = vmatprep.mubr.f32.mxu1 %v27306_v53  ;;  %v21930_v45 = vpop.f32.mrb[4].mxu0  ;;  %v11000_v18 = vsub.f32 %v28226_v24, %v28270_v28  ;;  %v28316_v53 = vand.u32 4294901760, %v28273_v42  ;;  %v10830_v28 = vsel %vm259_vm0, %v19524_v36, 0  ;;  %v19610_v24 = vld [vmem:[%s25515_s11 + $0xa9] sm:$0xff] }
 0x3f2   : > { %19496 = vst.msk [vmem:[%s28249_s4 + $0x80] sm:$0xff] %vm259_vm0, %v9585_v38  ;;  %31088 = vst [vmem:[#allocation8_spill] sm:$0xff] %v28280_v22  ;;  %v4895_v38 = vadd.f32 %v28196_v55, %v4789_v40  ;;  %v28301_v40 = vand.u32 4294901760, %v15666_v26  ;;  %v10827_v26 = vsel %vm259_vm0, %v19523_v52, 0  ;;  %v4898_v59 = vadd.f32 %v21930_v45, %v28196_v55  ;;  %v4801_v34 = vpop.f32.mrb[5].mxu0  ;;  %22724 = vmatmul.mubr.f32.gmra.mrb[30].mxu0 %v27758_v20 }
 0x3f3   : > { %31089 = vst [vmem:[#allocation15_spill] sm:$0xff] %v28291_v27  ;;  %4912 = vst.msk [vmem:[%s28249_s4 + $0x18] sm:$0xff] %vm259_vm0, %v4896_v60  ;;  %v15686_v60 = vsub.f32 %v28223_v56, %v28267_v41  ;;  %v15523_v41 = vsel %vm259_vm0, %v19609_v10, 0  ;;  %v31093_v20 = vand.u32 4294901760, %v28056_v0  ;;  %v28336_v10 = vand.u32 4294901760, %v15676_v11  ;;  %v19525_v0 = vld [vmem:[%s25515_s11 + $0xb0] sm:$0xff] }
 0x3f4   : > { %31090 = vst [vmem:[#allocation72_spill] sm:$0xff] %v28301_v40  ;;  %19499 = vst.msk [vmem:[%s28249_s4 + $0x98] sm:$0xff] %vm259_vm0, %v9588_v4  ;;  %v22554_v4 = vpop.f32.mrb[4].mxu1  ;;  %23348 = vmatmul.mubr.f32.gmra.mrb[30].mxu1 %v27322_v5  ;;  %v28342_v56 = vand.u32 4294901760, %v10990_v48  ;;  %v28347_v5 = vand.u32 4294901760, %v10827_v26  ;;  %v15526_v48 = vsel %vm259_vm0, %v19610_v24, 0 }
 0x3f5   : > { %4911 = vst.msk [vmem:[%s28249_s4 + $0x10] sm:$0xff] %vm259_vm0, %v4895_v38  ;;  %31091 = vst [vmem:[#allocation35_spill] sm:$0xff] %v28316_v53  ;;  %v28324_v38 = vsub.f32 %v10824_v12, %v28284_v49  ;;  %v9590_v52 = vadd.f32 %v22554_v4, %v28196_v55  ;;  %v9499_v45 = vpop.f32.mrb[5].mxu1  ;;  %22728 = vmatprep.mubr.f32.mxu0 %v31093_v20  ;;  %v28334_v12 = vand.u32 4294901760, %v10980_v62  ;;  %v31096_v4 = vld [vmem:[#allocation21_spill] sm:$0xff]  ;;  %v28355_v11 = vand.u32 4294901760, %v15686_v60 }
 0x3f6   : > { %19498 = vst.msk [vmem:[%s28249_s4 + $0x90] sm:$0xff] %vm259_vm0, %v9587_v57  ;;  %v4897_v57 = vadd.f32 %v28196_v55, %v4801_v34  ;;  %31095 = vst [vmem:[#allocation78_spill] sm:$0xff] %v28336_v10  ;;  %v9589_v36 = vadd.f32 %v28196_v55, %v9499_v45  ;;  %23352 = vmatprep.mubr.f32.mxu1 %v31096_v4  ;;  %v28345_v34 = vsub.f32 %v15520_v13, %v28305_v19  ;;  %v19611_v62 = vld [vmem:[%s25515_s11 + $0xb1] sm:$0xff]  ;;  %v19526_v13 = vld [vmem:[%s25515_s11 + $0xc0] sm:$0xff] }
 0x3f7   : > { %31092 = vst [vmem:[#allocation55_spill] sm:$0xff] %v28324_v38  ;;  %31094 = vst [vmem:[#allocation24_spill] sm:$0xff] %v28334_v12  ;;  %v28357_v45 = vand.u32 4294901760, %v15523_v41  ;;  %v28359_v20 = vand.u32 4294901760, %v10830_v28  ;;  %v22557_v32 = vpop.f32.mrb[6].mxu1  ;;  %22729 = vmatmul.mubr.f32.vlgmr.msra.gmra.mrb[16].mxu0 %v31100_v58  ;;  %v15696_v60 = vsub.f32 %v28273_v42, %v28316_v53  ;;  %v28373_v9 = vand.u32 4294901760, %v28324_v38 }
 0x3f8   : > { %4914 = vst.msk [vmem:[%s28249_s4 + $0x28] sm:$0xff] %vm259_vm0, %v4898_v59  ;;  %31097 = vst [vmem:[#allocation56_spill] sm:$0xff] %v28342_v56  ;;  %v21933_v59 = vpop.f32.mrb[6].mxu0  ;;  %v19612_v24 = vld [vmem:[%s25515_s11 + $0xc1] sm:$0xff]  ;;  %v9511_v7 = vpop.f32.mrb[7].mxu1  ;;  %22753 = vmatpush3.msra.mxu0 %v28018_v37  ;;  %23353 = vmatmul.mubr.f32.vlgmr.msra.gmra.mrb[16].mxu1 %v31103_v47  ;;  %v10833_v58 = vsel %vm259_vm0, %v19525_v0, 0 }
 0x3f9   : > { %31098 = vst [vmem:[#allocation36_spill] sm:$0xff] %v28345_v34  ;;  %19501 = vst.msk [vmem:[%s28249_s4 + $0xa8] sm:$0xff] %vm259_vm0, %v9590_v52  ;;  %v4900_v4 = vadd.f32 %v21933_v59, %v28196_v55  ;;  %v4813_v52 = vpop.f32.mrb[7].mxu0  ;;  %v9591_v53 = vadd.f32 %v28196_v55, %v9511_v7  ;;  %23377 = vmatpush3.msra.mxu1 %v28024_v2  ;;  %22731 = vmatprep.mubr.f32.mxu0 %v28171_v16  ;;  %v28391_v37 = vand.u32 4294901760, %v15526_v48  ;;  %v19527_v0 = vld [vmem:[%s25515_s11 + $0xc8] sm:$0xff] }
 0x3fa   : > { %4913 = vst.msk [vmem:[%s28249_s4 + $0x20] sm:$0xff] %vm259_vm0, %v4897_v57  ;;  %31099 = vst [vmem:[#allocation38_spill] sm:$0xff] %v28355_v11  ;;  %v28368_v57 = vand.u32 4294901760, %v11000_v18  ;;  %v4899_v59 = vadd.f32 %v28196_v55, %v4813_v52  ;;  %v15529_v18 = vsel %vm259_vm0, %v19611_v62, 0  ;;  %v10836_v33 = vsel %vm259_vm0, %v19526_v13, 0  ;;  %v21936_v62 = vpop.f32.mrb[8].mxu0  ;;  %23355 = vmatprep.mubr.f32.mxu1 %v28199_v6  ;;  %22778 = vmatprep.subr.mxu0 %v27961_v50 }
 0x3fb   : > { %19500 = vst.msk [vmem:[%s28249_s4 + $0xa0] sm:$0xff] %vm259_vm0, %v9589_v36  ;;  %31102 = vst [vmem:[#allocation69_spill] sm:$0xff] %v28373_v9  ;;  %v9592_v36 = vadd.f32 %v22557_v32, %v28196_v55  ;;  %v28389_v32 = vand.u32 4294901760, %v28345_v34  ;;  %v28401_v2 = vsub.f32 %v10827_v26, %v28347_v5  ;;  %v28404_v7 = vsub.f32 %v15523_v41, %v28357_v45  ;;  %v19613_v13 = vld [vmem:[%s25515_s11 + $0xc9] sm:$0xff]  ;;  %v4825_v47 = vpop.f32.mrb[9].mxu0 }
 0x3fc   : > { %31101 = vst [vmem:[#allocation64_spill] sm:$0xff] %v28368_v57  ;;  %4916 = vst.msk [vmem:[%s28249_s4 + $0x38] sm:$0xff] %vm259_vm0, %v4900_v4  ;;  %v28407_v4 = vsub.f32 %v10830_v28, %v28359_v20  ;;  %v15532_v52 = vsel %vm259_vm0, %v19612_v24, 0  ;;  %22732 = vmatmul.mubr.f32.gmra.mrb[18].mxu0 %v28201_v14  ;;  %v28416_v26 = vand.u32 4294901760, %v15696_v60  ;;  %v28418_v41 = vand.u32 4294901760, %v10833_v58  ;;  %23402 = vmatprep.subr.mxu1 %v27967_v15 }
 0x3fd   : > { %31104 = vst [vmem:[#allocation73_spill] sm:$0xff] %v28389_v32  ;;  %19503 = vst.msk [vmem:[%s28249_s4 + $0xb8] sm:$0xff] %vm259_vm0, %v9592_v36  ;;  %v4902_v36 = vadd.f32 %v21936_v62, %v28196_v55  ;;  %v28420_v28 = vand.u32 4294901760, %v15529_v18  ;;  %23356 = vmatmul.mubr.f32.gmra.mrb[18].mxu1 %v28203_v29  ;;  %22734 = vmatprep.mubr.f32.mxu0 %v28209_v63  ;;  %v28427_v60 = vand.u32 4294901760, %v10836_v33  ;;  %v10839_v62 = vsel %vm259_vm0, %v19527_v0, 0  ;;  %v21939_v63 = vpop.f32.mrb[10].mxu0 }
 0x3fe   : > { %4915 = vst.msk [vmem:[%s28249_s4 + $0x30] sm:$0xff] %vm259_vm0, %v4899_v59  ;;  %31105 = vst [vmem:[#allocation75_spill] sm:$0xff] %v28401_v2  ;;  %v22560_v59 = vpop.f32.mrb[8].mxu1  ;;  %23358 = vmatprep.mubr.f32.mxu1 %v28220_v3  ;;  %v15535_v29 = vsel %vm259_vm0, %v19613_v13, 0  ;;  %v11010_v0 = vsub.f32 %v28324_v38, %v28373_v9  ;;  %v4904_v13 = vadd.f32 %v21939_v63, %v28196_v55  ;;  %v28465_v9 = vand.u32 4294901760, %v10839_v62 }
 0x3ff   : > { %31106 = vst [vmem:[#allocation33_spill] sm:$0xff] %v28404_v7  ;;  %31107 = vst [vmem:[#allocation61_spill] sm:$0xff] %v28407_v4  ;;  %v9594_v24 = vadd.f32 %v22560_v59, %v28196_v55  ;;  %v9523_v6 = vpop.f32.mrb[9].mxu1  ;;  %v28435_v59 = vsub.f32 %v15526_v48, %v28391_v37  ;;  %v28453_v48 = vand.u32 4294901760, %v28407_v4  ;;  %v28460_v3 = vsub.f32 %v10833_v58, %v28418_v41 }
 0x400   : > { %19502 = vst.msk [vmem:[%s28249_s4 + $0xb0] sm:$0xff] %vm259_vm0, %v9591_v53  ;;  %31108 = vst [vmem:[#allocation67_spill] sm:$0xff] %v28416_v26  ;;  %v4901_v53 = vadd.f32 %v28196_v55, %v4825_v47  ;;  %v9593_v14 = vadd.f32 %v28196_v55, %v9523_v6  ;;  %v28437_v47 = vand.u32 4294901760, %v15532_v52  ;;  %v28450_v6 = vand.u32 4294901760, %v28404_v7  ;;  %22735 = vmatmul.mubr.f32.gmra.mrb[20].mxu0 %v28255_v51 }
 0x401   : > { %4918 = vst.msk [vmem:[%s28249_s4 + $0x48] sm:$0xff] %vm259_vm0, %v4902_v36  ;;  %31109 = vst [vmem:[#allocation42_spill] sm:$0xff] %v28435_v59  ;;  %v28447_v36 = vand.u32 4294901760, %v28401_v2  ;;  %v28463_v16 = vsub.f32 %v15529_v18, %v28420_v28  ;;  %23359 = vmatmul.mubr.f32.gmra.mrb[20].mxu1 %v28280_v22  ;;  %22737 = vmatprep.mubr.f32.mxu0 %v28291_v27  ;;  %v28472_v63 = vsub.f32 %v10836_v33, %v28427_v60 }
 0x402   : > { %31110 = vst [vmem:[#allocation52_spill] sm:$0xff] %v28437_v47  ;;  %19505 = vst.msk [vmem:[%s28249_s4 + $0xc8] sm:$0xff] %vm259_vm0, %v9594_v24  ;;  %v22563_v24 = vpop.f32.mrb[10].mxu1  ;;  %v28474_v58 = vand.u32 4294901760, %v15535_v29  ;;  %23361 = vmatprep.mubr.f32.mxu1 %v28301_v40  ;;  %v28486_v27 = vsub.f32 %v15532_v52, %v28437_v47  ;;  %v28492_v22 = vand.u32 4294901760, %v11010_v0  ;;  %v11030_v40 = vsub.f32 %v28407_v4, %v28453_v48 }
 0x403   : > { %4917 = vst.msk [vmem:[%s28249_s4 + $0x40] sm:$0xff] %vm259_vm0, %v4901_v53  ;;  %31111 = vst [vmem:[#allocation18_spill] sm:$0xff] %v28447_v36  ;;  %v4837_v53 = vpop.f32.mrb[11].mxu0  ;;  %v9596_v38 = vadd.f32 %v22563_v24, %v28196_v55  ;;  %v9535_v42 = vpop.f32.mrb[11].mxu1  ;;  %v15706_v24 = vsub.f32 %v28345_v34, %v28389_v32  ;;  %v28505_v0 = vand.u32 4294901760, %v28460_v3 }
 0x404   : > { %31112 = vst [vmem:[#allocation77_spill] sm:$0xff] %v28450_v6  ;;  %31113 = vst [vmem:[#allocation50_spill] sm:$0xff] %v28453_v48  ;;  %v9595_v18 = vadd.f32 %v28196_v55, %v9535_v42  ;;  %v21942_v33 = vpop.f32.mrb[12].mxu0  ;;  %v11020_v42 = vsub.f32 %v28401_v2, %v28447_v36  ;;  %22738 = vmatmul.mubr.f32.gmra.mrb[22].mxu0 %v28334_v12  ;;  %v28518_v12 = vand.u32 4294901760, %v28472_v63 }
 0x405   : > { %19504 = vst.msk [vmem:[%s28249_s4 + $0xc0] sm:$0xff] %vm259_vm0, %v9593_v14  ;;  %31114 = vst [vmem:[#allocation79_spill] sm:$0xff] %v28460_v3  ;;  %v4903_v14 = vadd.f32 %v28196_v55, %v4837_v53  ;;  %v28483_v53 = vand.u32 4294901760, %v28435_v59  ;;  %v4906_v52 = vadd.f32 %v21942_v33, %v28196_v55  ;;  %v4849_v51 = vpop.f32.mrb[13].mxu0  ;;  %23362 = vmatmul.mubr.f32.gmra.mrb[22].mxu1 %v28336_v10  ;;  %22740 = vmatprep.mubr.f32.mxu0 %v28342_v56 }
 0x406   : > { %31115 = vst [vmem:[#allocation12_spill] sm:$0xff] %v28463_v16  ;;  %31116 = vst [vmem:[#allocation21_spill] sm:$0xff] %v28465_v9  ;;  %v28521_v36 = vsub.f32 %v15535_v29, %v28474_v58  ;;  %23364 = vmatprep.mubr.f32.mxu1 %v28355_v11  ;;  %v28532_v10 = vand.u32 4294901760, %v28486_v27  ;;  %v21945_v29 = vpop.f32.mrb[14].mxu0  ;;  %v28538_v56 = vand.u32 4294901760, %v11020_v42 }
 0x407   : > { %31117 = vst [vmem:[#allocation80_spill] sm:$0xff] %v28472_v63  ;;  %31118 = vst [vmem:[#allocation81_spill] sm:$0xff] %v28474_v58 }
 0x408   : > { %4920 = vst.msk [vmem:[%s28249_s4 + $0x58] sm:$0xff] %vm259_vm0, %v4904_v13  ;;  %31119 = vst [vmem:[#allocation82_spill] sm:$0xff] %v28483_v53  ;;  %v15716_v13 = vsub.f32 %v28404_v7, %v28450_v6  ;;  %v28511_v6 = vsub.f32 %v10839_v62, %v28465_v9  ;;  %22741 = vmatmul.mubr.f32.gmra.mrb[24].mxu0 %v28368_v57  ;;  %v28562_v57 = vand.u32 4294901760, %v28521_v36 }
 0x409   : > { %31120 = vst [vmem:[#allocation83_spill] sm:$0xff] %v28486_v27  ;;  %19507 = vst.msk [vmem:[%s28249_s4 + $0xd8] sm:$0xff] %vm259_vm0, %v9596_v38  ;;  %v22566_v38 = vpop.f32.mrb[12].mxu1  ;;  %23365 = vmatmul.mubr.f32.gmra.mrb[24].mxu1 %v28416_v26  ;;  %22743 = vmatprep.mubr.f32.mxu0 %v28492_v22  ;;  %v31161_v26 = vld [vmem:[#allocation71_spill] sm:$0xff] }
 0x40a   : > { %4919 = vst.msk [vmem:[%s28249_s4 + $0x50] sm:$0xff] %vm259_vm0, %v4903_v14  ;;  %31121 = vst [vmem:[#allocation84_spill] sm:$0xff] %v28492_v22  ;;  %v28508_v14 = vand.u32 4294901760, %v28463_v16  ;;  %v9598_v48 = vadd.f32 %v22566_v38, %v28196_v55  ;;  %v9547_v33 = vpop.f32.mrb[13].mxu1  ;;  %v28527_v38 = vand.u32 4294901760, %v15706_v24  ;;  %v4908_v24 = vadd.f32 %v21945_v29, %v28196_v55 }
 0x40b   : > { %19506 = vst.msk [vmem:[%s28249_s4 + $0xd0] sm:$0xff] %vm259_vm0, %v9595_v18  ;;  %31122 = vst [vmem:[#allocation85_spill] sm:$0xff] %v28505_v0  ;;  %v4905_v18 = vadd.f32 %v28196_v55, %v4849_v51  ;;  %v9597_v62 = vadd.f32 %v28196_v55, %v9547_v33  ;;  %v15726_v51 = vsub.f32 %v28435_v59, %v28483_v53  ;;  %v28542_v33 = vand.u32 4294901760, %v11030_v40  ;;  %v22569_v11 = vpop.f32.mrb[14].mxu1  ;;  %v4861_v53 = vpop.f32.mrb[15].mxu0 }
 0x40c   : > { %31123 = vst [vmem:[#allocation86_spill] sm:$0xff] %v28508_v14  ;;  %31124 = vst [vmem:[#allocation87_spill] sm:$0xff] %v28511_v6  ;;  %v15736_v42 = vsub.f32 %v28463_v16, %v28508_v14  ;;  %v28553_v40 = vand.u32 4294901760, %v28511_v6  ;;  %v11050_v29 = vsub.f32 %v28472_v63, %v28518_v12  ;;  %23367 = vmatprep.mubr.f32.mxu1 %v28527_v38  ;;  %22744 = vmatmul.mubr.f32.gmra.mrb[26].mxu0 %v28538_v56 }
 0x40d   : > { %31125 = vst [vmem:[#allocation88_spill] sm:$0xff] %v28518_v12  ;;  %31126 = vst [vmem:[#allocation89_spill] sm:$0xff] %v28521_v36  ;;  %22746 = vmatprep.mubr.f32.mxu0 %v28542_v33 }
 0x40e   : > { %4922 = vst.msk [vmem:[%s28249_s4 + $0x68] sm:$0xff] %vm259_vm0, %v4906_v52  ;;  %31127 = vst [vmem:[#allocation90_spill] sm:$0xff] %v28527_v38  ;;  %v28540_v52 = vand.u32 4294901760, %v15716_v13  ;;  %v9600_v13 = vadd.f32 %v22569_v11, %v28196_v55  ;;  %v28568_v11 = vand.u32 4294901760, %v15726_v51  ;;  %v28585_v51 = vand.u32 4294901760, %v15736_v42  ;;  %v31141_v42 = vld [vmem:[#allocation66_spill] sm:$0xff] }
 0x40f   : > { %31128 = vst [vmem:[#allocation91_spill] sm:$0xff] %v28532_v10  ;;  %19509 = vst.msk [vmem:[%s28249_s4 + $0xe8] sm:$0xff] %vm259_vm0, %v9598_v48  ;;  %v11040_v48 = vsub.f32 %v28460_v3, %v28505_v0  ;;  %v31160_v38 = vld [vmem:[#allocation29_spill] sm:$0xff] }
 0x410   : > { %4921 = vst.msk [vmem:[%s28249_s4 + $0x60] sm:$0xff] %vm259_vm0, %v4905_v18  ;;  %31129 = vst [vmem:[#allocation92_spill] sm:$0xff] %v28538_v56  ;;  %v4907_v18 = vadd.f32 %v28196_v55, %v4861_v53  ;;  %v15746_v53 = vsub.f32 %v28486_v27, %v28532_v10  ;;  %23368 = vmatmul.mubr.f32.gmra.mrb[26].mxu1 %v28540_v52  ;;  %v31159_v56 = vld [vmem:[#allocation34_spill] sm:$0xff] }
 0x411   : > { %31130 = vst [vmem:[#allocation93_spill] sm:$0xff] %v28540_v52  ;;  %31131 = vst [vmem:[#allocation94_spill] sm:$0xff] %v28542_v33  ;;  %v28579_v22 = vand.u32 4294901760, %v11040_v48  ;;  %23370 = vmatprep.mubr.f32.mxu1 %v28568_v11  ;;  %v31156_v33 = vld [vmem:[#allocation39_spill] sm:$0xff]  ;;  %v31157_v52 = vld [vmem:[#allocation37_spill] sm:$0xff] }
 0x412   : > { %19508 = vst.msk [vmem:[%s28249_s4 + $0xe0] sm:$0xff] %vm259_vm0, %v9597_v62  ;;  %31132 = vst [vmem:[#allocation95_spill] sm:$0xff] %v28553_v40  ;;  %v9559_v62 = vpop.f32.mrb[15].mxu1 }
 0x413   : > { %31133 = vst [vmem:[#allocation96_spill] sm:$0xff] %v28562_v57  ;;  %4924 = vst.msk [vmem:[%s28249_s4 + $0x78] sm:$0xff] %vm259_vm0, %v4908_v24  ;;  %v9599_v14 = vadd.f32 %v28196_v55, %v9559_v62  ;;  %v11060_v55 = vsub.f32 %v28511_v6, %v28553_v40  ;;  %v28587_v24 = vand.u32 4294901760, %v11050_v29  ;;  %22747 = vmatmul.mubr.f32.gmra.mrb[28].mxu0 %v28579_v22  ;;  %v31142_v62 = vld [vmem:[#allocation4_spill] sm:$0xff] }
 0x414   : > { %31134 = vst [vmem:[#allocation97_spill] sm:$0xff] %v28568_v11  ;;  %19511 = vst.msk [vmem:[%s28249_s4 + $0xf8] sm:$0xff] %vm259_vm0, %v9600_v13  ;;  %v15756_v13 = vsub.f32 %v28521_v36, %v28562_v57  ;;  %23371 = vmatmul.mubr.f32.gmra.mrb[28].mxu1 %v28585_v51  ;;  %v31143_v29 = vld [vmem:[#allocation16_spill] sm:$0xff] }
 0x415   : > { %4923 = vst.msk [vmem:[%s28249_s4 + $0x70] sm:$0xff] %vm259_vm0, %v4907_v18  ;;  %19510 = vst.msk [vmem:[%s28249_s4 + $0xf0] sm:$0xff] %vm259_vm0, %v9599_v14  ;;  %v28592_v14 = vand.u32 4294901760, %v15746_v53  ;;  %v28595_v48 = vand.u32 4294901760, %v11060_v55  ;;  %22749 = vmatprep.mubr.f32.mxu0 %v28587_v24  ;;  %v31146_v53 = vld [vmem:[#allocation31_spill] sm:$0xff]  ;;  %v31147_v55 = vld [vmem:[#allocation13_spill] sm:$0xff] }
 0x416   : > { %31135 = vst [vmem:[#allocation98_spill] sm:$0xff] %v28579_v22  ;;  %31136 = vst [vmem:[#allocation99_spill] sm:$0xff] %v28585_v51  ;;  %v28599_v18 = vand.u32 4294901760, %v15756_v13  ;;  %v31148_v13 = vld [vmem:[#allocation44_spill] sm:$0xff]  ;;  %v31153_v51 = vld [vmem:[#allocation26_spill] sm:$0xff] }
 0x417   : > { %31137 = vst [vmem:[#allocation100_spill] sm:$0xff] %v28587_v24  ;;  %31138 = vst [vmem:[#allocation101_spill] sm:$0xff] %v28592_v14  ;;  %23373 = vmatprep.mubr.f32.mxu1 %v28592_v14  ;;  %22750 = vmatmul.mubr.f32.gmra.mrb[30].mxu0 %v28595_v48  ;;  %v31151_v14 = vld [vmem:[#allocation62_spill] sm:$0xff]  ;;  %v31154_v22 = vld [vmem:[#allocation23_spill] sm:$0xff] }
 0x418   : > { %31139 = vst [vmem:[#allocation102_spill] sm:$0xff] %v28595_v48  ;;  %31140 = vst [vmem:[#allocation103_spill] sm:$0xff] %v28599_v18  ;;  %23374 = vmatmul.mubr.f32.gmra.mrb[30].mxu1 %v28599_v18  ;;  %22754 = vmatprep.mubr.f32.mxu0 %v27974_v31  ;;  %v31149_v18 = vld [vmem:[#allocation47_spill] sm:$0xff]  ;;  %v31150_v48 = vld [vmem:[#allocation54_spill] sm:$0xff] }
 0x419   : > { %23378 = vmatprep.mubr.f32.mxu1 %v27584_v23  ;;  %v31152_v24 = vld [vmem:[#allocation10_spill] sm:$0xff]  ;;  %v31155_v11 = vld [vmem:[#allocation32_spill] sm:$0xff] }
 0x41b   : > { %22755 = vmatmul.mubr.f32.vlgmr.msra.gmra.mrb[16].mxu0 %v27983_v46 }
 0x41c   : > { %22779 = vmatpush3.msra.mxu0 %v27961_v50  ;;  %23379 = vmatmul.mubr.f32.vlgmr.msra.gmra.mrb[16].mxu1 %v27987_v1  ;;  %v31144_v50 = vld [vmem:[#allocation5_spill] sm:$0xff] }
 0x41d   : > { %23403 = vmatpush3.msra.mxu1 %v27967_v15  ;;  %22757 = vmatprep.mubr.f32.mxu0 %v28020_v35  ;;  %v31145_v15 = vld [vmem:[#allocation70_spill] sm:$0xff] }
 0x41e   : > { %23381 = vmatprep.mubr.f32.mxu1 %v28027_v25  ;;  %22804 = vmatprep.subr.mxu0 %v27930_v44 }
 0x41f   : > { %22758 = vmatmul.mubr.f32.gmra.mrb[18].mxu0 %v28034_v21  ;;  %23428 = vmatprep.subr.mxu1 %v27933_v61 }
 0x420   : > { %23382 = vmatmul.mubr.f32.gmra.mrb[18].mxu1 %v31141_v42  ;;  %22760 = vmatprep.mubr.f32.mxu0 %v31142_v62 }
 0x421   : > { %23384 = vmatprep.mubr.f32.mxu1 %v31143_v29 }
 0x423   : > { %22761 = vmatmul.mubr.f32.gmra.mrb[20].mxu0 %v31144_v50 }
 0x424   : > { %23385 = vmatmul.mubr.f32.gmra.mrb[20].mxu1 %v28096_v39  ;;  %22763 = vmatprep.mubr.f32.mxu0 %v28106_v43 }
 0x425   : > { %23387 = vmatprep.mubr.f32.mxu1 %v28128_v54 }
 0x427   : > { %22764 = vmatmul.mubr.f32.gmra.mrb[22].mxu0 %v28144_v8 }
 0x428   : > { %23388 = vmatmul.mubr.f32.gmra.mrb[22].mxu1 %v28157_v17  ;;  %22766 = vmatprep.mubr.f32.mxu0 %v31145_v15 }
 0x429   : > { %23390 = vmatprep.mubr.f32.mxu1 %v31146_v53 }
 0x42b   : > { %22767 = vmatmul.mubr.f32.gmra.mrb[24].mxu0 %v31147_v55 }
 0x42c   : > { %23391 = vmatmul.mubr.f32.gmra.mrb[24].mxu1 %v28228_v30  ;;  %22769 = vmatprep.mubr.f32.mxu0 %v28284_v49 }
 0x42d   : > { %23393 = vmatprep.mubr.f32.mxu1 %v28305_v19 }
 0x42f   : > { %22770 = vmatmul.mubr.f32.gmra.mrb[26].mxu0 %v28347_v5 }
 0x430   : > { %23394 = vmatmul.mubr.f32.gmra.mrb[26].mxu1 %v28357_v45  ;;  %22772 = vmatprep.mubr.f32.mxu0 %v28359_v20 }
 0x431   : > { %23396 = vmatprep.mubr.f32.mxu1 %v28391_v37 }
 0x433   : > { %22773 = vmatmul.mubr.f32.gmra.mrb[28].mxu0 %v28418_v41 }
 0x434   : > { %23397 = vmatmul.mubr.f32.gmra.mrb[28].mxu1 %v28420_v28  ;;  %22775 = vmatprep.mubr.f32.mxu0 %v28427_v60 }
 0x435   : > { %23399 = vmatprep.mubr.f32.mxu1 %v28437_v47  ;;  %v31167_v47 = vld [vmem:[#allocation60_spill] sm:$0xff] }
 0x437   : > { %22776 = vmatmul.mubr.f32.gmra.mrb[30].mxu0 %v28465_v9  ;;  %v31165_v9 = vld [vmem:[#allocation25_spill] sm:$0xff] }
 0x438   : > { %23400 = vmatmul.mubr.f32.gmra.mrb[30].mxu1 %v28474_v58  ;;  %22780 = vmatprep.mubr.f32.mxu0 %v31148_v13  ;;  %v31162_v58 = vld [vmem:[#allocation49_spill] sm:$0xff] }
 0x439   : > { %23404 = vmatprep.mubr.f32.mxu1 %v31149_v18  ;;  %v31158_v18 = vld [vmem:[#allocation41_spill] sm:$0xff] }
 0x43b   : > { %22781 = vmatmul.mubr.f32.vlgmr.msra.gmra.mrb[16].mxu0 %v31150_v48 }
 0x43c   : > { %22805 = vmatpush3.msra.mxu0 %v27930_v44  ;;  %23405 = vmatmul.mubr.f32.vlgmr.msra.gmra.mrb[16].mxu1 %v31151_v14 }
 0x43d   : > { %23429 = vmatpush3.msra.mxu1 %v27933_v61  ;;  %22783 = vmatprep.mubr.f32.mxu0 %v31152_v24  ;;  %v31163_v24 = vld [vmem:[#allocation63_spill] sm:$0xff] }
 0x43e   : > { %23407 = vmatprep.mubr.f32.mxu1 %v31153_v51  ;;  %22830 = vmatprep.subr.mxu0 %v31154_v22  ;;  %v31164_v51 = vld [vmem:[#allocation3_spill] sm:$0xff] }
 0x43f   : > { %22784 = vmatmul.mubr.f32.gmra.mrb[18].mxu0 %v31155_v11  ;;  %23454 = vmatprep.subr.mxu1 %v31156_v33  ;;  %v31166_v11 = vld [vmem:[#allocation59_spill] sm:$0xff] }
 0x440   : > { %23408 = vmatmul.mubr.f32.gmra.mrb[18].mxu1 %v31157_v52  ;;  %22786 = vmatprep.mubr.f32.mxu0 %v31158_v18  ;;  %v31168_v52 = vld [vmem:[#allocation9_spill] sm:$0xff] }
 0x441   : > { %23410 = vmatprep.mubr.f32.mxu1 %v31159_v56  ;;  %v31169_v18 = vld [vmem:[#allocation57_spill] sm:$0xff]  ;;  %v31170_v56 = vld [vmem:[#allocation55_spill] sm:$0xff] }
 0x443   : > { %22787 = vmatmul.mubr.f32.gmra.mrb[20].mxu0 %v31160_v38 }
 0x444   : > { %23411 = vmatmul.mubr.f32.gmra.mrb[20].mxu1 %v31161_v26  ;;  %22789 = vmatprep.mubr.f32.mxu0 %v31162_v58 }
 0x445   : > { %23413 = vmatprep.mubr.f32.mxu1 %v31163_v24 }
 0x447   : > { %22790 = vmatmul.mubr.f32.gmra.mrb[22].mxu0 %v31164_v51 }
 0x448   : > { %23414 = vmatmul.mubr.f32.gmra.mrb[22].mxu1 %v31165_v9  ;;  %22792 = vmatprep.mubr.f32.mxu0 %v31166_v11 }
 0x449   : > { %23416 = vmatprep.mubr.f32.mxu1 %v31167_v47 }
 0x44b   : > { %22793 = vmatmul.mubr.f32.gmra.mrb[24].mxu0 %v31168_v52 }
 0x44c   : > { %23417 = vmatmul.mubr.f32.gmra.mrb[24].mxu1 %v31169_v18  ;;  %22795 = vmatprep.mubr.f32.mxu0 %v31170_v56  ;;  %v31233_v18 = vld [vmem:[#allocation102_spill] sm:$0xff] }
 0x44d   : > { %23419 = vmatprep.mubr.f32.mxu1 %v28345_v34  ;;  %v31229_v34 = vld [vmem:[#allocation98_spill] sm:$0xff] }
 0x44f   : > { %22796 = vmatmul.mubr.f32.gmra.mrb[26].mxu0 %v28401_v2  ;;  %v31171_v2 = vand.u32 4294901760, %v31148_v13  ;;  %v31177_v13 = vld [vmem:[#allocation53_spill] sm:$0xff] }
 0x450   : > { %23420 = vmatmul.mubr.f32.gmra.mrb[26].mxu1 %v28404_v7  ;;  %22798 = vmatprep.mubr.f32.mxu0 %v28407_v4  ;;  %v31172_v7 = vld [vmem:[#allocation6_spill] sm:$0xff]  ;;  %v31173_v4 = vand.u32 4294901760, %v31150_v48  ;;  %v31185_v48 = vld [vmem:[#allocation65_spill] sm:$0xff] }
 0x451   : > { %23422 = vmatprep.mubr.f32.mxu1 %v28435_v59  ;;  %v31226_v59 = vld [vmem:[#allocation94_spill] sm:$0xff] }
 0x453   : > { %22799 = vmatmul.mubr.f32.gmra.mrb[28].mxu0 %v28460_v3  ;;  %v31222_v3 = vld [vmem:[#allocation90_spill] sm:$0xff] }
 0x454   : > { %23423 = vmatmul.mubr.f32.gmra.mrb[28].mxu1 %v28463_v16  ;;  %22801 = vmatprep.mubr.f32.mxu0 %v28472_v63  ;;  %v31174_v16 = vand.u32 4294901760, %v31151_v14  ;;  %v31184_v14 = vld [vmem:[#allocation76_spill] sm:$0xff] }
 0x455   : > { %23425 = vmatprep.mubr.f32.mxu1 %v28486_v27  ;;  %v31175_v27 = vld [vmem:[#allocation7_spill] sm:$0xff]  ;;  %v31218_v63 = vld [vmem:[#allocation64_spill] sm:$0xff] }
 0x457   : > { %22802 = vmatmul.mubr.f32.gmra.mrb[30].mxu0 %v28511_v6  ;;  %v31176_v6 = vld [vmem:[#allocation40_spill] sm:$0xff] }
 0x458   : > { %23426 = vmatmul.mubr.f32.gmra.mrb[30].mxu1 %v28521_v36  ;;  %22806 = vmatprep.mubr.f32.mxu0 %v31171_v2  ;;  %v31178_v2 = vld [vmem:[#allocation11_spill] sm:$0xff]  ;;  %v31213_v36 = vld [vmem:[#allocation56_spill] sm:$0xff] }
 0x459   : > { %23430 = vmatprep.mubr.f32.mxu1 %v31172_v7  ;;  %v31179_v7 = vld [vmem:[#allocation14_spill] sm:$0xff] }
 0x45b   : > { %22807 = vmatmul.mubr.f32.vlgmr.msra.gmra.mrb[16].mxu0 %v31173_v4  ;;  %v31181_v4 = vld [vmem:[#allocation58_spill] sm:$0xff] }
 0x45c   : > { %22831 = vmatpush3.msra.mxu0 %v31154_v22  ;;  %23431 = vmatmul.mubr.f32.vlgmr.msra.gmra.mrb[16].mxu1 %v31174_v16  ;;  %v31180_v22 = vld [vmem:[#allocation30_spill] sm:$0xff]  ;;  %v31182_v16 = vld [vmem:[#allocation28_spill] sm:$0xff] }
 0x45d   : > { %23455 = vmatpush3.msra.mxu1 %v31156_v33  ;;  %22809 = vmatprep.mubr.f32.mxu0 %v31175_v27  ;;  %v31183_v33 = vld [vmem:[#allocation27_spill] sm:$0xff] }
 0x45e   : > { %23433 = vmatprep.mubr.f32.mxu1 %v31176_v6  ;;  %22856 = vmatprep.subr.mxu0 %v27930_v44  ;;  %v31186_v6 = vld [vmem:[#allocation19_spill] sm:$0xff] }
 0x45f   : > { %22810 = vmatmul.mubr.f32.gmra.mrb[18].mxu0 %v31177_v13  ;;  %23480 = vmatprep.subr.mxu1 %v27933_v61  ;;  %v31187_v13 = vld [vmem:[#allocation48_spill] sm:$0xff]  ;;  %v31188_v27 = vld [vmem:[#allocation43_spill] sm:$0xff] }
 0x460   : > { %23434 = vmatmul.mubr.f32.gmra.mrb[18].mxu1 %v31178_v2  ;;  %22812 = vmatprep.mubr.f32.mxu0 %v31179_v7  ;;  %v31189_v2 = vld [vmem:[#allocation51_spill] sm:$0xff] }
 0x461   : > { %23436 = vmatprep.mubr.f32.mxu1 %v31180_v22  ;;  %v31190_v7 = vld [vmem:[#allocation35_spill] sm:$0xff]  ;;  %v31191_v22 = vld [vmem:[#allocation69_spill] sm:$0xff] }
 0x463   : > { %22813 = vmatmul.mubr.f32.gmra.mrb[20].mxu0 %v31181_v4 }
 0x464   : > { %23437 = vmatmul.mubr.f32.gmra.mrb[20].mxu1 %v31182_v16  ;;  %22815 = vmatprep.mubr.f32.mxu0 %v31183_v33  ;;  %v31192_v16 = vld [vmem:[#allocation18_spill] sm:$0xff]  ;;  %v31193_v33 = vld [vmem:[#allocation77_spill] sm:$0xff] }
 0x465   : > { %23439 = vmatprep.mubr.f32.mxu1 %v31184_v14  ;;  %v31194_v14 = vld [vmem:[#allocation50_spill] sm:$0xff] }
 0x467   : > { %22816 = vmatmul.mubr.f32.gmra.mrb[22].mxu0 %v31185_v48  ;;  %v31195_v48 = vld [vmem:[#allocation82_spill] sm:$0xff] }
 0x468   : > { %23440 = vmatmul.mubr.f32.gmra.mrb[22].mxu1 %v31186_v6  ;;  %22818 = vmatprep.mubr.f32.mxu0 %v31187_v13  ;;  %v31196_v13 = vld [vmem:[#allocation86_spill] sm:$0xff] }
 0x469   : > { %23442 = vmatprep.mubr.f32.mxu1 %v31188_v27  ;;  %v31205_v27 = vld [vmem:[#allocation22_spill] sm:$0xff] }
 0x46b   : > { %22819 = vmatmul.mubr.f32.gmra.mrb[24].mxu0 %v31189_v2  ;;  %v19563_v2 = vld [vmem:[%s25515_s11 + $0xe0] sm:$0xff] }
 0x46c   : > { %23443 = vmatmul.mubr.f32.gmra.mrb[24].mxu1 %v31190_v7  ;;  %22821 = vmatprep.mubr.f32.mxu0 %v31191_v22  ;;  %v31204_v22 = vld [vmem:[#allocation17_spill] sm:$0xff] }
 0x46d   : > { %23445 = vmatprep.mubr.f32.mxu1 %v28389_v32 }
 0x46f   : > { %22822 = vmatmul.mubr.f32.gmra.mrb[26].mxu0 %v31192_v16  ;;  %v19564_v16 = vld [vmem:[%s29973_s1 + $0x50] sm:$0xff] }
 0x470   : > { %23446 = vmatmul.mubr.f32.gmra.mrb[26].mxu1 %v31193_v33  ;;  %22824 = vmatprep.mubr.f32.mxu0 %v31194_v14  ;;  %v31199_v14 = vld [vmem:[#allocation81_spill] sm:$0xff] }
 0x471   : > { %23448 = vmatprep.mubr.f32.mxu1 %v31195_v48 }
 0x473   : > { %22825 = vmatmul.mubr.f32.gmra.mrb[28].mxu0 %v28505_v0  ;;  %v19648_v0 = vld [vmem:[%s29973_s1 + $0x70] sm:$0xff] }
 0x474   : > { %23449 = vmatmul.mubr.f32.gmra.mrb[28].mxu1 %v31196_v13  ;;  %22827 = vmatprep.mubr.f32.mxu0 %v28518_v12  ;;  %v28723_v13 = vand.u32 4294901760, %v19564_v16  ;;  %v31198_v12 = vld [vmem:[#allocation21_spill] sm:$0xff] }
 0x475   : > { %23451 = vmatprep.mubr.f32.mxu1 %v28532_v10  ;;  %v28726_v10 = vand.u32 4294901760, %v19648_v0 }
 0x477   : > { %22828 = vmatmul.mubr.f32.gmra.mrb[30].mxu0 %v28553_v40 }
 0x478   : > { %23452 = vmatmul.mubr.f32.gmra.mrb[30].mxu1 %v28562_v57  ;;  %22832 = vmatprep.mubr.f32.mxu0 %v27974_v31 }
 0x479   : > { %23456 = vmatprep.mubr.f32.mxu1 %v27584_v23 }
 0x47b   : > { %22833 = vmatmul.mubr.f32.vlgmr.msra.gmra.mrb[16].mxu0 %v27983_v46 }
 0x47c   : > { %22857 = vmatpush3.msra.mxu0 %v27930_v44  ;;  %23457 = vmatmul.mubr.f32.vlgmr.msra.gmra.mrb[16].mxu1 %v27987_v1  ;;  %v28752_v44 = vsub.f32 %v19564_v16, %v28723_v13 }
 0x47d   : > { %23481 = vmatpush3.msra.mxu1 %v27933_v61  ;;  %22835 = vmatprep.mubr.f32.mxu0 %v28020_v35  ;;  %v28756_v61 = vsub.f32 %v19648_v0, %v28726_v10  ;;  %v31197_v0 = vld [vmem:[#allocation52_spill] sm:$0xff] }
 0x47e   : > { %23459 = vmatprep.mubr.f32.mxu1 %v28027_v25  ;;  %22882 = vmatprep.subr.mxu0 %v28723_v13  ;;  %v28762_v57 = vand.u32 4294901760, %v28752_v44 }
 0x47f   : > { %22836 = vmatmul.mubr.f32.gmra.mrb[18].mxu0 %v28034_v21  ;;  %23506 = vmatprep.subr.mxu1 %v28726_v10  ;;  %v28766_v40 = vand.u32 4294901760, %v28756_v61 }
 0x480   : > { %23460 = vmatmul.mubr.f32.gmra.mrb[18].mxu1 %v31141_v42  ;;  %22838 = vmatprep.mubr.f32.mxu0 %v31142_v62  ;;  %v12231_v16 = vsub.f32 %v28752_v44, %v28762_v57 }
 0x481   : > { %23462 = vmatprep.mubr.f32.mxu1 %v31143_v29  ;;  %v16924_v48 = vsub.f32 %v28756_v61, %v28766_v40 }
 0x482   : > { %v12232_v33 = vand.u32 4294901760, %v12231_v16  ;;  %v31203_v16 = vld [vmem:[#allocation46_spill] sm:$0xff] }
 0x483   : > { %22839 = vmatmul.mubr.f32.gmra.mrb[20].mxu0 %v31144_v50  ;;  %v16925_v32 = vand.u32 4294901760, %v16924_v48  ;;  %v19646_v48 = vld [vmem:[%s25515_s11 + $0xd9] sm:$0xff] }
 0x484   : > { %23463 = vmatmul.mubr.f32.gmra.mrb[20].mxu1 %v28096_v39  ;;  %22841 = vmatprep.mubr.f32.mxu0 %v28106_v43  ;;  %v16689_v6 = vsel %vm259_vm0, %v19646_v48, 0 }
 0x485   : > { %23465 = vmatprep.mubr.f32.mxu1 %v28128_v54 }
 0x487   : > { %22842 = vmatmul.mubr.f32.gmra.mrb[22].mxu0 %v28144_v8 }
 0x488   : > { %23466 = vmatmul.mubr.f32.gmra.mrb[22].mxu1 %v28157_v17  ;;  %22844 = vmatprep.mubr.f32.mxu0 %v31145_v15 }
 0x489   : > { %23468 = vmatprep.mubr.f32.mxu1 %v31146_v53 }
 0x48b   : > { %22845 = vmatmul.mubr.f32.gmra.mrb[24].mxu0 %v31147_v55 }
 0x48c   : > { %23469 = vmatmul.mubr.f32.gmra.mrb[24].mxu1 %v28228_v30  ;;  %22847 = vmatprep.mubr.f32.mxu0 %v28284_v49 }
 0x48d   : > { %23471 = vmatprep.mubr.f32.mxu1 %v28305_v19 }
 0x48f   : > { %22848 = vmatmul.mubr.f32.gmra.mrb[26].mxu0 %v28347_v5 }
 0x490   : > { %23472 = vmatmul.mubr.f32.gmra.mrb[26].mxu1 %v28357_v45  ;;  %22850 = vmatprep.mubr.f32.mxu0 %v28359_v20 }
 0x491   : > { %23474 = vmatprep.mubr.f32.mxu1 %v28391_v37 }
 0x493   : > { %22851 = vmatmul.mubr.f32.gmra.mrb[28].mxu0 %v28418_v41 }
 0x494   : > { %23475 = vmatmul.mubr.f32.gmra.mrb[28].mxu1 %v28420_v28  ;;  %22853 = vmatprep.mubr.f32.mxu0 %v28427_v60 }
 0x495   : > { %23477 = vmatprep.mubr.f32.mxu1 %v31197_v0 }
 0x497   : > { %22854 = vmatmul.mubr.f32.gmra.mrb[30].mxu0 %v31198_v12 }
 0x498   : > { %23478 = vmatmul.mubr.f32.gmra.mrb[30].mxu1 %v31199_v14  ;;  %22858 = vmatprep.mubr.f32.mxu0 %v27974_v31  ;;  %v31201_v31 = vld [vmem:[#allocation45_spill] sm:$0xff] }
 0x499   : > { %23482 = vmatprep.mubr.f32.mxu1 %v27584_v23  ;;  %v31200_v23 = vld [vmem:[#allocation74_spill] sm:$0xff] }
 0x49b   : > { %22859 = vmatmul.mubr.f32.vlgmr.msra.gmra.mrb[16].mxu0 %v27983_v46  ;;  %v19562_v46 = vld [vmem:[%s25515_s11 + $0xd8] sm:$0xff] }
 0x49c   : > { %22883 = vmatpush3.msra.mxu0 %v28723_v13  ;;  %23483 = vmatmul.mubr.f32.vlgmr.msra.gmra.mrb[16].mxu1 %v27987_v1  ;;  %v31202_v1 = vld [vmem:[#allocation20_spill] sm:$0xff]  ;;  %v11996_v7 = vsel %vm259_vm0, %v19562_v46, 0 }
 0x49d   : > { %23507 = vmatpush3.msra.mxu1 %v28726_v10  ;;  %22861 = vmatprep.mubr.f32.mxu0 %v28020_v35  ;;  %v31209_v46 = vld [vmem:[#allocation72_spill] sm:$0xff] }
 0x49e   : > { %23485 = vmatprep.mubr.f32.mxu1 %v28027_v25  ;;  %22908 = vmatprep.subr.mxu0 %v12232_v33 }
 0x49f   : > { %22862 = vmatmul.mubr.f32.gmra.mrb[18].mxu0 %v28034_v21  ;;  %23532 = vmatprep.subr.mxu1 %v16925_v32 }
 0x4a0   : > { %23486 = vmatmul.mubr.f32.gmra.mrb[18].mxu1 %v31141_v42  ;;  %22864 = vmatprep.mubr.f32.mxu0 %v31142_v62 }
 0x4a1   : > { %23488 = vmatprep.mubr.f32.mxu1 %v31143_v29 }
 0x4a3   : > { %22865 = vmatmul.mubr.f32.gmra.mrb[20].mxu0 %v31144_v50 }
 0x4a4   : > { %23489 = vmatmul.mubr.f32.gmra.mrb[20].mxu1 %v28096_v39  ;;  %22867 = vmatprep.mubr.f32.mxu0 %v28106_v43 }
 0x4a5   : > { %23491 = vmatprep.mubr.f32.mxu1 %v28128_v54 }
 0x4a7   : > { %22868 = vmatmul.mubr.f32.gmra.mrb[22].mxu0 %v28144_v8 }
 0x4a8   : > { %23492 = vmatmul.mubr.f32.gmra.mrb[22].mxu1 %v28157_v17  ;;  %22870 = vmatprep.mubr.f32.mxu0 %v31145_v15 }
 0x4a9   : > { %23494 = vmatprep.mubr.f32.mxu1 %v31146_v53 }
 0x4ab   : > { %22871 = vmatmul.mubr.f32.gmra.mrb[24].mxu0 %v31147_v55 }
 0x4ac   : > { %23495 = vmatmul.mubr.f32.gmra.mrb[24].mxu1 %v28228_v30  ;;  %22873 = vmatprep.mubr.f32.mxu0 %v28284_v49 }
 0x4ad   : > { %23497 = vmatprep.mubr.f32.mxu1 %v28305_v19 }
 0x4af   : > { %22874 = vmatmul.mubr.f32.gmra.mrb[26].mxu0 %v28347_v5 }
 0x4b0   : > { %23498 = vmatmul.mubr.f32.gmra.mrb[26].mxu1 %v28357_v45  ;;  %22876 = vmatprep.mubr.f32.mxu0 %v28359_v20 }
 0x4b1   : > { %23500 = vmatprep.mubr.f32.mxu1 %v28391_v37 }
 0x4b3   : > { %22877 = vmatmul.mubr.f32.gmra.mrb[28].mxu0 %v28418_v41 }
 0x4b4   : > { %23501 = vmatmul.mubr.f32.gmra.mrb[28].mxu1 %v28420_v28  ;;  %22879 = vmatprep.mubr.f32.mxu0 %v28427_v60 }
 0x4b5   : > { %23503 = vmatprep.mubr.f32.mxu1 %v31197_v0 }
 0x4b7   : > { %22880 = vmatmul.mubr.f32.gmra.mrb[30].mxu0 %v31198_v12 }
 0x4b8   : > { %23504 = vmatmul.mubr.f32.gmra.mrb[30].mxu1 %v31199_v14  ;;  %22884 = vmatprep.mubr.f32.mxu0 %v31200_v23  ;;  %v19647_v23 = vld [vmem:[%s25515_s11 + $0xe1] sm:$0xff] }
 0x4b9   : > { %23508 = vmatprep.mubr.f32.mxu1 %v31201_v31  ;;  %v31206_v31 = vld [vmem:[#allocation68_spill] sm:$0xff]  ;;  %v16692_v48 = vsel %vm259_vm0, %v19647_v23, 0 }
 0x4bb   : > { %22885 = vmatmul.mubr.f32.vlgmr.msra.gmra.mrb[16].mxu0 %v31202_v1  ;;  %v31208_v1 = vld [vmem:[#allocation15_spill] sm:$0xff] }
 0x4bc   : > { %22909 = vmatpush3.msra.mxu0 %v12232_v33  ;;  %23509 = vmatmul.mubr.f32.vlgmr.msra.gmra.mrb[16].mxu1 %v31203_v16  ;;  %v31207_v33 = vld [vmem:[#allocation8_spill] sm:$0xff] }
 0x4bd   : > { %23533 = vmatpush3.msra.mxu1 %v16925_v32  ;;  %22887 = vmatprep.mubr.f32.mxu0 %v31204_v22  ;;  %v28828_v32 = vand.u32 4294901760, %v11996_v7  ;;  %v11999_v22 = vsel %vm259_vm0, %v19563_v2, 0  ;;  %v31211_v16 = vld [vmem:[#allocation24_spill] sm:$0xff]  ;;  %v31216_v2 = vld [vmem:[#allocation38_spill] sm:$0xff] }
 0x4be   : > { %23511 = vmatprep.mubr.f32.mxu1 %v31205_v27  ;;  %22934 = vmatprep.subr.mxu0 %v28752_v44  ;;  %v28832_v27 = vand.u32 4294901760, %v16689_v6  ;;  %v28836_v4 = vand.u32 4294901760, %v11999_v22 }
 0x4bf   : > { %22888 = vmatmul.mubr.f32.gmra.mrb[18].mxu0 %v31206_v31  ;;  %23558 = vmatprep.subr.mxu1 %v28756_v61  ;;  %v31212_v31 = vld [vmem:[#allocation78_spill] sm:$0xff] }
 0x4c0   : > { %23512 = vmatmul.mubr.f32.gmra.mrb[18].mxu1 %v31207_v33  ;;  %22890 = vmatprep.mubr.f32.mxu0 %v31208_v1  ;;  %31210 = vst [vmem:[#allocation66_spill] sm:$0xff] %v28832_v27  ;;  %v28841_v33 = vsub.f32 %v11996_v7, %v28828_v32  ;;  %v28843_v1 = vand.u32 4294901760, %v16692_v48  ;;  %v28851_v23 = vsub.f32 %v11999_v22, %v28836_v4  ;;  %v31225_v22 = vld [vmem:[#allocation93_spill] sm:$0xff] }
 0x4c1   : > { %23514 = vmatprep.mubr.f32.mxu1 %v31209_v46  ;;  %v28847_v46 = vsub.f32 %v16689_v6, %v28832_v27  ;;  %v31224_v6 = vld [vmem:[#allocation92_spill] sm:$0xff] }
 0x4c2   : > { %31214 = vst [vmem:[#allocation4_spill] sm:$0xff] %v28841_v33  ;;  %31215 = vst [vmem:[#allocation16_spill] sm:$0xff] %v28843_v1  ;;  %v28857_v7 = vsub.f32 %v16692_v48, %v28843_v1 }
 0x4c3   : > { %22891 = vmatmul.mubr.f32.gmra.mrb[20].mxu0 %v31211_v16  ;;  %31217 = vst [vmem:[#allocation5_spill] sm:$0xff] %v28847_v46  ;;  %v31219_v16 = vld [vmem:[#allocation67_spill] sm:$0xff] }
 0x4c4   : > { %23515 = vmatmul.mubr.f32.gmra.mrb[20].mxu1 %v31212_v31  ;;  %22893 = vmatprep.mubr.f32.mxu0 %v31213_v36  ;;  %v31220_v31 = vld [vmem:[#allocation84_spill] sm:$0xff]  ;;  %v30451_v36 = vand.u32 4294901760, %v28841_v33  ;;  %31221 = vst [vmem:[#allocation70_spill] sm:$0xff] %v28857_v7  ;;  %v28871_v48 = vand.u32 4294901760, %v28857_v7 }
 0x4c5   : > { %23517 = vmatprep.mubr.f32.mxu1 %v31216_v2  ;;  %v28861_v2 = vand.u32 4294901760, %v28847_v46 }
 0x4c6   : > { %31227 = vst [vmem:[#allocation13_spill] sm:$0xff] %v28871_v48 }
 0x4c7   : > { %22894 = vmatmul.mubr.f32.gmra.mrb[22].mxu0 %v31218_v63  ;;  %31223 = vst [vmem:[#allocation31_spill] sm:$0xff] %v28861_v2  ;;  %v12219_v63 = vand.u32 4294901760, %v28851_v23 }
 0x4c8   : > { %23518 = vmatmul.mubr.f32.gmra.mrb[22].mxu1 %v31219_v16  ;;  %22896 = vmatprep.mubr.f32.mxu0 %v31220_v31  ;;  %v12210_v16 = vsub.f32 %v28841_v33, %v30451_v36  ;;  %v31228_v31 = vld [vmem:[#allocation97_spill] sm:$0xff]  ;;  %v16913_v36 = vsub.f32 %v28857_v7, %v28871_v48 }
 0x4c9   : > { %23520 = vmatprep.mubr.f32.mxu1 %v31222_v3  ;;  %v16903_v3 = vsub.f32 %v28847_v46, %v28861_v2  ;;  %v31232_v33 = vld [vmem:[#allocation101_spill] sm:$0xff] }
 0x4ca   : > { %v12211_v56 = vand.u32 4294901760, %v12210_v16  ;;  %v28889_v46 = vand.u32 4294901760, %v16913_v36  ;;  %v31240_v36 = vld [vmem:[#allocation34_spill] sm:$0xff]  ;;  %v31243_v16 = vld [vmem:[#allocation36_spill] sm:$0xff] }
 0x4cb   : > { %22897 = vmatmul.mubr.f32.gmra.mrb[24].mxu0 %v31224_v6  ;;  %v12220_v6 = vsub.f32 %v28851_v23, %v12219_v63 }
 0x4cc   : > { %23521 = vmatmul.mubr.f32.gmra.mrb[24].mxu1 %v31225_v22  ;;  %22899 = vmatprep.mubr.f32.mxu0 %v31226_v59  ;;  %v31230_v22 = vld [vmem:[#allocation99_spill] sm:$0xff]  ;;  %v31231_v59 = vld [vmem:[#allocation100_spill] sm:$0xff] }
 0x4cd   : > { %23523 = vmatprep.mubr.f32.mxu1 %v31228_v31  ;;  %v28885_v31 = vand.u32 4294901760, %v16903_v3  ;;  %v12221_v2 = vand.u32 4294901760, %v12220_v6  ;;  %v31252_v3 = vld [vmem:[#allocation87_spill] sm:$0xff]  ;;  %v31253_v6 = vld [vmem:[#allocation89_spill] sm:$0xff] }
 0x4cf   : > { %22900 = vmatmul.mubr.f32.gmra.mrb[26].mxu0 %v31229_v34  ;;  %v31234_v34 = vld [vmem:[#allocation103_spill] sm:$0xff] }
 0x4d0   : > { %23524 = vmatmul.mubr.f32.gmra.mrb[26].mxu1 %v31230_v22  ;;  %22902 = vmatprep.mubr.f32.mxu0 %v31231_v59  ;;  %v31254_v22 = vld [vmem:[#allocation4_spill] sm:$0xff]  ;;  %v31255_v59 = vld [vmem:[#allocation5_spill] sm:$0xff] }
 0x4d1   : > { %23526 = vmatprep.mubr.f32.mxu1 %v31232_v33  ;;  %v31239_v33 = vld [vmem:[#allocation41_spill] sm:$0xff] }
 0x4d3   : > { %22903 = vmatmul.mubr.f32.gmra.mrb[28].mxu0 %v31233_v18  ;;  %v31236_v18 = vld [vmem:[#allocation26_spill] sm:$0xff] }
 0x4d4   : > { %23527 = vmatmul.mubr.f32.gmra.mrb[28].mxu1 %v31234_v34  ;;  %22905 = vmatprep.mubr.f32.mxu0 %v12211_v56  ;;  %v31235_v56 = vld [vmem:[#allocation10_spill] sm:$0xff]  ;;  %v31256_v34 = vld [vmem:[#allocation7_spill] sm:$0xff] }
 0x4d5   : > { %23529 = vmatprep.mubr.f32.mxu1 %v28885_v31 }
 0x4d7   : > { %22906 = vmatmul.mubr.f32.gmra.mrb[30].mxu0 %v12221_v2  ;;  %v31241_v2 = vld [vmem:[#allocation57_spill] sm:$0xff] }
 0x4d8   : > { %23530 = vmatmul.mubr.f32.gmra.mrb[30].mxu1 %v28889_v46  ;;  %22910 = vmatprep.mubr.f32.mxu0 %v28020_v35 }
 0x4d9   : > { %23534 = vmatprep.mubr.f32.mxu1 %v28027_v25 }
 0x4db   : > { %22911 = vmatmul.mubr.f32.vlgmr.msra.gmra.mrb[16].mxu0 %v28034_v21 }
 0x4dc   : > { %22935 = vmatpush3.msra.mxu0 %v28752_v44  ;;  %23535 = vmatmul.mubr.f32.vlgmr.msra.gmra.mrb[16].mxu1 %v31141_v42  ;;  %v31237_v44 = vld [vmem:[#allocation32_spill] sm:$0xff] }
 0x4dd   : > { %23559 = vmatpush3.msra.mxu1 %v28756_v61  ;;  %22913 = vmatprep.mubr.f32.mxu0 %v31142_v62  ;;  %v31238_v61 = vld [vmem:[#allocation37_spill] sm:$0xff] }
 0x4de   : > { %23537 = vmatprep.mubr.f32.mxu1 %v31143_v29  ;;  %22960 = vmatprep.subr.mxu0 %v28723_v13 }
 0x4df   : > { %22914 = vmatmul.mubr.f32.gmra.mrb[18].mxu0 %v31144_v50  ;;  %23584 = vmatprep.subr.mxu1 %v28726_v10 }
 0x4e0   : > { %23538 = vmatmul.mubr.f32.gmra.mrb[18].mxu1 %v28096_v39  ;;  %22916 = vmatprep.mubr.f32.mxu0 %v28106_v43 }
 0x4e1   : > { %23540 = vmatprep.mubr.f32.mxu1 %v28128_v54 }
 0x4e3   : > { %22917 = vmatmul.mubr.f32.gmra.mrb[20].mxu0 %v28144_v8 }
 0x4e4   : > { %23541 = vmatmul.mubr.f32.gmra.mrb[20].mxu1 %v28157_v17  ;;  %22919 = vmatprep.mubr.f32.mxu0 %v31145_v15 }
 0x4e5   : > { %23543 = vmatprep.mubr.f32.mxu1 %v31146_v53 }
 0x4e7   : > { %22920 = vmatmul.mubr.f32.gmra.mrb[22].mxu0 %v31147_v55 }
 0x4e8   : > { %23544 = vmatmul.mubr.f32.gmra.mrb[22].mxu1 %v28228_v30  ;;  %22922 = vmatprep.mubr.f32.mxu0 %v28284_v49 }
 0x4e9   : > { %23546 = vmatprep.mubr.f32.mxu1 %v28305_v19 }
 0x4eb   : > { %22923 = vmatmul.mubr.f32.gmra.mrb[24].mxu0 %v28347_v5 }
 0x4ec   : > { %23547 = vmatmul.mubr.f32.gmra.mrb[24].mxu1 %v28357_v45  ;;  %22925 = vmatprep.mubr.f32.mxu0 %v28359_v20 }
 0x4ed   : > { %23549 = vmatprep.mubr.f32.mxu1 %v28391_v37 }
 0x4ef   : > { %22926 = vmatmul.mubr.f32.gmra.mrb[26].mxu0 %v28418_v41 }
 0x4f0   : > { %23550 = vmatmul.mubr.f32.gmra.mrb[26].mxu1 %v28420_v28  ;;  %22928 = vmatprep.mubr.f32.mxu0 %v28427_v60 }
 0x4f1   : > { %23552 = vmatprep.mubr.f32.mxu1 %v31197_v0 }
 0x4f3   : > { %22929 = vmatmul.mubr.f32.gmra.mrb[28].mxu0 %v31198_v12 }
 0x4f4   : > { %23553 = vmatmul.mubr.f32.gmra.mrb[28].mxu1 %v31199_v14  ;;  %22931 = vmatprep.mubr.f32.mxu0 %v28828_v32 }
 0x4f5   : > { %23555 = vmatprep.mubr.f32.mxu1 %v28832_v27 }
 0x4f7   : > { %22932 = vmatmul.mubr.f32.gmra.mrb[30].mxu0 %v28836_v4 }
 0x4f8   : > { %23556 = vmatmul.mubr.f32.gmra.mrb[30].mxu1 %v28843_v1  ;;  %22936 = vmatprep.mubr.f32.mxu0 %v31235_v56  ;;  %v31257_v56 = vld [vmem:[#allocation40_spill] sm:$0xff] }
 0x4f9   : > { %23560 = vmatprep.mubr.f32.mxu1 %v31236_v18  ;;  %v31258_v18 = vld [vmem:[#allocation53_spill] sm:$0xff] }
 0x4fb   : > { %22937 = vmatmul.mubr.f32.vlgmr.msra.gmra.mrb[16].mxu0 %v31237_v44  ;;  %v31259_v44 = vld [vmem:[#allocation11_spill] sm:$0xff] }
 0x4fc   : > { %22961 = vmatpush3.msra.mxu0 %v28723_v13  ;;  %23561 = vmatmul.mubr.f32.vlgmr.msra.gmra.mrb[16].mxu1 %v31238_v61  ;;  %v31260_v61 = vld [vmem:[#allocation14_spill] sm:$0xff] }
 0x4fd   : > { %23585 = vmatpush3.msra.mxu1 %v28726_v10  ;;  %22939 = vmatprep.mubr.f32.mxu0 %v31239_v33  ;;  %v31261_v33 = vld [vmem:[#allocation30_spill] sm:$0xff] }
 0x4fe   : > { %23563 = vmatprep.mubr.f32.mxu1 %v31240_v36  ;;  %22986 = vmatprep.subr.mxu0 %v28762_v57  ;;  %v31262_v36 = vld [vmem:[#allocation58_spill] sm:$0xff] }
 0x4ff   : > { %22940 = vmatmul.mubr.f32.gmra.mrb[18].mxu0 %v31160_v38  ;;  %23610 = vmatprep.subr.mxu1 %v28766_v40  ;;  %v31242_v38 = vld [vmem:[#allocation55_spill] sm:$0xff] }
 0x500   : > { %23564 = vmatmul.mubr.f32.gmra.mrb[18].mxu1 %v31161_v26  ;;  %22942 = vmatprep.mubr.f32.mxu0 %v31162_v58  ;;  %v31244_v26 = vld [vmem:[#allocation75_spill] sm:$0xff]  ;;  %v31245_v58 = vld [vmem:[#allocation33_spill] sm:$0xff] }
 0x501   : > { %23566 = vmatprep.mubr.f32.mxu1 %v31163_v24  ;;  %v31246_v24 = vld [vmem:[#allocation61_spill] sm:$0xff] }
 0x503   : > { %22943 = vmatmul.mubr.f32.gmra.mrb[20].mxu0 %v31164_v51  ;;  %v31247_v51 = vld [vmem:[#allocation42_spill] sm:$0xff] }
 0x504   : > { %23567 = vmatmul.mubr.f32.gmra.mrb[20].mxu1 %v31165_v9  ;;  %22945 = vmatprep.mubr.f32.mxu0 %v31166_v11  ;;  %v31248_v9 = vld [vmem:[#allocation79_spill] sm:$0xff]  ;;  %v31249_v11 = vld [vmem:[#allocation12_spill] sm:$0xff] }
 0x505   : > { %23569 = vmatprep.mubr.f32.mxu1 %v31167_v47  ;;  %v31250_v47 = vld [vmem:[#allocation80_spill] sm:$0xff] }
 0x507   : > { %22946 = vmatmul.mubr.f32.gmra.mrb[22].mxu0 %v31168_v52  ;;  %v31251_v52 = vld [vmem:[#allocation83_spill] sm:$0xff] }
 0x508   : > { %23570 = vmatmul.mubr.f32.gmra.mrb[22].mxu1 %v31241_v2  ;;  %22948 = vmatprep.mubr.f32.mxu0 %v31242_v38  ;;  %v31263_v2 = vld [vmem:[#allocation28_spill] sm:$0xff]  ;;  %v31264_v38 = vld [vmem:[#allocation27_spill] sm:$0xff] }
 0x509   : > { %23572 = vmatprep.mubr.f32.mxu1 %v31243_v16  ;;  %v31265_v16 = vld [vmem:[#allocation76_spill] sm:$0xff] }
 0x50b   : > { %22949 = vmatmul.mubr.f32.gmra.mrb[24].mxu0 %v31244_v26  ;;  %v31267_v26 = vld [vmem:[#allocation19_spill] sm:$0xff] }
 0x50c   : > { %23573 = vmatmul.mubr.f32.gmra.mrb[24].mxu1 %v31245_v58  ;;  %22951 = vmatprep.mubr.f32.mxu0 %v31246_v24  ;;  %v31269_v58 = vld [vmem:[#allocation43_spill] sm:$0xff] }
 0x50d   : > { %23575 = vmatprep.mubr.f32.mxu1 %v31247_v51  ;;  %v31270_v24 = vld [vmem:[#allocation51_spill] sm:$0xff] }
 0x50e   : > { %v31271_v51 = vld [vmem:[#allocation35_spill] sm:$0xff] }
 0x50f   : > { %22952 = vmatmul.mubr.f32.gmra.mrb[26].mxu0 %v31248_v9  ;;  %v31272_v9 = vld [vmem:[#allocation69_spill] sm:$0xff] }
 0x510   : > { %23576 = vmatmul.mubr.f32.gmra.mrb[26].mxu1 %v31249_v11  ;;  %22954 = vmatprep.mubr.f32.mxu0 %v31250_v47  ;;  %v31273_v11 = vld [vmem:[#allocation73_spill] sm:$0xff]  ;;  %v31274_v47 = vld [vmem:[#allocation18_spill] sm:$0xff] }
 0x511   : > { %23578 = vmatprep.mubr.f32.mxu1 %v31251_v52  ;;  %v31275_v52 = vld [vmem:[#allocation77_spill] sm:$0xff] }
 0x513   : > { %22955 = vmatmul.mubr.f32.gmra.mrb[28].mxu0 %v31252_v3  ;;  %v31276_v3 = vld [vmem:[#allocation50_spill] sm:$0xff] }
 0x514   : > { %23579 = vmatmul.mubr.f32.gmra.mrb[28].mxu1 %v31253_v6  ;;  %22957 = vmatprep.mubr.f32.mxu0 %v31254_v22  ;;  %v31277_v6 = vld [vmem:[#allocation82_spill] sm:$0xff] }
 0x515   : > { %23581 = vmatprep.mubr.f32.mxu1 %v31255_v59 }
 0x517   : > { %22958 = vmatmul.mubr.f32.gmra.mrb[30].mxu0 %v28851_v23 }
 0x518   : > { %23582 = vmatmul.mubr.f32.gmra.mrb[30].mxu1 %v28857_v7  ;;  %22962 = vmatprep.mubr.f32.mxu0 %v31256_v34  ;;  %v31278_v34 = vld [vmem:[#allocation85_spill] sm:$0xff] }
 0x519   : > { %23586 = vmatprep.mubr.f32.mxu1 %v31257_v56  ;;  %v31279_v56 = vld [vmem:[#allocation86_spill] sm:$0xff] }
 0x51b   : > { %22963 = vmatmul.mubr.f32.vlgmr.msra.gmra.mrb[16].mxu0 %v31258_v18  ;;  %v31280_v18 = vld [vmem:[#allocation88_spill] sm:$0xff] }
 0x51c   : > { %22987 = vmatpush3.msra.mxu0 %v28762_v57  ;;  %23587 = vmatmul.mubr.f32.vlgmr.msra.gmra.mrb[16].mxu1 %v31259_v44  ;;  %v31266_v57 = vld [vmem:[#allocation65_spill] sm:$0xff]  ;;  %v31281_v44 = vld [vmem:[#allocation91_spill] sm:$0xff] }
 0x51d   : > { %23611 = vmatpush3.msra.mxu1 %v28766_v40  ;;  %22965 = vmatprep.mubr.f32.mxu0 %v31260_v61  ;;  %v31268_v40 = vld [vmem:[#allocation48_spill] sm:$0xff]  ;;  %v31282_v61 = vld [vmem:[#allocation95_spill] sm:$0xff] }
 0x51e   : > { %23589 = vmatprep.mubr.f32.mxu1 %v31261_v33  ;;  %23012 = vmatprep.subr.mxu0 %v28723_v13  ;;  %v31283_v33 = vld [vmem:[#allocation96_spill] sm:$0xff] }
 0x51f   : > { %22966 = vmatmul.mubr.f32.gmra.mrb[18].mxu0 %v31262_v36  ;;  %23636 = vmatprep.subr.mxu1 %v28726_v10  ;;  %v31284_v36 = vand.u32 4294901760, %v31254_v22 }
 0x520   : > { %23590 = vmatmul.mubr.f32.gmra.mrb[18].mxu1 %v31263_v2  ;;  %22968 = vmatprep.mubr.f32.mxu0 %v31264_v38  ;;  %v31285_v2 = vld [vmem:[#allocation31_spill] sm:$0xff]  ;;  %v19581_v38 = vld [vmem:[%s29973_s1 + $0x58] sm:$0xff] }
 0x521   : > { %23592 = vmatprep.mubr.f32.mxu1 %v31265_v16  ;;  %v19665_v16 = vld [vmem:[%s29973_s1 + $0x78] sm:$0xff]  ;;  %v29011_v22 = vand.u32 4294901760, %v19581_v38 }
 0x522   : > { %v29014_v23 = vand.u32 4294901760, %v19665_v16 }
 0x523   : > { %22969 = vmatmul.mubr.f32.gmra.mrb[20].mxu0 %v31266_v57 }
 0x524   : > { %23593 = vmatmul.mubr.f32.gmra.mrb[20].mxu1 %v31267_v26  ;;  %22971 = vmatprep.mubr.f32.mxu0 %v31268_v40  ;;  %v19565_v26 = vld [vmem:[%s25515_s11 + $0x31] sm:$0xff] }
 0x525   : > { %23595 = vmatprep.mubr.f32.mxu1 %v31269_v58  ;;  %v19649_v58 = vld [vmem:[%s25515_s11 + $0x32] sm:$0xff] }
 0x527   : > { %22972 = vmatmul.mubr.f32.gmra.mrb[22].mxu0 %v31270_v24 }
 0x528   : > { %23596 = vmatmul.mubr.f32.gmra.mrb[22].mxu1 %v31271_v51  ;;  %22974 = vmatprep.mubr.f32.mxu0 %v31272_v9  ;;  %v19566_v51 = vld [vmem:[%s25515_s11 + $0x39] sm:$0xff]  ;;  %v13127_v9 = vsel %vm259_vm0, %v19565_v26, 0 }
 0x529   : > { %23598 = vmatprep.mubr.f32.mxu1 %v31273_v11  ;;  %v17820_v11 = vsel %vm259_vm0, %v19649_v58, 0 }
 0x52b   : > { %22975 = vmatmul.mubr.f32.gmra.mrb[24].mxu0 %v31274_v47  ;;  %v19650_v47 = vld [vmem:[%s25515_s11 + $0x3a] sm:$0xff] }
 0x52c   : > { %23599 = vmatmul.mubr.f32.gmra.mrb[24].mxu1 %v31275_v52  ;;  %22977 = vmatprep.mubr.f32.mxu0 %v31276_v3  ;;  %v13130_v3 = vsel %vm259_vm0, %v19566_v51, 0  ;;  %v19654_v51 = vld [vmem:[%s25515_s11 + $0x6a] sm:$0xff] }
 0x52d   : > { %23601 = vmatprep.mubr.f32.mxu1 %v31277_v6  ;;  %v19567_v6 = vld [vmem:[%s25515_s11 + $0x49] sm:$0xff] }
 0x52f   : > { %22978 = vmatmul.mubr.f32.gmra.mrb[26].mxu0 %v31278_v34  ;;  %v29078_v34 = vand.u32 4294901760, %v13127_v9 }
 0x530   : > { %23602 = vmatmul.mubr.f32.gmra.mrb[26].mxu1 %v31279_v56  ;;  %22980 = vmatprep.mubr.f32.mxu0 %v31280_v18  ;;  %v19651_v18 = vld [vmem:[%s25515_s11 + $0x4a] sm:$0xff] }
 0x531   : > { %23604 = vmatprep.mubr.f32.mxu1 %v31281_v44  ;;  %v19568_v44 = vld [vmem:[%s25515_s11 + $0x51] sm:$0xff] }
 0x533   : > { %22981 = vmatmul.mubr.f32.gmra.mrb[28].mxu0 %v31282_v61  ;;  %v13133_v61 = vsel %vm259_vm0, %v19567_v6, 0 }
 0x534   : > { %23605 = vmatmul.mubr.f32.gmra.mrb[28].mxu1 %v31283_v33  ;;  %22983 = vmatprep.mubr.f32.mxu0 %v31284_v36  ;;  %v29099_v33 = vsub.f32 %v13127_v9, %v29078_v34  ;;  %v29113_v26 = vand.u32 4294901760, %v13133_v61 }
 0x535   : > { %23607 = vmatprep.mubr.f32.mxu1 %v31285_v2 }
 0x536   : > { %31288 = vst [vmem:[#allocation54_spill] sm:$0xff] %v29099_v33  ;;  %v30458_v6 = vand.u32 4294901760, %v29099_v33 }
 0x537   : > { %22984 = vmatmul.mubr.f32.gmra.mrb[30].mxu0 %v12219_v63 }
 0x538   : > { %23608 = vmatmul.mubr.f32.gmra.mrb[30].mxu1 %v28871_v48  ;;  %22988 = vmatprep.mubr.f32.mxu0 %v28020_v35  ;;  %v19656_v48 = vld [vmem:[%s25515_s11 + $0x82] sm:$0xff] }
 0x539   : > { %23612 = vmatprep.mubr.f32.mxu1 %v28027_v25 }
 0x53b   : > { %22989 = vmatmul.mubr.f32.vlgmr.msra.gmra.mrb[16].mxu0 %v28034_v21 }
 0x53c   : > { %23013 = vmatpush3.msra.mxu0 %v28723_v13  ;;  %23613 = vmatmul.mubr.f32.vlgmr.msra.gmra.mrb[16].mxu1 %v31141_v42  ;;  %v29044_v13 = vsub.f32 %v19665_v16, %v29014_v23  ;;  %v19569_v16 = vld [vmem:[%s25515_s11 + $0x61] sm:$0xff] }
 0x53d   : > { %23637 = vmatpush3.msra.mxu1 %v28726_v10  ;;  %22991 = vmatprep.mubr.f32.mxu0 %v31142_v62  ;;  %v29040_v10 = vsub.f32 %v19581_v38, %v29011_v22  ;;  %v13136_v38 = vsel %vm259_vm0, %v19568_v44, 0  ;;  %v29139_v44 = vsub.f32 %v13133_v61, %v29113_v26 }
 0x53e   : > { %23615 = vmatprep.mubr.f32.mxu1 %v31143_v29  ;;  %23038 = vmatprep.subr.mxu0 %v29011_v22  ;;  %v29054_v57 = vand.u32 4294901760, %v29044_v13 }
 0x53f   : > { %22992 = vmatmul.mubr.f32.gmra.mrb[18].mxu0 %v31144_v50  ;;  %23662 = vmatprep.subr.mxu1 %v29014_v23  ;;  %v29050_v63 = vand.u32 4294901760, %v29040_v10  ;;  %31292 = vst [vmem:[#allocation29_spill] sm:$0xff] %v29139_v44 }
 0x540   : > { %23616 = vmatmul.mubr.f32.gmra.mrb[18].mxu1 %v28096_v39  ;;  %22994 = vmatprep.mubr.f32.mxu0 %v28106_v43  ;;  %31287 = vst [vmem:[#allocation47_spill] sm:$0xff] %v29054_v57  ;;  %v18097_v24 = vsub.f32 %v29044_v13, %v29054_v57  ;;  %v17841_v57 = vsel %vm259_vm0, %v19656_v48, 0 }
 0x541   : > { %23618 = vmatprep.mubr.f32.mxu1 %v28128_v54  ;;  %31286 = vst [vmem:[#allocation44_spill] sm:$0xff] %v29050_v63  ;;  %v13404_v40 = vsub.f32 %v29040_v10, %v29050_v63  ;;  %v19574_v63 = vld [vmem:[%s25515_s11 + $0x99] sm:$0xff] }
 0x542   : > { %v29080_v56 = vand.u32 4294901760, %v18097_v24 }
 0x543   : > { %22995 = vmatmul.mubr.f32.gmra.mrb[20].mxu0 %v28144_v8  ;;  %v29073_v52 = vand.u32 4294901760, %v13404_v40  ;;  %v19570_v40 = vld [vmem:[%s25515_s11 + $0x69] sm:$0xff] }
 0x544   : > { %23619 = vmatmul.mubr.f32.gmra.mrb[20].mxu1 %v28157_v17  ;;  %22997 = vmatprep.mubr.f32.mxu0 %v31145_v15 }
 0x545   : > { %23621 = vmatprep.mubr.f32.mxu1 %v31146_v53 }
 0x547   : > { %22998 = vmatmul.mubr.f32.gmra.mrb[22].mxu0 %v31147_v55 }
 0x548   : > { %23622 = vmatmul.mubr.f32.gmra.mrb[22].mxu1 %v28228_v30  ;;  %23000 = vmatprep.mubr.f32.mxu0 %v28284_v49 }
 0x549   : > { %23624 = vmatprep.mubr.f32.mxu1 %v28305_v19 }
 0x54b   : > { %23001 = vmatmul.mubr.f32.gmra.mrb[24].mxu0 %v28347_v5 }
 0x54c   : > { %23625 = vmatmul.mubr.f32.gmra.mrb[24].mxu1 %v28357_v45  ;;  %23003 = vmatprep.mubr.f32.mxu0 %v28359_v20 }
 0x54d   : > { %23627 = vmatprep.mubr.f32.mxu1 %v28391_v37 }
 0x54f   : > { %23004 = vmatmul.mubr.f32.gmra.mrb[26].mxu0 %v28418_v41 }
 0x550   : > { %23628 = vmatmul.mubr.f32.gmra.mrb[26].mxu1 %v28420_v28  ;;  %23006 = vmatprep.mubr.f32.mxu0 %v28427_v60 }
 0x551   : > { %23630 = vmatprep.mubr.f32.mxu1 %v31197_v0 }
 0x553   : > { %23007 = vmatmul.mubr.f32.gmra.mrb[28].mxu0 %v31198_v12 }
 0x554   : > { %23631 = vmatmul.mubr.f32.gmra.mrb[28].mxu1 %v31199_v14  ;;  %23009 = vmatprep.mubr.f32.mxu0 %v28828_v32 }
 0x555   : > { %23633 = vmatprep.mubr.f32.mxu1 %v28832_v27 }
 0x557   : > { %23010 = vmatmul.mubr.f32.gmra.mrb[30].mxu0 %v28836_v4 }
 0x558   : > { %23634 = vmatmul.mubr.f32.gmra.mrb[30].mxu1 %v28843_v1  ;;  %23014 = vmatprep.mubr.f32.mxu0 %v28020_v35  ;;  %v29084_v35 = vand.u32 4294901760, %v17820_v11 }
 0x559   : > { %23638 = vmatprep.mubr.f32.mxu1 %v28027_v25  ;;  %v17823_v25 = vsel %vm259_vm0, %v19650_v47, 0  ;;  %v29124_v47 = vand.u32 4294901760, %v13136_v38 }
 0x55a   : > { %v29102_v36 = vand.u32 4294901760, %v17823_v25 }
 0x55b   : > { %23015 = vmatmul.mubr.f32.vlgmr.msra.gmra.mrb[16].mxu0 %v28034_v21  ;;  %v29091_v21 = vand.u32 4294901760, %v13130_v3  ;;  %v29155_v61 = vsub.f32 %v13136_v38, %v29124_v47 }
 0x55c   : > { %23039 = vmatpush3.msra.mxu0 %v29011_v22  ;;  %23639 = vmatmul.mubr.f32.vlgmr.msra.gmra.mrb[16].mxu1 %v31141_v42  ;;  %v19652_v42 = vld [vmem:[%s25515_s11 + $0x52] sm:$0xff] }
 0x55d   : > { %23663 = vmatpush3.msra.mxu1 %v29014_v23  ;;  %23017 = vmatprep.mubr.f32.mxu0 %v31142_v62  ;;  %v17826_v62 = vsel %vm259_vm0, %v19651_v18, 0  ;;  %v29118_v58 = vsub.f32 %v13130_v3, %v29091_v21  ;;  %v17829_v24 = vsel %vm259_vm0, %v19652_v42, 0  ;;  %v13142_v3 = vsel %vm259_vm0, %v19570_v40, 0  ;;  %31294 = vst [vmem:[#allocation49_spill] sm:$0xff] %v29155_v61 }
 0x55e   : > { %23641 = vmatprep.mubr.f32.mxu1 %v31143_v29  ;;  %23064 = vmatprep.subr.mxu0 %v29073_v52  ;;  %v19653_v29 = vld [vmem:[%s25515_s11 + $0x62] sm:$0xff]  ;;  %v29122_v9 = vand.u32 4294901760, %v17826_v62  ;;  %v29141_v42 = vand.u32 4294901760, %v17829_v24  ;;  %v29157_v40 = vand.u32 4294901760, %v13142_v3 }
 0x55f   : > { %23018 = vmatmul.mubr.f32.gmra.mrb[18].mxu0 %v31144_v50  ;;  %23688 = vmatprep.subr.mxu1 %v29080_v56  ;;  %v29111_v50 = vsub.f32 %v17820_v11, %v29084_v35  ;;  %31290 = vst [vmem:[#allocation23_spill] sm:$0xff] %v29118_v58  ;;  %v19571_v11 = vld [vmem:[%s25515_s11 + $0x79] sm:$0xff] }
 0x560   : > { %23642 = vmatmul.mubr.f32.gmra.mrb[18].mxu1 %v28096_v39  ;;  %23020 = vmatprep.mubr.f32.mxu0 %v28106_v43  ;;  %v13139_v43 = vsel %vm259_vm0, %v19569_v16, 0  ;;  %v17832_v39 = vsel %vm259_vm0, %v19653_v29, 0  ;;  %v29173_v38 = vsub.f32 %v17829_v24, %v29141_v42 }
 0x561   : > { %31289 = vst [vmem:[#allocation62_spill] sm:$0xff] %v29111_v50  ;;  %23644 = vmatprep.mubr.f32.mxu1 %v28128_v54  ;;  %v29132_v54 = vsub.f32 %v17823_v25, %v29102_v36  ;;  %v30460_v18 = vand.u32 4294901760, %v29111_v50  ;;  %v29146_v16 = vand.u32 4294901760, %v13139_v43  ;;  %v29148_v29 = vand.u32 4294901760, %v17832_v39 }
 0x562   : > { %31295 = vst [vmem:[#allocation63_spill] sm:$0xff] %v29173_v38 }
 0x563   : > { %23021 = vmatmul.mubr.f32.gmra.mrb[20].mxu0 %v28144_v8  ;;  %31291 = vst [vmem:[#allocation39_spill] sm:$0xff] %v29132_v54  ;;  %v17835_v8 = vsel %vm259_vm0, %v19654_v51, 0  ;;  %v31296_v51 = vand.u32 4294901760, %v29118_v58  ;;  %v29192_v24 = vsub.f32 %v17832_v39, %v29148_v29 }
 0x564   : > { %23645 = vmatmul.mubr.f32.gmra.mrb[20].mxu1 %v28157_v17  ;;  %23023 = vmatprep.mubr.f32.mxu0 %v31145_v15  ;;  %v13145_v17 = vsel %vm259_vm0, %v19571_v11, 0  ;;  %v29152_v15 = vsub.f32 %v17826_v62, %v29122_v9  ;;  %v29166_v25 = vand.u32 4294901760, %v17835_v8  ;;  %v19655_v11 = vld [vmem:[%s25515_s11 + $0x7a] sm:$0xff] }
 0x565   : > { %23647 = vmatprep.mubr.f32.mxu1 %v31146_v53  ;;  %v29163_v53 = vsub.f32 %v29099_v33, %v30458_v6  ;;  %v29181_v6 = vsub.f32 %v29111_v50, %v30460_v18  ;;  %31298 = vst [vmem:[#allocation25_spill] sm:$0xff] %v29192_v24  ;;  %v19572_v62 = vld [vmem:[%s25515_s11 + $0x81] sm:$0xff]  ;;  %v29198_v18 = vsub.f32 %v13142_v3, %v29157_v40  ;;  %v17838_v2 = vsel %vm259_vm0, %v19655_v11, 0 }
 0x566   : > { %31293 = vst [vmem:[#allocation71_spill] sm:$0xff] %v29152_v15  ;;  %v29209_v7 = vsub.f32 %v17835_v8, %v29166_v25  ;;  %v31302_v3 = vand.u32 4294901760, %v29139_v44  ;;  %v19573_v8 = vld [vmem:[%s25515_s11 + $0x91] sm:$0xff]  ;;  %v29229_v59 = vand.u32 4294901760, %v17838_v2 }
 0x567   : > { %23024 = vmatmul.mubr.f32.gmra.mrb[22].mxu0 %v31147_v55  ;;  %v29175_v55 = vand.u32 4294901760, %v13145_v17  ;;  %31299 = vst [vmem:[#allocation59_spill] sm:$0xff] %v29198_v18  ;;  %v31319_v50 = vand.u32 4294901760, %v29181_v6 }
 0x568   : > { %23648 = vmatmul.mubr.f32.gmra.mrb[22].mxu1 %v28228_v30  ;;  %23026 = vmatprep.mubr.f32.mxu0 %v28284_v49  ;;  %v29186_v30 = vsub.f32 %v29118_v58, %v31296_v51  ;;  %v29189_v49 = vsub.f32 %v13139_v43, %v29146_v16  ;;  %v31300_v51 = vand.u32 4294901760, %v29132_v54  ;;  %31301 = vst [vmem:[#allocation60_spill] sm:$0xff] %v29209_v7  ;;  %v19661_v58 = vld [vmem:[%s25515_s11 + $0xc2] sm:$0xff] }
 0x569   : > { %23650 = vmatprep.mubr.f32.mxu1 %v28305_v19  ;;  %v29216_v11 = vsub.f32 %v29139_v44, %v31302_v3  ;;  %v29220_v43 = vsub.f32 %v13145_v17, %v29175_v55  ;;  %v19576_v44 = vld [vmem:[%s25515_s11 + $0xb1] sm:$0xff] }
 0x56a   : > { %31297 = vst [vmem:[#allocation3_spill] sm:$0xff] %v29189_v49  ;;  %v29206_v39 = vsub.f32 %v29132_v54, %v31300_v51  ;;  %v13148_v51 = vsel %vm259_vm0, %v19572_v62, 0  ;;  %v31305_v62 = vand.u32 4294901760, %v29155_v61  ;;  %v31307_v48 = vand.u32 4294901760, %v29189_v49  ;;  %v19660_v54 = vld [vmem:[%s25515_s11 + $0xb2] sm:$0xff] }
 0x56b   : > { %23027 = vmatmul.mubr.f32.gmra.mrb[24].mxu0 %v28347_v5  ;;  %31303 = vst [vmem:[#allocation9_spill] sm:$0xff] %v29220_v43  ;;  %v31304_v5 = vand.u32 4294901760, %v29152_v15  ;;  %v29246_v3 = vand.u32 4294901760, %v13148_v51 }
 0x56c   : > { %23651 = vmatmul.mubr.f32.gmra.mrb[24].mxu1 %v28357_v45  ;;  %23029 = vmatprep.mubr.f32.mxu0 %v28359_v20  ;;  %v19657_v20 = vld [vmem:[%s25515_s11 + $0x92] sm:$0xff]  ;;  %v29273_v45 = vsub.f32 %v17838_v2, %v29229_v59  ;;  %v31311_v2 = vand.u32 4294901760, %v29209_v7 }
 0x56d   : > { %23653 = vmatprep.mubr.f32.mxu1 %v28391_v37  ;;  %v29235_v17 = vsub.f32 %v29152_v15, %v31304_v5  ;;  %v29240_v37 = vsub.f32 %v29155_v61, %v31305_v62  ;;  %v13151_v5 = vsel %vm259_vm0, %v19573_v8, 0  ;;  %v19658_v62 = vld [vmem:[%s25515_s11 + $0x9a] sm:$0xff]  ;;  %v19575_v61 = vld [vmem:[%s25515_s11 + $0xa9] sm:$0xff]  ;;  %v29280_v15 = vand.u32 4294901760, %v17841_v57 }
 0x56e   : > { %31309 = vst [vmem:[#allocation6_spill] sm:$0xff] %v29273_v45  ;;  %v31320_v33 = vand.u32 4294901760, %v29273_v45 }
 0x56f   : > { %23030 = vmatmul.mubr.f32.gmra.mrb[26].mxu0 %v28418_v41  ;;  %v31306_v41 = vand.u32 4294901760, %v29173_v38 }
 0x570   : > { %23654 = vmatmul.mubr.f32.gmra.mrb[26].mxu1 %v28420_v28  ;;  %23032 = vmatprep.mubr.f32.mxu0 %v28427_v60  ;;  %v29265_v28 = vsub.f32 %v29189_v49, %v31307_v48  ;;  %v31308_v60 = vand.u32 4294901760, %v29192_v24  ;;  %v29282_v48 = vand.u32 4294901760, %v13151_v5  ;;  %v19659_v49 = vld [vmem:[%s25515_s11 + $0xaa] sm:$0xff] }
 0x571   : > { %v29257_v19 = vsub.f32 %v29173_v38, %v31306_v41  ;;  %23656 = vmatprep.mubr.f32.mxu1 %v31197_v0  ;;  %v17844_v41 = vsel %vm259_vm0, %v19657_v20, 0  ;;  %v29293_v20 = vsub.f32 %v29209_v7, %v31311_v2  ;;  %v29296_v0 = vsub.f32 %v13148_v51, %v29246_v3 }
 0x572   : > { %v29270_v8 = vsub.f32 %v29192_v24, %v31308_v60  ;;  %v31310_v60 = vand.u32 4294901760, %v29198_v18  ;;  %v13154_v38 = vsel %vm259_vm0, %v19574_v63, 0  ;;  %v17847_v2 = vsel %vm259_vm0, %v19658_v62, 0  ;;  %v19577_v63 = vld [vmem:[%s25515_s11 + $0xc1] sm:$0xff] }
 0x573   : > { %23033 = vmatmul.mubr.f32.gmra.mrb[28].mxu0 %v31198_v12  ;;  %31312 = vst [vmem:[#allocation52_spill] sm:$0xff] %v29296_v0  ;;  %v31313_v12 = vand.u32 4294901760, %v29220_v43  ;;  %v13157_v51 = vsel %vm259_vm0, %v19575_v61, 0  ;;  %v29323_v62 = vand.u32 4294901760, %v13154_v38  ;;  %v17850_v61 = vsel %vm259_vm0, %v19659_v49, 0  ;;  %v19578_v49 = vld [vmem:[%s25515_s11 + $0xc9] sm:$0xff] }
 0x574   : > { %v29288_v24 = vsub.f32 %v29198_v18, %v31310_v60  ;;  %23657 = vmatmul.mubr.f32.gmra.mrb[28].mxu1 %v31199_v14  ;;  %23035 = vmatprep.mubr.f32.mxu0 %v28828_v32  ;;  %v29307_v18 = vand.u32 4294901760, %v17844_v41  ;;  %v29331_v7 = vand.u32 4294901760, %v17847_v2  ;;  %v13160_v32 = vsel %vm259_vm0, %v19576_v44, 0 }
 0x575   : > { %v29305_v60 = vsub.f32 %v29220_v43, %v31313_v12  ;;  %23659 = vmatprep.mubr.f32.mxu1 %v28832_v27  ;;  %v29318_v12 = vsub.f32 %v17841_v57, %v29280_v15  ;;  %v29321_v43 = vsub.f32 %v13151_v5, %v29282_v48  ;;  %v29333_v57 = vand.u32 4294901760, %v13157_v51  ;;  %v19662_v27 = vld [vmem:[%s25515_s11 + $0xca] sm:$0xff] }
 0x576   : > { %v31317_v5 = vand.u32 4294901760, %v29163_v53  ;;  %v29342_v14 = vsub.f32 %v17844_v41, %v29307_v18  ;;  %v29352_v53 = vand.u32 4294901760, %v17850_v61  ;;  %v29360_v6 = vsub.f32 %v13154_v38, %v29323_v62  ;;  %v19663_v38 = vld [vmem:[%s25515_s11 + $0xda] sm:$0xff] }
 0x577   : > { %31314 = vst [vmem:[#allocation21_spill] sm:$0xff] %v29318_v12  ;;  %31315 = vst [vmem:[#allocation81_spill] sm:$0xff] %v29321_v43  ;;  %23036 = vmatmul.mubr.f32.gmra.mrb[30].mxu0 %v28836_v4  ;;  %v13163_v4 = vsel %vm259_vm0, %v19577_v63, 0  ;;  %v29370_v63 = vsub.f32 %v17847_v2, %v29331_v7  ;;  %v29373_v41 = vsub.f32 %v13157_v51, %v29333_v57  ;;  %v29375_v44 = vand.u32 4294901760, %v13160_v32 }
 0x578   : > { %31316 = vst [vmem:[#allocation74_spill] sm:$0xff] %v29333_v57  ;;  %23660 = vmatmul.mubr.f32.gmra.mrb[30].mxu1 %v28843_v1  ;;  %23040 = vmatprep.mubr.f32.mxu0 %v31317_v5  ;;  %31318 = vst [vmem:[#allocation45_spill] sm:$0xff] %v29342_v14  ;;  %v29350_v1 = vsub.f32 %v29273_v45, %v31320_v33  ;;  %v17853_v5 = vsel %vm259_vm0, %v19660_v54, 0  ;;  %v31321_v33 = vand.u32 4294901760, %v29186_v30  ;;  %v31322_v45 = vand.u32 4294901760, %v29296_v0 }
 0x579   : > { %23664 = vmatprep.mubr.f32.mxu1 %v31319_v50  ;;  %v17856_v50 = vsel %vm259_vm0, %v19661_v58, 0  ;;  %v31323_v58 = vand.u32 4294901760, %v29206_v39  ;;  %v13166_v2 = vsel %vm259_vm0, %v19578_v49, 0  ;;  %v31325_v51 = vand.u32 4294901760, %v29216_v11 }
 0x57a   : > { %v13313_v54 = vsub.f32 %v29296_v0, %v31322_v45  ;;  %v29384_v45 = vand.u32 4294901760, %v13163_v4  ;;  %v17997_v0 = vand.u32 4294901760, %v29350_v1  ;;  %v29394_v39 = vand.u32 4294901760, %v17856_v50 }
 0x57b   : > { %23041 = vmatmul.mubr.f32.vlgmr.msra.gmra.mrb[16].mxu0 %v31321_v33  ;;  %v29382_v33 = vand.u32 4294901760, %v17853_v5  ;;  %v31327_v30 = vand.u32 4294901760, %v29235_v17  ;;  %v31328_v57 = vand.u32 4294901760, %v29318_v12  ;;  %v31336_v1 = vand.u32 4294901760, %v29270_v8 }
 0x57c   : > { %23065 = vmatpush3.msra.mxu0 %v29073_v52  ;;  %23665 = vmatmul.mubr.f32.vlgmr.msra.gmra.mrb[16].mxu1 %v31323_v58  ;;  %31324 = vst [vmem:[#allocation20_spill] sm:$0xff] %v29384_v45  ;;  %v29392_v52 = vsub.f32 %v17850_v61, %v29352_v53  ;;  %31326 = vst [vmem:[#allocation46_spill] sm:$0xff] %v29394_v39  ;;  %v17859_v58 = vsel %vm259_vm0, %v19662_v27, 0  ;;  %v17862_v61 = vsel %vm259_vm0, %v19663_v38, 0  ;;  %v31330_v27 = vand.u32 4294901760, %v29240_v37 }
 0x57d   : > { %23689 = vmatpush3.msra.mxu1 %v29080_v56  ;;  %23043 = vmatprep.mubr.f32.mxu0 %v31325_v51  ;;  %v18006_v49 = vsub.f32 %v29318_v12, %v31328_v57  ;;  %v31329_v56 = vand.u32 4294901760, %v29321_v43  ;;  %v19664_v51 = vld [vmem:[%s25515_s11 + $0xe2] sm:$0xff]  ;;  %v29414_v57 = vsub.f32 %v13160_v32, %v29375_v44  ;;  %v29416_v12 = vand.u32 4294901760, %v13166_v2 }
 0x57e   : > { %23667 = vmatprep.mubr.f32.mxu1 %v31327_v30  ;;  %23090 = vmatprep.subr.mxu0 %v29040_v10  ;;  %v31333_v38 = vand.u32 4294901760, %v29265_v28  ;;  %v31334_v37 = vand.u32 4294901760, %v29342_v14  ;;  %v29427_v17 = vsub.f32 %v17853_v5, %v29382_v33  ;;  %v29430_v32 = vsub.f32 %v13163_v4, %v29384_v45 }
 0x57f   : > { %v13323_v11 = vsub.f32 %v29321_v43, %v31329_v56  ;;  %23044 = vmatmul.mubr.f32.gmra.mrb[18].mxu0 %v31330_v27  ;;  %31331 = vst [vmem:[#allocation17_spill] sm:$0xff] %v29416_v12  ;;  %23714 = vmatprep.subr.mxu1 %v29044_v13  ;;  %v31332_v56 = vand.u32 4294901760, %v29257_v19  ;;  %v29432_v30 = vand.u32 4294901760, %v17859_v58  ;;  %v29438_v28 = vsub.f32 %v17856_v50, %v29394_v39 }
 0x580   : > { %23046 = vmatprep.mubr.f32.mxu0 %v31333_v38  ;;  %v18016_v27 = vsub.f32 %v29342_v14, %v31334_v37  ;;  %v17865_v38 = vsel %vm259_vm0, %v19664_v51, 0  ;;  %v13314_v37 = vand.u32 4294901760, %v13313_v54  ;;  %v18007_v5 = vand.u32 4294901760, %v18006_v49 }
 0x581   : > { %23668 = vmatmul.mubr.f32.gmra.mrb[18].mxu1 %v31332_v56  ;;  %31335 = vst [vmem:[#allocation22_spill] sm:$0xff] %v29432_v30  ;;  %v29440_v56 = vand.u32 4294901760, %v17862_v61  ;;  %v13324_v14 = vand.u32 4294901760, %v13323_v11  ;;  %v31338_v4 = vand.u32 4294901760, %v29360_v6  ;;  %v31339_v45 = vand.u32 4294901760, %v29288_v24 }
 0x582   : > { %23670 = vmatprep.mubr.f32.mxu1 %v31336_v1  ;;  %v31340_v8 = vand.u32 4294901760, %v29370_v63  ;;  %v31341_v50 = vand.u32 4294901760, %v29373_v41  ;;  %v29456_v54 = vsub.f32 %v13166_v2, %v29416_v12  ;;  %v31342_v49 = vand.u32 4294901760, %v29293_v20 }
 0x583   : > { %31337 = vst [vmem:[#allocation68_spill] sm:$0xff] %v29440_v56  ;;  %v13333_v43 = vsub.f32 %v29360_v6, %v31338_v4  ;;  %23047 = vmatmul.mubr.f32.gmra.mrb[20].mxu0 %v31339_v45  ;;  %v31343_v11 = vand.u32 4294901760, %v29305_v60  ;;  %v29465_v4 = vsub.f32 %v17859_v58, %v29432_v30  ;;  %v31345_v2 = vand.u32 4294901760, %v29392_v52 }
 0x584   : > { %v18026_v1 = vsub.f32 %v29370_v63, %v31340_v8  ;;  %v13343_v19 = vsub.f32 %v29373_v41, %v31341_v50  ;;  %v29467_v8 = vand.u32 4294901760, %v17865_v38  ;;  %v18017_v50 = vand.u32 4294901760, %v18016_v27 }
 0x585   : > { %23671 = vmatmul.mubr.f32.gmra.mrb[20].mxu1 %v31342_v49  ;;  %23049 = vmatprep.mubr.f32.mxu0 %v31343_v11  ;;  %v18036_v51 = vsub.f32 %v29392_v52, %v31345_v2  ;;  %v29474_v60 = vsub.f32 %v17862_v61, %v29440_v56  ;;  %v13334_v49 = vand.u32 4294901760, %v13333_v43  ;;  %v31346_v58 = vand.u32 4294901760, %v29414_v57 }
 0x586   : > { %31344 = vst [vmem:[#allocation8_spill] sm:$0xff] %v29467_v8  ;;  %23673 = vmatprep.mubr.f32.mxu1 %v17997_v0  ;;  %v18027_v11 = vand.u32 4294901760, %v18026_v1  ;;  %v13344_v45 = vand.u32 4294901760, %v13343_v19  ;;  %v30512_v0 = vand.u32 4294901760, %v29456_v54  ;;  %v31347_v27 = vand.u32 4294901760, %v29427_v17 }
 0x587   : > { %23050 = vmatmul.mubr.f32.gmra.mrb[22].mxu0 %v13314_v37  ;;  %v13353_v24 = vsub.f32 %v29414_v57, %v31346_v58  ;;  %v31348_v20 = vand.u32 4294901760, %v29430_v32  ;;  %v29488_v19 = vsub.f32 %v17865_v38, %v29467_v8  ;;  %v18037_v37 = vand.u32 4294901760, %v18036_v51 }
 0x588   : > { %23052 = vmatprep.mubr.f32.mxu0 %v13324_v14  ;;  %v18046_v2 = vsub.f32 %v29427_v17, %v31347_v27  ;;  %v31349_v1 = vand.u32 4294901760, %v29438_v28  ;;  %v30511_v14 = vand.u32 4294901760, %v29474_v60  ;;  %v13373_v27 = vsub.f32 %v29456_v54, %v30512_v0  ;;  %v31372_v0 = vld [vmem:[#allocation21_spill] sm:$0xff] }
 0x589   : > { %23674 = vmatmul.mubr.f32.gmra.mrb[22].mxu1 %v18007_v5  ;;  %v13363_v61 = vsub.f32 %v29430_v32, %v31348_v20  ;;  %v13354_v58 = vand.u32 4294901760, %v13353_v24  ;;  %v31350_v38 = vand.u32 4294901760, %v29465_v4 }
 0x58a   : > { %23676 = vmatprep.mubr.f32.mxu1 %v18017_v50  ;;  %v18056_v5 = vsub.f32 %v29438_v28, %v31349_v1  ;;  %v18047_v20 = vand.u32 4294901760, %v18046_v2  ;;  %v30510_v50 = vand.u32 4294901760, %v29488_v19  ;;  %v18076_v24 = vsub.f32 %v29474_v60, %v30511_v14  ;;  %v31371_v14 = vld [vmem:[#allocation52_spill] sm:$0xff] }
 0x58b   : > { %23053 = vmatmul.mubr.f32.gmra.mrb[24].mxu0 %v13334_v49  ;;  %v13364_v43 = vand.u32 4294901760, %v13363_v61  ;;  %v18066_v51 = vsub.f32 %v29465_v4, %v31350_v38  ;;  %v13374_v49 = vand.u32 4294901760, %v13373_v27  ;;  %v31359_v27 = vld [vmem:[#allocation29_spill] sm:$0xff]  ;;  %v31361_v38 = vld [vmem:[#allocation44_spill] sm:$0xff] }
 0x58c   : > { %23055 = vmatprep.mubr.f32.mxu0 %v13344_v45  ;;  %v18057_v1 = vand.u32 4294901760, %v18056_v5  ;;  %v18086_v45 = vsub.f32 %v29488_v19, %v30510_v50  ;;  %v18077_v2 = vand.u32 4294901760, %v18076_v24  ;;  %v31357_v5 = vld [vmem:[#allocation23_spill] sm:$0xff]  ;;  %v31370_v50 = vld [vmem:[#allocation6_spill] sm:$0xff] }
 0x58d   : > { %23677 = vmatmul.mubr.f32.gmra.mrb[24].mxu1 %v18027_v11  ;;  %v18067_v11 = vand.u32 4294901760, %v18066_v51  ;;  %v31362_v51 = vld [vmem:[#allocation49_spill] sm:$0xff]  ;;  %v31364_v24 = vld [vmem:[#allocation63_spill] sm:$0xff] }
 0x58e   : > { %23679 = vmatprep.mubr.f32.mxu1 %v18037_v37  ;;  %v18087_v61 = vand.u32 4294901760, %v18086_v45  ;;  %v31356_v37 = vld [vmem:[#allocation62_spill] sm:$0xff]  ;;  %v31367_v45 = vld [vmem:[#allocation59_spill] sm:$0xff] }
 0x58f   : > { %23056 = vmatmul.mubr.f32.gmra.mrb[26].mxu0 %v13354_v58  ;;  %v31358_v58 = vld [vmem:[#allocation39_spill] sm:$0xff] }
 0x590   : > { %23058 = vmatprep.mubr.f32.mxu0 %v13364_v43  ;;  %v31355_v43 = vld [vmem:[#allocation54_spill] sm:$0xff] }
 0x591   : > { %23680 = vmatmul.mubr.f32.gmra.mrb[26].mxu1 %v18047_v20  ;;  %v31360_v20 = vld [vmem:[#allocation71_spill] sm:$0xff] }
 0x592   : > { %23682 = vmatprep.mubr.f32.mxu1 %v18057_v1  ;;  %v31363_v1 = vld [vmem:[#allocation47_spill] sm:$0xff] }
 0x593   : > { %23059 = vmatmul.mubr.f32.gmra.mrb[28].mxu0 %v13374_v49  ;;  %v31365_v49 = vld [vmem:[#allocation3_spill] sm:$0xff] }
 0x594   : > { %23061 = vmatprep.mubr.f32.mxu0 %v28885_v31  ;;  %v31352_v31 = vld [vmem:[#allocation20_spill] sm:$0xff] }
 0x595   : > { %23683 = vmatmul.mubr.f32.gmra.mrb[28].mxu1 %v18067_v11  ;;  %v31366_v11 = vld [vmem:[#allocation25_spill] sm:$0xff] }
 0x596   : > { %23685 = vmatprep.mubr.f32.mxu1 %v18077_v2  ;;  %v31368_v2 = vld [vmem:[#allocation60_spill] sm:$0xff] }
 0x597   : > { %23062 = vmatmul.mubr.f32.gmra.mrb[30].mxu0 %v28889_v46  ;;  %v31351_v46 = vld [vmem:[#allocation74_spill] sm:$0xff] }
 0x598   : > { %23066 = vmatprep.mubr.f32.mxu0 %v29078_v34 }
 0x599   : > { %23686 = vmatmul.mubr.f32.gmra.mrb[30].mxu1 %v18087_v61  ;;  %v31369_v61 = vld [vmem:[#allocation9_spill] sm:$0xff] }
 0x59a   : > { %23690 = vmatprep.mubr.f32.mxu1 %v29084_v35 }
 0x59b   : > { %23067 = vmatmul.mubr.f32.vlgmr.msra.gmra.mrb[16].mxu0 %v29091_v21 }
 0x59c   : > { %23091 = vmatpush3.msra.mxu0 %v29040_v10  ;;  %23069 = vmatprep.mubr.f32.mxu0 %v29113_v26  ;;  %v31353_v10 = vld [vmem:[#allocation66_spill] sm:$0xff] }
 0x59d   : > { %23691 = vmatmul.mubr.f32.vlgmr.msra.gmra.mrb[16].mxu1 %v29102_v36  ;;  %23116 = vmatprep.subr.mxu0 %v29011_v22 }
 0x59e   : > { %23715 = vmatpush3.msra.mxu1 %v29044_v13  ;;  %23693 = vmatprep.mubr.f32.mxu1 %v29122_v9  ;;  %v31354_v13 = vld [vmem:[#allocation16_spill] sm:$0xff] }
 0x59f   : > { %23070 = vmatmul.mubr.f32.gmra.mrb[18].mxu0 %v29124_v47  ;;  %23740 = vmatprep.subr.mxu1 %v29014_v23 }
 0x5a0   : > { %23072 = vmatprep.mubr.f32.mxu0 %v29146_v16 }
 0x5a1   : > { %23694 = vmatmul.mubr.f32.gmra.mrb[18].mxu1 %v29141_v42 }
 0x5a2   : > { %23696 = vmatprep.mubr.f32.mxu1 %v29148_v29 }
 0x5a3   : > { %23073 = vmatmul.mubr.f32.gmra.mrb[20].mxu0 %v29157_v40 }
 0x5a4   : > { %23075 = vmatprep.mubr.f32.mxu0 %v29175_v55 }
 0x5a5   : > { %23697 = vmatmul.mubr.f32.gmra.mrb[20].mxu1 %v29166_v25 }
 0x5a6   : > { %23699 = vmatprep.mubr.f32.mxu1 %v29229_v59 }
 0x5a7   : > { %23076 = vmatmul.mubr.f32.gmra.mrb[22].mxu0 %v29246_v3 }
 0x5a8   : > { %23078 = vmatprep.mubr.f32.mxu0 %v29282_v48 }
 0x5a9   : > { %23700 = vmatmul.mubr.f32.gmra.mrb[22].mxu1 %v29280_v15 }
 0x5aa   : > { %23702 = vmatprep.mubr.f32.mxu1 %v29307_v18 }
 0x5ab   : > { %23079 = vmatmul.mubr.f32.gmra.mrb[24].mxu0 %v29323_v62 }
 0x5ac   : > { %23081 = vmatprep.mubr.f32.mxu0 %v31351_v46 }
 0x5ad   : > { %23703 = vmatmul.mubr.f32.gmra.mrb[24].mxu1 %v29331_v7 }
 0x5ae   : > { %23705 = vmatprep.mubr.f32.mxu1 %v29352_v53 }
 0x5af   : > { %23082 = vmatmul.mubr.f32.gmra.mrb[26].mxu0 %v29375_v44 }
 0x5b0   : > { %23084 = vmatprep.mubr.f32.mxu0 %v31352_v31  ;;  %v31380_v31 = vand.u32 4294901760, %v31358_v58 }
 0x5b1   : > { %23706 = vmatmul.mubr.f32.gmra.mrb[26].mxu1 %v29382_v33 }
 0x5b2   : > { %23708 = vmatprep.mubr.f32.mxu1 %v29394_v39  ;;  %v31379_v39 = vand.u32 4294901760, %v31357_v5 }
 0x5b3   : > { %23085 = vmatmul.mubr.f32.gmra.mrb[28].mxu0 %v29416_v12  ;;  %v31378_v12 = vand.u32 4294901760, %v31356_v37 }
 0x5b4   : > { %23087 = vmatprep.mubr.f32.mxu0 %v31353_v10  ;;  %v31376_v10 = vld [vmem:[#allocation70_spill] sm:$0xff] }
 0x5b5   : > { %23709 = vmatmul.mubr.f32.gmra.mrb[28].mxu1 %v29432_v30  ;;  %v31377_v30 = vand.u32 4294901760, %v31355_v43 }
 0x5b6   : > { %23711 = vmatprep.mubr.f32.mxu1 %v29440_v56  ;;  %v31375_v56 = vld [vmem:[#allocation5_spill] sm:$0xff] }
 0x5b7   : > { %23088 = vmatmul.mubr.f32.gmra.mrb[30].mxu0 %v31354_v13  ;;  %v31374_v13 = vld [vmem:[#allocation45_spill] sm:$0xff] }
 0x5b8   : > { %23092 = vmatprep.mubr.f32.mxu0 %v31355_v43  ;;  %v31387_v43 = vand.u32 4294901760, %v31367_v45 }
 0x5b9   : > { %23712 = vmatmul.mubr.f32.gmra.mrb[30].mxu1 %v29467_v8  ;;  %v31373_v8 = vld [vmem:[#allocation81_spill] sm:$0xff] }
 0x5ba   : > { %23716 = vmatprep.mubr.f32.mxu1 %v31356_v37  ;;  %v31388_v37 = vand.u32 4294901760, %v31368_v2 }
 0x5bb   : > { %23093 = vmatmul.mubr.f32.vlgmr.msra.gmra.mrb[16].mxu0 %v31357_v5  ;;  %v31389_v5 = vand.u32 4294901760, %v31369_v61 }
 0x5bc   : > { %23117 = vmatpush3.msra.mxu0 %v29011_v22  ;;  %23095 = vmatprep.mubr.f32.mxu0 %v31359_v27 }
 0x5bd   : > { %23717 = vmatmul.mubr.f32.vlgmr.msra.gmra.mrb[16].mxu1 %v31358_v58  ;;  %23142 = vmatprep.subr.mxu0 %v31361_v38  ;;  %v31390_v58 = vand.u32 4294901760, %v31370_v50 }
 0x5be   : > { %23741 = vmatpush3.msra.mxu1 %v29014_v23  ;;  %23719 = vmatprep.mubr.f32.mxu1 %v31360_v20 }
 0x5bf   : > { %23096 = vmatmul.mubr.f32.gmra.mrb[18].mxu0 %v31362_v51  ;;  %23766 = vmatprep.subr.mxu1 %v31363_v1 }
 0x5c0   : > { %23098 = vmatprep.mubr.f32.mxu0 %v31365_v49 }
 0x5c1   : > { %23720 = vmatmul.mubr.f32.gmra.mrb[18].mxu1 %v31364_v24 }
 0x5c2   : > { %23722 = vmatprep.mubr.f32.mxu1 %v31366_v11 }
 0x5c3   : > { %23099 = vmatmul.mubr.f32.gmra.mrb[20].mxu0 %v31367_v45 }
 0x5c4   : > { %23101 = vmatprep.mubr.f32.mxu0 %v31369_v61 }
 0x5c5   : > { %23723 = vmatmul.mubr.f32.gmra.mrb[20].mxu1 %v31368_v2 }
 0x5c6   : > { %23725 = vmatprep.mubr.f32.mxu1 %v31370_v50  ;;  %v31397_v50 = vand.u32 4294901760, %v29373_v41 }
 0x5c7   : > { %23102 = vmatmul.mubr.f32.gmra.mrb[22].mxu0 %v31371_v14 }
 0x5c8   : > { %23104 = vmatprep.mubr.f32.mxu0 %v31373_v8 }
 0x5c9   : > { %23726 = vmatmul.mubr.f32.gmra.mrb[22].mxu1 %v31372_v0 }
 0x5ca   : > { %23728 = vmatprep.mubr.f32.mxu1 %v31374_v13 }
 0x5cb   : > { %23105 = vmatmul.mubr.f32.gmra.mrb[24].mxu0 %v29360_v6 }
 0x5cc   : > { %23107 = vmatprep.mubr.f32.mxu0 %v29373_v41  ;;  %v31404_v41 = vand.u32 4294901760, %v29465_v4 }
 0x5cd   : > { %23729 = vmatmul.mubr.f32.gmra.mrb[24].mxu1 %v29370_v63 }
 0x5ce   : > { %23731 = vmatprep.mubr.f32.mxu1 %v29392_v52 }
 0x5cf   : > { %23108 = vmatmul.mubr.f32.gmra.mrb[26].mxu0 %v29414_v57 }
 0x5d0   : > { %23110 = vmatprep.mubr.f32.mxu0 %v29430_v32 }
 0x5d1   : > { %23732 = vmatmul.mubr.f32.gmra.mrb[26].mxu1 %v29427_v17 }
 0x5d2   : > { %23734 = vmatprep.mubr.f32.mxu1 %v29438_v28 }
 0x5d3   : > { %23111 = vmatmul.mubr.f32.gmra.mrb[28].mxu0 %v29456_v54 }
 0x5d4   : > { %23113 = vmatprep.mubr.f32.mxu0 %v31375_v56  ;;  %v31381_v56 = vand.u32 4294901760, %v31359_v27  ;;  %v31391_v27 = vand.u32 4294901760, %v31371_v14  ;;  %v31398_v14 = vand.u32 4294901760, %v29392_v52  ;;  %v31405_v52 = vld [vmem:[#allocation31_spill] sm:$0xff] }
 0x5d5   : > { %23735 = vmatmul.mubr.f32.gmra.mrb[28].mxu1 %v29465_v4  ;;  %v31414_v4 = vld [vmem:[#allocation68_spill] sm:$0xff] }
 0x5d6   : > { %23737 = vmatprep.mubr.f32.mxu1 %v29474_v60 }
 0x5d7   : > { %23114 = vmatmul.mubr.f32.gmra.mrb[30].mxu0 %v31376_v10  ;;  %v31382_v10 = vand.u32 4294901760, %v31360_v20  ;;  %v31392_v20 = vand.u32 4294901760, %v31372_v0  ;;  %v31399_v0 = vand.u32 4294901760, %v29414_v57  ;;  %v31406_v57 = vand.u32 4294901760, %v29474_v60  ;;  %v31415_v60 = vld [vmem:[#allocation16_spill] sm:$0xff] }
 0x5d8   : > { %23118 = vmatprep.mubr.f32.mxu0 %v31377_v30  ;;  %v31385_v30 = vand.u32 4294901760, %v31365_v49  ;;  %v31407_v49 = vld [vmem:[#allocation13_spill] sm:$0xff] }
 0x5d9   : > { %23738 = vmatmul.mubr.f32.gmra.mrb[30].mxu1 %v29488_v19 }
 0x5da   : > { %23742 = vmatprep.mubr.f32.mxu1 %v31378_v12  ;;  %v31383_v12 = vand.u32 4294901760, %v31362_v51  ;;  %v31394_v51 = vand.u32 4294901760, %v31374_v13  ;;  %v31401_v13 = vand.u32 4294901760, %v29430_v32  ;;  %v31411_v32 = vld [vmem:[#allocation17_spill] sm:$0xff] }
 0x5db   : > { %23119 = vmatmul.mubr.f32.vlgmr.msra.gmra.mrb[16].mxu0 %v31379_v39  ;;  %v31384_v39 = vand.u32 4294901760, %v31364_v24  ;;  %v31396_v24 = vand.u32 4294901760, %v29370_v63  ;;  %v31403_v63 = vand.u32 4294901760, %v29456_v54  ;;  %v31413_v54 = vld [vmem:[#allocation66_spill] sm:$0xff] }
 0x5dc   : > { %23143 = vmatpush3.msra.mxu0 %v31361_v38  ;;  %23121 = vmatprep.mubr.f32.mxu0 %v31381_v56  ;;  %v31393_v38 = vand.u32 4294901760, %v31373_v8  ;;  %v31400_v8 = vand.u32 4294901760, %v29427_v17  ;;  %v31408_v17 = vand.u32 4294901760, %v29488_v19  ;;  %v31416_v19 = vld [vmem:[#allocation8_spill] sm:$0xff] }
 0x5dd   : > { %23743 = vmatmul.mubr.f32.vlgmr.msra.gmra.mrb[16].mxu1 %v31380_v31  ;;  %23168 = vmatprep.subr.mxu0 %v29011_v22  ;;  %v31386_v31 = vand.u32 4294901760, %v31366_v11 }
 0x5de   : > { %23767 = vmatpush3.msra.mxu1 %v31363_v1  ;;  %23745 = vmatprep.mubr.f32.mxu1 %v31382_v10  ;;  %v31395_v1 = vand.u32 4294901760, %v29360_v6  ;;  %v31402_v6 = vand.u32 4294901760, %v29438_v28  ;;  %v31412_v28 = vld [vmem:[#allocation22_spill] sm:$0xff] }
 0x5df   : > { %23122 = vmatmul.mubr.f32.gmra.mrb[18].mxu0 %v31383_v12  ;;  %23792 = vmatprep.subr.mxu1 %v29014_v23 }
 0x5e0   : > { %23124 = vmatprep.mubr.f32.mxu0 %v31385_v30 }
 0x5e1   : > { %23746 = vmatmul.mubr.f32.gmra.mrb[18].mxu1 %v31384_v39 }
 0x5e2   : > { %23748 = vmatprep.mubr.f32.mxu1 %v31386_v31 }
 0x5e3   : > { %23125 = vmatmul.mubr.f32.gmra.mrb[20].mxu0 %v31387_v43 }
 0x5e4   : > { %23127 = vmatprep.mubr.f32.mxu0 %v31389_v5 }
 0x5e5   : > { %23749 = vmatmul.mubr.f32.gmra.mrb[20].mxu1 %v31388_v37 }
 0x5e6   : > { %23751 = vmatprep.mubr.f32.mxu1 %v31390_v58 }
 0x5e7   : > { %23128 = vmatmul.mubr.f32.gmra.mrb[22].mxu0 %v31391_v27 }
 0x5e8   : > { %23130 = vmatprep.mubr.f32.mxu0 %v31393_v38 }
 0x5e9   : > { %23752 = vmatmul.mubr.f32.gmra.mrb[22].mxu1 %v31392_v20 }
 0x5ea   : > { %23754 = vmatprep.mubr.f32.mxu1 %v31394_v51 }
 0x5eb   : > { %23131 = vmatmul.mubr.f32.gmra.mrb[24].mxu0 %v31395_v1 }
 0x5ec   : > { %23133 = vmatprep.mubr.f32.mxu0 %v31397_v50 }
 0x5ed   : > { %23755 = vmatmul.mubr.f32.gmra.mrb[24].mxu1 %v31396_v24 }
 0x5ee   : > { %23757 = vmatprep.mubr.f32.mxu1 %v31398_v14 }
 0x5ef   : > { %23134 = vmatmul.mubr.f32.gmra.mrb[26].mxu0 %v31399_v0 }
 0x5f0   : > { %23136 = vmatprep.mubr.f32.mxu0 %v31401_v13 }
 0x5f1   : > { %23758 = vmatmul.mubr.f32.gmra.mrb[26].mxu1 %v31400_v8 }
 0x5f2   : > { %23760 = vmatprep.mubr.f32.mxu1 %v31402_v6 }
 0x5f3   : > { %23137 = vmatmul.mubr.f32.gmra.mrb[28].mxu0 %v31403_v63 }
 0x5f4   : > { %23139 = vmatprep.mubr.f32.mxu0 %v31405_v52 }
 0x5f5   : > { %23761 = vmatmul.mubr.f32.gmra.mrb[28].mxu1 %v31404_v41 }
 0x5f6   : > { %23763 = vmatprep.mubr.f32.mxu1 %v31406_v57 }
 0x5f7   : > { %23140 = vmatmul.mubr.f32.gmra.mrb[30].mxu0 %v31407_v49 }
 0x5f8   : > { %23144 = vmatprep.mubr.f32.mxu0 %v29078_v34 }
 0x5f9   : > { %23764 = vmatmul.mubr.f32.gmra.mrb[30].mxu1 %v31408_v17 }
 0x5fa   : > { %23768 = vmatprep.mubr.f32.mxu1 %v29084_v35 }
 0x5fb   : > { %23145 = vmatmul.mubr.f32.vlgmr.msra.gmra.mrb[16].mxu0 %v29091_v21 }
 0x5fc   : > { %23169 = vmatpush3.msra.mxu0 %v29011_v22  ;;  %23147 = vmatprep.mubr.f32.mxu0 %v29113_v26  ;;  %v31409_v22 = vld [vmem:[#allocation20_spill] sm:$0xff] }
 0x5fd   : > { %23769 = vmatmul.mubr.f32.vlgmr.msra.gmra.mrb[16].mxu1 %v29102_v36 }
 0x5fe   : > { %23793 = vmatpush3.msra.mxu1 %v29014_v23  ;;  %23771 = vmatprep.mubr.f32.mxu1 %v29122_v9  ;;  %v31410_v23 = vld [vmem:[#allocation46_spill] sm:$0xff] }
 0x5ff   : > { %23148 = vmatmul.mubr.f32.gmra.mrb[18].mxu0 %v29124_v47 }
 0x600   : > { %23150 = vmatprep.mubr.f32.mxu0 %v29146_v16 }
 0x601   : > { %23772 = vmatmul.mubr.f32.gmra.mrb[18].mxu1 %v29141_v42 }
 0x602   : > { %23774 = vmatprep.mubr.f32.mxu1 %v29148_v29 }
 0x603   : > { %23151 = vmatmul.mubr.f32.gmra.mrb[20].mxu0 %v29157_v40 }
 0x604   : > { %23153 = vmatprep.mubr.f32.mxu0 %v29175_v55 }
 0x605   : > { %23775 = vmatmul.mubr.f32.gmra.mrb[20].mxu1 %v29166_v25 }
 0x606   : > { %23777 = vmatprep.mubr.f32.mxu1 %v29229_v59 }
 0x607   : > { %23154 = vmatmul.mubr.f32.gmra.mrb[22].mxu0 %v29246_v3 }
 0x608   : > { %23156 = vmatprep.mubr.f32.mxu0 %v29282_v48 }
 0x609   : > { %23778 = vmatmul.mubr.f32.gmra.mrb[22].mxu1 %v29280_v15 }
 0x60a   : > { %23780 = vmatprep.mubr.f32.mxu1 %v29307_v18 }
 0x60b   : > { %23157 = vmatmul.mubr.f32.gmra.mrb[24].mxu0 %v29323_v62 }
 0x60c   : > { %23159 = vmatprep.mubr.f32.mxu0 %v31351_v46 }
 0x60d   : > { %23781 = vmatmul.mubr.f32.gmra.mrb[24].mxu1 %v29331_v7 }
 0x60e   : > { %23783 = vmatprep.mubr.f32.mxu1 %v29352_v53 }
 0x60f   : > { %23160 = vmatmul.mubr.f32.gmra.mrb[26].mxu0 %v29375_v44 }
 0x610   : > { %23162 = vmatprep.mubr.f32.mxu0 %v31409_v22 }
 0x611   : > { %23784 = vmatmul.mubr.f32.gmra.mrb[26].mxu1 %v29382_v33 }
 0x612   : > { %23786 = vmatprep.mubr.f32.mxu1 %v31410_v23 }
 0x613   : > { %23163 = vmatmul.mubr.f32.gmra.mrb[28].mxu0 %v31411_v32 }
 0x614   : > { %23165 = vmatprep.mubr.f32.mxu0 %v31413_v54 }
 0x615   : > { %23787 = vmatmul.mubr.f32.gmra.mrb[28].mxu1 %v31412_v28 }
 0x616   : > { %23789 = vmatprep.mubr.f32.mxu1 %v31414_v4 }
 0x617   : > { %23166 = vmatmul.mubr.f32.gmra.mrb[30].mxu0 %v31415_v60 }
 0x618   : > { %23170 = vmatprep.mubr.f32.mxu0 %v29078_v34 }
 0x619   : > { %23790 = vmatmul.mubr.f32.gmra.mrb[30].mxu1 %v31416_v19 }
 0x61a   : > { %23794 = vmatprep.mubr.f32.mxu1 %v29084_v35 }
 0x61b   : > { %23171 = vmatmul.mubr.f32.vlgmr.msra.gmra.mrb[16].mxu0 %v29091_v21 }
 0x61c   : > { %23173 = vmatprep.mubr.f32.mxu0 %v29113_v26 }
 0x61d   : > { %23795 = vmatmul.mubr.f32.vlgmr.msra.gmra.mrb[16].mxu1 %v29102_v36 }
 0x61e   : > { %23797 = vmatprep.mubr.f32.mxu1 %v29122_v9 }
 0x61f   : > { %23174 = vmatmul.mubr.f32.gmra.mrb[18].mxu0 %v29124_v47 }
 0x620   : > { %23176 = vmatprep.mubr.f32.mxu0 %v29146_v16 }
 0x621   : > { %23798 = vmatmul.mubr.f32.gmra.mrb[18].mxu1 %v29141_v42 }
 0x622   : > { %23800 = vmatprep.mubr.f32.mxu1 %v29148_v29 }
 0x623   : > { %23177 = vmatmul.mubr.f32.gmra.mrb[20].mxu0 %v29157_v40 }
 0x624   : > { %23179 = vmatprep.mubr.f32.mxu0 %v29175_v55 }
 0x625   : > { %23801 = vmatmul.mubr.f32.gmra.mrb[20].mxu1 %v29166_v25 }
 0x626   : > { %23803 = vmatprep.mubr.f32.mxu1 %v29229_v59  ;;  %v29716_v59 = vld [vmem:[%s29974_s2] ss:$0 sm:$0xff] }
 0x627   : > { %23180 = vmatmul.mubr.f32.gmra.mrb[22].mxu0 %v29246_v3 }
 0x628   : > { %23182 = vmatprep.mubr.f32.mxu0 %v29282_v48 }
 0x629   : > { %23804 = vmatmul.mubr.f32.gmra.mrb[22].mxu1 %v29280_v15 }
 0x62a   : > { %23806 = vmatprep.mubr.f32.mxu1 %v29307_v18 }
 0x62b   : > { %23183 = vmatmul.mubr.f32.gmra.mrb[24].mxu0 %v29323_v62 }
 0x62c   : > { %23185 = vmatprep.mubr.f32.mxu0 %v31351_v46 }
 0x62d   : > { %23807 = vmatmul.mubr.f32.gmra.mrb[24].mxu1 %v29331_v7 }
 0x62e   : > { %23809 = vmatprep.mubr.f32.mxu1 %v29352_v53 }
 0x62f   : > { %23186 = vmatmul.mubr.f32.gmra.mrb[26].mxu0 %v29375_v44 }
 0x630   : > { %23188 = vmatprep.mubr.f32.mxu0 %v31409_v22 }
 0x631   : > { %23810 = vmatmul.mubr.f32.gmra.mrb[26].mxu1 %v29382_v33 }
 0x632   : > { %23812 = vmatprep.mubr.f32.mxu1 %v31410_v23 }
 0x633   : > { %23189 = vmatmul.mubr.f32.gmra.mrb[28].mxu0 %v31411_v32 }
 0x634   : > { %23191 = vmatprep.mubr.f32.mxu0 %v31413_v54 }
 0x635   : > { %23813 = vmatmul.mubr.f32.gmra.mrb[28].mxu1 %v31412_v28 }
 0x636   : > { %23815 = vmatprep.mubr.f32.mxu1 %v31414_v4 }
 0x637   : > { %23192 = vmatmul.mubr.f32.gmra.mrb[30].mxu0 %v31415_v60 }
 0x639   : > { %23816 = vmatmul.mubr.f32.gmra.mrb[30].mxu1 %v31416_v19 }
 0x6ee   : > { %v23172_v7 = vpop.f32.mrb[16].mxu0 }
 0x6ef   : > { %v14282_v34 = vadd.f32 %v29716_v59, %v23172_v7  ;;  %v14171_v21 = vpop.f32.mrb[17].mxu0 }
 0x6f0   : > { %v23796_v35 = vpop.f32.mrb[16].mxu1  ;;  %v14281_v26 = vadd.f32 %v29716_v59, %v14171_v21  ;;  %v19180_v21 = vld [vmem:[%s28249_s4 + $0x18] sm:$0xff] (%p25470_p5) }
 0x6f1   : > { %v18975_v36 = vadd.f32 %v29716_v59, %v23796_v35  ;;  %v18864_v9 = vpop.f32.mrb[17].mxu1  ;;  %19583 = vst.msk [vmem:[%s28249_s4 + $0x108] sm:$0xff] %vm259_vm0, %v14282_v34  ;;  %v19176_v34 = vld [vmem:[%s28249_s4 + $0x8] sm:$0xff] (%p25470_p5)  ;;  %v19178_v35 = vld [vmem:[%s28249_s4 + $0x10] sm:$0xff] (%p25470_p5)  ;;  %19181 = vst [vmem:[%s29830_s30 + $0x18] sm:$0xff] (%p25470_p5), %v19180_v21 }
 0x6f2   : > { %v18974_v47 = vadd.f32 %v29716_v59, %v18864_v9  ;;  %19582 = vst.msk [vmem:[%s28249_s4 + $0x100] sm:$0xff] %vm259_vm0, %v14281_v26  ;;  %v23175_v18 = vpop.f32.mrb[18].mxu0  ;;  %v19184_v26 = vld [vmem:[%s28249_s4 + $0x28] sm:$0xff] (%p25470_p5)  ;;  %v19186_v9 = vld [vmem:[%s28249_s4 + $0x30] sm:$0xff] (%p25470_p5)  ;;  %19177 = vst [vmem:[%s29830_s30 + $0x8] sm:$0xff] (%p25470_p5), %v19176_v34 }
 0x6f3   : > { %19667 = vst.msk [vmem:[%s28249_s4 + $0x188] sm:$0xff] %vm259_vm0, %v18975_v36  ;;  %v14284_v42 = vadd.f32 %v29716_v59, %v23175_v18  ;;  %v14183_v16 = vpop.f32.mrb[19].mxu0  ;;  %v19182_v36 = vld [vmem:[%s28249_s4 + $0x20] sm:$0xff] (%p25470_p5)  ;;  %19179 = vst [vmem:[%s29830_s30 + $0x10] sm:$0xff] (%p25470_p5), %v19178_v35 }
 0x6f4   : > { %19666 = vst.msk [vmem:[%s28249_s4 + $0x180] sm:$0xff] %vm259_vm0, %v18974_v47  ;;  %v23799_v25 = vpop.f32.mrb[18].mxu1  ;;  %v14283_v15 = vadd.f32 %v29716_v59, %v14183_v16  ;;  %v19188_v47 = vld [vmem:[%s28249_s4 + $0x38] sm:$0xff] (%p25470_p5)  ;;  %v19190_v18 = vld [vmem:[%s28249_s4 + $0x40] sm:$0xff] (%p25470_p5)  ;;  %19183 = vst [vmem:[%s29830_s30 + $0x20] sm:$0xff] (%p25470_p5), %v19182_v36 }
 0x6f5   : > { %v18977_v29 = vadd.f32 %v29716_v59, %v23799_v25  ;;  %v18876_v40 = vpop.f32.mrb[19].mxu1  ;;  %19585 = vst.msk [vmem:[%s28249_s4 + $0x118] sm:$0xff] %vm259_vm0, %v14284_v42  ;;  %v19192_v42 = vld [vmem:[%s28249_s4 + $0x48] sm:$0xff] (%p25470_p5)  ;;  %v19194_v25 = vld [vmem:[%s28249_s4 + $0x50] sm:$0xff] (%p25470_p5)  ;;  %v19196_v16 = vld [vmem:[%s28249_s4 + $0x58] sm:$0xff] (%p25470_p5) }
 0x6f6   : > { %v18976_v55 = vadd.f32 %v29716_v59, %v18876_v40  ;;  %19584 = vst.msk [vmem:[%s28249_s4 + $0x110] sm:$0xff] %vm259_vm0, %v14283_v15  ;;  %v23178_v3 = vpop.f32.mrb[20].mxu0  ;;  %19185 = vst [vmem:[%s29830_s30 + $0x28] sm:$0xff] (%p25470_p5), %v19184_v26  ;;  %v19200_v15 = vld [vmem:[%s28249_s4 + $0x68] sm:$0xff] (%p25470_p5)  ;;  %v19202_v40 = vld [vmem:[%s28249_s4 + $0x70] sm:$0xff] (%p25470_p5) }
 0x6f7   : > { %19669 = vst.msk [vmem:[%s28249_s4 + $0x198] sm:$0xff] %vm259_vm0, %v18977_v29  ;;  %v14286_v48 = vadd.f32 %v29716_v59, %v23178_v3  ;;  %v14195_v53 = vpop.f32.mrb[21].mxu0  ;;  %19187 = vst [vmem:[%s29830_s30 + $0x30] sm:$0xff] (%p25470_p5), %v19186_v9  ;;  %v19198_v29 = vld [vmem:[%s28249_s4 + $0x60] sm:$0xff] (%p25470_p5) }
 0x6f8   : > { %19668 = vst.msk [vmem:[%s28249_s4 + $0x190] sm:$0xff] %vm259_vm0, %v18976_v55  ;;  %v23802_v62 = vpop.f32.mrb[20].mxu1  ;;  %v14285_v33 = vadd.f32 %v29716_v59, %v14195_v53  ;;  %19189 = vst [vmem:[%s29830_s30 + $0x38] sm:$0xff] (%p25470_p5), %v19188_v47  ;;  %v19204_v55 = vld [vmem:[%s28249_s4 + $0x78] sm:$0xff] (%p25470_p5)  ;;  %v19206_v3 = vld [vmem:[%s28249_s4 + $0x80] sm:$0xff] (%p25470_p5) }
 0x6f9   : > { %v18979_v44 = vadd.f32 %v29716_v59, %v23802_v62  ;;  %v18888_v46 = vpop.f32.mrb[21].mxu1  ;;  %19587 = vst.msk [vmem:[%s28249_s4 + $0x128] sm:$0xff] %vm259_vm0, %v14286_v48  ;;  %19191 = vst [vmem:[%s29830_s30 + $0x40] sm:$0xff] (%p25470_p5), %v19190_v18  ;;  %v19208_v48 = vld [vmem:[%s28249_s4 + $0x88] sm:$0xff] (%p25470_p5)  ;;  %v19210_v62 = vld [vmem:[%s28249_s4 + $0x90] sm:$0xff] (%p25470_p5) }
 0x6fa   : > { %v18978_v11 = vadd.f32 %v29716_v59, %v18888_v46  ;;  %19586 = vst.msk [vmem:[%s28249_s4 + $0x120] sm:$0xff] %vm259_vm0, %v14285_v33  ;;  %v23181_v45 = vpop.f32.mrb[22].mxu0  ;;  %19193 = vst [vmem:[%s29830_s30 + $0x48] sm:$0xff] (%p25470_p5), %v19192_v42  ;;  %v19212_v53 = vld [vmem:[%s28249_s4 + $0x98] sm:$0xff] (%p25470_p5)  ;;  %v19216_v33 = vld [vmem:[%s28249_s4 + $0xa8] sm:$0xff] (%p25470_p5) }
 0x6fb   : > { %19671 = vst.msk [vmem:[%s28249_s4 + $0x1a8] sm:$0xff] %vm259_vm0, %v18979_v44  ;;  %v14288_v2 = vadd.f32 %v29716_v59, %v23181_v45  ;;  %v14207_v56 = vpop.f32.mrb[23].mxu0  ;;  %19195 = vst [vmem:[%s29830_s30 + $0x50] sm:$0xff] (%p25470_p5), %v19194_v25  ;;  %v19214_v44 = vld [vmem:[%s28249_s4 + $0xa0] sm:$0xff] (%p25470_p5)  ;;  %v19218_v46 = vld [vmem:[%s28249_s4 + $0xb0] sm:$0xff] (%p25470_p5) }
 0x6fc   : > { %19670 = vst.msk [vmem:[%s28249_s4 + $0x1a0] sm:$0xff] %vm259_vm0, %v18978_v11  ;;  %v23805_v61 = vpop.f32.mrb[22].mxu1  ;;  %v14287_v12 = vadd.f32 %v29716_v59, %v14207_v56  ;;  %19197 = vst [vmem:[%s29830_s30 + $0x58] sm:$0xff] (%p25470_p5), %v19196_v16  ;;  %v19220_v11 = vld [vmem:[%s28249_s4 + $0xb8] sm:$0xff] (%p25470_p5)  ;;  %v19222_v45 = vld [vmem:[%s28249_s4 + $0xc0] sm:$0xff] (%p25470_p5) }
 0x6fd   : > { %v18981_v10 = vadd.f32 %v29716_v59, %v23805_v61  ;;  %v18900_v39 = vpop.f32.mrb[23].mxu1  ;;  %19589 = vst.msk [vmem:[%s28249_s4 + $0x138] sm:$0xff] %vm259_vm0, %v14288_v2  ;;  %19199 = vst [vmem:[%s29830_s30 + $0x60] sm:$0xff] (%p25470_p5), %v19198_v29  ;;  %v19224_v2 = vld [vmem:[%s28249_s4 + $0xc8] sm:$0xff] (%p25470_p5)  ;;  %v19226_v61 = vld [vmem:[%s28249_s4 + $0xd0] sm:$0xff] (%p25470_p5) }
 0x6fe   : > { %v18980_v30 = vadd.f32 %v29716_v59, %v18900_v39  ;;  %19588 = vst.msk [vmem:[%s28249_s4 + $0x130] sm:$0xff] %vm259_vm0, %v14287_v12  ;;  %v23184_v31 = vpop.f32.mrb[24].mxu0  ;;  %19201 = vst [vmem:[%s29830_s30 + $0x68] sm:$0xff] (%p25470_p5), %v19200_v15  ;;  %v19228_v56 = vld [vmem:[%s28249_s4 + $0xd8] sm:$0xff] (%p25470_p5)  ;;  %v19232_v12 = vld [vmem:[%s28249_s4 + $0xe8] sm:$0xff] (%p25470_p5) }
 0x6ff   : > { %19673 = vst.msk [vmem:[%s28249_s4 + $0x1b8] sm:$0xff] %vm259_vm0, %v18981_v10  ;;  %v14290_v43 = vadd.f32 %v29716_v59, %v23184_v31  ;;  %v14219_v5 = vpop.f32.mrb[25].mxu0  ;;  %19203 = vst [vmem:[%s29830_s30 + $0x70] sm:$0xff] (%p25470_p5), %v19202_v40  ;;  %v19230_v10 = vld [vmem:[%s28249_s4 + $0xe0] sm:$0xff] (%p25470_p5)  ;;  %v19234_v39 = vld [vmem:[%s28249_s4 + $0xf0] sm:$0xff] (%p25470_p5) }
 0x700   : > { %19672 = vst.msk [vmem:[%s28249_s4 + $0x1b0] sm:$0xff] %vm259_vm0, %v18980_v30  ;;  %v23808_v37 = vpop.f32.mrb[24].mxu1  ;;  %v14289_v27 = vadd.f32 %v29716_v59, %v14219_v5  ;;  %19205 = vst [vmem:[%s29830_s30 + $0x78] sm:$0xff] (%p25470_p5), %v19204_v55  ;;  %v19236_v30 = vld [vmem:[%s28249_s4 + $0xf8] sm:$0xff] (%p25470_p5)  ;;  %v19238_v31 = vld [vmem:[%s28249_s4 + $0x100] sm:$0xff] (%p25470_p5) }
 0x701   : > { %v18983_v58 = vadd.f32 %v29716_v59, %v23808_v37  ;;  %v18912_v20 = vpop.f32.mrb[25].mxu1  ;;  %19591 = vst.msk [vmem:[%s28249_s4 + $0x148] sm:$0xff] %vm259_vm0, %v14290_v43  ;;  %19207 = vst [vmem:[%s29830_s30 + $0x100] sm:$0xff] (%p25470_p5), %v19206_v3  ;;  %v19240_v43 = vld [vmem:[%s28249_s4 + $0x108] sm:$0xff] (%p25470_p5)  ;;  %v19242_v37 = vld [vmem:[%s28249_s4 + $0x110] sm:$0xff] (%p25470_p5) }
 0x702   : > { %v18982_v38 = vadd.f32 %v29716_v59, %v18912_v20  ;;  %19590 = vst.msk [vmem:[%s28249_s4 + $0x140] sm:$0xff] %vm259_vm0, %v14289_v27  ;;  %v23187_v51 = vpop.f32.mrb[26].mxu0  ;;  %19209 = vst [vmem:[%s29830_s30 + $0x108] sm:$0xff] (%p25470_p5), %v19208_v48  ;;  %v19244_v5 = vld [vmem:[%s28249_s4 + $0x118] sm:$0xff] (%p25470_p5)  ;;  %v19248_v27 = vld [vmem:[%s28249_s4 + $0x128] sm:$0xff] (%p25470_p5) }
 0x703   : > { %19675 = vst.msk [vmem:[%s28249_s4 + $0x1c8] sm:$0xff] %vm259_vm0, %v18983_v58  ;;  %v14292_v1 = vadd.f32 %v29716_v59, %v23187_v51  ;;  %v14231_v50 = vpop.f32.mrb[27].mxu0  ;;  %19211 = vst [vmem:[%s29830_s30 + $0x110] sm:$0xff] (%p25470_p5), %v19210_v62  ;;  %v19246_v58 = vld [vmem:[%s28249_s4 + $0x120] sm:$0xff] (%p25470_p5) }
 0x704   : > { %19674 = vst.msk [vmem:[%s28249_s4 + $0x1c0] sm:$0xff] %vm259_vm0, %v18982_v38  ;;  %v23811_v24 = vpop.f32.mrb[26].mxu1  ;;  %v14291_v0 = vadd.f32 %v29716_v59, %v14231_v50  ;;  %19213 = vst [vmem:[%s29830_s30 + $0x118] sm:$0xff] (%p25470_p5), %v19212_v53  ;;  %v19252_v38 = vld [vmem:[%s28249_s4 + $0x138] sm:$0xff] (%p25470_p5) }
 0x705   : > { %v18985_v14 = vadd.f32 %v29716_v59, %v23811_v24  ;;  %v18924_v8 = vpop.f32.mrb[27].mxu1  ;;  %19593 = vst.msk [vmem:[%s28249_s4 + $0x158] sm:$0xff] %vm259_vm0, %v14292_v1  ;;  %19215 = vst [vmem:[%s29830_s30 + $0x120] sm:$0xff] (%p25470_p5), %v19214_v44  ;;  %v19250_v20 = vld [vmem:[%s28249_s4 + $0x130] sm:$0xff] (%p25470_p5) }
 0x706   : > { %v18984_v13 = vadd.f32 %v29716_v59, %v18924_v8  ;;  %19592 = vst.msk [vmem:[%s28249_s4 + $0x150] sm:$0xff] %vm259_vm0, %v14291_v0  ;;  %v23190_v6 = vpop.f32.mrb[28].mxu0  ;;  %19217 = vst [vmem:[%s29830_s30 + $0x128] sm:$0xff] (%p25470_p5), %v19216_v33 }
 0x707   : > { %19677 = vst.msk [vmem:[%s28249_s4 + $0x1d8] sm:$0xff] %vm259_vm0, %v18985_v14  ;;  %v14294_v63 = vadd.f32 %v29716_v59, %v23190_v6  ;;  %v14243_v52 = vpop.f32.mrb[29].mxu0  ;;  %19219 = vst [vmem:[%s29830_s30 + $0x130] sm:$0xff] (%p25470_p5), %v19218_v46  ;;  %v19270_v6 = vld [vmem:[%s28249_s4 + $0x180] sm:$0xff] (%p25470_p5) }
 0x708   : > { %19676 = vst.msk [vmem:[%s28249_s4 + $0x1d0] sm:$0xff] %vm259_vm0, %v18984_v13  ;;  %v23814_v41 = vpop.f32.mrb[28].mxu1  ;;  %v14293_v49 = vadd.f32 %v29716_v59, %v14243_v52  ;;  %19221 = vst [vmem:[%s29830_s30 + $0x138] sm:$0xff] (%p25470_p5), %v19220_v11  ;;  %v19256_v1 = vld [vmem:[%s28249_s4 + $0x148] sm:$0xff] (%p25470_p5)  ;;  %v19276_v52 = vld [vmem:[%s28249_s4 + $0x198] sm:$0xff] (%p25470_p5) }
 0x709   : > { %v18987_v57 = vadd.f32 %v29716_v59, %v23814_v41  ;;  %v18936_v17 = vpop.f32.mrb[29].mxu1  ;;  %19595 = vst.msk [vmem:[%s28249_s4 + $0x168] sm:$0xff] %vm259_vm0, %v14294_v63  ;;  %19223 = vst [vmem:[%s29830_s30 + $0x140] sm:$0xff] (%p25470_p5), %v19222_v45  ;;  %v19254_v51 = vld [vmem:[%s28249_s4 + $0x140] sm:$0xff] (%p25470_p5)  ;;  %v19272_v63 = vld [vmem:[%s28249_s4 + $0x188] sm:$0xff] (%p25470_p5) }
 0x70a   : > { %v18986_v22 = vadd.f32 %v29716_v59, %v18936_v17  ;;  %19594 = vst.msk [vmem:[%s28249_s4 + $0x160] sm:$0xff] %vm259_vm0, %v14293_v49  ;;  %v23193_v23 = vpop.f32.mrb[30].mxu0  ;;  %19013 = sbr.rel (!%p25470_p5) target bundleno = 1826 (0x722), region = 36  ;;  %19225 = vst [vmem:[%s29830_s30 + $0x148] sm:$0xff] (%p25470_p5), %v19224_v2  ;;  %v19274_v41 = vld [vmem:[%s28249_s4 + $0x190] sm:$0xff] (%p25470_p5)  ;;  %v19280_v49 = vld [vmem:[%s28249_s4 + $0x1a8] sm:$0xff] (%p25470_p5) }
 0x70b   : > { %19679 = vst.msk [vmem:[%s28249_s4 + $0x1e8] sm:$0xff] %vm259_vm0, %v18987_v57  ;;  %v14296_v32 = vadd.f32 %v29716_v59, %v23193_v23  ;;  %v14255_v54 = vpop.f32.mrb[31].mxu0  ;;  %19227 = vst [vmem:[%s29830_s30 + $0x150] sm:$0xff] (%p25470_p5), %v19226_v61  ;;  %v19278_v57 = vld [vmem:[%s28249_s4 + $0x1a0] sm:$0xff] (%p25470_p5)  ;;  %v19282_v17 = vld [vmem:[%s28249_s4 + $0x1b0] sm:$0xff] (%p25470_p5) }
 0x70c   : > { %19678 = vst.msk [vmem:[%s28249_s4 + $0x1e0] sm:$0xff] %vm259_vm0, %v18986_v22  ;;  %v23817_v28 = vpop.f32.mrb[30].mxu1  ;;  %v14295_v60 = vadd.f32 %v29716_v59, %v14255_v54  ;;  %19229 = vst [vmem:[%s29830_s30 + $0x158] sm:$0xff] (%p25470_p5), %v19228_v56  ;;  %v19260_v50 = vld [vmem:[%s28249_s4 + $0x158] sm:$0xff] (%p25470_p5)  ;;  %v19286_v23 = vld [vmem:[%s28249_s4 + $0x1c0] sm:$0xff] (%p25470_p5) }
 0x70d   : > { %v18989_v4 = vadd.f32 %v29716_v59, %v23817_v28  ;;  %v18948_v19 = vpop.f32.mrb[31].mxu1  ;;  %19597 = vst.msk [vmem:[%s28249_s4 + $0x178] sm:$0xff] %vm259_vm0, %v14296_v32  ;;  %19231 = vst [vmem:[%s29830_s30 + $0x160] sm:$0xff] (%p25470_p5), %v19230_v10  ;;  %v19258_v24 = vld [vmem:[%s28249_s4 + $0x150] sm:$0xff] (%p25470_p5)  ;;  %v19284_v22 = vld [vmem:[%s28249_s4 + $0x1b8] sm:$0xff] (%p25470_p5) }
 0x70e   : > { %v18988_v7 = vadd.f32 %v29716_v59, %v18948_v19  ;;  %19596 = vst.msk [vmem:[%s28249_s4 + $0x170] sm:$0xff] %vm259_vm0, %v14295_v60  ;;  %v19174_v59 = vld [vmem:[%s28249_s4] sm:$0xff] (%p25470_p5)  ;;  %19233 = vst [vmem:[%s29830_s30 + $0x168] sm:$0xff] (%p25470_p5), %v19232_v12  ;;  %v19288_v32 = vld [vmem:[%s28249_s4 + $0x1c8] sm:$0xff] (%p25470_p5) }
 0x70f   : > { %19681 = vst.msk [vmem:[%s28249_s4 + $0x1f8] sm:$0xff] %vm259_vm0, %v18989_v4  ;;  %19175 = vst [vmem:[%s29830_s30] sm:$0xff] (%p25470_p5), %v19174_v59  ;;  %v19290_v28 = vld [vmem:[%s28249_s4 + $0x1d0] sm:$0xff] (%p25470_p5)  ;;  %v19292_v54 = vld [vmem:[%s28249_s4 + $0x1d8] sm:$0xff] (%p25470_p5) }
 0x710   : > { %19680 = vst.msk [vmem:[%s28249_s4 + $0x1f0] sm:$0xff] %vm259_vm0, %v18988_v7  ;;  %19235 = vst [vmem:[%s29830_s30 + $0x170] sm:$0xff] (%p25470_p5), %v19234_v39  ;;  %v19264_v0 = vld [vmem:[%s28249_s4 + $0x168] sm:$0xff] (%p25470_p5) }
 0x711   : > { %19237 = vst [vmem:[%s29830_s30 + $0x178] sm:$0xff] %v19236_v30  ;;  %19239 = vst [vmem:[%s29830_s30 + $0x200] sm:$0xff] %v19238_v31  ;;  %v19262_v14 = vld [vmem:[%s28249_s4 + $0x160] sm:$0xff] }
 0x712   : > { %19241 = vst [vmem:[%s29830_s30 + $0x208] sm:$0xff] %v19240_v43  ;;  %19243 = vst [vmem:[%s29830_s30 + $0x210] sm:$0xff] %v19242_v37  ;;  %v19296_v60 = vld [vmem:[%s28249_s4 + $0x1e8] sm:$0xff] }
 0x713   : > { %19245 = vst [vmem:[%s29830_s30 + $0x218] sm:$0xff] %v19244_v5  ;;  %19247 = vst [vmem:[%s29830_s30 + $0x220] sm:$0xff] %v19246_v58  ;;  %v19294_v4 = vld [vmem:[%s28249_s4 + $0x1e0] sm:$0xff] }
 0x714   : > { %19249 = vst [vmem:[%s29830_s30 + $0x228] sm:$0xff] %v19248_v27  ;;  %19251 = vst [vmem:[%s29830_s30 + $0x230] sm:$0xff] %v19250_v20  ;;  %v19268_v13 = vld [vmem:[%s28249_s4 + $0x178] sm:$0xff] }
 0x715   : > { %19253 = vst [vmem:[%s29830_s30 + $0x238] sm:$0xff] %v19252_v38  ;;  %19255 = vst [vmem:[%s29830_s30 + $0x240] sm:$0xff] %v19254_v51  ;;  %v19266_v8 = vld [vmem:[%s28249_s4 + $0x170] sm:$0xff] }
 0x716   : > { %19257 = vst [vmem:[%s29830_s30 + $0x248] sm:$0xff] %v19256_v1  ;;  %19259 = vst [vmem:[%s29830_s30 + $0x250] sm:$0xff] %v19258_v24  ;;  %v19300_v7 = vld [vmem:[%s28249_s4 + $0x1f8] sm:$0xff] }
 0x717   : > { %19261 = vst [vmem:[%s29830_s30 + $0x258] sm:$0xff] %v19260_v50  ;;  %19263 = vst [vmem:[%s29830_s30 + $0x260] sm:$0xff] %v19262_v14  ;;  %v19298_v19 = vld [vmem:[%s28249_s4 + $0x1f0] sm:$0xff] }
 0x718   : > { %19265 = vst [vmem:[%s29830_s30 + $0x268] sm:$0xff] %v19264_v0  ;;  %19267 = vst [vmem:[%s29830_s30 + $0x270] sm:$0xff] %v19266_v8 }
 0x719   : > { %19269 = vst [vmem:[%s29830_s30 + $0x278] sm:$0xff] %v19268_v13  ;;  %19271 = vst [vmem:[%s29830_s30 + $0x300] sm:$0xff] %v19270_v6 }
 0x71a   : > { %19273 = vst [vmem:[%s29830_s30 + $0x308] sm:$0xff] %v19272_v63  ;;  %19275 = vst [vmem:[%s29830_s30 + $0x310] sm:$0xff] %v19274_v41 }
 0x71b   : > { %19277 = vst [vmem:[%s29830_s30 + $0x318] sm:$0xff] %v19276_v52  ;;  %19279 = vst [vmem:[%s29830_s30 + $0x320] sm:$0xff] %v19278_v57 }
 0x71c   : > { %19281 = vst [vmem:[%s29830_s30 + $0x328] sm:$0xff] %v19280_v49  ;;  %19283 = vst [vmem:[%s29830_s30 + $0x330] sm:$0xff] %v19282_v17 }
 0x71d   : > { %19285 = vst [vmem:[%s29830_s30 + $0x338] sm:$0xff] %v19284_v22  ;;  %19287 = vst [vmem:[%s29830_s30 + $0x340] sm:$0xff] %v19286_v23 }
 0x71e   : > { %19289 = vst [vmem:[%s29830_s30 + $0x348] sm:$0xff] %v19288_v32  ;;  %19291 = vst [vmem:[%s29830_s30 + $0x350] sm:$0xff] %v19290_v28 }
 0x71f   : > { %19293 = vst [vmem:[%s29830_s30 + $0x358] sm:$0xff] %v19292_v54  ;;  %19295 = vst [vmem:[%s29830_s30 + $0x360] sm:$0xff] %v19294_v4 }
 0x720   : > { %19297 = vst [vmem:[%s29830_s30 + $0x368] sm:$0xff] %v19296_v60  ;;  %19299 = vst [vmem:[%s29830_s30 + $0x370] sm:$0xff] %v19298_v19 }
 0x721   : > { %19301 = vst [vmem:[%s29830_s30 + $0x378] sm:$0xff] %v19300_v7 }
 0x722 PF: > { %s13_s18 = sadd.s32 1, %s25402_s18   ;;  %s31417_s12 = smov %s25382_s13 }
 0x723   : > { %p10_p10 = scmp.ge.s32.totalorder %s13_s18, 6   ;;  %s31418_s13 = smov %s25481_s27 }
 0x724   : > { %s31419_s14 = smov %s25394_s16  ;;  %s31420_s15 = smov %s25398_s17 }
 0x725   : > { %s31421_s16 = smov %s31424_s19  ;;  %s31422_s17 = smov %s31428_s20 }
 0x726   :  { %12 = sbr.rel (!%p10_p10) target bundleno = 4 (0x4), region = 127 }

</bundles_post_ra>
